<compile_context>
chip_gen: v5e
topology: v5e:2x2
jax: 0.10.0
libtpu: 0.0.40
codegen_flags: <defaults>
</compile_context>

<pallas_src>
import functools

import jax
import jax.numpy as jnp
from jax.experimental import pallas as pl
from jax.experimental.pallas import tpu as pltpu

LANE = 128     # vreg lane count  -> channel padding
SUB = 8        # vreg sublane count -> width padding
_EPS = 1e-5    # nn.BatchNorm2d default eps


def _round_up(x, m):
    return (x + m - 1) // m * m


def _vmem_limit_bytes():
    """Scoped-VMEM budget from the actual chip (128 MiB v5e/v6e, 64 MiB v7x)."""
    try:
        cap = getattr(pltpu.get_tpu_info(), "vmem_capacity_bytes", None)
        if cap:
            return int(min(cap * 3 // 4, 100 * 1024 * 1024))
    except Exception:
        pass
    return 64 * 1024 * 1024


# ----------------------------------------------------------------------------
# Fused kernel: conv1(3x3,s)+BN1+ReLU -> conv2(3x3,1)+BN2 (+shortcut) -> ReLU
# ----------------------------------------------------------------------------
def _make_resblk_kernel(*, stride, th, ho, wo, wo_p, wo_h, identity_shortcut):
    """One grid step computes `th` output rows for one batch element.

    conv1 is evaluated for th+2 rows (conv2's 1-row halo) over the padded
    width `wo_h`, masked to zero outside the valid image, and kept in a VMEM
    scratch -- it never touches HBM.

    refs (in order):
      x_ref   (1, s*s, HP, WP, cin_p)  bf16  phase-decomposed padded input
      w1_ref  (9, cin_p, cout_p)       bf16  conv1 weight, BN1 scale folded
      b1_ref  (1, cout_p)              f32   conv1+BN1 folded bias
      w2_ref  (9, cout_p, cout_p)      bf16  conv2 weight, BN2 scale folded
      b2_ref  (1, cout_p)              f32   conv2+BN2 (+shortcut BN) bias
      [wsc_ref (cin_p, cout_p)         bf16  folded 1x1 projection shortcut]
      o_ref   (1, th, wo_p, cout_p)
      h_ref   (th+2, wo_h, cout_p)     bf16  VMEM scratch for conv1 output
    """
    kh = kw = 3
    th1 = th + 2
    off_sc = 1 // stride + 1                     # offset of the x[j*s, c*s] gather
    p_sc = (1 % stride) * stride + (1 % stride)  # phase holding that gather

    def kernel(x_ref, w1_ref, b1_ref, w2_ref, b2_ref, *rest):
        if identity_shortcut:
            o_ref, h_ref = rest
        else:
            wsc_ref, o_ref, h_ref = rest

        cin_p = x_ref.shape[-1]
        cout_p = o_ref.shape[-1]
        row0 = pl.program_id(1) * th             # first output row of this tile

        # ---- conv1 + BN1 + ReLU (implicit im2col, 9 MXU taps) --------------
        acc1 = jnp.zeros((th1 * wo_h, cout_p), jnp.float32)
        for dh in range(kh):                     # static, unrolled
            for dw in range(kw):
                p = (dh % stride) * stride + (dw % stride)
                patch = x_ref[0, p, pl.ds(row0 + dh // stride, th1),
                              pl.ds(dw // stride, wo_h), :]
                acc1 = acc1 + jnp.dot(patch.reshape(th1 * wo_h, cin_p),
                                      w1_ref[dh * kw + dw],
                                      preferred_element_type=jnp.float32)
        hval = jnp.maximum(acc1 + b1_ref[...], 0.0)        # (th1*wo_h, cout_p)

        # Zero everything outside the valid conv1 output: those entries are
        # conv2's zero padding (and the ho..ho_pad rows, which would otherwise
        # hold relu(bias)). Row predicate is a scalar per static local row.
        col_ids = jax.lax.broadcasted_iota(jnp.int32, (wo_h, cout_p), 0)
        col_ok = (col_ids >= 1) & (col_ids <= wo)
        for t in range(th1):
            g = row0 - 1 + t                               # global conv1 row
            keep = col_ok & (g >= 0) & (g < ho)
            h_ref[t] = jnp.where(keep, hval[t * wo_h:(t + 1) * wo_h, :],
                                 0.0).astype(h_ref.dtype)

        # ---- conv2 + BN2 + shortcut + ReLU ----------------------------------
        acc2 = jnp.zeros((th * wo_p, cout_p), jnp.float32)
        for dh in range(kh):
            for dw in range(kw):
                patch = h_ref[pl.ds(dh, th), pl.ds(dw, wo_p), :]
                acc2 = acc2 + jnp.dot(patch.reshape(th * wo_p, cout_p),
                                      w2_ref[dh * kw + dw],
                                      preferred_element_type=jnp.float32)

        # Shortcut input x[j*s, c*s] is read from the resident phase image.
        sc = x_ref[0, p_sc, pl.ds(row0 + off_sc, th),
                   pl.ds(off_sc, wo_p), :].reshape(th * wo_p, cin_p)
        if identity_shortcut:
            acc2 = acc2 + sc.astype(jnp.float32)           # no eye-matmul
        else:
            acc2 = acc2 + jnp.dot(sc, wsc_ref[...],
                                  preferred_element_type=jnp.float32)

        out = jnp.maximum(acc2 + b2_ref[...], 0.0)
        o_ref[0] = out.reshape(th, wo_p, cout_p).astype(o_ref.dtype)

    return kernel


# ----------------------------------------------------------------------------
# Wrapper glue
# ----------------------------------------------------------------------------
def _fold_conv_bn(w_oihw, conv_b, bn, cin_p, cout_p):
    """Fold Conv2d bias + eval-mode BN into padded (bf16 weight, f32 bias)."""
    gamma, beta, mean, var = bn
    cout, cin, kh, kw = w_oihw.shape
    scale = gamma * jax.lax.rsqrt(var + _EPS)                  # (cout,)
    bias = beta + (conv_b - mean) * scale                      # (cout,)
    w = jnp.transpose(w_oihw, (2, 3, 1, 0)).reshape(kh * kw, cin, cout)
    w = w * scale[None, None, :]
    w_p = jnp.zeros((kh * kw, cin_p, cout_p), jnp.float32).at[:, :cin, :cout].set(w)
    b_p = jnp.zeros((1, cout_p), jnp.float32).at[0, :cout].set(bias)
    return w_p.astype(jnp.bfloat16), b_p


def _pick_row_tile(ho, wo_h, cout_p):
    """Target ~128 KiB of f32 accumulator (half the vreg file) so the 9-tap
    accumulation stays mostly register-resident (a 256 KiB acc spills on every
    tap and saturates v5e's single vector-store slot)."""
    target_rows = max(SUB, (128 * 1024 // 4) // max(cout_p, 1))
    return max(1, min(ho, target_rows // wo_h - 2))


def resblk_forward_nhwc(x_nhwc, params, *, stride, out_dtype=jnp.float32):
    """ResBlk forward on NHWC activations (pass out_dtype=bf16 when chaining
    blocks to halve the final HBM writeback)."""
    n, h, w, cin = x_nhwc.shape
    cout = params["w1"].shape[0]
    cin_p = _round_up(max(cin, LANE), LANE)
    cout_p = _round_up(max(cout, LANE), LANE)
    s = stride

    ho = (h + 2 - 3) // s + 1
    wo = (w + 2 - 3) // s + 1
    wo_p = _round_up(wo, SUB)                 # output width (sublane aligned)
    wo_h = _round_up(wo_p + 2, SUB)           # conv1 / VMEM-h width incl. halo
    th = _pick_row_tile(ho, wo_h, cout_p)
    n_row_tiles = pl.cdiv(ho, th)
    ho_pad = n_row_tiles * th

    # Phase (space-to-batch) layout of the zero-padded input. Each of the s*s
    # phases carries conv1's "same" padding plus one extra zero row/col so the
    # kernel's halo reads never go negative; (HP, WP) sized so every in-kernel
    # slice is in bounds.
    hp = ho_pad + 2 + 2 // s
    wp = wo_h + 2 // s
    top = left = 1 + s
    bot = s * hp - (top + h)
    right = s * wp - (left + w)
    x_p = jnp.pad(x_nhwc.astype(jnp.bfloat16),
                  ((0, 0), (top, max(bot, 0)), (left, max(right, 0)),
                   (0, cin_p - cin)))
    phases = jnp.stack([x_p[:, a::s, b::s, :][:, :hp, :wp, :]
                        for a in range(s) for b in range(s)], axis=1)

    # Fold conv bias + eval-mode BN into the matmul weights / one f32 bias.
    w1, b1 = _fold_conv_bn(params["w1"], params["b1"], params["bn1"], cin_p, cout_p)
    w2, b2 = _fold_conv_bn(params["w2"], params["b2"], params["bn2"], cout_p, cout_p)

    identity = "w_sc" not in params
    args = [phases, w1, b1, w2]
    in_specs = [
        # Full padded per-batch image: index depends only on the batch
        # coordinate, so it stays resident in VMEM across the row-tile axis.
        pl.BlockSpec((1, s * s, hp, wp, cin_p), lambda i, r: (i, 0, 0, 0, 0)),
        pl.BlockSpec((9, cin_p, cout_p), lambda i, r: (0, 0, 0)),
        pl.BlockSpec((1, cout_p), lambda i, r: (0, 0)),
        pl.BlockSpec((9, cout_p, cout_p), lambda i, r: (0, 0, 0)),
    ]
    if identity:
        bias2 = b2
    else:
        wsc, bsc = _fold_conv_bn(params["w_sc"], params["b_sc"],
                                 params["bn_sc"], cin_p, cout_p)
        bias2 = b2 + bsc                      # shortcut bias folded in too
    args.append(bias2)
    in_specs.append(pl.BlockSpec((1, cout_p), lambda i, r: (0, 0)))
    if not identity:
        args.append(wsc[0])                   # (cin_p, cout_p)
        in_specs.append(pl.BlockSpec((cin_p, cout_p), lambda i, r: (0, 0)))

    kernel = _make_resblk_kernel(stride=s, th=th, ho=ho, wo=wo, wo_p=wo_p,
                                 wo_h=wo_h, identity_shortcut=identity)

    # Advisory cost estimate so XLA overlaps the wrapper-side layout ops.
    steps = n * n_row_tiles
    flops = steps * 2 * 9 * ((th + 2) * wo_h * cin_p + th * wo_p * cout_p) * cout_p
    if not identity:
        flops += steps * 2 * th * wo_p * cin_p * cout_p
    out_bytes = n * ho_pad * wo_p * cout_p * jnp.dtype(out_dtype).itemsize
    bytes_accessed = int(phases.size * 2 + w1.size * 2 + w2.size * 2 + out_bytes)

    out = pl.pallas_call(
        kernel,
        out_shape=jax.ShapeDtypeStruct((n, ho_pad, wo_p, cout_p), out_dtype),
        grid=(n, n_row_tiles),
        in_specs=in_specs,
        out_specs=pl.BlockSpec((1, th, wo_p, cout_p), lambda i, r: (i, r, 0, 0)),
        scratch_shapes=[pltpu.VMEM((th + 2, wo_h, cout_p), jnp.bfloat16)],
        compiler_params=pltpu.CompilerParams(
            # No cross-iteration carry -> both axes are safe to shard across
            # TensorCores (matters on v7x's 2 cores even at batch=1).
            dimension_semantics=("parallel", "parallel"),
            vmem_limit_bytes=_vmem_limit_bytes()),
        cost_estimate=pl.CostEstimate(flops=int(flops), transcendentals=0,
                                      bytes_accessed=bytes_accessed),
    )(*args)
    return out[:, :ho, :wo, :cout]


def resblk_forward(x_nchw, params, *, stride):
    """PyTorch-convention wrapper: NCHW float32 in / NCHW float32 out."""
    x = jnp.transpose(x_nchw, (0, 2, 3, 1))
    out = resblk_forward_nhwc(x, params, stride=stride)
    return jnp.transpose(out, (0, 3, 1, 2))


# ----------------------------------------------------------------------------
# Deterministic parameter init (synthetic, PyTorch-like shapes)
# ----------------------------------------------------------------------------
def init_params(key, ch_in, ch_out, stride):
    ks = jax.random.split(key, 6)

    def conv_w(k, co, ci, kh, kw):
        kw_, kb_ = jax.random.split(k)
        bound = (1.0 / (ci * kh * kw)) ** 0.5
        w = jax.random.uniform(kw_, (co, ci, kh, kw), jnp.float32, -bound, bound)
        b = jax.random.uniform(kb_, (co,), jnp.float32, -bound, bound)
        return w, b

    def bn_p(k, c):
        k1, k2, k3, k4 = jax.random.split(k, 4)
        gamma = jax.random.uniform(k1, (c,), jnp.float32, 0.5, 1.5)
        beta = jax.random.uniform(k2, (c,), jnp.float32, -0.5, 0.5)
        mean = jax.random.uniform(k3, (c,), jnp.float32, -0.5, 0.5)
        var = jax.random.uniform(k4, (c,), jnp.float32, 0.5, 1.5)
        return (gamma, beta, mean, var)

    w1, b1 = conv_w(ks[0], ch_out, ch_in, 3, 3)
    w2, b2 = conv_w(ks[2], ch_out, ch_out, 3, 3)
    params = {"w1": w1, "b1": b1, "bn1": bn_p(ks[1], ch_out),
              "w2": w2, "b2": b2, "bn2": bn_p(ks[3], ch_out)}
    if stride != 1 or ch_out != ch_in:
        w_sc, b_sc = conv_w(ks[4], ch_out, ch_in, 1, 1)
        params["w_sc"] = w_sc
        params["b_sc"] = b_sc
        params["bn_sc"] = bn_p(ks[5], ch_out)
    return params


# ----------------------------------------------------------------------------
# Pure-JAX reference (mirrors the PyTorch forward, eval-mode BN, f32)
# ----------------------------------------------------------------------------
def _ref_resblk(x, params, *, stride):
    def conv(x, w, b, s, p):
        y = jax.lax.conv_general_dilated(
            x, w, (s, s), [(p, p), (p, p)],
            dimension_numbers=("NCHW", "OIHW", "NCHW"))
        return y + b[None, :, None, None]

    def bn(x, gamma, beta, mean, var, eps=_EPS):
        s = gamma * jax.lax.rsqrt(var + eps)
        return x * s[None, :, None, None] + (beta - mean * s)[None, :, None, None]

    y = jnp.maximum(bn(conv(x, params["w1"], params["b1"], stride, 1), *params["bn1"]), 0.0)
    y = bn(conv(y, params["w2"], params["b2"], 1, 1), *params["bn2"])
    if "w_sc" in params:
        sc = bn(conv(x, params["w_sc"], params["b_sc"], stride, 0), *params["bn_sc"])
    else:
        sc = x
    return jnp.maximum(y + sc, 0.0)


# ----------------------------------------------------------------------------
if __name__ == "__main__":
    key = jax.random.PRNGKey(0)
    cases = [
        # (batch, ch_in, ch_out, H=W, stride)
        (2, 4, 8, 16, 1),   # channel change -> 1x1-conv projection shortcut
        (2, 4, 8, 16, 2),   # strided block  -> projection shortcut, downsample
        (2, 8, 8, 16, 1),   # identity shortcut (fused as a direct add)
        (1, 8, 8, 20, 1),   # exercises ho % th != 0 and wo % 8 != 0 padding
    ]
    for i, (b, ci, co, hw, stride) in enumerate(cases):
        kx, kp = jax.random.split(jax.random.fold_in(key, i))
        x = jax.random.normal(kx, (b, ci, hw, hw), jnp.float32)
        params = init_params(kp, ci, co, stride)

        fwd = jax.jit(functools.partial(resblk_forward, stride=stride))
        out = jax.block_until_ready(fwd(x, params))
        ref = _ref_resblk(x, params, stride=stride)
        assert out.shape == ref.shape, (out.shape, ref.shape)
        err = jnp.max(jnp.abs(out - ref))
        # bf16 matmul operands / bf16 intermediate h (f32 accumulation)
        assert jnp.allclose(out, ref, atol=5e-2, rtol=5e-2), \
            f"mismatch in case {i}: max err {err}"

    print("KERNEL_OK")
</pallas_src>

<mosaic_0001>
module attributes {stable_mosaic.version = 11 : i64} {
  func.func @kernel(%arg0: i32, %arg1: i32, %arg2: memref<1x1x20x26x128xbf16, #tpu.memory_space<vmem>>, %arg3: memref<9x128x128xbf16, #tpu.memory_space<vmem>>, %arg4: memref<1x128xf32, #tpu.memory_space<vmem>>, %arg5: memref<9x128x128xbf16, #tpu.memory_space<vmem>>, %arg6: memref<1x128xf32, #tpu.memory_space<vmem>>, %arg7: memref<128x128xbf16, #tpu.memory_space<vmem>>, %arg8: memref<1x8x16x128xf32, #tpu.memory_space<vmem>>, %arg9: memref<10x24x128xbf16, #tpu.memory_space<vmem>>) attributes {dimension_semantics = [#tpu.dimension_semantics<parallel>, #tpu.dimension_semantics<parallel>], iteration_bounds = array<i64: 2, 2>, scalar_prefetch = 0 : i64, scratch_operands = 1 : i64, tpu.core_type = #tpu.core_type<tc>, window_params = [{transform_indices = @transform_0, window_bounds = array<i64: 1, 1, 20, 26, 128>}, {pipeline_mode = #tpu.pipeline_mode<synchronous>, transform_indices = @transform_1, window_bounds = array<i64: 9, 128, 128>}, {pipeline_mode = #tpu.pipeline_mode<synchronous>, transform_indices = @transform_2, window_bounds = array<i64: 1, 128>}, {pipeline_mode = #tpu.pipeline_mode<synchronous>, transform_indices = @transform_3, window_bounds = array<i64: 9, 128, 128>}, {pipeline_mode = #tpu.pipeline_mode<synchronous>, transform_indices = @transform_4, window_bounds = array<i64: 1, 128>}, {pipeline_mode = #tpu.pipeline_mode<synchronous>, transform_indices = @transform_5, window_bounds = array<i64: 128, 128>}, {transform_indices = @transform_6, window_bounds = array<i64: 1, 8, 16, 128>}]} {
    %c8_i32 = arith.constant 8 : i32
    %0 = arith.muli %arg1, %c8_i32 : i32
    %cst = arith.constant 0.000000e+00 : f32
    %1 = vector.broadcast %cst : f32 to vector<240x128xf32>
    %c0_i32 = arith.constant 0 : i32
    %2 = arith.addi %0, %c0_i32 : i32
    %c0 = arith.constant 0 : index
    %c0_0 = arith.constant 0 : index
    %3 = arith.index_cast %2 : i32 to index
    %c0_1 = arith.constant 0 : index
    %c0_2 = arith.constant 0 : index
    %4 = vector.load %arg2[%c0, %c0_0, %3, %c0_1, %c0_2] : memref<1x1x20x26x128xbf16, #tpu.memory_space<vmem>>, vector<1x1x10x24x128xbf16>
    %5 = vector.shape_cast %4 : vector<1x1x10x24x128xbf16> to vector<10x24x128xbf16>
    %6 = vector.shape_cast %5 : vector<10x24x128xbf16> to vector<240x128xbf16>
    %c0_3 = arith.constant 0 : index
    %c0_4 = arith.constant 0 : index
    %c0_5 = arith.constant 0 : index
    %7 = vector.load %arg3[%c0_3, %c0_4, %c0_5] : memref<9x128x128xbf16, #tpu.memory_space<vmem>>, vector<1x128x128xbf16>
    %8 = vector.shape_cast %7 : vector<1x128x128xbf16> to vector<128x128xbf16>
    %cst_6 = arith.constant dense<0.000000e+00> : vector<240x128xf32>
    %9 = tpu.matmul %6, %8, %cst_6 {dimension_numbers = #tpu.dot_dimension_numbers<[1], [0], [0], [1], [0, 0, 1, 1], [], []>} : vector<240x128xbf16>, vector<128x128xbf16>, vector<240x128xf32> -> vector<240x128xf32>
    %10 = arith.addf %1, %9 : vector<240x128xf32>
    %c0_i32_7 = arith.constant 0 : i32
    %11 = arith.addi %0, %c0_i32_7 : i32
    %c0_8 = arith.constant 0 : index
    %c0_9 = arith.constant 0 : index
    %12 = arith.index_cast %11 : i32 to index
    %c1 = arith.constant 1 : index
    %c0_10 = arith.constant 0 : index
    %13 = vector.load %arg2[%c0_8, %c0_9, %12, %c1, %c0_10] : memref<1x1x20x26x128xbf16, #tpu.memory_space<vmem>>, vector<1x1x10x24x128xbf16>
    %14 = vector.shape_cast %13 : vector<1x1x10x24x128xbf16> to vector<10x24x128xbf16>
    %15 = vector.shape_cast %14 : vector<10x24x128xbf16> to vector<240x128xbf16>
    %c1_11 = arith.constant 1 : index
    %c0_12 = arith.constant 0 : index
    %c0_13 = arith.constant 0 : index
    %16 = vector.load %arg3[%c1_11, %c0_12, %c0_13] : memref<9x128x128xbf16, #tpu.memory_space<vmem>>, vector<1x128x128xbf16>
    %17 = vector.shape_cast %16 : vector<1x128x128xbf16> to vector<128x128xbf16>
    %cst_14 = arith.constant dense<0.000000e+00> : vector<240x128xf32>
    %18 = tpu.matmul %15, %17, %cst_14 {dimension_numbers = #tpu.dot_dimension_numbers<[1], [0], [0], [1], [0, 0, 1, 1], [], []>} : vector<240x128xbf16>, vector<128x128xbf16>, vector<240x128xf32> -> vector<240x128xf32>
    %19 = arith.addf %10, %18 : vector<240x128xf32>
    %c0_i32_15 = arith.constant 0 : i32
    %20 = arith.addi %0, %c0_i32_15 : i32
    %c0_16 = arith.constant 0 : index
    %c0_17 = arith.constant 0 : index
    %21 = arith.index_cast %20 : i32 to index
    %c2 = arith.constant 2 : index
    %c0_18 = arith.constant 0 : index
    %22 = vector.load %arg2[%c0_16, %c0_17, %21, %c2, %c0_18] : memref<1x1x20x26x128xbf16, #tpu.memory_space<vmem>>, vector<1x1x10x24x128xbf16>
    %23 = vector.shape_cast %22 : vector<1x1x10x24x128xbf16> to vector<10x24x128xbf16>
    %24 = vector.shape_cast %23 : vector<10x24x128xbf16> to vector<240x128xbf16>
    %c2_19 = arith.constant 2 : index
    %c0_20 = arith.constant 0 : index
    %c0_21 = arith.constant 0 : index
    %25 = vector.load %arg3[%c2_19, %c0_20, %c0_21] : memref<9x128x128xbf16, #tpu.memory_space<vmem>>, vector<1x128x128xbf16>
    %26 = vector.shape_cast %25 : vector<1x128x128xbf16> to vector<128x128xbf16>
    %cst_22 = arith.constant dense<0.000000e+00> : vector<240x128xf32>
    %27 = tpu.matmul %24, %26, %cst_22 {dimension_numbers = #tpu.dot_dimension_numbers<[1], [0], [0], [1], [0, 0, 1, 1], [], []>} : vector<240x128xbf16>, vector<128x128xbf16>, vector<240x128xf32> -> vector<240x128xf32>
    %28 = arith.addf %19, %27 : vector<240x128xf32>
    %c1_i32 = arith.constant 1 : i32
    %29 = arith.addi %0, %c1_i32 : i32
    %c0_23 = arith.constant 0 : index
    %c0_24 = arith.constant 0 : index
    %30 = arith.index_cast %29 : i32 to index
    %c0_25 = arith.constant 0 : index
    %c0_26 = arith.constant 0 : index
    %31 = vector.load %arg2[%c0_23, %c0_24, %30, %c0_25, %c0_26] : memref<1x1x20x26x128xbf16, #tpu.memory_space<vmem>>, vector<1x1x10x24x128xbf16>
    %32 = vector.shape_cast %31 : vector<1x1x10x24x128xbf16> to vector<10x24x128xbf16>
    %33 = vector.shape_cast %32 : vector<10x24x128xbf16> to vector<240x128xbf16>
    %c3 = arith.constant 3 : index
    %c0_27 = arith.constant 0 : index
    %c0_28 = arith.constant 0 : index
    %34 = vector.load %arg3[%c3, %c0_27, %c0_28] : memref<9x128x128xbf16, #tpu.memory_space<vmem>>, vector<1x128x128xbf16>
    %35 = vector.shape_cast %34 : vector<1x128x128xbf16> to vector<128x128xbf16>
    %cst_29 = arith.constant dense<0.000000e+00> : vector<240x128xf32>
    %36 = tpu.matmul %33, %35, %cst_29 {dimension_numbers = #tpu.dot_dimension_numbers<[1], [0], [0], [1], [0, 0, 1, 1], [], []>} : vector<240x128xbf16>, vector<128x128xbf16>, vector<240x128xf32> -> vector<240x128xf32>
    %37 = arith.addf %28, %36 : vector<240x128xf32>
    %c1_i32_30 = arith.constant 1 : i32
    %38 = arith.addi %0, %c1_i32_30 : i32
    %c0_31 = arith.constant 0 : index
    %c0_32 = arith.constant 0 : index
    %39 = arith.index_cast %38 : i32 to index
    %c1_33 = arith.constant 1 : index
    %c0_34 = arith.constant 0 : index
    %40 = vector.load %arg2[%c0_31, %c0_32, %39, %c1_33, %c0_34] : memref<1x1x20x26x128xbf16, #tpu.memory_space<vmem>>, vector<1x1x10x24x128xbf16>
    %41 = vector.shape_cast %40 : vector<1x1x10x24x128xbf16> to vector<10x24x128xbf16>
    %42 = vector.shape_cast %41 : vector<10x24x128xbf16> to vector<240x128xbf16>
    %c4 = arith.constant 4 : index
    %c0_35 = arith.constant 0 : index
    %c0_36 = arith.constant 0 : index
    %43 = vector.load %arg3[%c4, %c0_35, %c0_36] : memref<9x128x128xbf16, #tpu.memory_space<vmem>>, vector<1x128x128xbf16>
    %44 = vector.shape_cast %43 : vector<1x128x128xbf16> to vector<128x128xbf16>
    %cst_37 = arith.constant dense<0.000000e+00> : vector<240x128xf32>
    %45 = tpu.matmul %42, %44, %cst_37 {dimension_numbers = #tpu.dot_dimension_numbers<[1], [0], [0], [1], [0, 0, 1, 1], [], []>} : vector<240x128xbf16>, vector<128x128xbf16>, vector<240x128xf32> -> vector<240x128xf32>
    %46 = arith.addf %37, %45 : vector<240x128xf32>
    %c1_i32_38 = arith.constant 1 : i32
    %47 = arith.addi %0, %c1_i32_38 : i32
    %c0_39 = arith.constant 0 : index
    %c0_40 = arith.constant 0 : index
    %48 = arith.index_cast %47 : i32 to index
    %c2_41 = arith.constant 2 : index
    %c0_42 = arith.constant 0 : index
    %49 = vector.load %arg2[%c0_39, %c0_40, %48, %c2_41, %c0_42] : memref<1x1x20x26x128xbf16, #tpu.memory_space<vmem>>, vector<1x1x10x24x128xbf16>
    %50 = vector.shape_cast %49 : vector<1x1x10x24x128xbf16> to vector<10x24x128xbf16>
    %51 = vector.shape_cast %50 : vector<10x24x128xbf16> to vector<240x128xbf16>
    %c5 = arith.constant 5 : index
    %c0_43 = arith.constant 0 : index
    %c0_44 = arith.constant 0 : index
    %52 = vector.load %arg3[%c5, %c0_43, %c0_44] : memref<9x128x128xbf16, #tpu.memory_space<vmem>>, vector<1x128x128xbf16>
    %53 = vector.shape_cast %52 : vector<1x128x128xbf16> to vector<128x128xbf16>
    %cst_45 = arith.constant dense<0.000000e+00> : vector<240x128xf32>
    %54 = tpu.matmul %51, %53, %cst_45 {dimension_numbers = #tpu.dot_dimension_numbers<[1], [0], [0], [1], [0, 0, 1, 1], [], []>} : vector<240x128xbf16>, vector<128x128xbf16>, vector<240x128xf32> -> vector<240x128xf32>
    %55 = arith.addf %46, %54 : vector<240x128xf32>
    %c2_i32 = arith.constant 2 : i32
    %56 = arith.addi %0, %c2_i32 : i32
    %c0_46 = arith.constant 0 : index
    %c0_47 = arith.constant 0 : index
    %57 = arith.index_cast %56 : i32 to index
    %c0_48 = arith.constant 0 : index
    %c0_49 = arith.constant 0 : index
    %58 = vector.load %arg2[%c0_46, %c0_47, %57, %c0_48, %c0_49] : memref<1x1x20x26x128xbf16, #tpu.memory_space<vmem>>, vector<1x1x10x24x128xbf16>
    %59 = vector.shape_cast %58 : vector<1x1x10x24x128xbf16> to vector<10x24x128xbf16>
    %60 = vector.shape_cast %59 : vector<10x24x128xbf16> to vector<240x128xbf16>
    %c6 = arith.constant 6 : index
    %c0_50 = arith.constant 0 : index
    %c0_51 = arith.constant 0 : index
    %61 = vector.load %arg3[%c6, %c0_50, %c0_51] : memref<9x128x128xbf16, #tpu.memory_space<vmem>>, vector<1x128x128xbf16>
    %62 = vector.shape_cast %61 : vector<1x128x128xbf16> to vector<128x128xbf16>
    %cst_52 = arith.constant dense<0.000000e+00> : vector<240x128xf32>
    %63 = tpu.matmul %60, %62, %cst_52 {dimension_numbers = #tpu.dot_dimension_numbers<[1], [0], [0], [1], [0, 0, 1, 1], [], []>} : vector<240x128xbf16>, vector<128x128xbf16>, vector<240x128xf32> -> vector<240x128xf32>
    %64 = arith.addf %55, %63 : vector<240x128xf32>
    %c2_i32_53 = arith.constant 2 : i32
    %65 = arith.addi %0, %c2_i32_53 : i32
    %c0_54 = arith.constant 0 : index
    %c0_55 = arith.constant 0 : index
    %66 = arith.index_cast %65 : i32 to index
    %c1_56 = arith.constant 1 : index
    %c0_57 = arith.constant 0 : index
    %67 = vector.load %arg2[%c0_54, %c0_55, %66, %c1_56, %c0_57] : memref<1x1x20x26x128xbf16, #tpu.memory_space<vmem>>, vector<1x1x10x24x128xbf16>
    %68 = vector.shape_cast %67 : vector<1x1x10x24x128xbf16> to vector<10x24x128xbf16>
    %69 = vector.shape_cast %68 : vector<10x24x128xbf16> to vector<240x128xbf16>
    %c7 = arith.constant 7 : index
    %c0_58 = arith.constant 0 : index
    %c0_59 = arith.constant 0 : index
    %70 = vector.load %arg3[%c7, %c0_58, %c0_59] : memref<9x128x128xbf16, #tpu.memory_space<vmem>>, vector<1x128x128xbf16>
    %71 = vector.shape_cast %70 : vector<1x128x128xbf16> to vector<128x128xbf16>
    %cst_60 = arith.constant dense<0.000000e+00> : vector<240x128xf32>
    %72 = tpu.matmul %69, %71, %cst_60 {dimension_numbers = #tpu.dot_dimension_numbers<[1], [0], [0], [1], [0, 0, 1, 1], [], []>} : vector<240x128xbf16>, vector<128x128xbf16>, vector<240x128xf32> -> vector<240x128xf32>
    %73 = arith.addf %64, %72 : vector<240x128xf32>
    %c2_i32_61 = arith.constant 2 : i32
    %74 = arith.addi %0, %c2_i32_61 : i32
    %c0_62 = arith.constant 0 : index
    %c0_63 = arith.constant 0 : index
    %75 = arith.index_cast %74 : i32 to index
    %c2_64 = arith.constant 2 : index
    %c0_65 = arith.constant 0 : index
    %76 = vector.load %arg2[%c0_62, %c0_63, %75, %c2_64, %c0_65] : memref<1x1x20x26x128xbf16, #tpu.memory_space<vmem>>, vector<1x1x10x24x128xbf16>
    %77 = vector.shape_cast %76 : vector<1x1x10x24x128xbf16> to vector<10x24x128xbf16>
    %78 = vector.shape_cast %77 : vector<10x24x128xbf16> to vector<240x128xbf16>
    %c8 = arith.constant 8 : index
    %c0_66 = arith.constant 0 : index
    %c0_67 = arith.constant 0 : index
    %79 = vector.load %arg3[%c8, %c0_66, %c0_67] : memref<9x128x128xbf16, #tpu.memory_space<vmem>>, vector<1x128x128xbf16>
    %80 = vector.shape_cast %79 : vector<1x128x128xbf16> to vector<128x128xbf16>
    %cst_68 = arith.constant dense<0.000000e+00> : vector<240x128xf32>
    %81 = tpu.matmul %78, %80, %cst_68 {dimension_numbers = #tpu.dot_dimension_numbers<[1], [0], [0], [1], [0, 0, 1, 1], [], []>} : vector<240x128xbf16>, vector<128x128xbf16>, vector<240x128xf32> -> vector<240x128xf32>
    %82 = arith.addf %73, %81 : vector<240x128xf32>
    %c0_69 = arith.constant 0 : index
    %c0_70 = arith.constant 0 : index
    %83 = vector.load %arg4[%c0_69, %c0_70] : memref<1x128xf32, #tpu.memory_space<vmem>>, vector<1x128xf32>
    %84 = vector.broadcast %83 : vector<1x128xf32> to vector<240x128xf32>
    %85 = arith.addf %82, %84 : vector<240x128xf32>
    %cst_71 = arith.constant 0.000000e+00 : f32
    %86 = vector.broadcast %cst_71 : f32 to vector<240x128xf32>
    %87 = arith.maximumf %85, %86 : vector<240x128xf32>
    %88 = tpu.iota {dimensions = array<i32: 0>} : vector<24x128xi32>
    %c1_i32_72 = arith.constant 1 : i32
    %89 = vector.broadcast %c1_i32_72 : i32 to vector<24x128xi32>
    %90 = arith.cmpi sge, %88, %89 : vector<24x128xi32>
    %c16_i32 = arith.constant 16 : i32
    %91 = vector.broadcast %c16_i32 : i32 to vector<24x128xi32>
    %92 = arith.cmpi sle, %88, %91 : vector<24x128xi32>
    %93 = arith.andi %90, %92 : vector<24x128xi1>
    %c1_i32_73 = arith.constant 1 : i32
    %94 = arith.subi %0, %c1_i32_73 : i32
    %c0_i32_74 = arith.constant 0 : i32
    %95 = arith.addi %94, %c0_i32_74 : i32
    %c0_i32_75 = arith.constant 0 : i32
    %96 = arith.cmpi sge, %95, %c0_i32_75 : i32
    %97 = vector.broadcast %96 : i1 to vector<24x128xi1>
    %98 = arith.andi %93, %97 : vector<24x128xi1>
    %c16_i32_76 = arith.constant 16 : i32
    %99 = arith.cmpi slt, %95, %c16_i32_76 : i32
    %100 = vector.broadcast %99 : i1 to vector<24x128xi1>
    %101 = arith.andi %98, %100 : vector<24x128xi1>
    %102 = vector.extract_strided_slice %87 {offsets = [0, 0], sizes = [24, 128], strides = [1, 1]} : vector<240x128xf32> to vector<24x128xf32>
    %cst_77 = arith.constant 0.000000e+00 : f32
    %103 = vector.broadcast %cst_77 : f32 to vector<24x128xf32>
    %104 = arith.select %101, %102, %103 : vector<24x128xi1>, vector<24x128xf32>
    %105 = arith.truncf %104 : vector<24x128xf32> to vector<24x128xbf16>
    %c0_78 = arith.constant 0 : index
    %c0_79 = arith.constant 0 : index
    %c0_80 = arith.constant 0 : index
    %106 = vector.load %arg9[%c0_78, %c0_79, %c0_80] : memref<10x24x128xbf16, #tpu.memory_space<vmem>>, vector<1x24x128xbf16>
    %107 = vector.shape_cast %106 : vector<1x24x128xbf16> to vector<24x128xbf16>
    %108 = vector.shape_cast %105 : vector<24x128xbf16> to vector<1x24x128xbf16>
    tpu.vector_store %arg9[%c0_78, %c0_79, %c0_80], %108 {strides = array<i32>} : memref<10x24x128xbf16, #tpu.memory_space<vmem>>, vector<1x24x128xbf16>,
    %c1_i32_81 = arith.constant 1 : i32
    %109 = arith.subi %0, %c1_i32_81 : i32
    %c1_i32_82 = arith.constant 1 : i32
    %110 = arith.addi %109, %c1_i32_82 : i32
    %c0_i32_83 = arith.constant 0 : i32
    %111 = arith.cmpi sge, %110, %c0_i32_83 : i32
    %112 = vector.broadcast %111 : i1 to vector<24x128xi1>
    %113 = arith.andi %93, %112 : vector<24x128xi1>
    %c16_i32_84 = arith.constant 16 : i32
    %114 = arith.cmpi slt, %110, %c16_i32_84 : i32
    %115 = vector.broadcast %114 : i1 to vector<24x128xi1>
    %116 = arith.andi %113, %115 : vector<24x128xi1>
    %117 = vector.extract_strided_slice %87 {offsets = [24, 0], sizes = [24, 128], strides = [1, 1]} : vector<240x128xf32> to vector<24x128xf32>
    %cst_85 = arith.constant 0.000000e+00 : f32
    %118 = vector.broadcast %cst_85 : f32 to vector<24x128xf32>
    %119 = arith.select %116, %117, %118 : vector<24x128xi1>, vector<24x128xf32>
    %120 = arith.truncf %119 : vector<24x128xf32> to vector<24x128xbf16>
    %c1_86 = arith.constant 1 : index
    %c0_87 = arith.constant 0 : index
    %c0_88 = arith.constant 0 : index
    %121 = vector.load %arg9[%c1_86, %c0_87, %c0_88] : memref<10x24x128xbf16, #tpu.memory_space<vmem>>, vector<1x24x128xbf16>
    %122 = vector.shape_cast %121 : vector<1x24x128xbf16> to vector<24x128xbf16>
    %123 = vector.shape_cast %120 : vector<24x128xbf16> to vector<1x24x128xbf16>
    tpu.vector_store %arg9[%c1_86, %c0_87, %c0_88], %123 {strides = array<i32>} : memref<10x24x128xbf16, #tpu.memory_space<vmem>>, vector<1x24x128xbf16>,
    %c1_i32_89 = arith.constant 1 : i32
    %124 = arith.subi %0, %c1_i32_89 : i32
    %c2_i32_90 = arith.constant 2 : i32
    %125 = arith.addi %124, %c2_i32_90 : i32
    %c0_i32_91 = arith.constant 0 : i32
    %126 = arith.cmpi sge, %125, %c0_i32_91 : i32
    %127 = vector.broadcast %126 : i1 to vector<24x128xi1>
    %128 = arith.andi %93, %127 : vector<24x128xi1>
    %c16_i32_92 = arith.constant 16 : i32
    %129 = arith.cmpi slt, %125, %c16_i32_92 : i32
    %130 = vector.broadcast %129 : i1 to vector<24x128xi1>
    %131 = arith.andi %128, %130 : vector<24x128xi1>
    %132 = vector.extract_strided_slice %87 {offsets = [48, 0], sizes = [24, 128], strides = [1, 1]} : vector<240x128xf32> to vector<24x128xf32>
    %cst_93 = arith.constant 0.000000e+00 : f32
    %133 = vector.broadcast %cst_93 : f32 to vector<24x128xf32>
    %134 = arith.select %131, %132, %133 : vector<24x128xi1>, vector<24x128xf32>
    %135 = arith.truncf %134 : vector<24x128xf32> to vector<24x128xbf16>
    %c2_94 = arith.constant 2 : index
    %c0_95 = arith.constant 0 : index
    %c0_96 = arith.constant 0 : index
    %136 = vector.load %arg9[%c2_94, %c0_95, %c0_96] : memref<10x24x128xbf16, #tpu.memory_space<vmem>>, vector<1x24x128xbf16>
    %137 = vector.shape_cast %136 : vector<1x24x128xbf16> to vector<24x128xbf16>
    %138 = vector.shape_cast %135 : vector<24x128xbf16> to vector<1x24x128xbf16>
    tpu.vector_store %arg9[%c2_94, %c0_95, %c0_96], %138 {strides = array<i32>} : memref<10x24x128xbf16, #tpu.memory_space<vmem>>, vector<1x24x128xbf16>,
    %c1_i32_97 = arith.constant 1 : i32
    %139 = arith.subi %0, %c1_i32_97 : i32
    %c3_i32 = arith.constant 3 : i32
    %140 = arith.addi %139, %c3_i32 : i32
    %c0_i32_98 = arith.constant 0 : i32
    %141 = arith.cmpi sge, %140, %c0_i32_98 : i32
    %142 = vector.broadcast %141 : i1 to vector<24x128xi1>
    %143 = arith.andi %93, %142 : vector<24x128xi1>
    %c16_i32_99 = arith.constant 16 : i32
    %144 = arith.cmpi slt, %140, %c16_i32_99 : i32
    %145 = vector.broadcast %144 : i1 to vector<24x128xi1>
    %146 = arith.andi %143, %145 : vector<24x128xi1>
    %147 = vector.extract_strided_slice %87 {offsets = [72, 0], sizes = [24, 128], strides = [1, 1]} : vector<240x128xf32> to vector<24x128xf32>
    %cst_100 = arith.constant 0.000000e+00 : f32
    %148 = vector.broadcast %cst_100 : f32 to vector<24x128xf32>
    %149 = arith.select %146, %147, %148 : vector<24x128xi1>, vector<24x128xf32>
    %150 = arith.truncf %149 : vector<24x128xf32> to vector<24x128xbf16>
    %c3_101 = arith.constant 3 : index
    %c0_102 = arith.constant 0 : index
    %c0_103 = arith.constant 0 : index
    %151 = vector.load %arg9[%c3_101, %c0_102, %c0_103] : memref<10x24x128xbf16, #tpu.memory_space<vmem>>, vector<1x24x128xbf16>
    %152 = vector.shape_cast %151 : vector<1x24x128xbf16> to vector<24x128xbf16>
    %153 = vector.shape_cast %150 : vector<24x128xbf16> to vector<1x24x128xbf16>
    tpu.vector_store %arg9[%c3_101, %c0_102, %c0_103], %153 {strides = array<i32>} : memref<10x24x128xbf16, #tpu.memory_space<vmem>>, vector<1x24x128xbf16>,
    %c1_i32_104 = arith.constant 1 : i32
    %154 = arith.subi %0, %c1_i32_104 : i32
    %c4_i32 = arith.constant 4 : i32
    %155 = arith.addi %154, %c4_i32 : i32
    %c0_i32_105 = arith.constant 0 : i32
    %156 = arith.cmpi sge, %155, %c0_i32_105 : i32
    %157 = vector.broadcast %156 : i1 to vector<24x128xi1>
    %158 = arith.andi %93, %157 : vector<24x128xi1>
    %c16_i32_106 = arith.constant 16 : i32
    %159 = arith.cmpi slt, %155, %c16_i32_106 : i32
    %160 = vector.broadcast %159 : i1 to vector<24x128xi1>
    %161 = arith.andi %158, %160 : vector<24x128xi1>
    %162 = vector.extract_strided_slice %87 {offsets = [96, 0], sizes = [24, 128], strides = [1, 1]} : vector<240x128xf32> to vector<24x128xf32>
    %cst_107 = arith.constant 0.000000e+00 : f32
    %163 = vector.broadcast %cst_107 : f32 to vector<24x128xf32>
    %164 = arith.select %161, %162, %163 : vector<24x128xi1>, vector<24x128xf32>
    %165 = arith.truncf %164 : vector<24x128xf32> to vector<24x128xbf16>
    %c4_108 = arith.constant 4 : index
    %c0_109 = arith.constant 0 : index
    %c0_110 = arith.constant 0 : index
    %166 = vector.load %arg9[%c4_108, %c0_109, %c0_110] : memref<10x24x128xbf16, #tpu.memory_space<vmem>>, vector<1x24x128xbf16>
    %167 = vector.shape_cast %166 : vector<1x24x128xbf16> to vector<24x128xbf16>
    %168 = vector.shape_cast %165 : vector<24x128xbf16> to vector<1x24x128xbf16>
    tpu.vector_store %arg9[%c4_108, %c0_109, %c0_110], %168 {strides = array<i32>} : memref<10x24x128xbf16, #tpu.memory_space<vmem>>, vector<1x24x128xbf16>,
    %c1_i32_111 = arith.constant 1 : i32
    %169 = arith.subi %0, %c1_i32_111 : i32
    %c5_i32 = arith.constant 5 : i32
    %170 = arith.addi %169, %c5_i32 : i32
    %c0_i32_112 = arith.constant 0 : i32
    %171 = arith.cmpi sge, %170, %c0_i32_112 : i32
    %172 = vector.broadcast %171 : i1 to vector<24x128xi1>
    %173 = arith.andi %93, %172 : vector<24x128xi1>
    %c16_i32_113 = arith.constant 16 : i32
    %174 = arith.cmpi slt, %170, %c16_i32_113 : i32
    %175 = vector.broadcast %174 : i1 to vector<24x128xi1>
    %176 = arith.andi %173, %175 : vector<24x128xi1>
    %177 = vector.extract_strided_slice %87 {offsets = [120, 0], sizes = [24, 128], strides = [1, 1]} : vector<240x128xf32> to vector<24x128xf32>
    %cst_114 = arith.constant 0.000000e+00 : f32
    %178 = vector.broadcast %cst_114 : f32 to vector<24x128xf32>
    %179 = arith.select %176, %177, %178 : vector<24x128xi1>, vector<24x128xf32>
    %180 = arith.truncf %179 : vector<24x128xf32> to vector<24x128xbf16>
    %c5_115 = arith.constant 5 : index
    %c0_116 = arith.constant 0 : index
    %c0_117 = arith.constant 0 : index
    %181 = vector.load %arg9[%c5_115, %c0_116, %c0_117] : memref<10x24x128xbf16, #tpu.memory_space<vmem>>, vector<1x24x128xbf16>
    %182 = vector.shape_cast %181 : vector<1x24x128xbf16> to vector<24x128xbf16>
    %183 = vector.shape_cast %180 : vector<24x128xbf16> to vector<1x24x128xbf16>
    tpu.vector_store %arg9[%c5_115, %c0_116, %c0_117], %183 {strides = array<i32>} : memref<10x24x128xbf16, #tpu.memory_space<vmem>>, vector<1x24x128xbf16>,
    %c1_i32_118 = arith.constant 1 : i32
    %184 = arith.subi %0, %c1_i32_118 : i32
    %c6_i32 = arith.constant 6 : i32
    %185 = arith.addi %184, %c6_i32 : i32
    %c0_i32_119 = arith.constant 0 : i32
    %186 = arith.cmpi sge, %185, %c0_i32_119 : i32
    %187 = vector.broadcast %186 : i1 to vector<24x128xi1>
    %188 = arith.andi %93, %187 : vector<24x128xi1>
    %c16_i32_120 = arith.constant 16 : i32
    %189 = arith.cmpi slt, %185, %c16_i32_120 : i32
    %190 = vector.broadcast %189 : i1 to vector<24x128xi1>
    %191 = arith.andi %188, %190 : vector<24x128xi1>
    %192 = vector.extract_strided_slice %87 {offsets = [144, 0], sizes = [24, 128], strides = [1, 1]} : vector<240x128xf32> to vector<24x128xf32>
    %cst_121 = arith.constant 0.000000e+00 : f32
    %193 = vector.broadcast %cst_121 : f32 to vector<24x128xf32>
    %194 = arith.select %191, %192, %193 : vector<24x128xi1>, vector<24x128xf32>
    %195 = arith.truncf %194 : vector<24x128xf32> to vector<24x128xbf16>
    %c6_122 = arith.constant 6 : index
    %c0_123 = arith.constant 0 : index
    %c0_124 = arith.constant 0 : index
    %196 = vector.load %arg9[%c6_122, %c0_123, %c0_124] : memref<10x24x128xbf16, #tpu.memory_space<vmem>>, vector<1x24x128xbf16>
    %197 = vector.shape_cast %196 : vector<1x24x128xbf16> to vector<24x128xbf16>
    %198 = vector.shape_cast %195 : vector<24x128xbf16> to vector<1x24x128xbf16>
    tpu.vector_store %arg9[%c6_122, %c0_123, %c0_124], %198 {strides = array<i32>} : memref<10x24x128xbf16, #tpu.memory_space<vmem>>, vector<1x24x128xbf16>,
    %c1_i32_125 = arith.constant 1 : i32
    %199 = arith.subi %0, %c1_i32_125 : i32
    %c7_i32 = arith.constant 7 : i32
    %200 = arith.addi %199, %c7_i32 : i32
    %c0_i32_126 = arith.constant 0 : i32
    %201 = arith.cmpi sge, %200, %c0_i32_126 : i32
    %202 = vector.broadcast %201 : i1 to vector<24x128xi1>
    %203 = arith.andi %93, %202 : vector<24x128xi1>
    %c16_i32_127 = arith.constant 16 : i32
    %204 = arith.cmpi slt, %200, %c16_i32_127 : i32
    %205 = vector.broadcast %204 : i1 to vector<24x128xi1>
    %206 = arith.andi %203, %205 : vector<24x128xi1>
    %207 = vector.extract_strided_slice %87 {offsets = [168, 0], sizes = [24, 128], strides = [1, 1]} : vector<240x128xf32> to vector<24x128xf32>
    %cst_128 = arith.constant 0.000000e+00 : f32
    %208 = vector.broadcast %cst_128 : f32 to vector<24x128xf32>
    %209 = arith.select %206, %207, %208 : vector<24x128xi1>, vector<24x128xf32>
    %210 = arith.truncf %209 : vector<24x128xf32> to vector<24x128xbf16>
    %c7_129 = arith.constant 7 : index
    %c0_130 = arith.constant 0 : index
    %c0_131 = arith.constant 0 : index
    %211 = vector.load %arg9[%c7_129, %c0_130, %c0_131] : memref<10x24x128xbf16, #tpu.memory_space<vmem>>, vector<1x24x128xbf16>
    %212 = vector.shape_cast %211 : vector<1x24x128xbf16> to vector<24x128xbf16>
    %213 = vector.shape_cast %210 : vector<24x128xbf16> to vector<1x24x128xbf16>
    tpu.vector_store %arg9[%c7_129, %c0_130, %c0_131], %213 {strides = array<i32>} : memref<10x24x128xbf16, #tpu.memory_space<vmem>>, vector<1x24x128xbf16>,
    %c1_i32_132 = arith.constant 1 : i32
    %214 = arith.subi %0, %c1_i32_132 : i32
    %c8_i32_133 = arith.constant 8 : i32
    %215 = arith.addi %214, %c8_i32_133 : i32
    %c0_i32_134 = arith.constant 0 : i32
    %216 = arith.cmpi sge, %215, %c0_i32_134 : i32
    %217 = vector.broadcast %216 : i1 to vector<24x128xi1>
    %218 = arith.andi %93, %217 : vector<24x128xi1>
    %c16_i32_135 = arith.constant 16 : i32
    %219 = arith.cmpi slt, %215, %c16_i32_135 : i32
    %220 = vector.broadcast %219 : i1 to vector<24x128xi1>
    %221 = arith.andi %218, %220 : vector<24x128xi1>
    %222 = vector.extract_strided_slice %87 {offsets = [192, 0], sizes = [24, 128], strides = [1, 1]} : vector<240x128xf32> to vector<24x128xf32>
    %cst_136 = arith.constant 0.000000e+00 : f32
    %223 = vector.broadcast %cst_136 : f32 to vector<24x128xf32>
    %224 = arith.select %221, %222, %223 : vector<24x128xi1>, vector<24x128xf32>
    %225 = arith.truncf %224 : vector<24x128xf32> to vector<24x128xbf16>
    %c8_137 = arith.constant 8 : index
    %c0_138 = arith.constant 0 : index
    %c0_139 = arith.constant 0 : index
    %226 = vector.load %arg9[%c8_137, %c0_138, %c0_139] : memref<10x24x128xbf16, #tpu.memory_space<vmem>>, vector<1x24x128xbf16>
    %227 = vector.shape_cast %226 : vector<1x24x128xbf16> to vector<24x128xbf16>
    %228 = vector.shape_cast %225 : vector<24x128xbf16> to vector<1x24x128xbf16>
    tpu.vector_store %arg9[%c8_137, %c0_138, %c0_139], %228 {strides = array<i32>} : memref<10x24x128xbf16, #tpu.memory_space<vmem>>, vector<1x24x128xbf16>,
    %c1_i32_140 = arith.constant 1 : i32
    %229 = arith.subi %0, %c1_i32_140 : i32
    %c9_i32 = arith.constant 9 : i32
    %230 = arith.addi %229, %c9_i32 : i32
    %c0_i32_141 = arith.constant 0 : i32
    %231 = arith.cmpi sge, %230, %c0_i32_141 : i32
    %232 = vector.broadcast %231 : i1 to vector<24x128xi1>
    %233 = arith.andi %93, %232 : vector<24x128xi1>
    %c16_i32_142 = arith.constant 16 : i32
    %234 = arith.cmpi slt, %230, %c16_i32_142 : i32
    %235 = vector.broadcast %234 : i1 to vector<24x128xi1>
    %236 = arith.andi %233, %235 : vector<24x128xi1>
    %237 = vector.extract_strided_slice %87 {offsets = [216, 0], sizes = [24, 128], strides = [1, 1]} : vector<240x128xf32> to vector<24x128xf32>
    %cst_143 = arith.constant 0.000000e+00 : f32
    %238 = vector.broadcast %cst_143 : f32 to vector<24x128xf32>
    %239 = arith.select %236, %237, %238 : vector<24x128xi1>, vector<24x128xf32>
    %240 = arith.truncf %239 : vector<24x128xf32> to vector<24x128xbf16>
    %c9 = arith.constant 9 : index
    %c0_144 = arith.constant 0 : index
    %c0_145 = arith.constant 0 : index
    %241 = vector.load %arg9[%c9, %c0_144, %c0_145] : memref<10x24x128xbf16, #tpu.memory_space<vmem>>, vector<1x24x128xbf16>
    %242 = vector.shape_cast %241 : vector<1x24x128xbf16> to vector<24x128xbf16>
    %243 = vector.shape_cast %240 : vector<24x128xbf16> to vector<1x24x128xbf16>
    tpu.vector_store %arg9[%c9, %c0_144, %c0_145], %243 {strides = array<i32>} : memref<10x24x128xbf16, #tpu.memory_space<vmem>>, vector<1x24x128xbf16>,
    %cst_146 = arith.constant 0.000000e+00 : f32
    %244 = vector.broadcast %cst_146 : f32 to vector<128x128xf32>
    %c0_147 = arith.constant 0 : index
    %c0_148 = arith.constant 0 : index
    %c0_149 = arith.constant 0 : index
    %245 = vector.load %arg9[%c0_147, %c0_148, %c0_149] : memref<10x24x128xbf16, #tpu.memory_space<vmem>>, vector<8x16x128xbf16>
    %246 = vector.shape_cast %245 : vector<8x16x128xbf16> to vector<128x128xbf16>
    %c0_150 = arith.constant 0 : index
    %c0_151 = arith.constant 0 : index
    %c0_152 = arith.constant 0 : index
    %247 = vector.load %arg5[%c0_150, %c0_151, %c0_152] : memref<9x128x128xbf16, #tpu.memory_space<vmem>>, vector<1x128x128xbf16>
    %248 = vector.shape_cast %247 : vector<1x128x128xbf16> to vector<128x128xbf16>
    %cst_153 = arith.constant dense<0.000000e+00> : vector<128x128xf32>
    %249 = tpu.matmul %246, %248, %cst_153 {dimension_numbers = #tpu.dot_dimension_numbers<[1], [0], [0], [1], [0, 0, 1, 1], [], []>} : vector<128x128xbf16>, vector<128x128xbf16>, vector<128x128xf32> -> vector<128x128xf32>
    %250 = arith.addf %244, %249 : vector<128x128xf32>
    %c0_154 = arith.constant 0 : index
    %c1_155 = arith.constant 1 : index
    %c0_156 = arith.constant 0 : index
    %251 = vector.load %arg9[%c0_154, %c1_155, %c0_156] : memref<10x24x128xbf16, #tpu.memory_space<vmem>>, vector<8x16x128xbf16>
    %252 = vector.shape_cast %251 : vector<8x16x128xbf16> to vector<128x128xbf16>
    %c1_157 = arith.constant 1 : index
    %c0_158 = arith.constant 0 : index
    %c0_159 = arith.constant 0 : index
    %253 = vector.load %arg5[%c1_157, %c0_158, %c0_159] : memref<9x128x128xbf16, #tpu.memory_space<vmem>>, vector<1x128x128xbf16>
    %254 = vector.shape_cast %253 : vector<1x128x128xbf16> to vector<128x128xbf16>
    %cst_160 = arith.constant dense<0.000000e+00> : vector<128x128xf32>
    %255 = tpu.matmul %252, %254, %cst_160 {dimension_numbers = #tpu.dot_dimension_numbers<[1], [0], [0], [1], [0, 0, 1, 1], [], []>} : vector<128x128xbf16>, vector<128x128xbf16>, vector<128x128xf32> -> vector<128x128xf32>
    %256 = arith.addf %250, %255 : vector<128x128xf32>
    %c0_161 = arith.constant 0 : index
    %c2_162 = arith.constant 2 : index
    %c0_163 = arith.constant 0 : index
    %257 = vector.load %arg9[%c0_161, %c2_162, %c0_163] : memref<10x24x128xbf16, #tpu.memory_space<vmem>>, vector<8x16x128xbf16>
    %258 = vector.shape_cast %257 : vector<8x16x128xbf16> to vector<128x128xbf16>
    %c2_164 = arith.constant 2 : index
    %c0_165 = arith.constant 0 : index
    %c0_166 = arith.constant 0 : index
    %259 = vector.load %arg5[%c2_164, %c0_165, %c0_166] : memref<9x128x128xbf16, #tpu.memory_space<vmem>>, vector<1x128x128xbf16>
    %260 = vector.shape_cast %259 : vector<1x128x128xbf16> to vector<128x128xbf16>
    %cst_167 = arith.constant dense<0.000000e+00> : vector<128x128xf32>
    %261 = tpu.matmul %258, %260, %cst_167 {dimension_numbers = #tpu.dot_dimension_numbers<[1], [0], [0], [1], [0, 0, 1, 1], [], []>} : vector<128x128xbf16>, vector<128x128xbf16>, vector<128x128xf32> -> vector<128x128xf32>
    %262 = arith.addf %256, %261 : vector<128x128xf32>
    %c1_168 = arith.constant 1 : index
    %c0_169 = arith.constant 0 : index
    %c0_170 = arith.constant 0 : index
    %263 = vector.load %arg9[%c1_168, %c0_169, %c0_170] : memref<10x24x128xbf16, #tpu.memory_space<vmem>>, vector<8x16x128xbf16>
    %264 = vector.shape_cast %263 : vector<8x16x128xbf16> to vector<128x128xbf16>
    %c3_171 = arith.constant 3 : index
    %c0_172 = arith.constant 0 : index
    %c0_173 = arith.constant 0 : index
    %265 = vector.load %arg5[%c3_171, %c0_172, %c0_173] : memref<9x128x128xbf16, #tpu.memory_space<vmem>>, vector<1x128x128xbf16>
    %266 = vector.shape_cast %265 : vector<1x128x128xbf16> to vector<128x128xbf16>
    %cst_174 = arith.constant dense<0.000000e+00> : vector<128x128xf32>
    %267 = tpu.matmul %264, %266, %cst_174 {dimension_numbers = #tpu.dot_dimension_numbers<[1], [0], [0], [1], [0, 0, 1, 1], [], []>} : vector<128x128xbf16>, vector<128x128xbf16>, vector<128x128xf32> -> vector<128x128xf32>
    %268 = arith.addf %262, %267 : vector<128x128xf32>
    %c1_175 = arith.constant 1 : index
    %c1_176 = arith.constant 1 : index
    %c0_177 = arith.constant 0 : index
    %269 = vector.load %arg9[%c1_175, %c1_176, %c0_177] : memref<10x24x128xbf16, #tpu.memory_space<vmem>>, vector<8x16x128xbf16>
    %270 = vector.shape_cast %269 : vector<8x16x128xbf16> to vector<128x128xbf16>
    %c4_178 = arith.constant 4 : index
    %c0_179 = arith.constant 0 : index
    %c0_180 = arith.constant 0 : index
    %271 = vector.load %arg5[%c4_178, %c0_179, %c0_180] : memref<9x128x128xbf16, #tpu.memory_space<vmem>>, vector<1x128x128xbf16>
    %272 = vector.shape_cast %271 : vector<1x128x128xbf16> to vector<128x128xbf16>
    %cst_181 = arith.constant dense<0.000000e+00> : vector<128x128xf32>
    %273 = tpu.matmul %270, %272, %cst_181 {dimension_numbers = #tpu.dot_dimension_numbers<[1], [0], [0], [1], [0, 0, 1, 1], [], []>} : vector<128x128xbf16>, vector<128x128xbf16>, vector<128x128xf32> -> vector<128x128xf32>
    %274 = arith.addf %268, %273 : vector<128x128xf32>
    %c1_182 = arith.constant 1 : index
    %c2_183 = arith.constant 2 : index
    %c0_184 = arith.constant 0 : index
    %275 = vector.load %arg9[%c1_182, %c2_183, %c0_184] : memref<10x24x128xbf16, #tpu.memory_space<vmem>>, vector<8x16x128xbf16>
    %276 = vector.shape_cast %275 : vector<8x16x128xbf16> to vector<128x128xbf16>
    %c5_185 = arith.constant 5 : index
    %c0_186 = arith.constant 0 : index
    %c0_187 = arith.constant 0 : index
    %277 = vector.load %arg5[%c5_185, %c0_186, %c0_187] : memref<9x128x128xbf16, #tpu.memory_space<vmem>>, vector<1x128x128xbf16>
    %278 = vector.shape_cast %277 : vector<1x128x128xbf16> to vector<128x128xbf16>
    %cst_188 = arith.constant dense<0.000000e+00> : vector<128x128xf32>
    %279 = tpu.matmul %276, %278, %cst_188 {dimension_numbers = #tpu.dot_dimension_numbers<[1], [0], [0], [1], [0, 0, 1, 1], [], []>} : vector<128x128xbf16>, vector<128x128xbf16>, vector<128x128xf32> -> vector<128x128xf32>
    %280 = arith.addf %274, %279 : vector<128x128xf32>
    %c2_189 = arith.constant 2 : index
    %c0_190 = arith.constant 0 : index
    %c0_191 = arith.constant 0 : index
    %281 = vector.load %arg9[%c2_189, %c0_190, %c0_191] : memref<10x24x128xbf16, #tpu.memory_space<vmem>>, vector<8x16x128xbf16>
    %282 = vector.shape_cast %281 : vector<8x16x128xbf16> to vector<128x128xbf16>
    %c6_192 = arith.constant 6 : index
    %c0_193 = arith.constant 0 : index
    %c0_194 = arith.constant 0 : index
    %283 = vector.load %arg5[%c6_192, %c0_193, %c0_194] : memref<9x128x128xbf16, #tpu.memory_space<vmem>>, vector<1x128x128xbf16>
    %284 = vector.shape_cast %283 : vector<1x128x128xbf16> to vector<128x128xbf16>
    %cst_195 = arith.constant dense<0.000000e+00> : vector<128x128xf32>
    %285 = tpu.matmul %282, %284, %cst_195 {dimension_numbers = #tpu.dot_dimension_numbers<[1], [0], [0], [1], [0, 0, 1, 1], [], []>} : vector<128x128xbf16>, vector<128x128xbf16>, vector<128x128xf32> -> vector<128x128xf32>
    %286 = arith.addf %280, %285 : vector<128x128xf32>
    %c2_196 = arith.constant 2 : index
    %c1_197 = arith.constant 1 : index
    %c0_198 = arith.constant 0 : index
    %287 = vector.load %arg9[%c2_196, %c1_197, %c0_198] : memref<10x24x128xbf16, #tpu.memory_space<vmem>>, vector<8x16x128xbf16>
    %288 = vector.shape_cast %287 : vector<8x16x128xbf16> to vector<128x128xbf16>
    %c7_199 = arith.constant 7 : index
    %c0_200 = arith.constant 0 : index
    %c0_201 = arith.constant 0 : index
    %289 = vector.load %arg5[%c7_199, %c0_200, %c0_201] : memref<9x128x128xbf16, #tpu.memory_space<vmem>>, vector<1x128x128xbf16>
    %290 = vector.shape_cast %289 : vector<1x128x128xbf16> to vector<128x128xbf16>
    %cst_202 = arith.constant dense<0.000000e+00> : vector<128x128xf32>
    %291 = tpu.matmul %288, %290, %cst_202 {dimension_numbers = #tpu.dot_dimension_numbers<[1], [0], [0], [1], [0, 0, 1, 1], [], []>} : vector<128x128xbf16>, vector<128x128xbf16>, vector<128x128xf32> -> vector<128x128xf32>
    %292 = arith.addf %286, %291 : vector<128x128xf32>
    %c2_203 = arith.constant 2 : index
    %c2_204 = arith.constant 2 : index
    %c0_205 = arith.constant 0 : index
    %293 = vector.load %arg9[%c2_203, %c2_204, %c0_205] : memref<10x24x128xbf16, #tpu.memory_space<vmem>>, vector<8x16x128xbf16>
    %294 = vector.shape_cast %293 : vector<8x16x128xbf16> to vector<128x128xbf16>
    %c8_206 = arith.constant 8 : index
    %c0_207 = arith.constant 0 : index
    %c0_208 = arith.constant 0 : index
    %295 = vector.load %arg5[%c8_206, %c0_207, %c0_208] : memref<9x128x128xbf16, #tpu.memory_space<vmem>>, vector<1x128x128xbf16>
    %296 = vector.shape_cast %295 : vector<1x128x128xbf16> to vector<128x128xbf16>
    %cst_209 = arith.constant dense<0.000000e+00> : vector<128x128xf32>
    %297 = tpu.matmul %294, %296, %cst_209 {dimension_numbers = #tpu.dot_dimension_numbers<[1], [0], [0], [1], [0, 0, 1, 1], [], []>} : vector<128x128xbf16>, vector<128x128xbf16>, vector<128x128xf32> -> vector<128x128xf32>
    %298 = arith.addf %292, %297 : vector<128x128xf32>
    %c2_i32_210 = arith.constant 2 : i32
    %299 = arith.addi %0, %c2_i32_210 : i32
    %c0_211 = arith.constant 0 : index
    %c0_212 = arith.constant 0 : index
    %300 = arith.index_cast %299 : i32 to index
    %c2_213 = arith.constant 2 : index
    %c0_214 = arith.constant 0 : index
    %301 = vector.load %arg2[%c0_211, %c0_212, %300, %c2_213, %c0_214] : memref<1x1x20x26x128xbf16, #tpu.memory_space<vmem>>, vector<1x1x8x16x128xbf16>
    %302 = vector.shape_cast %301 : vector<1x1x8x16x128xbf16> to vector<8x16x128xbf16>
    %303 = vector.shape_cast %302 : vector<8x16x128xbf16> to vector<128x128xbf16>
    %c0_215 = arith.constant 0 : index
    %c0_216 = arith.constant 0 : index
    %304 = vector.load %arg7[%c0_215, %c0_216] : memref<128x128xbf16, #tpu.memory_space<vmem>>, vector<128x128xbf16>
    %cst_217 = arith.constant dense<0.000000e+00> : vector<128x128xf32>
    %305 = tpu.matmul %303, %304, %cst_217 {dimension_numbers = #tpu.dot_dimension_numbers<[1], [0], [0], [1], [0, 0, 1, 1], [], []>} : vector<128x128xbf16>, vector<128x128xbf16>, vector<128x128xf32> -> vector<128x128xf32>
    %306 = arith.addf %298, %305 : vector<128x128xf32>
    %c0_218 = arith.constant 0 : index
    %c0_219 = arith.constant 0 : index
    %307 = vector.load %arg6[%c0_218, %c0_219] : memref<1x128xf32, #tpu.memory_space<vmem>>, vector<1x128xf32>
    %308 = vector.broadcast %307 : vector<1x128xf32> to vector<128x128xf32>
    %309 = arith.addf %306, %308 : vector<128x128xf32>
    %cst_220 = arith.constant 0.000000e+00 : f32
    %310 = vector.broadcast %cst_220 : f32 to vector<128x128xf32>
    %311 = arith.maximumf %309, %310 : vector<128x128xf32>
    %312 = vector.shape_cast %311 : vector<128x128xf32> to vector<8x16x128xf32>
    %c0_221 = arith.constant 0 : index
    %c0_222 = arith.constant 0 : index
    %c0_223 = arith.constant 0 : index
    %c0_224 = arith.constant 0 : index
    %313 = vector.load %arg8[%c0_221, %c0_222, %c0_223, %c0_224] : memref<1x8x16x128xf32, #tpu.memory_space<vmem>>, vector<1x8x16x128xf32>
    %314 = vector.shape_cast %313 : vector<1x8x16x128xf32> to vector<8x16x128xf32>
    %315 = vector.shape_cast %312 : vector<8x16x128xf32> to vector<1x8x16x128xf32>
    tpu.vector_store %arg8[%c0_221, %c0_222, %c0_223, %c0_224], %315 {strides = array<i32>} : memref<1x8x16x128xf32, #tpu.memory_space<vmem>>, vector<1x8x16x128xf32>,
    return
  }
  func.func @transform_0(%arg0: i32, %arg1: i32) -> (i32, i32, i32, i32, i32) {
    %c0_i32 = arith.constant 0 : i32
    %c0_i32_0 = arith.constant 0 : i32
    %c0_i32_1 = arith.constant 0 : i32
    %c0_i32_2 = arith.constant 0 : i32
    %c0_i32_3 = arith.constant 0 : i32
    return %arg0, %c0_i32, %c0_i32_0, %c0_i32_1, %c0_i32_2 : i32, i32, i32, i32, i32
  }
  func.func @transform_1(%arg0: i32, %arg1: i32) -> (i32, i32, i32) {
    %c0_i32 = arith.constant 0 : i32
    %c0_i32_0 = arith.constant 0 : i32
    %c0_i32_1 = arith.constant 0 : i32
    %c0_i32_2 = arith.constant 0 : i32
    return %c0_i32, %c0_i32_0, %c0_i32_1 : i32, i32, i32
  }
  func.func @transform_2(%arg0: i32, %arg1: i32) -> (i32, i32) {
    %c0_i32 = arith.constant 0 : i32
    %c0_i32_0 = arith.constant 0 : i32
    %c0_i32_1 = arith.constant 0 : i32
    return %c0_i32, %c0_i32_0 : i32, i32
  }
  func.func @transform_3(%arg0: i32, %arg1: i32) -> (i32, i32, i32) {
    %c0_i32 = arith.constant 0 : i32
    %c0_i32_0 = arith.constant 0 : i32
    %c0_i32_1 = arith.constant 0 : i32
    %c0_i32_2 = arith.constant 0 : i32
    return %c0_i32, %c0_i32_0, %c0_i32_1 : i32, i32, i32
  }
  func.func @transform_4(%arg0: i32, %arg1: i32) -> (i32, i32) {
    %c0_i32 = arith.constant 0 : i32
    %c0_i32_0 = arith.constant 0 : i32
    %c0_i32_1 = arith.constant 0 : i32
    return %c0_i32, %c0_i32_0 : i32, i32
  }
  func.func @transform_5(%arg0: i32, %arg1: i32) -> (i32, i32) {
    %c0_i32 = arith.constant 0 : i32
    %c0_i32_0 = arith.constant 0 : i32
    %c0_i32_1 = arith.constant 0 : i32
    return %c0_i32, %c0_i32_0 : i32, i32
  }
  func.func @transform_6(%arg0: i32, %arg1: i32) -> (i32, i32, i32, i32) {
    %c0_i32 = arith.constant 0 : i32
    %c0_i32_0 = arith.constant 0 : i32
    %c0_i32_1 = arith.constant 0 : i32
    return %arg0, %arg1, %c0_i32, %c0_i32_0 : i32, i32, i32, i32
  }
}

</mosaic_0001>

<bundles_post_ra>
// kernel: resblk_forward.1
= control target key start
LH: loop header
LB: loop body
LE: loop exit
PB: predicated region body
PF: predicated region fallthrough
CT: control target
= control target key end

     0   :  { %s9089_s21 = smov 0   ;;  %s9091_s22 = smov 0   ;;  %s11987_s0 = inlined_call_operand.vmem [shape: bf16[2,1,20,26,128], index: 0, kind: input, shape index: {}]   ;;  %s11988_s1 = inlined_call_operand.vmem [shape: bf16[9,128,128], index: 1, kind: input, shape index: {}]   ;;  %s11989_s2 = inlined_call_operand.vmem [shape: f32[1,128], index: 2, kind: input, shape index: {}]   ;;  %s11990_s3 = inlined_call_operand.vmem [shape: bf16[9,128,128], index: 3, kind: input, shape index: {}]   ;;  %s11991_s4 = inlined_call_operand.vmem [shape: f32[1,128], index: 4, kind: input, shape index: {}]   ;;  %s11992_s5 = inlined_call_operand.vmem [shape: bf16[128,128], index: 5, kind: input, shape index: {}]   ;;  %s11993_s6 = inlined_call_operand.vmem [shape: f32[2,16,16,128], index: 6, kind: output, shape index: {}]  }
   0x1   :  { %s9093_s23 = smov 0   ;;  %s9095_s24 = smov 0  }
   0x2   :  { %s9097_s25 = smov 0  }
   0x3 LB: > { %s25_s26 = sadd.s32 1, %s9044_s23  ;;  %s28_s27 = sadd.s32 1, %s9048_s24  ;;  %s9052_s25 = sphi %s9097_s25, %s16_s25   ;;  %s9048_s24 = sphi %s9095_s24, %s12131_s24   ;;  %s9044_s23 = sphi %s9093_s23, %s12130_s23   ;;  %s9040_s22 = sphi %s9091_s22, %s12129_s22   ;;  %s9036_s21 = sphi %s9089_s21, %s12128_s21  }
   0x4   : > { %p26_p0 = scmp.ge.s32.totalorder %s25_s26, 2  ;;  %p7258_p1 = scmp.ge.s32.totalorder %s9052_s25, 1 }
   0x5   : > { %p226_p2 = scmp.lt.s32.totalorder %s9052_s25, 5 }
   0x6   : > { %s12133_s26 = smov (%p26_p0, %s25_s26), 0  ;;  %s12135_s27 = smov (!%p26_p0, %s28_s27), %s9048_s24 }
   0x7   : > { %p227_p3 = pnand %p7258_p1, %p226_p2  ;;  %p30_p4 = scmp.ge.s32.totalorder %s12135_s27, 2 }
   0x9   : > { %s12137_s27 = smov (%p30_p4, %s12135_s27), 0  ;;  %230 = sbr.rel (%p227_p3) target bundleno = 1269 (0x4f5), region = 44 }
   0xe   : > { %v8692_v0 = vld [vmem:[%s11988_s1 + $0x78] sm:$0xff]  ;;  %p261_p5 = scmp.lt.s32.totalorder %s9040_s22, 1  ;;  %v8691_v4 = vld [vmem:[%s11988_s1 + $0x70] sm:$0xff]  ;;  %s8661_s28 = sshll.u32 %s9036_s21, 7  ;;  %v8690_v8 = vld [vmem:[%s11988_s1 + $0x68] sm:$0xff]  ;;  %vm1141_vm0 = vcmask 1042432  }
   0xf   : > { %v8684_v1 = vld [vmem:[%s11988_s1 + $0x38] sm:$0xff]  ;;  %805 = vmatpush.bf16.msra.mxu0 %v8692_v0  ;;  %v8683_v5 = vld [vmem:[%s11988_s1 + $0x30] sm:$0xff]  ;;  %v8682_v9 = vld [vmem:[%s11988_s1 + $0x28] sm:$0xff]  ;;  %vm1142_vm1 = vcmask 1046532   ;;  %vm337_vm2 = vsmask.f32 3328 }
  0x10   : > { %v8700_v2 = vld [vmem:[%s11988_s1 + $0xb8] sm:$0xff]  ;;  %1027 = vmatpush.bf16.msra.mxu1 %v8684_v1  ;;  %s12139_s22 = smov (!%p261_p5, %s9040_s22), 1  ;;  %v8699_v6 = vld [vmem:[%s11988_s1 + $0xb0] sm:$0xff]  ;;  %v8698_v10 = vld [vmem:[%s11988_s1 + $0xa8] sm:$0xff]  ;;  %vm338_vm3 = vsmask.f32 7440 }
  0x11   : > { %v8724_v3 = vld [vmem:[%s11988_s1 + $0xf8] sm:$0xff]  ;;  %1369 = vmatpush.bf16.msra.mxu2 %v8700_v2  ;;  %v8723_v7 = vld [vmem:[%s11988_s1 + $0xf0] sm:$0xff]  ;;  %s8940_s20 = smul.u32 320, %s12139_s22  ;;  %v8722_v11 = vld [vmem:[%s11988_s1 + $0xe8] sm:$0xff]  ;;  %s10522_s14 = sshll.u32 %s9036_s21, 3 }
  0x12   : > { %1672 = vmatpush.bf16.msra.mxu3 %v8724_v3  ;;  %v8689_v12 = vld [vmem:[%s11988_s1 + $0x60] sm:$0xff]  ;;  %v8688_v23 = vld [vmem:[%s11988_s1 + $0x58] sm:$0xff]  ;;  %v8687_v36 = vld [vmem:[%s11988_s1 + $0x50] sm:$0xff]  ;;  %s8057_s15 = sadd.s32 4294967295, %s10522_s14  ;;  %p4206_p8 = scmp.ge.s32.totalorder %s10522_s14, 0 }
  0x13   : > { %806 = vmatpush.bf16.msra.mxu0 %v8691_v4  ;;  %s265_s11 = scalar_lea.vmem %s11987_s0, %s8940_s20  ;;  %v8681_v13 = vld [vmem:[%s11988_s1 + $0x20] sm:$0xff]  ;;  %v8680_v26 = vld [vmem:[%s11988_s1 + $0x18] sm:$0xff]  ;;  %v8679_v38 = vld [vmem:[%s11988_s1 + $0x10] sm:$0xff]  ;;  %p10542_p6 = scmp.ge.s32.totalorder %s8057_s15, 0 }
  0x14   : > { %1028 = vmatpush.bf16.msra.mxu1 %v8683_v5  ;;  %s9164_s16 = scalar_lea.vmem %s265_s11, %s8661_s28  ;;  %v8697_v14 = vld [vmem:[%s11988_s1 + $0xa0] sm:$0xff]  ;;  %v8696_v31 = vld [vmem:[%s11988_s1 + $0x98] sm:$0xff]  ;;  %v8695_v39 = vld [vmem:[%s11988_s1 + $0x90] sm:$0xff]  ;;  %p10546_p7 = scmp.lt.s32.totalorder %s8057_s15, 16 }
  0x15   : > { %1370 = vmatpush.bf16.msra.mxu2 %v8699_v6  ;;  %v8721_v15 = vld [vmem:[%s11988_s1 + $0xe0] sm:$0xff]  ;;  %v9181_v18 = vld [vmem:[%s9164_s16 + $0x8] sm:$0xf]  ;;  %v8720_v32 = vld [vmem:[%s11988_s1 + $0xd8] sm:$0xff]  ;;  %s4184_s20 = scalar_select %p10542_p6, 1, 0 }
  0x16   : > { %1673 = vmatpush.bf16.msra.mxu3 %v8723_v7  ;;  %v281_v16 = vld [vmem:[%s9164_s16] sm:$0xf]  ;;  %v282_v17 = vld [vmem:[%s9164_s16 + $0x4] sm:$0xf]  ;;  %v360_v29 = vshll.u32 %v9181_v18, 16  ;;  %vm9207_vm4 = vmor %vm1141_vm0, %vm1142_vm1  ;;  %v1149_v47 = vrot.slane %v9181_v18, 5 }
  0x17   : > { %807 = vmatpush.bf16.msra.mxu0 %v8690_v8  ;;  %v341_v19 = vshrl.u32 %v281_v16, 16  ;;  %v344_v20 = vshll.u32 %v281_v16, 16  ;;  %v350_v21 = vshll.u32 %v282_v17, 16  ;;  %v354_v22 = vshrl.u32 %v282_v17, 16  ;;  %v1111_v30 = vld [vmem:[%s9164_s16] sm:$0xe]  ;;  %vm9216_vm5 = vmor %vm337_vm2, %vm338_vm3 }
  0x18   : > { %1029 = vmatpush.bf16.msra.mxu1 %v8682_v9  ;;  %v1146_v34 = vrot.slane %v282_v17, 5  ;;  %v7407_v37 = vrot.slane %v1111_v30, 9  ;;  %v362_v42 = vrot.slane %v360_v29, 5  ;;  %v8719_v44 = vld [vmem:[%s11988_s1 + $0xd0] sm:$0xff]  ;;  %v364_v50 = vshrl.u32 %v9181_v18, 16  ;;  %v8686_v51 = vld [vmem:[%s11988_s1 + $0x48] sm:$0xff] }
  0x19   : > { %1371 = vmatpush.bf16.msra.mxu2 %v8698_v10  ;;  %v343_v24 = vrot.slane %v341_v19, 4  ;;  %v346_v25 = vrot.slane %v344_v20, 5  ;;  %v352_v27 = vrot.slane %v350_v21, 5  ;;  %v356_v28 = vrot.slane %v354_v22, 4  ;;  %v284_v48 = vld [vmem:[%s9164_s16 + $0x10] sm:$0xf] }
  0x1a   : > { %1674 = vmatpush.bf16.msra.mxu3 %v8722_v11  ;;  %v1148_v46 = vrot.slane %v1146_v34, 4  ;;  %v1147_v49 = vsel %vm9207_vm4, %v7407_v37, %v1146_v34  ;;  %v8678_v52 = vld [vmem:[%s11988_s1 + $0x8] sm:$0xff]  ;;  %v375_v55 = vshrl.u32 %v284_v48, 16  ;;  %v378_v56 = vshll.u32 %v284_v48, 16  ;;  %v8685_v60 = vld [vmem:[%s11988_s1 + $0x40] sm:$0xff]  ;;  %v8732_v9 = vld [vmem:[%s11988_s1 + $0x138] sm:$0xff] }
  0x1b   : > { %808 = vmatpush.bf16.msra.mxu0 %v8689_v12  ;;  %v347_v33 = vor.u32 %v346_v25, %v343_v24  ;;  %v357_v35 = vor.u32 %v356_v28, %v352_v27  ;;  %v8694_v57 = vld [vmem:[%s11988_s1 + $0x88] sm:$0xff]  ;;  %v1261_v63 = vunpack.c.l.b16 %v1147_v49  ;;  %v8677_v0 = vld [vmem:[%s11988_s1] sm:$0xff]  ;;  %v366_v3 = vrot.slane %v364_v50, 4  ;;  %v9257_v8 = vld [vmem:[%s9164_s16 + $0x14] sm:$0xf]  ;;  %p4213_p9 = scmp.lt.s32.totalorder %s10522_s14, 16 }
  0x1c   : > { %1030 = vmatpush.bf16.msra.mxu1 %v8681_v13  ;;  %v8718_v58 = vld [vmem:[%s11988_s1 + $0xc8] sm:$0xff]  ;;  %v1150_v59 = vsel %vm9207_vm4, %v1148_v46, %v1149_v47  ;;  %v377_v4 = vrot.slane %v375_v55, 4  ;;  %v380_v5 = vrot.slane %v378_v56, 5  ;;  %v8693_v6 = vld [vmem:[%s11988_s1 + $0x80] sm:$0xff]  ;;  %v384_v17 = vshll.u32 %v9257_v8, 16  ;;  %v8731_v19 = vld [vmem:[%s11988_s1 + $0x130] sm:$0xff] }
  0x1d   : > { %1372 = vmatpush.bf16.msra.mxu2 %v8697_v14  ;;  %v348_v40 = vrot.slane %v347_v33, 4  ;;  %v358_v41 = vrot.slane %v357_v35, 4  ;;  %v1262_v1 = vunpack.c.l.b16 %v1150_v59  ;;  %v327_v2 = vld [vmem:[%s9164_s16 + $0xc] sm:$0x1]  ;;  %v8717_v7 = vld [vmem:[%s11988_s1 + $0xc0] sm:$0xff]  ;;  %v8702_v14 = vld [vmem:[%s9164_s16 + $0x10] sm:$0xff] }
  0x1e   : > { %1675 = vmatpush.bf16.msra.mxu3 %v8721_v15  ;;  %v8662_v11 = vld [vmem:[%s9164_s16] sm:$0xff]  ;;  %v370_v12 = vshll.u32 %v327_v2, 16  ;;  %v367_v15 = vor.u32 %v366_v3, %v362_v42  ;;  %v381_v16 = vor.u32 %v380_v5, %v377_v4  ;;  %v1112_v18 = vld [vmem:[%s9164_s16 + $0x10] sm:$0xe]  ;;  %v286_v20 = vld [vmem:[%s9164_s16 + $0x18] sm:$0xf] }
  0x1f   : > { %809 = vmatpush.bf16.msra.mxu0 %v8688_v23  ;;  %v353_v53 = vsel %vm9216_vm5, %v348_v40, %v352_v27  ;;  %v363_v54 = vsel %vm9216_vm5, %v358_v41, %v362_v42  ;;  %v1291_v13 = vpack.c.b16 %v1262_v1, %v1261_v63  ;;  %v386_v24 = vrot.slane %v384_v17, 5  ;;  %v328_v41 = vld [vmem:[%s9164_s16 + $0x1c] sm:$0x1]  ;;  %v7321_v42 = vld [vmem:[%s9164_s16 + $0x8] sm:$0xf]  ;;  %s1483_s21 = sadd.s32 1, %s10522_s14 }
  0x20   : > { %1031 = vmatpush.bf16.msra.mxu1 %v8680_v26  ;;  %v697_v61 = vunpack.c.l.b16 %v353_v53  ;;  %v698_v62 = vunpack.c.l.b16 %v363_v54  ;;  %v368_v21 = vrot.slane %v367_v15, 4  ;;  %v372_v22 = vrot.slane %v370_v12, 5  ;;  %v7519_v48 = vld [vmem:[%s9164_s16 + $0x18] sm:$0xf]  ;;  %v8703_v49 = vld [vmem:[%s9164_s16 + $0x1c] sm:$0xf0] }
  0x21   : > { %1373 = vmatpush.bf16.msra.mxu2 %v8696_v31  ;;  %v382_v23 = vrot.slane %v381_v16, 4  ;;  %v1151_v25 = vrot.slane %v1149_v47, 4  ;;  %v1152_v26 = vrot.slane %v327_v2, 5  ;;  %v7408_v27 = vrot.slane %v1112_v18, 9  ;;  %v8730_v63 = vld [vmem:[%s11988_s1 + $0x128] sm:$0xff]  ;;  %p10688_p10 = scmp.ge.s32.totalorder %s1483_s21, 0 }
  0x22   : > { %1676 = vmatpush.bf16.msra.mxu3 %v8720_v32  ;;  %v727_v10 = vpack.c.b16 %v698_v62, %v697_v61  ;;  %v1156_v28 = vrot.slane %v9257_v8, 5  ;;  %v388_v29 = vshrl.u32 %v9257_v8, 16  ;;  %v394_v30 = vshll.u32 %v286_v20, 16  ;;  %v287_v61 = vld [vmem:[%s9164_s16 + $0x20] sm:$0xf]  ;;  %p10705_p11 = scmp.lt.s32.totalorder %s1483_s21, 16 }
  0x23   : > { %810 = vmatpush.bf16.msra.mxu0 %v8687_v36  ;;  %v398_v31 = vshrl.u32 %v286_v20, 16  ;;  %v373_v32 = vsel %vm9216_vm5, %v368_v21, %v372_v22  ;;  %v387_v33 = vsel %vm9216_vm5, %v382_v23, %v386_v24  ;;  %v1153_v34 = vsel %vm9207_vm4, %v1151_v25, %v1152_v26  ;;  %v288_v62 = vld [vmem:[%s9164_s16 + $0x24] sm:$0xf]  ;;  %v8664_v21 = vld [vmem:[%s9164_s16 + $0x14] sm:$0xff]  ;;  %s4191_s29 = scalar_select %p10546_p7, 1, 0 }
  0x24   : > { %1032 = vmatpush.bf16.msra.mxu1 %v8679_v38  ;;  %v1157_v35 = vsel %vm9207_vm4, %v7408_v27, %v1156_v28  ;;  %v390_v36 = vrot.slane %v388_v29, 4  ;;  %v396_v37 = vrot.slane %v394_v30, 5  ;;  %v700_v40 = vunpack.c.l.b16 %v387_v33  ;;  %v8704_v26 = vld [vmem:[%s9164_s16 + $0x24] sm:$0xff]  ;;  %v1113_v27 = vld [vmem:[%s9164_s16 + $0x20] sm:$0xe]  ;;  %s2794_s8 = sadd.s32 2, %s10522_s14 }
  0x25   : > { %1374 = vmatpush.bf16.msra.mxu2 %v8695_v39  ;;  %v400_v38 = vrot.slane %v398_v31, 4  ;;  %v699_v39 = vunpack.c.l.b16 %v373_v32  ;;  %v1263_v46 = vunpack.c.l.b16 %v1153_v34  ;;  %v1264_v47 = vunpack.c.l.b16 %v1157_v35  ;;  %v290_v35 = vld [vmem:[%s9164_s16 + $0x30] sm:$0xf]  ;;  %s4207_s17 = scalar_select %p4206_p8, 1, 0 }
  0x26   : > { %1677 = vmatpush.bf16.msra.mxu3 %v8719_v44  ;;  %v8663_v44 = vld [vmem:[%s9164_s16 + $0xc] sm:$0xf0]  ;;  %v391_v50 = vor.u32 %v390_v36, %v386_v24  ;;  %v7520_v56 = vor.u32 %v8703_v49, %v7519_v48  ;;  %v1162_v2 = vrot.slane %v328_v41, 5  ;;  %v409_v5 = vshrl.u32 %v287_v61, 16  ;;  %s4214_s18 = scalar_select %p4213_p9, 1, 0 }
  0x27   : > { %811 = vmatpush.bf16.msra.mxu0 %v8686_v51  ;;  %v401_v51 = vor.u32 %v400_v38, %v396_v37  ;;  %v728_v53 = vpack.c.b16 %v700_v40, %v699_v39  ;;  %v7322_v54 = vor.u32 %v8663_v44, %v7321_v42  ;;  %v1292_v55 = vpack.c.b16 %v1264_v47, %v1263_v46  ;;  %s4238_s30 = scalar_select %p10705_p11, 1, 0 }
  0x28   : > { %1033 = vmatpush.bf16.msra.mxu1 %v8678_v52  ;;  %v404_v52 = vshll.u32 %v328_v41, 16  ;;  %v422_v8 = vshrl.u32 %v288_v62, 16  ;;  %v7409_v32 = vrot.slane %v1113_v27, 9  ;;  %v443_v41 = vshrl.u32 %v290_v35, 16  ;;  %v8706_v27 = vld [vmem:[%s9164_s16 + $0x3c] sm:$0xf0] }
  0x29   : > { %1375 = vmatpush.bf16.msra.mxu2 %v8694_v57  ;;  %v1159_v57 = vrot.slane %v286_v20, 5  ;;  %v402_v59 = vrot.slane %v401_v51, 4  ;;  %v446_v42 = vshll.u32 %v290_v35, 16  ;;  %p10761_p12 = scmp.ge.s32.totalorder %s2794_s8, 0  ;;  %p10803_p13 = scmp.lt.s32.totalorder %s2794_s8, 16 }
  0x2a   : > { %1678 = vmatpush.bf16.msra.mxu3 %v8718_v58  ;;  %v392_v58 = vrot.slane %v391_v50, 4  ;;  %v424_v16 = vrot.slane %v422_v8, 4  ;;  %v445_v50 = vrot.slane %v443_v41, 4  ;;  %s4278_s21 = sadd.s32 3, %s10522_s14  ;;  %s4403_s12 = sadd.s32 8, %s10522_s14 }
  0x2b   : > { %812 = vmatpush.bf16.msra.mxu0 %v8685_v60  ;;  %v406_v60 = vrot.slane %v404_v52, 5  ;;  %v1161_v1 = vrot.slane %v1159_v57, 4  ;;  %v448_v51 = vrot.slane %v446_v42, 5  ;;  %v291_v52 = vld [vmem:[%s9164_s16 + $0x34] sm:$0xf]  ;;  %p10943_p0 = scmp.ge.s32.totalorder %s4278_s21, 0 }
  0x2c   : > { %1034 = vmatpush.bf16.msra.mxu1 %v8677_v0  ;;  %v1158_v0 = vrot.slane %v1156_v28, 4  ;;  %v397_v3 = vsel %vm9216_vm5, %v392_v58, %v396_v37  ;;  %v1166_v28 = vrot.slane %v288_v62, 5  ;;  %v1176_v8 = vrot.slane %v291_v52, 5  ;;  %s4255_s15 = scalar_select %p10761_p12, 1, 0 }
  0x2d   : > { %1376 = vmatpush.bf16.msra.mxu2 %v8693_v6  ;;  %v407_v4 = vsel %vm9216_vm5, %v402_v59, %v406_v60  ;;  %v412_v6 = vshll.u32 %v287_v61, 16  ;;  %v449_v60 = vor.u32 %v448_v51, %v445_v50  ;;  %v452_v61 = vshll.u32 %v291_v52, 16  ;;  %s4262_s19 = scalar_select %p10803_p13, 1, 0 }
  0x2e   : > { %1679 = vmatpush.bf16.msra.mxu3 %v8717_v7  ;;  %813 = vmatmul.bf16.vlgmr.msra.gmra.mxu0 %v727_v10  ;;  %v418_v7 = vshll.u32 %v288_v62, 16  ;;  %v1163_v10 = vsel %vm9207_vm4, %v1161_v1, %v1162_v2  ;;  %v702_v12 = vunpack.c.l.b16 %v407_v4  ;;  %v1168_v33 = vrot.slane %v1166_v28, 4  ;;  %v1114_v62 = vld [vmem:[%s9164_s16 + $0x30] sm:$0xe]  ;;  %v8729_v4 = vld [vmem:[%s11988_s1 + $0x120] sm:$0xff]  ;;  %p10966_p1 = scmp.lt.s32.totalorder %s4278_s21, 16 }
  0x2f   : > { %2291 = vmatpush.bf16.msrb.mxu0 %v8732_v9  ;;  %1035 = vmatmul.bf16.vlgmr.msra.gmra.mxu1 %v8662_v11  ;;  %v1160_v9 = vsel %vm9207_vm4, %v1158_v0, %v1159_v57  ;;  %v701_v11 = vunpack.c.l.b16 %v397_v3  ;;  %v1266_v18 = vunpack.c.l.b16 %v1163_v10  ;;  %v1167_v38 = vsel %vm9207_vm4, %v7409_v32, %v1166_v28  ;;  %v8705_v57 = vld [vmem:[%s9164_s16 + $0x30] sm:$0xff]  ;;  %s4280_s10 = scalar_select %p10943_p0, 1, 0 }
  0x30   : > { %1377 = vmatmul.bf16.vlgmr.msra.gmra.mxu2 %v1291_v13  ;;  %v411_v13 = vrot.slane %v409_v5, 4  ;;  %v420_v15 = vrot.slane %v418_v7, 5  ;;  %v1265_v17 = vunpack.c.l.b16 %v1160_v9  ;;  %v1267_v47 = vunpack.c.l.b16 %v1167_v38  ;;  %s4287_s11 = scalar_select %p10966_p1, 1, 0 }
  0x31   : > { %1680 = vmatmul.bf16.vlgmr.msra.gmra.mxu3 %v8702_v14  ;;  %v414_v14 = vrot.slane %v412_v6, 5  ;;  %v729_v20 = vpack.c.b16 %v702_v12, %v701_v11  ;;  %v450_v2 = vrot.slane %v449_v60, 4  ;;  %v454_v3 = vrot.slane %v452_v61, 5  ;;  %p11440_p11 = scmp.lt.s32.totalorder %s4403_s12, 16  ;;  %p269_p12 = scmp.lt.s32.totalorder %s10522_s14, 15 }
  0x32   : > { %v425_v23 = vor.u32 %v424_v16, %v420_v15  ;;  %v1293_v25 = vpack.c.b16 %v1266_v18, %v1265_v17  ;;  %v7410_v7 = vrot.slane %v1114_v62, 9  ;;  %v456_v9 = vshrl.u32 %v291_v52, 16  ;;  %v295_v62 = vld [vmem:[%s9164_s16 + $0x48] sm:$0xf] }
  0x33   : > { %2292 = vmatpush.bf16.msrb.mxu0 %v8731_v19  ;;  %v289_v19 = vld [vmem:[%s9164_s16 + $0x28] sm:$0xf]  ;;  %v415_v22 = vor.u32 %v414_v14, %v411_v13  ;;  %v455_v13 = vsel %vm9216_vm5, %v450_v2, %v454_v3  ;;  %v1178_v41 = vrot.slane %v1176_v8, 4 }
  0x34   : > { %v428_v24 = vshll.u32 %v289_v19, 16  ;;  %v426_v30 = vrot.slane %v425_v23, 4  ;;  %v1169_v34 = vrot.slane %v289_v19, 5  ;;  %v432_v40 = vshrl.u32 %v289_v19, 16  ;;  %v8666_v23 = vld [vmem:[%s9164_s16 + $0x2c] sm:$0xf0] }
  0x35   : > { %v416_v29 = vrot.slane %v415_v22, 4  ;;  %v458_v16 = vrot.slane %v456_v9, 4  ;;  %v7333_v22 = vld [vmem:[%s9164_s16 + $0x28] sm:$0xf] }
  0x36   : > { %v430_v31 = vrot.slane %v428_v24, 5  ;;  %v1170_v39 = vsel %vm9207_vm4, %v1168_v33, %v1169_v34  ;;  %v434_v49 = vrot.slane %v432_v40, 4  ;;  %v1171_v5 = vrot.slane %v1169_v34, 4  ;;  %v294_v40 = vld [vmem:[%s9164_s16 + $0x44] sm:$0xf] }
  0x37   : > { %2293 = vmatpush.bf16.msrb.mxu0 %v8730_v63  ;;  %v421_v36 = vsel %vm9216_vm5, %v416_v29, %v420_v15  ;;  %v1268_v48 = vunpack.c.l.b16 %v1170_v39  ;;  %v292_v63 = vld [vmem:[%s9164_s16 + $0x38] sm:$0xf]  ;;  %v1177_v15 = vsel %vm9207_vm4, %v7410_v7, %v1176_v8  ;;  %v459_v28 = vor.u32 %v458_v16, %v454_v3  ;;  %v293_v39 = vld [vmem:[%s9164_s16 + $0x40] sm:$0xf] }
  0x38   : > { %v431_v37 = vsel %vm9216_vm5, %v426_v30, %v430_v31  ;;  %v703_v44 = vunpack.c.l.b16 %v421_v36  ;;  %v435_v58 = vor.u32 %v434_v49, %v430_v31  ;;  %v462_v10 = vshll.u32 %v292_v63, 16 }
  0x39   : > { %v704_v46 = vunpack.c.l.b16 %v431_v37  ;;  %v466_v11 = vshrl.u32 %v292_v63, 16  ;;  %v7334_v32 = vor.u32 %v8666_v23, %v7333_v22  ;;  %v1179_v35 = vrot.slane %v292_v63, 5 }
  0x3a   : > { %v436_v0 = vrot.slane %v435_v58, 4  ;;  %v464_v17 = vrot.slane %v462_v10, 5  ;;  %v460_v36 = vrot.slane %v459_v28, 4  ;;  %v480_v49 = vshll.u32 %v293_v39, 16 }
  0x3b   : > { %2294 = vmatpush.bf16.msrb.mxu0 %v8729_v4  ;;  %v468_v18 = vrot.slane %v466_v11, 4  ;;  %v1181_v42 = vrot.slane %v1179_v35, 4  ;;  %v486_v50 = vshll.u32 %v294_v40, 16  ;;  %v490_v51 = vshrl.u32 %v294_v40, 16 }
  0x3c   : > { %v1180_v52 = vsel %vm9207_vm4, %v1178_v41, %v1179_v35  ;;  %v496_v3 = vshll.u32 %v295_v62, 16  ;;  %v1186_v7 = vrot.slane %v294_v40, 5  ;;  %v8708_v35 = vld [vmem:[%s9164_s16 + $0x50] sm:$0xff]  ;;  %v298_v41 = vld [vmem:[%s9164_s16 + $0x58] sm:$0xf] }
  0x3d   : > { %v469_v29 = vor.u32 %v468_v18, %v464_v17  ;;  %v488_v58 = vrot.slane %v486_v50, 5  ;;  %v1271_v60 = vunpack.c.l.b16 %v1180_v52  ;;  %v1116_v40 = vld [vmem:[%s9164_s16 + $0x50] sm:$0xe] }
  0x3e   : > { %818 = vmatmul.bf16.gmra.mxu0 %v728_v53  ;;  %v329_v53 = vld [vmem:[%s9164_s16 + $0x2c] sm:$0x1]  ;;  %v498_v10 = vrot.slane %v496_v3, 5  ;;  %v7412_v50 = vrot.slane %v1116_v40, 9  ;;  %v9392_v40 = vld [vmem:[%s9164_s16 + $0x68] sm:$0xf] }
  0x3f   : > { %1040 = vmatmul.bf16.gmra.mxu1 %v7322_v54  ;;  %v730_v54 = vpack.c.b16 %v704_v46, %v703_v44  ;;  %v438_v59 = vshll.u32 %v329_v53, 16  ;;  %v1172_v6 = vrot.slane %v329_v53, 5  ;;  %v470_v37 = vrot.slane %v469_v29, 4 }
  0x40   : > { %1382 = vmatmul.bf16.gmra.mxu2 %v1292_v55  ;;  %v8665_v55 = vld [vmem:[%s9164_s16 + $0x20] sm:$0xff]  ;;  %v465_v46 = vsel %vm9216_vm5, %v460_v36, %v464_v17 }
  0x41   : > { %1685 = vmatmul.bf16.gmra.mxu3 %v7520_v56  ;;  %v1294_v56 = vpack.c.b16 %v1268_v48, %v1267_v47  ;;  %v440_v1 = vrot.slane %v438_v59, 5  ;;  %v1173_v14 = vsel %vm9207_vm4, %v1171_v5, %v1172_v6  ;;  %v477_v48 = vshrl.u32 %v293_v39, 16  ;;  %v8707_v5 = vld [vmem:[%s9164_s16 + $0x44] sm:$0xff]  ;;  %v1115_v6 = vld [vmem:[%s9164_s16 + $0x40] sm:$0xe] }
  0x42   : > { %v1269_v24 = vunpack.c.l.b16 %v1173_v14  ;;  %v492_v59 = vrot.slane %v490_v51, 4  ;;  %v7411_v11 = vrot.slane %v1115_v6, 9  ;;  %v8728_v14 = vld [vmem:[%s11988_s1 + $0x118] sm:$0xff]  ;;  %v8709_v6 = vld [vmem:[%s9164_s16 + $0x5c] sm:$0xf0] }
  0x43   : > { %v441_v12 = vsel %vm9216_vm5, %v436_v0, %v440_v1  ;;  %v8667_v0 = vld [vmem:[%s9164_s16 + $0x34] sm:$0xff]  ;;  %2295 = vmatpush.bf16.msrb.mxu0 %v8728_v14  ;;  %v1199_v14 = vrot.slane %v298_v41, 5 }
  0x44   : > { %v705_v19 = vunpack.c.l.b16 %v441_v12  ;;  %v493_v2 = vor.u32 %v492_v59, %v488_v58  ;;  %v1188_v12 = vrot.slane %v1186_v7, 4  ;;  %v1187_v18 = vsel %vm9207_vm4, %v7411_v11, %v1186_v7 }
  0x46   : > { %v494_v9 = vrot.slane %v493_v2, 4  ;;  %v8669_v2 = vld [vmem:[%s9164_s16 + $0x4c] sm:$0xf0] }
  0x48   : > { %v499_v17 = vsel %vm9216_vm5, %v494_v9, %v498_v10 }
  0x4e   : > { %823 = vmatmul.bf16.gmra.mxu0 %v729_v20  ;;  %v706_v20 = vunpack.c.l.b16 %v455_v13  ;;  %v1189_v13 = vrot.slane %v295_v62, 5 }
  0x4f   : > { %1045 = vmatmul.bf16.gmra.mxu1 %v8664_v21  ;;  %v330_v21 = vld [vmem:[%s9164_s16 + $0x3c] sm:$0x1] }
  0x50   : > { %1387 = vmatmul.bf16.gmra.mxu2 %v1293_v25  ;;  %v1270_v25 = vunpack.c.l.b16 %v1177_v15  ;;  %v472_v30 = vshll.u32 %v330_v21, 16  ;;  %v731_v31 = vpack.c.b16 %v706_v20, %v705_v19  ;;  %v1182_v44 = vrot.slane %v330_v21, 5  ;;  %v296_v15 = vld [vmem:[%s9164_s16 + $0x50] sm:$0xf] }
  0x51   : > { %1690 = vmatmul.bf16.gmra.mxu3 %v8704_v26  ;;  %v7531_v26 = vld [vmem:[%s9164_s16 + $0x38] sm:$0xf]  ;;  %v1190_v19 = vsel %vm9207_vm4, %v1188_v12, %v1189_v13  ;;  %v500_v20 = vshrl.u32 %v295_v62, 16  ;;  %v511_v21 = vshrl.u32 %v296_v15, 16  ;;  %v514_v22 = vshll.u32 %v296_v15, 16 }
  0x52   : > { %v1295_v33 = vpack.c.b16 %v1270_v25, %v1269_v24  ;;  %v7532_v34 = vor.u32 %v8706_v27, %v7531_v26  ;;  %v474_v38 = vrot.slane %v472_v30, 5  ;;  %v1183_v53 = vsel %vm9207_vm4, %v1181_v42, %v1182_v44  ;;  %v297_v30 = vld [vmem:[%s9164_s16 + $0x54] sm:$0xf] }
  0x53   : > { %v1272_v61 = vunpack.c.l.b16 %v1183_v53  ;;  %v710_v24 = vunpack.c.l.b16 %v499_v17  ;;  %v1273_v25 = vunpack.c.l.b16 %v1187_v18  ;;  %v1274_v26 = vunpack.c.l.b16 %v1190_v19  ;;  %v299_v18 = vld [vmem:[%s9164_s16 + $0x60] sm:$0xf]  ;;  %v300_v19 = vld [vmem:[%s9164_s16 + $0x64] sm:$0xf] }
  0x54   : > { %v475_v47 = vsel %vm9216_vm5, %v470_v37, %v474_v38  ;;  %v502_v27 = vrot.slane %v500_v20, 4  ;;  %v513_v28 = vrot.slane %v511_v21, 4  ;;  %v516_v29 = vrot.slane %v514_v22, 5 }
  0x55   : > { %v1296_v4 = vpack.c.b16 %v1272_v61, %v1271_v60  ;;  %v520_v39 = vshll.u32 %v297_v30, 16  ;;  %v1196_v51 = vrot.slane %v297_v30, 5  ;;  %v524_v52 = vshrl.u32 %v297_v30, 16 }
  0x56   : > { %v503_v36 = vor.u32 %v502_v27, %v498_v10  ;;  %v517_v38 = vor.u32 %v516_v29, %v513_v28  ;;  %v530_v53 = vshll.u32 %v298_v41, 16  ;;  %v1201_v21 = vrot.slane %v1199_v14, 4 }
  0x57   : > { %v526_v59 = vrot.slane %v524_v52, 4  ;;  %v1198_v20 = vrot.slane %v1196_v51, 4  ;;  %v554_v27 = vshll.u32 %v300_v19, 16  ;;  %v558_v28 = vshrl.u32 %v300_v19, 16  ;;  %v1117_v52 = vld [vmem:[%s9164_s16 + $0x60] sm:$0xe] }
  0x58   : > { %v504_v42 = vrot.slane %v503_v36, 4  ;;  %v532_v60 = vrot.slane %v530_v53, 5  ;;  %v1206_v53 = vrot.slane %v300_v19, 5  ;;  %v9412_v19 = vld [vmem:[%s9164_s16 + $0x74] sm:$0xf] }
  0x59   : > { %v1200_v29 = vsel %vm9207_vm4, %v1198_v20, %v1199_v14  ;;  %v556_v36 = vrot.slane %v554_v27, 5  ;;  %v333_v20 = vld [vmem:[%s9164_s16 + $0x6c] sm:$0x1] }
  0x5e   : > { %828 = vmatmul.bf16.gmra.mxu0 %v730_v54  ;;  %v707_v54 = vunpack.c.l.b16 %v465_v46  ;;  %v518_v46 = vrot.slane %v517_v38, 4  ;;  %v1277_v38 = vunpack.c.l.b16 %v1200_v29 }
  0x5f   : > { %1050 = vmatmul.bf16.gmra.mxu1 %v8665_v55  ;;  %v708_v55 = vunpack.c.l.b16 %v475_v47  ;;  %v522_v47 = vrot.slane %v520_v39, 5 }
  0x60   : > { %1392 = vmatmul.bf16.gmra.mxu2 %v1294_v56  ;;  %v479_v56 = vrot.slane %v477_v48, 4  ;;  %v1191_v48 = vrot.slane %v1189_v13, 4 }
  0x61   : > { %1695 = vmatmul.bf16.gmra.mxu3 %v8705_v57  ;;  %v482_v57 = vrot.slane %v480_v49, 5  ;;  %v732_v63 = vpack.c.b16 %v708_v55, %v707_v54  ;;  %v534_v54 = vshrl.u32 %v298_v41, 16  ;;  %v527_v7 = vor.u32 %v526_v59, %v522_v47 }
  0x62   : > { %v1208_v59 = vrot.slane %v1206_v53, 4 }
  0x63   : > { %v483_v1 = vor.u32 %v482_v57, %v479_v56  ;;  %v523_v56 = vsel %vm9216_vm5, %v518_v46, %v522_v47  ;;  %v536_v61 = vrot.slane %v534_v54, 4  ;;  %v528_v15 = vrot.slane %v527_v7, 4 }
  0x64   : > { %v564_v47 = vshll.u32 %v9392_v40, 16 }
  0x65   : > { %v484_v8 = vrot.slane %v483_v1, 4  ;;  %v7345_v1 = vld [vmem:[%s9164_s16 + $0x48] sm:$0xf] }
  0x66   : > { %v7346_v11 = vor.u32 %v8669_v2, %v7345_v1 }
  0x67   : > { %v489_v16 = vsel %vm9216_vm5, %v484_v8, %v488_v58  ;;  %v1197_v58 = vsel %vm9207_vm4, %v7412_v50, %v1196_v51  ;;  %v537_v8 = vor.u32 %v536_v61, %v532_v60  ;;  %v8710_v51 = vld [vmem:[%s9164_s16 + $0x64] sm:$0xff]  ;;  %v302_v61 = vld [vmem:[%s9164_s16 + $0x70] sm:$0xf] }
  0x68   : > { %v709_v23 = vunpack.c.l.b16 %v489_v16 }
  0x69   : > { %v538_v16 = vrot.slane %v537_v8, 4  ;;  %v579_v8 = vshrl.u32 %v302_v61, 16 }
  0x6e   : > { %833 = vmatmul.bf16.gmra.mxu0 %v731_v31  ;;  %v331_v31 = vld [vmem:[%s9164_s16 + $0x4c] sm:$0x1] }
  0x6f   : > { %1055 = vmatmul.bf16.gmra.mxu1 %v7334_v32  ;;  %v733_v32 = vpack.c.b16 %v710_v24, %v709_v23  ;;  %v506_v37 = vshll.u32 %v331_v31, 16  ;;  %v1192_v49 = vrot.slane %v331_v31, 5  ;;  %v533_v23 = vsel %vm9216_vm5, %v528_v15, %v532_v60 }
  0x70   : > { %1397 = vmatmul.bf16.gmra.mxu2 %v1295_v33  ;;  %v8668_v33 = vld [vmem:[%s9164_s16 + $0x40] sm:$0xff]  ;;  %v713_v31 = vunpack.c.l.b16 %v533_v23  ;;  %v1209_v60 = vrot.slane %v9392_v40, 5 }
  0x71   : > { %1700 = vmatmul.bf16.gmra.mxu3 %v7532_v34  ;;  %v1297_v34 = vpack.c.b16 %v1274_v26, %v1273_v25  ;;  %v508_v44 = vrot.slane %v506_v37, 5  ;;  %v1193_v57 = vsel %vm9207_vm4, %v1191_v48, %v1192_v49  ;;  %v545_v25 = vshrl.u32 %v299_v18, 16 }
  0x72   : > { %v1275_v3 = vunpack.c.l.b16 %v1193_v57  ;;  %v548_v26 = vshll.u32 %v299_v18, 16  ;;  %v560_v37 = vrot.slane %v558_v28, 4  ;;  %v566_v57 = vrot.slane %v564_v47, 5 }
  0x73   : > { %v509_v55 = vsel %vm9216_vm5, %v504_v42, %v508_v44  ;;  %v8670_v42 = vld [vmem:[%s9164_s16 + $0x54] sm:$0xff]  ;;  %v1210_v7 = vsel %vm9207_vm4, %v1208_v59, %v1209_v60  ;;  %v1216_v47 = vrot.slane %v9412_v19, 5 }
  0x74   : > { %v711_v62 = vunpack.c.l.b16 %v509_v55  ;;  %v561_v46 = vor.u32 %v560_v37, %v556_v36  ;;  %v1280_v15 = vunpack.c.l.b16 %v1210_v7  ;;  %v9422_v37 = vld [vmem:[%s9164_s16 + $0x78] sm:$0xf] }
  0x7e   : > { %838 = vmatmul.bf16.gmra.mxu0 %v732_v63  ;;  %v712_v63 = vunpack.c.l.b16 %v523_v56  ;;  %v562_v56 = vrot.slane %v561_v46, 4 }
  0x7f   : > { %1060 = vmatmul.bf16.gmra.mxu1 %v8667_v0  ;;  %v332_v0 = vld [vmem:[%s9164_s16 + $0x5c] sm:$0x1] }
  0x80   : > { %1402 = vmatmul.bf16.gmra.mxu2 %v1296_v4  ;;  %v1276_v4 = vunpack.c.l.b16 %v1197_v58  ;;  %v540_v9 = vshll.u32 %v332_v0, 16  ;;  %v734_v10 = vpack.c.b16 %v712_v63, %v711_v62  ;;  %v1202_v22 = vrot.slane %v332_v0, 5 }
  0x81   : > { %1705 = vmatmul.bf16.gmra.mxu3 %v8707_v5  ;;  %v7543_v5 = vld [vmem:[%s9164_s16 + $0x58] sm:$0xf]  ;;  %v7413_v58 = vrot.slane %v1117_v52, 9  ;;  %v567_v1 = vsel %vm9216_vm5, %v562_v56, %v566_v57 }
  0x82   : > { %v1298_v12 = vpack.c.b16 %v1276_v4, %v1275_v3  ;;  %v7544_v13 = vor.u32 %v8709_v6, %v7543_v5  ;;  %v542_v17 = vrot.slane %v540_v9, 5  ;;  %v1203_v30 = vsel %vm9207_vm4, %v1201_v21, %v1202_v22 }
  0x83   : > { %v1278_v39 = vunpack.c.l.b16 %v1203_v30  ;;  %v1207_v2 = vsel %vm9207_vm4, %v7413_v58, %v1206_v53  ;;  %v568_v3 = vshrl.u32 %v9392_v40, 16  ;;  %v582_v9 = vshll.u32 %v302_v61, 16  ;;  %v8711_v30 = vld [vmem:[%s9164_s16 + $0x70] sm:$0xff]  ;;  %v8726_v58 = vld [vmem:[%s11988_s1 + $0x108] sm:$0xff] }
  0x84   : > { %v543_v24 = vsel %vm9216_vm5, %v538_v16, %v542_v17  ;;  %v1279_v14 = vunpack.c.l.b16 %v1207_v2  ;;  %v581_v17 = vrot.slane %v579_v8, 4 }
  0x85   : > { %v1299_v50 = vpack.c.b16 %v1278_v39, %v1277_v38  ;;  %v570_v16 = vrot.slane %v568_v3, 4  ;;  %v584_v18 = vrot.slane %v582_v9, 5  ;;  %v7555_v9 = vld [vmem:[%s9164_s16 + $0x78] sm:$0xf] }
  0x8e   : > { %843 = vmatmul.bf16.gmra.mxu0 %v733_v32  ;;  %v714_v32 = vunpack.c.l.b16 %v543_v24  ;;  %v8671_v24 = vld [vmem:[%s9164_s16 + $0x60] sm:$0xff] }
  0x8f   : > { %1065 = vmatmul.bf16.gmra.mxu1 %v8668_v33  ;;  %v8727_v33 = vld [vmem:[%s11988_s1 + $0x110] sm:$0xff] }
  0x90   : > { %1407 = vmatmul.bf16.gmra.mxu2 %v1297_v34  ;;  %v547_v34 = vrot.slane %v545_v25, 4  ;;  %2296 = vmatpush.bf16.msrb.mxu0 %v8727_v33  ;;  %v735_v41 = vpack.c.b16 %v714_v32, %v713_v31  ;;  %v1300_v25 = vpack.c.b16 %v1280_v15, %v1279_v14  ;;  %v574_v31 = vshll.u32 %v333_v20, 16 }
  0x91   : > { %1710 = vmatmul.bf16.gmra.mxu3 %v8708_v35  ;;  %v550_v35 = vrot.slane %v548_v26, 5  ;;  %v571_v26 = vor.u32 %v570_v16, %v566_v57  ;;  %v585_v32 = vor.u32 %v584_v18, %v581_v17  ;;  %v588_v33 = vshll.u32 %v9412_v19, 16 }
  0x92   : > { %v576_v39 = vrot.slane %v574_v31, 5  ;;  %v9451_v31 = vld [vmem:[%s9164_s16 + $0x84] sm:$0xf] }
  0x93   : > { %v551_v44 = vor.u32 %v550_v35, %v547_v34  ;;  %v572_v38 = vrot.slane %v571_v26, 4  ;;  %v586_v40 = vrot.slane %v585_v32, 4  ;;  %v1218_v32 = vrot.slane %v1216_v47, 4 }
  0x94   : > { %2297 = vmatpush.bf16.msrb.mxu0 %v8726_v58 }
  0x95   : > { %v552_v55 = vrot.slane %v551_v44, 4  ;;  %v1212_v44 = vrot.slane %v333_v20, 5  ;;  %v577_v56 = vsel %vm9216_vm5, %v572_v38, %v576_v39 }
  0x96   : > { %v717_v2 = vunpack.c.l.b16 %v577_v56 }
  0x97   : > { %v557_v0 = vsel %vm9216_vm5, %v552_v55, %v556_v36  ;;  %v1118_v36 = vld [vmem:[%s9164_s16 + $0x70] sm:$0xe] }
  0x98   : > { %v7414_v46 = vrot.slane %v1118_v36, 9 }
  0x9a   : > { %v1217_v61 = vsel %vm9207_vm4, %v7414_v46, %v1216_v47 }
  0x9b   : > { %v1282_v8 = vunpack.c.l.b16 %v1217_v61  ;;  %v9466_v61 = vld [vmem:[%s9164_s16 + $0x88] sm:$0xf] }
  0x9e   : > { %848 = vmatmul.bf16.gmra.mxu0 %v734_v10 }
  0x9f   : > { %1070 = vmatmul.bf16.gmra.mxu1 %v7346_v11 }
  0xa0   : > { %1412 = vmatmul.bf16.gmra.mxu2 %v1298_v12  ;;  %v715_v12 = vunpack.c.l.b16 %v557_v0 }
  0xa1   : > { %1715 = vmatmul.bf16.gmra.mxu3 %v7544_v13  ;;  %v716_v13 = vunpack.c.l.b16 %v567_v1 }
  0xa3   : > { %v736_v23 = vpack.c.b16 %v716_v13, %v715_v12 }
  0xab   : > { %v814_v48 = vpop.f32.mrf.mxu0 }
  0xac   : > { %v1036_v49 = vpop.f32.mrf.mxu1 }
  0xad   : > { %v1037_v54 = vadd.f32 %v1036_v49, %v814_v48  ;;  %v592_v48 = vshrl.u32 %v9412_v19, 16  ;;  %v598_v49 = vshll.u32 %v9422_v37, 16 }
  0xae   : > { %853 = vmatmul.bf16.gmra.mxu0 %v735_v41  ;;  %v590_v41 = vrot.slane %v588_v33, 5 }
  0xaf   : > { %1075 = vmatmul.bf16.gmra.mxu1 %v8670_v42  ;;  %v1211_v42 = vrot.slane %v1209_v60, 4  ;;  %v600_v0 = vrot.slane %v598_v49, 5 }
  0xb0   : > { %1417 = vmatmul.bf16.gmra.mxu2 %v1299_v50  ;;  %v602_v50 = vshrl.u32 %v9422_v37, 16  ;;  %v591_v57 = vsel %vm9216_vm5, %v586_v40, %v590_v41 }
  0xb1   : > { %1720 = vmatmul.bf16.gmra.mxu3 %v8710_v51  ;;  %v1213_v60 = vsel %vm9207_vm4, %v1211_v42, %v1212_v44  ;;  %v718_v3 = vunpack.c.l.b16 %v591_v57  ;;  %v622_v42 = vshll.u32 %v9451_v31, 16  ;;  %v626_v44 = vshrl.u32 %v9451_v31, 16 }
  0xb2   : > { %v604_v1 = vrot.slane %v602_v50, 4  ;;  %v1281_v7 = vunpack.c.l.b16 %v1213_v60 }
  0xb3   : > { %v1378_v62 = vpop.f32.mrf.mxu2  ;;  %v816_v5 = vpop.f32.mrf.mxu0  ;;  %v737_v17 = vpack.c.b16 %v718_v3, %v717_v2  ;;  %v624_v57 = vrot.slane %v622_v42, 5  ;;  %v628_v58 = vrot.slane %v626_v44, 4  ;;  %v8673_v2 = vld [vmem:[%s9164_s16 + $0x74] sm:$0xff] }
  0xb4   : > { %v1681_v63 = vpop.f32.mrf.mxu3  ;;  %v1453_v4 = vadd.f32 %v1378_v62, %v1037_v54  ;;  %v1038_v6 = vpop.f32.mrf.mxu1  ;;  %v605_v13 = vor.u32 %v604_v1, %v600_v0  ;;  %v8739_v44 = vld [vmem:[%s11988_s1 + $0x170] sm:$0xff] }
  0xb5   : > { %v1039_v10 = vadd.f32 %v1038_v6, %v816_v5  ;;  %v7357_v5 = vld [vmem:[%s9164_s16 + $0x68] sm:$0xf]  ;;  %v8672_v6 = vld [vmem:[%s9164_s16 + $0x6c] sm:$0xf0] }
  0xb6   : > { %v9409_v11 = vadd.f32 %v1681_v63, %v1453_v4  ;;  %v594_v63 = vrot.slane %v592_v48, 4  ;;  %v334_v4 = vld [vmem:[%s9164_s16 + $0x7c] sm:$0x1]  ;;  %v7358_v18 = vor.u32 %v8672_v6, %v7357_v5  ;;  %v632_v5 = vshll.u32 %v9466_v61, 16 }
  0xb7   : > { %v608_v14 = vshll.u32 %v334_v4, 16 }
  0xb8   : > { %v595_v12 = vor.u32 %v594_v63, %v590_v41 }
  0xbb   : > { %v1380_v21 = vpop.f32.mrf.mxu2  ;;  %v819_v28 = vpop.f32.mrf.mxu0 }
  0xbc   : > { %v1683_v22 = vpop.f32.mrf.mxu3  ;;  %v1454_v27 = vadd.f32 %v1380_v21, %v1039_v10  ;;  %v1041_v29 = vpop.f32.mrf.mxu1  ;;  %v8712_v10 = vld [vmem:[%s9164_s16 + $0x7c] sm:$0xf0] }
  0xbd   : > { %v1042_v34 = vadd.f32 %v1041_v29, %v819_v28  ;;  %v606_v28 = vrot.slane %v605_v13, 4  ;;  %v610_v29 = vrot.slane %v608_v14, 5  ;;  %v1226_v13 = vrot.slane %v9451_v31, 5 }
  0xbe   : > { %v9418_v35 = vadd.f32 %v1683_v22, %v1454_v27  ;;  %858 = vmatmul.bf16.gmra.mxu0 %v736_v23  ;;  %v1301_v22 = vpack.c.b16 %v1282_v8, %v1281_v7  ;;  %v7556_v23 = vor.u32 %v8712_v10, %v7555_v9  ;;  %v596_v27 = vrot.slane %v595_v12, 4  ;;  %v8713_v10 = vld [vmem:[%s9164_s16 + $0x84] sm:$0xff]  ;;  %v1119_v12 = vld [vmem:[%s9164_s16 + $0x80] sm:$0xe] }
  0xbf   : > { %1080 = vmatmul.bf16.gmra.mxu1 %v8671_v24 }
  0xc0   : > { %1422 = vmatmul.bf16.gmra.mxu2 %v1300_v25  ;;  %v1219_v25 = vrot.slane %v9422_v37, 5  ;;  %v601_v36 = vsel %vm9216_vm5, %v596_v27, %v600_v0  ;;  %v611_v37 = vsel %vm9216_vm5, %v606_v28, %v610_v29  ;;  %v8772_v27 = vld [vmem:[%s11988_s1 + $0x1f8] sm:$0xff] }
  0xc1   : > { %1725 = vmatmul.bf16.gmra.mxu3 %v8711_v30  ;;  %v305_v30 = vld [vmem:[%s9164_s16 + $0x80] sm:$0xf] }
  0xc2   : > { %v1221_v33 = vrot.slane %v1219_v25, 4  ;;  %v613_v40 = vshrl.u32 %v305_v30, 16  ;;  %v616_v41 = vshll.u32 %v305_v30, 16  ;;  %v1220_v50 = vsel %vm9207_vm4, %v1218_v32, %v1219_v25  ;;  %v8740_v25 = vld [vmem:[%s11988_s1 + $0x178] sm:$0xff]  ;;  %3602 = vmatpush.bf16.msrb.mxu3 %v8772_v27 }
  0xc3   : > { %v1383_v51 = vpop.f32.mrf.mxu2  ;;  %v821_v54 = vpop.f32.mrf.mxu0  ;;  %2680 = vmatpush.bf16.msrb.mxu1 %v8740_v25 }
  0xc4   : > { %v1686_v52 = vpop.f32.mrf.mxu3  ;;  %v1455_v53 = vadd.f32 %v1383_v51, %v1042_v34  ;;  %v1043_v55 = vpop.f32.mrf.mxu1  ;;  %v1222_v34 = vrot.slane %v334_v4, 5  ;;  %v618_v56 = vrot.slane %v616_v41, 5  ;;  %v629_v4 = vor.u32 %v628_v58, %v624_v57  ;;  %v335_v58 = vld [vmem:[%s9164_s16 + $0x8c] sm:$0x1] }
  0xc5   : > { %v1044_v59 = vadd.f32 %v1043_v55, %v821_v54  ;;  %v720_v54 = vunpack.c.l.b16 %v611_v37  ;;  %v615_v55 = vrot.slane %v613_v40, 4 }
  0xc6   : > { %v9439_v62 = vadd.f32 %v1686_v52, %v1455_v53  ;;  %v1223_v51 = vsel %vm9207_vm4, %v1221_v33, %v1222_v34  ;;  %v719_v53 = vunpack.c.l.b16 %v601_v36  ;;  %v636_v33 = vshrl.u32 %v9466_v61, 16  ;;  %v8763_v34 = vld [vmem:[%s11988_s1 + $0x1b0] sm:$0xff] }
  0xc7   : > { %v1284_v60 = vunpack.c.l.b16 %v1223_v51  ;;  %v619_v3 = vor.u32 %v618_v56, %v615_v55  ;;  %2681 = vmatpush.bf16.msrb.mxu1 %v8739_v44  ;;  %v9518_v55 = vld [vmem:[%s9164_s16 + $0x94] sm:$0xf] }
  0xc8   : > { %v738_v1 = vpack.c.b16 %v720_v54, %v719_v53  ;;  %v638_v54 = vrot.slane %v636_v33, 4  ;;  %v8768_v33 = vld [vmem:[%s11988_s1 + $0x1d8] sm:$0xff] }
  0xcb   : > { %v1385_v15 = vpop.f32.mrf.mxu2  ;;  %v824_v20 = vpop.f32.mrf.mxu0 }
  0xcc   : > { %v1688_v16 = vpop.f32.mrf.mxu3  ;;  %v1456_v19 = vadd.f32 %v1385_v15, %v1044_v59  ;;  %v1046_v21 = vpop.f32.mrf.mxu1  ;;  %v1283_v59 = vunpack.c.l.b16 %v1220_v50 }
  0xcd   : > { %v1047_v24 = vadd.f32 %v1046_v21, %v824_v20  ;;  %v8764_v20 = vld [vmem:[%s11988_s1 + $0x1b8] sm:$0xff]  ;;  %v1228_v21 = vrot.slane %v1226_v13, 4 }
  0xce   : > { %v9447_v26 = vadd.f32 %v1688_v16, %v1456_v19  ;;  %863 = vmatmul.bf16.gmra.mxu0 %v737_v17  ;;  %v1302_v9 = vpack.c.b16 %v1284_v60, %v1283_v59  ;;  %v620_v16 = vrot.slane %v619_v3, 4  ;;  %v630_v17 = vrot.slane %v629_v4, 4  ;;  %2983 = vmatpush.bf16.msrb.mxu2 %v8764_v20  ;;  %v8738_v59 = vld [vmem:[%s11988_s1 + $0x168] sm:$0xff]  ;;  %v9544_v20 = vld [vmem:[%s9164_s16 + $0x98] sm:$0xf] }
  0xcf   : > { %1085 = vmatmul.bf16.gmra.mxu1 %v7358_v18  ;;  %v9475_v18 = vrot.slane %v632_v5, 5  ;;  %v7415_v19 = vrot.slane %v1119_v12, 9  ;;  %v8770_v60 = vld [vmem:[%s11988_s1 + $0x1e8] sm:$0xff]  ;;  %v8761_v5 = vld [vmem:[%s11988_s1 + $0x1a0] sm:$0xff] }
  0xd0   : > { %1427 = vmatmul.bf16.gmra.mxu2 %v1301_v22  ;;  %v1229_v22 = vrot.slane %v9466_v61, 5  ;;  %v625_v30 = vsel %vm9216_vm5, %v620_v16, %v624_v57  ;;  %2682 = vmatpush.bf16.msrb.mxu1 %v8738_v59  ;;  %v8737_v16 = vld [vmem:[%s11988_s1 + $0x160] sm:$0xff]  ;;  %v670_v61 = vshrl.u32 %v9544_v20, 16 }
  0xd1   : > { %1730 = vmatmul.bf16.gmra.mxu3 %v7556_v23  ;;  %v8725_v23 = vld [vmem:[%s11988_s1 + $0x100] sm:$0xff]  ;;  %v635_v31 = vsel %vm9216_vm5, %v630_v17, %v9475_v18  ;;  %v1227_v32 = vsel %vm9207_vm4, %v7415_v19, %v1226_v13  ;;  %v639_v4 = vor.u32 %v638_v54, %v9475_v18  ;;  %v656_v13 = vshll.u32 %v9518_v55, 16  ;;  %v1120_v19 = vld [vmem:[%s9164_s16 + $0x90] sm:$0xe] }
  0xd2   : > { %2298 = vmatpush.bf16.msrb.mxu0 %v8725_v23  ;;  %2984 = vmatpush.bf16.msrb.mxu2 %v8763_v34  ;;  %v722_v50 = vunpack.c.l.b16 %v635_v31  ;;  %v1285_v51 = vunpack.c.l.b16 %v1227_v32  ;;  %v8769_v17 = vld [vmem:[%s11988_s1 + $0x1e0] sm:$0xff]  ;;  %v1236_v31 = vrot.slane %v9518_v55, 5  ;;  %v8736_v32 = vld [vmem:[%s11988_s1 + $0x158] sm:$0xff]  ;;  %v660_v34 = vshrl.u32 %v9518_v55, 16 }
  0xd3   : > { %v1388_v38 = vpop.f32.mrf.mxu2  ;;  %v826_v48 = vpop.f32.mrf.mxu0  ;;  %v640_v23 = vrot.slane %v639_v4, 4  ;;  %v9549_v27 = vrot.slane %v656_v13, 5  ;;  %v7567_v4 = vld [vmem:[%s9164_s16 + $0x98] sm:$0xf] }
  0xd4   : > { %v1691_v39 = vpop.f32.mrf.mxu3  ;;  %v1457_v46 = vadd.f32 %v1388_v38, %v1047_v24  ;;  %v1048_v47 = vpop.f32.mrf.mxu1  ;;  %v308_v24 = vld [vmem:[%s9164_s16 + $0x90] sm:$0xf]  ;;  %2683 = vmatpush.bf16.msrb.mxu1 %v8737_v16  ;;  %v662_v54 = vrot.slane %v660_v34, 4 }
  0xd5   : > { %v1049_v49 = vadd.f32 %v1048_v47, %v826_v48  ;;  %v647_v40 = vshrl.u32 %v308_v24, 16  ;;  %v650_v41 = vshll.u32 %v308_v24, 16  ;;  %v721_v47 = vunpack.c.l.b16 %v625_v30 }
  0xd6   : > { %v9463_v52 = vadd.f32 %v1691_v39, %v1457_v46  ;;  %v1230_v39 = vsel %vm9207_vm4, %v1228_v21, %v1229_v22  ;;  %v8771_v46 = vld [vmem:[%s11988_s1 + $0x1f0] sm:$0xff]  ;;  %v8760_v21 = vld [vmem:[%s11988_s1 + $0x198] sm:$0xff]  ;;  %v7416_v30 = vrot.slane %v1120_v19, 9  ;;  %v8757_v19 = vld [vmem:[%s11988_s1 + $0x180] sm:$0xff] }
  0xd7   : > { %v1286_v53 = vunpack.c.l.b16 %v1230_v39  ;;  %3603 = vmatpush.bf16.msrb.mxu3 %v8771_v46  ;;  %v649_v56 = vrot.slane %v647_v40, 4  ;;  %v652_v57 = vrot.slane %v650_v41, 5 }
  0xd8   : > { %2684 = vmatpush.bf16.msrb.mxu1 %v8736_v32 }
  0xd9   : > { %v1303_v3 = vpack.c.b16 %v1286_v53, %v1285_v51  ;;  %v653_v12 = vor.u32 %v652_v57, %v649_v56  ;;  %v8767_v51 = vld [vmem:[%s11988_s1 + $0x1d0] sm:$0xff]  ;;  %v672_v57 = vrot.slane %v670_v61, 4 }
  0xda   : > { %v9620_v61 = vld [vmem:[%s9164_s16 + $0x14] sm:$0xf] }
  0xdb   : > { %v1390_v63 = vpop.f32.mrf.mxu2  ;;  %v829_v7 = vpop.f32.mrf.mxu0  ;;  %3604 = vmatpush.bf16.msrb.mxu3 %v8770_v60  ;;  %v654_v25 = vrot.slane %v653_v12, 4  ;;  %v1840_v55 = vshrl.u32 %v9620_v61, 16 }
  0xdc   : > { %v1693_v0 = vpop.f32.mrf.mxu3  ;;  %v1458_v6 = vadd.f32 %v1390_v63, %v1049_v49  ;;  %v1051_v8 = vpop.f32.mrf.mxu1  ;;  %v8762_v49 = vld [vmem:[%s11988_s1 + $0x1a8] sm:$0xff] }
  0xdd   : > { %v1052_v14 = vadd.f32 %v1051_v8, %v829_v7  ;;  %2985 = vmatpush.bf16.msrb.mxu2 %v8762_v49  ;;  %v659_v44 = vsel %vm9216_vm5, %v654_v25, %v9549_v27  ;;  %v1237_v49 = vsel %vm9207_vm4, %v7416_v30, %v1236_v31  ;;  %v7605_v30 = vld [vmem:[%s9164_s16 + $0x10] sm:$0xf] }
  0xde   : > { %v9473_v15 = vadd.f32 %v1693_v0, %v1458_v6  ;;  %868 = vmatmul.bf16.gmra.mxu0 %v738_v1  ;;  %v739_v1 = vpack.c.b16 %v722_v50, %v721_v47  ;;  %v8735_v50 = vld [vmem:[%s11988_s1 + $0x150] sm:$0xff]  ;;  %v724_v60 = vunpack.c.l.b16 %v659_v44  ;;  %v1830_v44 = vshll.u32 %v7605_v30, 16 }
  0xdf   : > { %1090 = vmatmul.bf16.gmra.mxu1 %v8673_v2  ;;  %v8674_v2 = vld [vmem:[%s9164_s16 + $0x80] sm:$0xff]  ;;  %3605 = vmatpush.bf16.msrb.mxu3 %v8769_v17  ;;  %v1239_v17 = vrot.slane %v9544_v20, 5 }
  0xe0   : > { %1432 = vmatmul.bf16.gmra.mxu2 %v1302_v9  ;;  %v8714_v9 = vld [vmem:[%s9164_s16 + $0x90] sm:$0xff]  ;;  %2685 = vmatpush.bf16.msrb.mxu1 %v8735_v50 }
  0xe1   : > { %1735 = vmatmul.bf16.gmra.mxu3 %v8713_v10  ;;  %v642_v10 = vshll.u32 %v335_v58, 16  ;;  %2986 = vmatpush.bf16.msrb.mxu2 %v8761_v5  ;;  %v8715_v5 = vld [vmem:[%s9164_s16 + $0x9c] sm:$0xf0] }
  0xe3   : > { %v1393_v28 = vpop.f32.mrf.mxu2  ;;  %v831_v37 = vpop.f32.mrf.mxu0  ;;  %v644_v24 = vrot.slane %v642_v10, 5  ;;  %3606 = vmatpush.bf16.msrb.mxu3 %v8768_v33 }
  0xe4   : > { %v1696_v29 = vpop.f32.mrf.mxu3  ;;  %v1459_v36 = vadd.f32 %v1393_v28, %v1052_v14  ;;  %v1053_v38 = vpop.f32.mrf.mxu1  ;;  %v1231_v28 = vrot.slane %v1229_v22, 4 }
  0xe5   : > { %v1054_v42 = vadd.f32 %v1053_v38, %v831_v37  ;;  %2987 = vmatpush.bf16.msrb.mxu2 %v8760_v21  ;;  %v8759_v38 = vld [vmem:[%s11988_s1 + $0x190] sm:$0xff] }
  0xe6   : > { %v9512_v48 = vadd.f32 %v1696_v29, %v1459_v36  ;;  %v1232_v29 = vrot.slane %v335_v58, 5  ;;  %v666_v36 = vshll.u32 %v9544_v20, 16  ;;  %v8758_v58 = vld [vmem:[%s11988_s1 + $0x188] sm:$0xff]  ;;  %v8765_v20 = vld [vmem:[%s11988_s1 + $0x1c0] sm:$0xff] }
  0xe7   : > { %3607 = vmatpush.bf16.msrb.mxu3 %v8767_v51 }
  0xe8   : > { %v1233_v47 = vsel %vm9207_vm4, %v1231_v28, %v1232_v29  ;;  %v9585_v56 = vrot.slane %v666_v36, 5  ;;  %v8733_v29 = vld [vmem:[%s11988_s1 + $0x140] sm:$0xff] }
  0xe9   : > { %2988 = vmatpush.bf16.msrb.mxu2 %v8759_v38 }
  0xeb   : > { %v1395_v63 = vpop.f32.mrf.mxu2  ;;  %v834_v7 = vpop.f32.mrf.mxu0 }
  0xec   : > { %v1698_v0 = vpop.f32.mrf.mxu3  ;;  %v1460_v6 = vadd.f32 %v1395_v63, %v1054_v42  ;;  %v1056_v8 = vpop.f32.mrf.mxu1  ;;  %v645_v42 = vsel %vm9216_vm5, %v640_v23, %v644_v24  ;;  %v9591_v63 = vld [vmem:[%s9164_s16 + $0x9c] sm:$0x1] }
  0xed   : > { %v1057_v14 = vadd.f32 %v1056_v8, %v834_v7  ;;  %v723_v59 = vunpack.c.l.b16 %v645_v42  ;;  %v8766_v7 = vld [vmem:[%s11988_s1 + $0x1c8] sm:$0xff]  ;;  %v663_v8 = vor.u32 %v662_v54, %v9549_v27  ;;  %v676_v10 = vshll.u32 %v9591_v63, 16  ;;  %2989 = vmatpush.bf16.msrb.mxu2 %v8758_v58  ;;  %v7902_v42 = vld [vmem:[%s9164_s16 + $0x24] sm:$0xf] }
  0xee   : > { %v9540_v18 = vadd.f32 %v1698_v0, %v1460_v6  ;;  %873 = vmatmul.bf16.gmra.mxu0 %v739_v1  ;;  %v7369_v0 = vld [vmem:[%s9164_s16 + $0x88] sm:$0xf]  ;;  %v8675_v1 = vld [vmem:[%s9164_s16 + $0x8c] sm:$0xf0]  ;;  %v7568_v27 = vor.u32 %v8715_v5, %v7567_v4  ;;  %3608 = vmatpush.bf16.msrb.mxu3 %v8766_v7  ;;  %v1242_v38 = vrot.slane %v9591_v63, 5  ;;  %v3151_v58 = vshrl.u32 %v7902_v42, 16 }
  0xef   : > { %1095 = vmatmul.bf16.gmra.mxu1 %v8674_v2  ;;  %v1287_v2 = vunpack.c.l.b16 %v1233_v47  ;;  %v8734_v6 = vld [vmem:[%s11988_s1 + $0x148] sm:$0xff]  ;;  %v7370_v16 = vor.u32 %v8675_v1, %v7369_v0  ;;  %v664_v33 = vrot.slane %v663_v8, 4  ;;  %v678_v36 = vrot.slane %v676_v10, 5 }
  0xf0   : > { %1437 = vmatmul.bf16.gmra.mxu2 %v1303_v3  ;;  %v1288_v3 = vunpack.c.l.b16 %v1237_v49  ;;  %2686 = vmatpush.bf16.msrb.mxu1 %v8734_v6  ;;  %v1842_v5 = vrot.slane %v1840_v55, 4 }
  0xf1   : > { %1740 = vmatmul.bf16.gmra.mxu3 %v8714_v9  ;;  %v673_v9 = vor.u32 %v672_v57, %v9585_v56  ;;  %2990 = vmatpush.bf16.msrb.mxu2 %v8757_v19  ;;  %v3147_v57 = vshll.u32 %v7902_v42, 16  ;;  %v9651_v19 = vld [vmem:[%s9164_s16 + $0x28] sm:$0xf] }
  0xf2   : > { %v1304_v25 = vpack.c.b16 %v1288_v3, %v1287_v2  ;;  %3609 = vmatpush.bf16.msrb.mxu3 %v8765_v20  ;;  %v1832_v3 = vrot.slane %v1830_v44, 5  ;;  %v8676_v20 = vld [vmem:[%s9164_s16 + $0x94] sm:$0xff] }
  0xf3   : > { %v1398_v22 = vpop.f32.mrf.mxu2  ;;  %v836_v40 = vpop.f32.mrf.mxu0  ;;  %v674_v34 = vrot.slane %v673_v9, 4  ;;  %v9646_v9 = vld [vmem:[%s9164_s16 + $0x18] sm:$0xf] }
  0xf4   : > { %v1701_v37 = vpop.f32.mrf.mxu3  ;;  %v1461_v39 = vadd.f32 %v1398_v22, %v1057_v14  ;;  %v1058_v41 = vpop.f32.mrf.mxu1  ;;  %v740_v14 = vpack.c.b16 %v724_v60, %v723_v59  ;;  %v1238_v22 = vrot.slane %v1236_v31, 4  ;;  %2687 = vmatpush.bf16.msrb.mxu1 %v8733_v29  ;;  %v669_v31 = vsel %vm9216_vm5, %v664_v33, %v9585_v56 }
  0xf5   : > { %v1059_v46 = vadd.f32 %v1058_v41, %v836_v40  ;;  %v8780_v40 = vld [vmem:[%s11988_s1 + $0x238] sm:$0xff]  ;;  %v7901_v41 = vld [vmem:[%s9164_s16 + $0x20] sm:$0xf]  ;;  %v679_v47 = vsel %vm9216_vm5, %v674_v34, %v678_v36  ;;  %v725_v7 = vunpack.c.l.b16 %v669_v31  ;;  %v3157_v36 = vshll.u32 %v9651_v19, 16 }
  0xf6   : > { %v9583_v53 = vadd.f32 %v1701_v37, %v1461_v39  ;;  %v1241_v37 = vrot.slane %v1239_v17, 4  ;;  %v1827_v39 = vshrl.u32 %v7605_v30, 16  ;;  %3991 = vmatpush.bf16.msra.mxu0 %v8780_v40  ;;  %v3138_v51 = vshrl.u32 %v7901_v41, 16  ;;  %v7693_v30 = vld [vmem:[%s9164_s16 + $0x10] sm:$0xe]  ;;  %v8716_v40 = vld [vmem:[%s9164_s16 + $0xa4] sm:$0xff] }
  0xf7   : > { %v3141_v54 = vshll.u32 %v7901_v41, 16  ;;  %v1240_v0 = vsel %vm9207_vm4, %v1238_v22, %v1239_v17  ;;  %v726_v8 = vunpack.c.l.b16 %v679_v47  ;;  %v7703_v31 = vrot.slane %v7693_v30, 9 }
  0xf8   : > { %v1243_v56 = vsel %vm9207_vm4, %v1241_v37, %v1242_v38  ;;  %v1829_v1 = vrot.slane %v1827_v39, 4  ;;  %v3140_v10 = vrot.slane %v3138_v51, 4 }
  0xf9   : > { %v1290_v17 = vunpack.c.l.b16 %v1243_v56  ;;  %v741_v29 = vpack.c.b16 %v726_v8, %v725_v7 }
  0xfb   : > { %v1400_v12 = vpop.f32.mrf.mxu2  ;;  %v839_v23 = vpop.f32.mrf.mxu0 }
  0xfc   : > { %v1703_v13 = vpop.f32.mrf.mxu3  ;;  %v1462_v21 = vadd.f32 %v1400_v12, %v1059_v46  ;;  %v1061_v24 = vpop.f32.mrf.mxu1  ;;  %v1836_v46 = vshll.u32 %v9620_v61, 16  ;;  %v3143_v12 = vrot.slane %v3141_v54, 5  ;;  %v9667_v54 = vrot.slane %v3157_v36, 5 }
  0xfd   : > { %v1062_v28 = vadd.f32 %v1061_v24, %v839_v23  ;;  %v1846_v24 = vshll.u32 %v9646_v9, 16 }
  0xfe   : > { %v9617_v32 = vadd.f32 %v1703_v13, %v1462_v21  ;;  %878 = vmatmul.bf16.gmra.mxu0 %v740_v14  ;;  %v9641_v4 = vrot.slane %v1836_v46, 5  ;;  %v9648_v13 = vrot.slane %v3147_v57, 5  ;;  %v3153_v14 = vrot.slane %v3151_v58, 4  ;;  %v7609_v46 = vld [vmem:[%s9164_s16 + $0x20] sm:$0xf] }
  0xff   : > { %1100 = vmatmul.bf16.gmra.mxu1 %v7370_v16  ;;  %v1289_v16 = vunpack.c.l.b16 %v1240_v0  ;;  %v1833_v21 = vor.u32 %v1832_v3, %v1829_v1  ;;  %v3144_v33 = vor.u32 %v3143_v12, %v3140_v10  ;;  %v1850_v57 = vshrl.u32 %v9646_v9, 16 }
 0x100   : > { %1442 = vmatmul.bf16.gmra.mxu2 %v1304_v25  ;;  %v1843_v23 = vor.u32 %v1842_v5, %v9641_v4  ;;  %v2457_v25 = vrot.slane %v9620_v61, 5  ;;  %v3154_v34 = vor.u32 %v3153_v14, %v9648_v13  ;;  %v9661_v61 = vrot.slane %v1846_v24, 5 }
 0x101   : > { %1745 = vmatmul.bf16.gmra.mxu3 %v7568_v27  ;;  %v1305_v39 = vpack.c.b16 %v1290_v17, %v1289_v16  ;;  %v1834_v42 = vrot.slane %v1833_v21, 4  ;;  %v1861_v58 = vshrl.u32 %v7609_v46, 16  ;;  %v1852_v17 = vrot.slane %v1850_v57, 4  ;;  %v7694_v57 = vld [vmem:[%s9164_s16 + $0x20] sm:$0xe] }
 0x102   : > { %v1844_v44 = vrot.slane %v1843_v23, 4  ;;  %v2459_v47 = vrot.slane %v2457_v25, 4  ;;  %v3155_v51 = vrot.slane %v3154_v34, 4  ;;  %v2458_v56 = vsel %vm9207_vm4, %v7703_v31, %v2457_v25 }
 0x103   : > { %v1403_v49 = vpop.f32.mrf.mxu2  ;;  %v841_v60 = vpop.f32.mrf.mxu0  ;;  %v1863_v21 = vrot.slane %v1861_v58, 4 }
 0x104   : > { %v1706_v50 = vpop.f32.mrf.mxu3  ;;  %v1463_v59 = vadd.f32 %v1403_v49, %v1062_v28  ;;  %v1063_v63 = vpop.f32.mrf.mxu1  ;;  %v2460_v49 = vrot.slane %v9646_v9, 5  ;;  %v1849_v0 = vsel %vm9216_vm5, %v1844_v44, %v9661_v61  ;;  %v3160_v7 = vsel %vm9216_vm5, %v3155_v51, %v9667_v54 }
 0x105   : > { %v1064_v2 = vadd.f32 %v1063_v63, %v841_v60  ;;  %v7905_v60 = vld [vmem:[%s9164_s16 + $0x30] sm:$0xf]  ;;  %v1839_v63 = vsel %vm9216_vm5, %v1834_v42, %v9641_v4  ;;  %v2184_v25 = vunpack.c.l.b16 %v1849_v0  ;;  %v3495_v34 = vunpack.c.l.b16 %v3160_v7 }
 0x106   : > { %v9643_v6 = vadd.f32 %v1706_v50, %v1463_v59  ;;  %v3145_v50 = vrot.slane %v3144_v33, 4  ;;  %v1864_v59 = vshll.u32 %v7609_v46, 16  ;;  %v2461_v1 = vsel %vm9207_vm4, %v2459_v47, %v2460_v49 }
 0x107   : > { %v3172_v8 = vshrl.u32 %v7905_v60, 16  ;;  %v3175_v10 = vshll.u32 %v7905_v60, 16  ;;  %v2183_v24 = vunpack.c.l.b16 %v1839_v63 }
 0x108   : > { %v3150_v4 = vsel %vm9216_vm5, %v3145_v50, %v9648_v13 }
 0x109   : > { %v3494_v33 = vunpack.c.l.b16 %v3150_v4  ;;  %v3174_v36 = vrot.slane %v3172_v8, 4  ;;  %v2213_v44 = vpack.c.b16 %v2184_v25, %v2183_v24  ;;  %v9711_v8 = vld [vmem:[%s9164_s16 + $0x28] sm:$0xf] }
 0x10a   : > { %v1884_v24 = vshrl.u32 %v9711_v8, 16 }
 0x10b   : > { %v1405_v27 = vpop.f32.mrf.mxu2  ;;  %v844_v37 = vpop.f32.mrf.mxu0  ;;  %v3524_v51 = vpack.c.b16 %v3495_v34, %v3494_v33 }
 0x10c   : > { %v1708_v28 = vpop.f32.mrf.mxu3  ;;  %v1464_v22 = vadd.f32 %v1405_v27, %v1064_v2  ;;  %v1066_v38 = vpop.f32.mrf.mxu1  ;;  %v3161_v2 = vshrl.u32 %v9651_v19, 16  ;;  %v1866_v19 = vrot.slane %v1864_v59, 5  ;;  %v7608_v27 = vld [vmem:[%s9164_s16 + $0x1c] sm:$0x1] }
 0x10d   : > { %v1067_v41 = vadd.f32 %v1066_v38, %v844_v37  ;;  %v1853_v37 = vor.u32 %v1852_v17, %v9661_v61  ;;  %v1856_v38 = vshll.u32 %v7608_v27, 16  ;;  %v2463_v7 = vrot.slane %v7608_v27, 5  ;;  %v8779_v17 = vld [vmem:[%s11988_s1 + $0x230] sm:$0xff] }
 0x10e   : > { %v9664_v55 = vadd.f32 %v1708_v28, %v1464_v22  ;;  %883 = vmatmul.bf16.gmra.mxu0 %v741_v29  ;;  %v2572_v28 = vunpack.c.l.b16 %v2458_v56  ;;  %v2573_v29 = vunpack.c.l.b16 %v2461_v1  ;;  %v3163_v30 = vrot.slane %v3161_v2, 4  ;;  %v8742_v56 = vld [vmem:[%s9164_s16 + $0x20] sm:$0xff] }
 0x10f   : > { %1105 = vmatmul.bf16.gmra.mxu1 %v8676_v20  ;;  %v9694_v20 = vld [vmem:[%s9164_s16 + $0x24] sm:$0xf]  ;;  %v3177_v22 = vrot.slane %v3175_v10, 5  ;;  %v1854_v1 = vrot.slane %v1853_v37, 4  ;;  %v1858_v2 = vrot.slane %v1856_v38, 5  ;;  %3992 = vmatpush.bf16.msra.mxu0 %v8779_v17 }
 0x110   : > { %1447 = vmatmul.bf16.gmra.mxu2 %v1305_v39  ;;  %v1867_v39 = vor.u32 %v1866_v19, %v1863_v21  ;;  %v1870_v42 = vshll.u32 %v9694_v20, 16  ;;  %v2602_v46 = vpack.c.b16 %v2573_v29, %v2572_v28  ;;  %v3164_v31 = vor.u32 %v3163_v30, %v9667_v54  ;;  %v7907_v29 = vld [vmem:[%s9164_s16 + $0x38] sm:$0xf]  ;;  %v7908_v17 = vld [vmem:[%s9164_s16 + $0x3c] sm:$0x1] }
 0x111   : > { %1750 = vmatmul.bf16.gmra.mxu3 %v8716_v40  ;;  %v7904_v40 = vld [vmem:[%s9164_s16 + $0x2c] sm:$0x1]  ;;  %v3178_v59 = vor.u32 %v3177_v22, %v3174_v36  ;;  %v2462_v54 = vrot.slane %v2460_v49, 4  ;;  %v1874_v49 = vshrl.u32 %v9694_v20, 16  ;;  %v1859_v25 = vsel %vm9216_vm5, %v1854_v1, %v1858_v2 }
 0x112   : > { %v3167_v58 = vshll.u32 %v7904_v40, 16  ;;  %v9706_v4 = vrot.slane %v1870_v42, 5  ;;  %v9740_v40 = vld [vmem:[%s9164_s16 + $0x2c] sm:$0x1] }
 0x113   : > { %v1408_v3 = vpop.f32.mrf.mxu2  ;;  %v846_v14 = vpop.f32.mrf.mxu0  ;;  %v3179_v19 = vrot.slane %v3178_v59, 4  ;;  %v2464_v28 = vsel %vm9207_vm4, %v2462_v54, %v2463_v7  ;;  %v1876_v22 = vrot.slane %v1874_v49, 4  ;;  %v1890_v2 = vshll.u32 %v9740_v40, 16 }
 0x114   : > { %v1711_v5 = vpop.f32.mrf.mxu3  ;;  %v1465_v12 = vadd.f32 %v1408_v3, %v1067_v41  ;;  %v1068_v16 = vpop.f32.mrf.mxu1  ;;  %v9699_v41 = vld [vmem:[%s9164_s16 + $0x34] sm:$0xf]  ;;  %v1868_v3 = vrot.slane %v1867_v39, 4  ;;  %v3169_v21 = vrot.slane %v3167_v58, 5  ;;  %v2574_v59 = vunpack.c.l.b16 %v2464_v28 }
 0x115   : > { %v1069_v23 = vadd.f32 %v1068_v16, %v846_v14  ;;  %v3181_v61 = vshll.u32 %v9699_v41, 16  ;;  %v2467_v14 = vrot.slane %v9694_v20, 5  ;;  %v3165_v16 = vrot.slane %v3164_v31, 4 }
 0x116   : > { %v9691_v13 = vadd.f32 %v1711_v5, %v1465_v12  ;;  %v7704_v12 = vrot.slane %v7694_v57, 9  ;;  %v1873_v27 = vsel %vm9216_vm5, %v1868_v3, %v9706_v4  ;;  %v1877_v1 = vor.u32 %v1876_v22, %v9706_v4 }
 0x117   : > { %v9719_v9 = vrot.slane %v3181_v61, 5  ;;  %v3170_v34 = vsel %vm9216_vm5, %v3165_v16, %v3169_v21  ;;  %v2186_v58 = vunpack.c.l.b16 %v1873_v27  ;;  %v2470_v16 = vrot.slane %v9711_v8, 5 }
 0x118   : > { %v2468_v33 = vsel %vm9207_vm4, %v7704_v12, %v2467_v14 }
 0x119   : > { %v3184_v36 = vsel %vm9216_vm5, %v3179_v19, %v9719_v9  ;;  %v2575_v61 = vunpack.c.l.b16 %v2468_v33  ;;  %v2472_v22 = vrot.slane %v2470_v16, 4 }
 0x11b   : > { %v1410_v47 = vpop.f32.mrf.mxu2  ;;  %v849_v63 = vpop.f32.mrf.mxu0  ;;  %v2603_v49 = vpack.c.b16 %v2575_v61, %v2574_v59 }
 0x11c   : > { %v1713_v50 = vpop.f32.mrf.mxu3  ;;  %v1466_v60 = vadd.f32 %v1410_v47, %v1069_v23  ;;  %v1071_v0 = vpop.f32.mrf.mxu1  ;;  %v1880_v23 = vshll.u32 %v9711_v8, 16  ;;  %v2185_v47 = vunpack.c.l.b16 %v1859_v25  ;;  %v1892_v25 = vrot.slane %v1890_v2, 5 }
 0x11d   : > { %v1072_v5 = vadd.f32 %v1071_v0, %v849_v63  ;;  %v8743_v63 = vld [vmem:[%s9164_s16 + $0x2c] sm:$0xf0]  ;;  %v3496_v0 = vunpack.c.l.b16 %v3170_v34  ;;  %v3201_v34 = vshll.u32 %v7908_v17, 16 }
 0x11e   : > { %v9713_v10 = vadd.f32 %v1713_v50, %v1466_v60  ;;  %2299 = vmatmul.bf16.vlgmr.msrb.gmra.mxu0 %v2213_v44  ;;  %v1882_v42 = vrot.slane %v1880_v23, 5  ;;  %v1886_v44 = vrot.slane %v1884_v24, 4  ;;  %v3191_v50 = vshll.u32 %v7907_v29, 16  ;;  %v7815_v60 = vld [vmem:[%s9164_s16 + $0x28] sm:$0xf] }
 0x11f   : > { %2688 = vmatmul.bf16.vlgmr.msrb.gmra.mxu1 %v2602_v46  ;;  %v3185_v46 = vshrl.u32 %v9699_v41, 16  ;;  %v2214_v7 = vpack.c.b16 %v2186_v58, %v2185_v47  ;;  %v7816_v12 = vor.u32 %v8743_v63, %v7815_v60  ;;  %v1878_v24 = vrot.slane %v1877_v1, 4  ;;  %v7910_v47 = vld [vmem:[%s9164_s16 + $0x44] sm:$0xf] }
 0x120   : > { %2991 = vmatmul.bf16.vlgmr.msrb.gmra.mxu2 %v8742_v56  ;;  %v3497_v56 = vunpack.c.l.b16 %v3184_v36  ;;  %v1887_v3 = vor.u32 %v1886_v44, %v1882_v42  ;;  %v3215_v2 = vshll.u32 %v7910_v47, 16 }
 0x121   : > { %3610 = vmatmul.bf16.vlgmr.msrb.gmra.mxu3 %v3524_v51  ;;  %v3195_v51 = vshrl.u32 %v7907_v29, 16  ;;  %v3187_v41 = vrot.slane %v3185_v46, 4 }
 0x122   : > { %v3525_v23 = vpack.c.b16 %v3497_v56, %v3496_v0  ;;  %v1888_v29 = vrot.slane %v1887_v3, 4  ;;  %v3219_v3 = vshrl.u32 %v7910_v47, 16  ;;  %v7695_v47 = vld [vmem:[%s9164_s16 + $0x30] sm:$0xe] }
 0x123   : > { %v1413_v20 = vpop.f32.mrf.mxu2  ;;  %v851_v38 = vpop.f32.mrf.mxu0  ;;  %v3197_v54 = vrot.slane %v3195_v51, 4 }
 0x124   : > { %v1716_v30 = vpop.f32.mrf.mxu3  ;;  %v1467_v37 = vadd.f32 %v1413_v20, %v1072_v5  ;;  %v1073_v39 = vpop.f32.mrf.mxu1  ;;  %v9749_v5 = vrot.slane %v3191_v50, 5  ;;  %v2469_v20 = vrot.slane %v2467_v14, 4  ;;  %v9762_v14 = vld [vmem:[%s9164_s16 + $0x34] sm:$0xf]  ;;  %v3203_v50 = vrot.slane %v3201_v34, 5 }
 0x125   : > { %v1074_v31 = vadd.f32 %v1073_v39, %v851_v38  ;;  %v7613_v38 = vld [vmem:[%s9164_s16 + $0x30] sm:$0xf]  ;;  %v1883_v39 = vsel %vm9216_vm5, %v1878_v24, %v1882_v42  ;;  %v1904_v61 = vshll.u32 %v9762_v14, 16  ;;  %v1908_v60 = vshrl.u32 %v9762_v14, 16  ;;  %v9789_v34 = vld [vmem:[%s9164_s16 + $0x48] sm:$0xf] }
 0x126   : > { %v9743_v57 = vadd.f32 %v1716_v30, %v1467_v37  ;;  %v3188_v30 = vor.u32 %v3187_v41, %v9719_v9  ;;  %v3198_v8 = vor.u32 %v3197_v54, %v9749_v5  ;;  %v2473_v37 = vrot.slane %v9740_v40, 5 }
 0x127   : > { %v1893_v9 = vsel %vm9216_vm5, %v1888_v29, %v1892_v25  ;;  %v2471_v44 = vsel %vm9207_vm4, %v2469_v20, %v2470_v16  ;;  %v1895_v51 = vshrl.u32 %v7613_v38, 16  ;;  %v1898_v58 = vshll.u32 %v7613_v38, 16 }
 0x128   : > { %v3189_v46 = vrot.slane %v3188_v30, 4  ;;  %v3199_v40 = vrot.slane %v3198_v8, 4  ;;  %v2187_v59 = vunpack.c.l.b16 %v1883_v39  ;;  %v2474_v42 = vsel %vm9207_vm4, %v2472_v22, %v2473_v37 }
 0x129   : > { %v2576_v16 = vunpack.c.l.b16 %v2471_v44  ;;  %v2577_v25 = vunpack.c.l.b16 %v2474_v42  ;;  %v9786_v30 = vrot.slane %v3215_v2, 5 }
 0x12a   : > { %v3194_v17 = vsel %vm9216_vm5, %v3189_v46, %v9749_v5  ;;  %v3221_v5 = vrot.slane %v3219_v3, 4  ;;  %v7705_v3 = vrot.slane %v7695_v47, 9 }
 0x12b   : > { %v1415_v21 = vpop.f32.mrf.mxu2  ;;  %v854_v27 = vpop.f32.mrf.mxu0 }
 0x12c   : > { %v1718_v19 = vpop.f32.mrf.mxu3  ;;  %v1468_v4 = vadd.f32 %v1415_v21, %v1074_v31  ;;  %v1076_v28 = vpop.f32.mrf.mxu1  ;;  %v7909_v31 = vld [vmem:[%s9164_s16 + $0x40] sm:$0xf] }
 0x12d   : > { %v1077_v33 = vadd.f32 %v1076_v28, %v854_v27  ;;  %v3206_v56 = vshrl.u32 %v7909_v31, 16  ;;  %v3209_v1 = vshll.u32 %v7909_v31, 16  ;;  %v9784_v27 = vrot.slane %v1904_v61, 5 }
 0x12e   : > { %v9755_v36 = vadd.f32 %v1718_v19, %v1468_v4  ;;  %2304 = vmatmul.bf16.gmra.mxu0 %v2214_v7  ;;  %v3204_v19 = vsel %vm9216_vm5, %v3199_v40, %v3203_v50  ;;  %v9782_v4 = vld [vmem:[%s9164_s16 + $0x38] sm:$0xf]  ;;  %v1910_v28 = vrot.slane %v1908_v60, 4  ;;  %v2604_v31 = vpack.c.b16 %v2577_v25, %v2576_v16 }
 0x12f   : > { %2693 = vmatmul.bf16.gmra.mxu1 %v2603_v49  ;;  %v1897_v49 = vrot.slane %v1895_v51, 4  ;;  %v3208_v29 = vrot.slane %v3206_v56, 4  ;;  %v3211_v20 = vrot.slane %v3209_v1, 5  ;;  %v3499_v8 = vunpack.c.l.b16 %v3204_v19  ;;  %v8744_v60 = vld [vmem:[%s9164_s16 + $0x34] sm:$0xff] }
 0x130   : > { %2996 = vmatmul.bf16.gmra.mxu2 %v7816_v12  ;;  %v2188_v12 = vunpack.c.l.b16 %v1893_v9  ;;  %v1914_v37 = vshll.u32 %v9782_v4, 16  ;;  %v1911_v39 = vor.u32 %v1910_v28, %v9784_v27  ;;  %v2477_v9 = vrot.slane %v9762_v14, 5 }
 0x131   : > { %3615 = vmatmul.bf16.gmra.mxu3 %v3525_v23  ;;  %v1900_v23 = vrot.slane %v1898_v58, 5  ;;  %v3212_v40 = vor.u32 %v3211_v20, %v3208_v29  ;;  %v3222_v50 = vor.u32 %v3221_v5, %v9786_v30  ;;  %v3225_v51 = vshll.u32 %v9789_v34, 16 }
 0x132   : > { %v2215_v38 = vpack.c.b16 %v2188_v12, %v2187_v59  ;;  %v8778_v59 = vld [vmem:[%s11988_s1 + $0x228] sm:$0xff]  ;;  %v9801_v56 = vrot.slane %v1914_v37, 5  ;;  %v1912_v2 = vrot.slane %v1911_v39, 4  ;;  %v2478_v29 = vsel %vm9207_vm4, %v7705_v3, %v2477_v9 }
 0x133   : > { %v1418_v63 = vpop.f32.mrf.mxu2  ;;  %v856_v54 = vpop.f32.mrf.mxu0  ;;  %v1901_v22 = vor.u32 %v1900_v23, %v1897_v49  ;;  %3993 = vmatpush.bf16.msra.mxu0 %v8778_v59  ;;  %v3213_v12 = vrot.slane %v3212_v40, 4  ;;  %v3223_v16 = vrot.slane %v3222_v50, 4  ;;  %v7913_v23 = vld [vmem:[%s9164_s16 + $0x50] sm:$0xf] }
 0x134   : > { %v1721_v0 = vpop.f32.mrf.mxu3  ;;  %v1469_v41 = vadd.f32 %v1418_v63, %v1077_v33  ;;  %v1078_v7 = vpop.f32.mrf.mxu1  ;;  %v3498_v33 = vunpack.c.l.b16 %v3194_v17  ;;  %v9807_v17 = vrot.slane %v3225_v51, 5  ;;  %v1917_v28 = vsel %vm9216_vm5, %v1912_v2, %v9801_v56 }
 0x135   : > { %v1079_v21 = vadd.f32 %v1078_v7, %v856_v54  ;;  %v7617_v54 = vld [vmem:[%s9164_s16 + $0x40] sm:$0xf]  ;;  %v2480_v7 = vrot.slane %v9782_v4, 5  ;;  %v2190_v51 = vunpack.c.l.b16 %v1917_v28 }
 0x136   : > { %v9779_v24 = vadd.f32 %v1721_v0, %v1469_v41  ;;  %v3526_v63 = vpack.c.b16 %v3499_v8, %v3498_v33  ;;  %v1902_v0 = vrot.slane %v1901_v22, 4  ;;  %v2479_v41 = vrot.slane %v2477_v9, 4  ;;  %v7696_v28 = vld [vmem:[%s9164_s16 + $0x40] sm:$0xe] }
 0x137   : > { %v1929_v19 = vshrl.u32 %v7617_v54, 16  ;;  %v1932_v49 = vshll.u32 %v7617_v54, 16  ;;  %v3218_v8 = vsel %vm9216_vm5, %v3213_v12, %v9786_v30  ;;  %v3229_v22 = vshrl.u32 %v9789_v34, 16 }
 0x138   : > { %v1907_v25 = vsel %vm9216_vm5, %v1902_v0, %v9784_v27  ;;  %v2481_v33 = vsel %vm9207_vm4, %v2479_v41, %v2480_v7  ;;  %v3228_v27 = vsel %vm9216_vm5, %v3223_v16, %v9807_v17  ;;  %v7912_v0 = vld [vmem:[%s9164_s16 + $0x4c] sm:$0x1]  ;;  %v9840_v16 = vld [vmem:[%s9164_s16 + $0x54] sm:$0xf] }
 0x139   : > { %v1931_v47 = vrot.slane %v1929_v19, 4  ;;  %v1934_v40 = vrot.slane %v1932_v49, 5  ;;  %v2189_v30 = vunpack.c.l.b16 %v1907_v25  ;;  %v2579_v34 = vunpack.c.l.b16 %v2481_v33 }
 0x13a   : > { %v3231_v59 = vrot.slane %v3229_v22, 4 }
 0x13b   : > { %v1420_v44 = vpop.f32.mrf.mxu2  ;;  %v859_v42 = vpop.f32.mrf.mxu0  ;;  %v1935_v54 = vor.u32 %v1934_v40, %v1931_v47 }
 0x13c   : > { %v1723_v46 = vpop.f32.mrf.mxu3  ;;  %v1470_v58 = vadd.f32 %v1420_v44, %v1079_v21  ;;  %v1081_v61 = vpop.f32.mrf.mxu1  ;;  %v1918_v21 = vshrl.u32 %v9782_v4, 16  ;;  %v3240_v44 = vshrl.u32 %v7913_v23, 16 }
 0x13d   : > { %v1082_v14 = vadd.f32 %v1081_v61, %v859_v42  ;;  %v7616_v42 = vld [vmem:[%s9164_s16 + $0x3c] sm:$0x1]  ;;  %v9834_v61 = vld [vmem:[%s9164_s16 + $0x44] sm:$0xf] }
 0x13e   : > { %v9803_v1 = vadd.f32 %v1723_v46, %v1470_v58  ;;  %2309 = vmatmul.bf16.gmra.mxu0 %v2215_v38  ;;  %v1920_v9 = vrot.slane %v1918_v21, 4  ;;  %v3243_v46 = vshll.u32 %v7913_v23, 16  ;;  %v2578_v58 = vunpack.c.l.b16 %v2478_v29 }
 0x13f   : > { %2698 = vmatmul.bf16.gmra.mxu1 %v2604_v31  ;;  %v3242_v2 = vrot.slane %v3240_v44, 4  ;;  %v1924_v41 = vshll.u32 %v7616_v42, 16  ;;  %v1938_v12 = vshll.u32 %v9834_v61, 16  ;;  %v2216_v21 = vpack.c.b16 %v2190_v51, %v2189_v30 }
 0x140   : > { %3001 = vmatmul.bf16.gmra.mxu2 %v8744_v60  ;;  %v3500_v60 = vunpack.c.l.b16 %v3218_v8  ;;  %v3245_v3 = vrot.slane %v3243_v46, 5  ;;  %v2605_v23 = vpack.c.b16 %v2579_v34, %v2578_v58  ;;  %v3232_v29 = vor.u32 %v3231_v59, %v9807_v17  ;;  %v8745_v8 = vld [vmem:[%s9164_s16 + $0x40] sm:$0xff]  ;;  %v9847_v46 = vld [vmem:[%s9164_s16 + $0x48] sm:$0xf] }
 0x141   : > { %3620 = vmatmul.bf16.gmra.mxu3 %v3526_v63  ;;  %v3501_v63 = vunpack.c.l.b16 %v3228_v27  ;;  %v1940_v44 = vrot.slane %v1938_v12, 5  ;;  %v2482_v17 = vrot.slane %v2480_v7, 4  ;;  %v2483_v40 = vrot.slane %v7616_v42, 5 }
 0x142   : > { %v3246_v22 = vor.u32 %v3245_v3, %v3242_v2  ;;  %v2487_v30 = vrot.slane %v9834_v61, 5  ;;  %v3233_v51 = vrot.slane %v3232_v29, 4  ;;  %v1942_v34 = vshrl.u32 %v9834_v61, 16 }
 0x143   : > { %v1423_v20 = vpop.f32.mrf.mxu2  ;;  %v861_v38 = vpop.f32.mrf.mxu0  ;;  %v3527_v25 = vpack.c.b16 %v3501_v63, %v3500_v60  ;;  %v1948_v59 = vshll.u32 %v9847_v46, 16  ;;  %v1952_v4 = vshrl.u32 %v9847_v46, 16  ;;  %v2484_v3 = vsel %vm9207_vm4, %v2482_v17, %v2483_v40 }
 0x144   : > { %v1726_v5 = vpop.f32.mrf.mxu3  ;;  %v1471_v37 = vadd.f32 %v1423_v20, %v1082_v14  ;;  %v1083_v39 = vpop.f32.mrf.mxu1  ;;  %v1921_v14 = vor.u32 %v1920_v9, %v9801_v56  ;;  %v3235_v56 = vshll.u32 %v7912_v0, 16  ;;  %v1936_v9 = vrot.slane %v1935_v54, 4 }
 0x145   : > { %v1084_v31 = vadd.f32 %v1083_v39, %v861_v38  ;;  %v1926_v39 = vrot.slane %v1924_v41, 5  ;;  %v3247_v60 = vrot.slane %v3246_v22, 4  ;;  %v1944_v12 = vrot.slane %v1942_v34, 4 }
 0x146   : > { %v9830_v50 = vadd.f32 %v1726_v5, %v1471_v37  ;;  %v1922_v27 = vrot.slane %v1921_v14, 4  ;;  %v3249_v37 = vshll.u32 %v9840_v16, 16  ;;  %v3237_v58 = vrot.slane %v3235_v56, 5  ;;  %v7915_v14 = vld [vmem:[%s9164_s16 + $0x58] sm:$0xf] }
 0x147   : > { %v1941_v42 = vsel %vm9216_vm5, %v1936_v9, %v1940_v44  ;;  %v9876_v56 = vld [vmem:[%s9164_s16 + $0x4c] sm:$0x1]  ;;  %v1945_v40 = vor.u32 %v1944_v12, %v1940_v44 }
 0x148   : > { %v9855_v63 = vrot.slane %v3249_v37, 5  ;;  %v1927_v7 = vsel %vm9216_vm5, %v1922_v27, %v1926_v39  ;;  %v3238_v54 = vsel %vm9216_vm5, %v3233_v51, %v3237_v58  ;;  %v2192_v22 = vunpack.c.l.b16 %v1941_v42  ;;  %v8746_v51 = vld [vmem:[%s9164_s16 + $0x4c] sm:$0xf0] }
 0x149   : > { %v2191_v27 = vunpack.c.l.b16 %v1927_v7  ;;  %v2580_v37 = vunpack.c.l.b16 %v2484_v3  ;;  %v3502_v9 = vunpack.c.l.b16 %v3238_v54  ;;  %v7916_v7 = vld [vmem:[%s9164_s16 + $0x5c] sm:$0x1] }
 0x14b   : > { %v1425_v19 = vpop.f32.mrf.mxu2  ;;  %v864_v5 = vpop.f32.mrf.mxu0 }
 0x14c   : > { %v1728_v49 = vpop.f32.mrf.mxu3  ;;  %v1472_v20 = vadd.f32 %v1425_v19, %v1084_v31  ;;  %v1086_v33 = vpop.f32.mrf.mxu1  ;;  %v7706_v31 = vrot.slane %v7696_v28, 9  ;;  %v1954_v28 = vrot.slane %v1952_v4, 4  ;;  %v2217_v4 = vpack.c.b16 %v2192_v22, %v2191_v27  ;;  %v7621_v27 = vld [vmem:[%s9164_s16 + $0x50] sm:$0xf] }
 0x14d   : > { %v1087_v38 = vadd.f32 %v1086_v33, %v864_v5  ;;  %v3259_v5 = vshll.u32 %v7915_v14, 16  ;;  %v3263_v33 = vshrl.u32 %v7915_v14, 16  ;;  %v2489_v22 = vrot.slane %v2487_v30, 4 }
 0x14e   : > { %v9849_v47 = vadd.f32 %v1728_v49, %v1472_v20  ;;  %2314 = vmatmul.bf16.gmra.mxu0 %v2216_v21  ;;  %v2488_v41 = vsel %vm9207_vm4, %v7706_v31, %v2487_v30  ;;  %v3253_v20 = vshrl.u32 %v9840_v16, 16  ;;  %v7827_v31 = vld [vmem:[%s9164_s16 + $0x48] sm:$0xf]  ;;  %v1958_v16 = vshll.u32 %v9876_v56, 16 }
 0x14f   : > { %2703 = vmatmul.bf16.gmra.mxu1 %v2605_v23  ;;  %v3252_v23 = vsel %vm9216_vm5, %v3247_v60, %v9855_v63  ;;  %v2581_v39 = vunpack.c.l.b16 %v2488_v41  ;;  %v9887_v60 = vrot.slane %v3259_v5, 5  ;;  %v1946_v41 = vrot.slane %v1945_v40, 4 }
 0x150   : > { %3006 = vmatmul.bf16.gmra.mxu2 %v8745_v8  ;;  %v3503_v17 = vunpack.c.l.b16 %v3252_v23  ;;  %v3255_v34 = vrot.slane %v3253_v20, 4  ;;  %v3269_v5 = vshll.u32 %v7916_v7, 16 }
 0x151   : > { %3625 = vmatmul.bf16.gmra.mxu3 %v3527_v25  ;;  %v1950_v25 = vrot.slane %v1948_v59, 5  ;;  %v3265_v59 = vrot.slane %v3263_v33, 4 }
 0x152   : > { %v3528_v3 = vpack.c.b16 %v3503_v17, %v3502_v9  ;;  %v3271_v40 = vrot.slane %v3269_v5, 5 }
 0x153   : > { %v1428_v0 = vpop.f32.mrf.mxu2  ;;  %v866_v19 = vpop.f32.mrf.mxu0  ;;  %v1955_v58 = vor.u32 %v1954_v28, %v1950_v25  ;;  %v3256_v28 = vor.u32 %v3255_v34, %v9855_v63  ;;  %v3266_v20 = vor.u32 %v3265_v59, %v9887_v60 }
 0x154   : > { %v1731_v2 = vpop.f32.mrf.mxu3  ;;  %v1473_v21 = vadd.f32 %v1428_v0, %v1087_v38  ;;  %v1088_v49 = vpop.f32.mrf.mxu1  ;;  %v8777_v38 = vld [vmem:[%s11988_s1 + $0x220] sm:$0xff]  ;;  %v7828_v0 = vor.u32 %v8746_v51, %v7827_v31  ;;  %v1963_v31 = vshrl.u32 %v7621_v27, 16 }
 0x155   : > { %v1089_v29 = vadd.f32 %v1088_v49, %v866_v19  ;;  %3994 = vmatpush.bf16.msra.mxu0 %v8777_v38  ;;  %v1960_v19 = vrot.slane %v1958_v16, 5  ;;  %v2490_v49 = vrot.slane %v9847_v46, 5  ;;  %v9901_v46 = vld [vmem:[%s9164_s16 + $0x54] sm:$0xf]  ;;  %v2493_v38 = vrot.slane %v9876_v56, 5 }
 0x156   : > { %v9879_v8 = vadd.f32 %v1731_v2, %v1473_v21  ;;  %v2606_v2 = vpack.c.b16 %v2581_v39, %v2580_v37  ;;  %v1956_v21 = vrot.slane %v1955_v58, 4  ;;  %v7917_v39 = vld [vmem:[%s9164_s16 + $0x60] sm:$0xf]  ;;  %v3257_v9 = vrot.slane %v3256_v28, 4  ;;  %v7918_v51 = vld [vmem:[%s9164_s16 + $0x64] sm:$0xf] }
 0x157   : > { %v2492_v37 = vrot.slane %v2490_v49, 4  ;;  %v3267_v17 = vrot.slane %v3266_v20, 4  ;;  %v1966_v58 = vshll.u32 %v7621_v27, 16  ;;  %v1972_v61 = vshll.u32 %v9901_v46, 16  ;;  %v9924_v27 = vld [vmem:[%s9164_s16 + $0x58] sm:$0xf] }
 0x158   : > { %v1961_v63 = vsel %vm9216_vm5, %v1956_v21, %v1960_v19  ;;  %v1976_v30 = vshrl.u32 %v9901_v46, 16  ;;  %v3274_v7 = vshrl.u32 %v7917_v39, 16  ;;  %v3277_v56 = vshll.u32 %v7917_v39, 16  ;;  %v9929_v39 = vld [vmem:[%s9164_s16 + $0x68] sm:$0xf] }
 0x159   : > { %v2194_v59 = vunpack.c.l.b16 %v1961_v63  ;;  %v1965_v21 = vrot.slane %v1963_v31, 4 }
 0x15a   : > { %v1978_v28 = vrot.slane %v1976_v30, 4  ;;  %v2497_v30 = vrot.slane %v9901_v46, 5 }
 0x15b   : > { %v1430_v42 = vpop.f32.mrf.mxu2  ;;  %v869_v54 = vpop.f32.mrf.mxu0 }
 0x15c   : > { %v1733_v14 = vpop.f32.mrf.mxu3  ;;  %v1474_v44 = vadd.f32 %v1430_v42, %v1089_v29  ;;  %v1091_v12 = vpop.f32.mrf.mxu1  ;;  %v1951_v29 = vsel %vm9216_vm5, %v1946_v41, %v1950_v25  ;;  %v3287_v41 = vshrl.u32 %v7918_v51, 16 }
 0x15d   : > { %v1092_v23 = vadd.f32 %v1091_v12, %v869_v54  ;;  %v2193_v25 = vunpack.c.l.b16 %v1951_v29  ;;  %v3262_v54 = vsel %vm9216_vm5, %v3257_v9, %v9887_v60  ;;  %v3272_v12 = vsel %vm9216_vm5, %v3267_v17, %v3271_v40 }
 0x15e   : > { %v9893_v33 = vadd.f32 %v1733_v14, %v1474_v44  ;;  %2319 = vmatmul.bf16.gmra.mxu0 %v2217_v4  ;;  %v2491_v4 = vsel %vm9207_vm4, %v2489_v22, %v2490_v49  ;;  %v1968_v49 = vrot.slane %v1966_v58, 5  ;;  %v3276_v29 = vrot.slane %v3274_v7, 4 }
 0x15f   : > { %2708 = vmatmul.bf16.gmra.mxu1 %v2606_v2  ;;  %v2494_v2 = vsel %vm9207_vm4, %v2492_v37, %v2493_v38  ;;  %v2582_v20 = vunpack.c.l.b16 %v2491_v4  ;;  %v3279_v22 = vrot.slane %v3277_v56, 5  ;;  %v3504_v63 = vunpack.c.l.b16 %v3262_v54  ;;  %v8747_v56 = vld [vmem:[%s9164_s16 + $0x54] sm:$0xff] }
 0x160   : > { %3011 = vmatmul.bf16.gmra.mxu2 %v7828_v0  ;;  %v2583_v5 = vunpack.c.l.b16 %v2494_v2  ;;  %v3505_v37 = vunpack.c.l.b16 %v3272_v12  ;;  %v3289_v38 = vrot.slane %v3287_v41, 4  ;;  %v1969_v9 = vor.u32 %v1968_v49, %v1965_v21  ;;  %v7625_v49 = vld [vmem:[%s9164_s16 + $0x60] sm:$0xf] }
 0x161   : > { %3630 = vmatmul.bf16.gmra.mxu3 %v3528_v3  ;;  %v3283_v3 = vshll.u32 %v7918_v51, 16  ;;  %v1982_v40 = vshll.u32 %v9924_v27, 16  ;;  %v2218_v58 = vpack.c.b16 %v2194_v59, %v2193_v25  ;;  %v3293_v2 = vshll.u32 %v9929_v39, 16 }
 0x162   : > { %v1970_v54 = vrot.slane %v1969_v9, 4  ;;  %v11994_v12 = vrot.slane %v9924_v27, 5 }
 0x163   : > { %v1433_v16 = vpop.f32.mrf.mxu2  ;;  %v871_v14 = vpop.f32.mrf.mxu0  ;;  %v9926_v60 = vrot.slane %v3283_v3, 5  ;;  %v9940_v59 = vrot.slane %v1982_v40, 5 }
 0x164   : > { %v1736_v34 = vpop.f32.mrf.mxu3  ;;  %v1475_v42 = vadd.f32 %v1433_v16, %v1092_v23  ;;  %v1093_v0 = vpop.f32.mrf.mxu1  ;;  %v9921_v23 = vrot.slane %v1972_v61, 5  ;;  %v2607_v61 = vpack.c.b16 %v2583_v5, %v2582_v20  ;;  %v3280_v16 = vor.u32 %v3279_v22, %v3276_v29 }
 0x165   : > { %v1094_v44 = vadd.f32 %v1093_v0, %v871_v14  ;;  %v7697_v14 = vld [vmem:[%s9164_s16 + $0x50] sm:$0xe]  ;;  %v3290_v0 = vor.u32 %v3289_v38, %v9926_v60  ;;  %v9944_v20 = vrot.slane %v3293_v2, 5  ;;  %v1986_v5 = vshrl.u32 %v9924_v27, 16 }
 0x166   : > { %v9919_v19 = vadd.f32 %v1736_v34, %v1475_v42  ;;  %v1979_v17 = vor.u32 %v1978_v28, %v9921_v23  ;;  %v3529_v42 = vpack.c.b16 %v3505_v37, %v3504_v63  ;;  %v7707_v46 = vrot.slane %v7697_v14, 9  ;;  %v7921_v37 = vld [vmem:[%s9164_s16 + $0x70] sm:$0xf] }
 0x167   : > { %v3281_v21 = vrot.slane %v3280_v16, 4  ;;  %v3291_v28 = vrot.slane %v3290_v0, 4  ;;  %v1975_v29 = vsel %vm9216_vm5, %v1970_v54, %v9921_v23  ;;  %v1997_v22 = vshrl.u32 %v7625_v49, 16  ;;  %v8776_v54 = vld [vmem:[%s11988_s1 + $0x218] sm:$0xff] }
 0x168   : > { %v1980_v25 = vrot.slane %v1979_v17, 4  ;;  %v2000_v63 = vshll.u32 %v7625_v49, 16  ;;  %v2498_v40 = vsel %vm9207_vm4, %v7707_v46, %v2497_v30  ;;  %3995 = vmatpush.bf16.msra.mxu0 %v8776_v54 }
 0x169   : > { %v3286_v23 = vsel %vm9216_vm5, %v3281_v21, %v9926_v60  ;;  %v3296_v16 = vsel %vm9216_vm5, %v3291_v28, %v9944_v20  ;;  %v9970_v60 = vld [vmem:[%s9164_s16 + $0x5c] sm:$0x1]  ;;  %v1999_v2 = vrot.slane %v1997_v22, 4  ;;  %v9976_v21 = vld [vmem:[%s9164_s16 + $0x64] sm:$0xf] }
 0x16a   : > { %v1985_v17 = vsel %vm9216_vm5, %v1980_v25, %v9940_v59  ;;  %v2584_v25 = vunpack.c.l.b16 %v2498_v40 }
 0x16b   : > { %v1435_v31 = vpop.f32.mrf.mxu2  ;;  %v874_v4 = vpop.f32.mrf.mxu0  ;;  %v2196_v0 = vunpack.c.l.b16 %v1985_v17 }
 0x16c   : > { %v1738_v51 = vpop.f32.mrf.mxu3  ;;  %v1476_v34 = vadd.f32 %v1435_v31, %v1094_v44  ;;  %v1096_v7 = vpop.f32.mrf.mxu1  ;;  %v2499_v44 = vrot.slane %v2497_v30, 4  ;;  %v3297_v30 = vshrl.u32 %v9929_v39, 16  ;;  %v3506_v39 = vunpack.c.l.b16 %v3286_v23 }
 0x16d   : > { %v1097_v3 = vadd.f32 %v1096_v7, %v874_v4  ;;  %v2195_v7 = vunpack.c.l.b16 %v1975_v29  ;;  %v7920_v29 = vld [vmem:[%s9164_s16 + $0x6c] sm:$0x1] }
 0x16e   : > { %v9938_v41 = vadd.f32 %v1738_v51, %v1476_v34  ;;  %2324 = vmatmul.bf16.gmra.mxu0 %v2218_v58  ;;  %v2501_v31 = vsel %vm9207_vm4, %v2499_v44, %v11994_v12  ;;  %v1988_v34 = vrot.slane %v1986_v5, 4  ;;  %v3507_v44 = vunpack.c.l.b16 %v3296_v16  ;;  %v8748_v16 = vld [vmem:[%s9164_s16 + $0x60] sm:$0xff] }
 0x16f   : > { %2713 = vmatmul.bf16.gmra.mxu1 %v2607_v61  ;;  %v2585_v46 = vunpack.c.l.b16 %v2501_v31  ;;  %v3299_v28 = vrot.slane %v3297_v30, 4  ;;  %v1992_v5 = vshll.u32 %v9970_v60, 16  ;;  %v2219_v31 = vpack.c.b16 %v2196_v0, %v2195_v7  ;;  %v7698_v30 = vld [vmem:[%s9164_s16 + $0x60] sm:$0xe] }
 0x170   : > { %3016 = vmatmul.bf16.gmra.mxu2 %v8747_v56  ;;  %v3308_v56 = vshrl.u32 %v7921_v37, 16  ;;  %v1989_v49 = vor.u32 %v1988_v34, %v9940_v59 }
 0x171   : > { %3635 = vmatmul.bf16.gmra.mxu3 %v3529_v42  ;;  %v3311_v42 = vshll.u32 %v7921_v37, 16  ;;  %v2608_v23 = vpack.c.b16 %v2585_v46, %v2584_v25  ;;  %v9992_v25 = vld [vmem:[%s9164_s16 + $0x68] sm:$0xf]  ;;  %v12003_v46 = vrot.slane %v9924_v27, 5 }
 0x172   : > { %v3310_v22 = vrot.slane %v3308_v56, 4  ;;  %v1990_v34 = vrot.slane %v1989_v49, 4  ;;  %v3300_v56 = vor.u32 %v3299_v28, %v9944_v20  ;;  %v11995_v49 = vrot.slane %v9976_v21, 5 }
 0x173   : > { %v1438_v38 = vpop.f32.mrf.mxu2  ;;  %v876_v58 = vpop.f32.mrf.mxu0  ;;  %v2502_v20 = vrot.slane %v12003_v46, 4 }
 0x174   : > { %v1741_v9 = vpop.f32.mrf.mxu3  ;;  %v1477_v51 = vadd.f32 %v1438_v38, %v1097_v3  ;;  %v1098_v61 = vpop.f32.mrf.mxu1  ;;  %v2002_v3 = vrot.slane %v2000_v63, 5  ;;  %v3313_v63 = vrot.slane %v3311_v42, 5  ;;  %v2006_v38 = vshll.u32 %v9976_v21, 16 }
 0x175   : > { %v1099_v4 = vadd.f32 %v1098_v61, %v876_v58  ;;  %v3303_v42 = vshll.u32 %v7920_v29, 16  ;;  %v3301_v28 = vrot.slane %v3300_v56, 4 }
 0x176   : > { %v9967_v14 = vadd.f32 %v1741_v9, %v1477_v51  ;;  %v2003_v37 = vor.u32 %v2002_v3, %v1999_v2  ;;  %v9983_v9 = vld [vmem:[%s9164_s16 + $0x74] sm:$0xf]  ;;  %v3530_v51 = vpack.c.b16 %v3507_v44, %v3506_v39  ;;  %v1994_v3 = vrot.slane %v1992_v5, 5 }
 0x177   : > { %v3314_v54 = vor.u32 %v3313_v63, %v3310_v22  ;;  %v3317_v12 = vshll.u32 %v9983_v9, 16  ;;  %v2008_v0 = vrot.slane %v2006_v38, 5  ;;  %v2503_v39 = vrot.slane %v9970_v60, 5  ;;  %v7923_v38 = vld [vmem:[%s9164_s16 + $0x78] sm:$0xf] }
 0x178   : > { %12001 = vst [vmem:[#allocation3_spill] sm:$0xff] %v9967_v14  ;;  %v2004_v7 = vrot.slane %v2003_v37, 4  ;;  %v7708_v44 = vrot.slane %v7698_v30, 9  ;;  %v3305_v5 = vrot.slane %v3303_v42, 5  ;;  %v2016_v63 = vshll.u32 %v9992_v25, 16 }
 0x179   : > { %v3315_v29 = vrot.slane %v3314_v54, 4  ;;  %v9999_v22 = vrot.slane %v3317_v12, 5  ;;  %v2020_v37 = vshrl.u32 %v9992_v25, 16  ;;  %v1995_v27 = vsel %vm9216_vm5, %v1990_v34, %v1994_v3 }
 0x17a   : > { %v2508_v12 = vsel %vm9207_vm4, %v7708_v44, %v11995_v49  ;;  %v3327_v34 = vshll.u32 %v7923_v38, 16  ;;  %v3331_v30 = vshrl.u32 %v7923_v38, 16  ;;  %v2018_v3 = vrot.slane %v2016_v63, 5  ;;  %v7629_v49 = vld [vmem:[%s9164_s16 + $0x70] sm:$0xf] }
 0x17b   : > { %v1440_v17 = vpop.f32.mrf.mxu2  ;;  %v879_v58 = vpop.f32.mrf.mxu0  ;;  %v3320_v42 = vsel %vm9216_vm5, %v3315_v29, %v9999_v22  ;;  %v2022_v54 = vrot.slane %v2020_v37, 4 }
 0x17c   : > { %v1743_v40 = vpop.f32.mrf.mxu3  ;;  %v1478_v59 = vadd.f32 %v1440_v17, %v1099_v4  ;;  %v1101_v61 = vpop.f32.mrf.mxu1  ;;  %v2010_v4 = vshrl.u32 %v9976_v21, 16  ;;  %v3333_v29 = vrot.slane %v3331_v30, 4 }
 0x17d   : > { %v1102_v2 = vadd.f32 %v1101_v61, %v879_v58  ;;  %v2023_v63 = vor.u32 %v2022_v54, %v2018_v3 }
 0x17e   : > { %v9989_v14 = vadd.f32 %v1743_v40, %v1478_v59  ;;  %2329 = vmatmul.bf16.gmra.mxu0 %v2219_v31  ;;  %v2012_v17 = vrot.slane %v2010_v4, 4  ;;  %v2009_v31 = vsel %vm9216_vm5, %v2004_v7, %v2008_v0 }
 0x17f   : > { %2718 = vmatmul.bf16.gmra.mxu1 %v2608_v23  ;;  %v2504_v23 = vsel %vm9207_vm4, %v2502_v20, %v2503_v39  ;;  %v2198_v46 = vunpack.c.l.b16 %v2009_v31  ;;  %v2587_v39 = vunpack.c.l.b16 %v2508_v12 }
 0x180   : > { %12002 = vst [vmem:[#allocation4_spill] sm:$0xff] %v9989_v14  ;;  %3021 = vmatmul.bf16.gmra.mxu2 %v8748_v16  ;;  %v3306_v16 = vsel %vm9216_vm5, %v3301_v28, %v3305_v5  ;;  %v2013_v4 = vor.u32 %v2012_v17, %v2008_v0  ;;  %v2586_v20 = vunpack.c.l.b16 %v2504_v23  ;;  %v7839_v28 = vld [vmem:[%s9164_s16 + $0x68] sm:$0xf]  ;;  %v8749_v5 = vld [vmem:[%s9164_s16 + $0x6c] sm:$0xf0] }
 0x181   : > { %3640 = vmatmul.bf16.gmra.mxu3 %v3530_v51  ;;  %v3321_v51 = vshrl.u32 %v9983_v9, 16  ;;  %v2197_v9 = vunpack.c.l.b16 %v1995_v27  ;;  %v3508_v38 = vunpack.c.l.b16 %v3306_v16  ;;  %v7840_v23 = vor.u32 %v8749_v5, %v7839_v28  ;;  %v10036_v14 = vld [vmem:[%s9164_s16 + $0x74] sm:$0xf] }
 0x182   : > { %v2014_v27 = vrot.slane %v2013_v4, 4  ;;  %v2609_v12 = vpack.c.b16 %v2587_v39, %v2586_v20  ;;  %v7925_v39 = vld [vmem:[%s9164_s16 + $0x80] sm:$0xf]  ;;  %v2031_v5 = vshrl.u32 %v7629_v49, 16 }
 0x183   : > { %v1443_v60 = vpop.f32.mrf.mxu2  ;;  %v881_v58 = vpop.f32.mrf.mxu0  ;;  %v3323_v44 = vrot.slane %v3321_v51, 4  ;;  %v2220_v31 = vpack.c.b16 %v2198_v46, %v2197_v9 }
 0x184   : > { %v1746_v40 = vpop.f32.mrf.mxu3  ;;  %v1479_v59 = vadd.f32 %v1443_v60, %v1102_v2  ;;  %v1103_v61 = vpop.f32.mrf.mxu1  ;;  %v10023_v2 = vld [vmem:[%s9164_s16 + $0x6c] sm:$0x1]  ;;  %v3509_v60 = vunpack.c.l.b16 %v3320_v42 }
 0x185   : > { %v1104_v56 = vadd.f32 %v1103_v61, %v881_v58  ;;  %v10027_v58 = vrot.slane %v3327_v34, 5  ;;  %v2026_v37 = vshll.u32 %v10023_v2, 16  ;;  %v3324_v51 = vor.u32 %v3323_v44, %v9999_v22 }
 0x186   : > { %v10020_v7 = vadd.f32 %v1746_v40, %v1479_v59  ;;  %v7924_v40 = vld [vmem:[%s9164_s16 + $0x7c] sm:$0x1]  ;;  %v2510_v59 = vrot.slane %v9992_v25, 5  ;;  %v3531_v30 = vpack.c.b16 %v3509_v60, %v3508_v38  ;;  %v2024_v25 = vrot.slane %v2023_v63, 4  ;;  %v7926_v60 = vld [vmem:[%s9164_s16 + $0x84] sm:$0xf] }
 0x187   : > { %v3334_v42 = vor.u32 %v3333_v29, %v10027_v58  ;;  %v3337_v54 = vshll.u32 %v7924_v40, 16  ;;  %v2019_v22 = vsel %vm9216_vm5, %v2014_v27, %v2018_v3  ;;  %v2513_v44 = vrot.slane %v10023_v2, 5 }
 0x188   : > { %12004 = vst [vmem:[#allocation5_spill] sm:$0xff] %v10020_v7  ;;  %v2028_v7 = vrot.slane %v2026_v37, 5  ;;  %v2512_v20 = vrot.slane %v2510_v59, 4  ;;  %v3325_v28 = vrot.slane %v3324_v51, 4  ;;  %v2034_v38 = vshll.u32 %v7629_v49, 16 }
 0x189   : > { %v3335_v29 = vrot.slane %v3334_v42, 4  ;;  %v3339_v63 = vrot.slane %v3337_v54, 5  ;;  %v2040_v37 = vshll.u32 %v10036_v14, 16  ;;  %v2044_v3 = vshrl.u32 %v10036_v14, 16 }
 0x18a   : > { %v3342_v40 = vshrl.u32 %v7925_v39, 16  ;;  %v3345_v27 = vshll.u32 %v7925_v39, 16  ;;  %v3355_v49 = vshrl.u32 %v7926_v60, 16  ;;  %v3330_v51 = vsel %vm9216_vm5, %v3325_v28, %v10027_v58  ;;  %v8775_v28 = vld [vmem:[%s11988_s1 + $0x210] sm:$0xff] }
 0x18b   : > { %v1445_v0 = vpop.f32.mrf.mxu2  ;;  %v884_v16 = vpop.f32.mrf.mxu0  ;;  %v10060_v42 = vrot.slane %v2040_v37, 5  ;;  %v2046_v54 = vrot.slane %v2044_v3, 4  ;;  %3996 = vmatpush.bf16.msra.mxu0 %v8775_v28 }
 0x18c   : > { %v1748_v17 = vpop.f32.mrf.mxu3  ;;  %v1480_v61 = vadd.f32 %v1445_v0, %v1104_v56  ;;  %v1106_v34 = vpop.f32.mrf.mxu1  ;;  %v12005_v56 = vrot.slane %v9976_v21, 5  ;;  %v2029_v21 = vsel %vm9216_vm5, %v2024_v25, %v2028_v7  ;;  %v2199_v0 = vunpack.c.l.b16 %v2019_v22 }
 0x18d   : > { %v1107_v4 = vadd.f32 %v1106_v34, %v884_v16  ;;  %v2036_v7 = vrot.slane %v2034_v38, 5  ;;  %v2200_v22 = vunpack.c.l.b16 %v2029_v21  ;;  %v3510_v38 = vunpack.c.l.b16 %v3330_v51  ;;  %v7699_v21 = vld [vmem:[%s9164_s16 + $0x70] sm:$0xe] }
 0x18e   : > { %v10038_v9 = vadd.f32 %v1748_v17, %v1480_v61  ;;  %v2509_v46 = vrot.slane %v12005_v56, 4  ;;  %2334 = vmatmul.bf16.gmra.mxu0 %v2220_v31  ;;  %v3351_v17 = vshll.u32 %v7926_v60, 16  ;;  %v2033_v61 = vrot.slane %v2031_v5, 4  ;;  %v10063_v56 = vld [vmem:[%s9164_s16 + $0x78] sm:$0xf] }
 0x18f   : > { %2723 = vmatmul.bf16.gmra.mxu1 %v2609_v12  ;;  %v2514_v12 = vsel %vm9207_vm4, %v2512_v20, %v2513_v44  ;;  %v3347_v20 = vrot.slane %v3345_v27, 5  ;;  %v3357_v44 = vrot.slane %v3355_v49, 4  ;;  %v2047_v37 = vor.u32 %v2046_v54, %v10060_v42 }
 0x190   : > { %3026 = vmatmul.bf16.gmra.mxu2 %v7840_v23  ;;  %v2511_v2 = vsel %vm9207_vm4, %v2509_v46, %v2510_v59  ;;  %v3340_v59 = vsel %vm9216_vm5, %v3335_v29, %v3339_v63  ;;  %v3344_v46 = vrot.slane %v3342_v40, 4  ;;  %v2589_v5 = vunpack.c.l.b16 %v2514_v12  ;;  %v10073_v63 = vld [vmem:[%s9164_s16 + $0x88] sm:$0xf] }
 0x191   : > { %3645 = vmatmul.bf16.gmra.mxu3 %v3531_v30  ;;  %v2588_v39 = vunpack.c.l.b16 %v2511_v2  ;;  %v3511_v60 = vunpack.c.l.b16 %v3340_v59  ;;  %v2037_v29 = vor.u32 %v2036_v7, %v2033_v61  ;;  %v2050_v3 = vshll.u32 %v10063_v56, 16 }
 0x192   : > { %v2517_v40 = vrot.slane %v10036_v14, 5  ;;  %v3348_v27 = vor.u32 %v3347_v20, %v3344_v46  ;;  %v2048_v59 = vrot.slane %v2047_v37, 4  ;;  %v7709_v14 = vrot.slane %v7699_v21, 9  ;;  %v7633_v46 = vld [vmem:[%s9164_s16 + $0x80] sm:$0xf] }
 0x193   : > { %v1448_v31 = vpop.f32.mrf.mxu2  ;;  %v886_v34 = vpop.f32.mrf.mxu0  ;;  %v2610_v12 = vpack.c.b16 %v2589_v5, %v2588_v39  ;;  %v3532_v51 = vpack.c.b16 %v3511_v60, %v3510_v38  ;;  %v2038_v61 = vrot.slane %v2037_v29, 4  ;;  %v10082_v54 = vrot.slane %v2050_v3, 5 }
 0x194   : > { %v1751_v23 = vpop.f32.mrf.mxu3  ;;  %v1481_v16 = vadd.f32 %v1448_v31, %v1107_v4  ;;  %v1108_v30 = vpop.f32.mrf.mxu1  ;;  %v10067_v4 = vrot.slane %v3351_v17, 5  ;;  %v3361_v17 = vshll.u32 %v10073_v63, 16  ;;  %v2520_v28 = vrot.slane %v10063_v56, 5 }
 0x195   : > { %v1109_v25 = vadd.f32 %v1108_v30, %v886_v34  ;;  %v8750_v30 = vld [vmem:[%s9164_s16 + $0x74] sm:$0xff]  ;;  %v2065_v38 = vshrl.u32 %v7633_v46, 16  ;;  %v2068_v60 = vshll.u32 %v7633_v46, 16  ;;  %v2043_v29 = vsel %vm9216_vm5, %v2038_v61, %v10060_v42  ;;  %v10117_v46 = vld [vmem:[%s9164_s16 + $0x84] sm:$0xf] }
 0x196   : > { %v10065_v58 = vadd.f32 %v1751_v23, %v1481_v16  ;;  %v3358_v2 = vor.u32 %v3357_v44, %v10067_v4  ;;  %v2221_v23 = vpack.c.b16 %v2200_v22, %v2199_v0  ;;  %v2519_v44 = vrot.slane %v2517_v40, 4 }
 0x197   : > { %v10089_v39 = vrot.slane %v3361_v17, 5  ;;  %v2053_v37 = vsel %vm9216_vm5, %v2048_v59, %v10082_v54  ;;  %v2518_v3 = vsel %vm9207_vm4, %v7709_v14, %v2517_v40  ;;  %v3365_v21 = vshrl.u32 %v10073_v63, 16  ;;  %v10113_v40 = vld [vmem:[%s9164_s16 + $0x7c] sm:$0x1] }
 0x198   : > { %12006 = vst [vmem:[#allocation6_spill] sm:$0xff] %v10065_v58  ;;  %v3349_v58 = vrot.slane %v3348_v27, 4  ;;  %v3359_v22 = vrot.slane %v3358_v2, 4  ;;  %v2521_v27 = vsel %vm9207_vm4, %v2519_v44, %v2520_v28  ;;  %v2067_v63 = vrot.slane %v2065_v38, 4 }
 0x199   : > { %v2591_v59 = vunpack.c.l.b16 %v2521_v27 }
 0x19a   : > { %v3354_v2 = vsel %vm9216_vm5, %v3349_v58, %v10067_v4  ;;  %v3364_v42 = vsel %vm9216_vm5, %v3359_v22, %v10089_v39  ;;  %v2201_v58 = vunpack.c.l.b16 %v2043_v29  ;;  %v2202_v4 = vunpack.c.l.b16 %v2053_v37  ;;  %v10125_v29 = vld [vmem:[%s9164_s16 + $0x94] sm:$0xf] }
 0x19b   : > { %v1450_v49 = vpop.f32.mrf.mxu2  ;;  %v2300_v16 = vpop.f32.mrf.mxu0  ;;  %v3512_v14 = vunpack.c.l.b16 %v3354_v2  ;;  %v3513_v22 = vunpack.c.l.b16 %v3364_v42  ;;  %v7700_v42 = vld [vmem:[%s9164_s16 + $0x80] sm:$0xe] }
 0x19c   : > { %v1753_v31 = vpop.f32.mrf.mxu3  ;;  %v1482_v7 = vadd.f32 %v1450_v49, %v1109_v25  ;;  %v2689_v34 = vpop.f32.mrf.mxu1  ;;  %v2375_v20 = vadd.f32 %v2300_v16, %v9409_v11  ;;  %v2054_v25 = vshrl.u32 %v10063_v56, 16  ;;  %v7929_v11 = vld [vmem:[%s9164_s16 + $0x90] sm:$0xf]  ;;  %v2222_v27 = vpack.c.b16 %v2202_v4, %v2201_v58  ;;  %v8751_v58 = vld [vmem:[%s9164_s16 + $0x80] sm:$0xff] }
 0x19e   : > { %v10087_v0 = vadd.f32 %v1753_v31, %v1482_v7  ;;  %v2764_v5 = vadd.f32 %v2689_v34, %v2375_v20  ;;  %2339 = vmatmul.bf16.gmra.mxu0 %v2221_v23  ;;  %v2056_v17 = vrot.slane %v2054_v25, 4  ;;  %v2070_v23 = vrot.slane %v2068_v60, 5 }
 0x19f   : > { %2728 = vmatmul.bf16.gmra.mxu1 %v2610_v12  ;;  %v3376_v12 = vshrl.u32 %v7929_v11, 16  ;;  %v2590_v34 = vunpack.c.l.b16 %v2518_v3  ;;  %v3367_v20 = vrot.slane %v3365_v21, 4  ;;  %v2074_v3 = vshll.u32 %v10117_v46, 16 }
 0x1a0   : > { %3031 = vmatmul.bf16.gmra.mxu2 %v8750_v30  ;;  %v2057_v25 = vor.u32 %v2056_v17, %v10082_v54  ;;  %v2071_v60 = vor.u32 %v2070_v23, %v2067_v63  ;;  %v3385_v17 = vshll.u32 %v10125_v29, 16 }
 0x1a1   : > { %3650 = vmatmul.bf16.gmra.mxu3 %v3532_v51  ;;  %v3379_v51 = vshll.u32 %v7929_v11, 16  ;;  %v7928_v11 = vld [vmem:[%s9164_s16 + $0x8c] sm:$0x1]  ;;  %v3378_v37 = vrot.slane %v3376_v12, 4  ;;  %v3368_v21 = vor.u32 %v3367_v20, %v10089_v39  ;;  %v2611_v2 = vpack.c.b16 %v2591_v59, %v2590_v34  ;;  %v10136_v59 = vld [vmem:[%s9164_s16 + $0x88] sm:$0xf] }
 0x1a2   : > { %v3371_v54 = vshll.u32 %v7928_v11, 16  ;;  %v2058_v23 = vrot.slane %v2057_v25, 4  ;;  %v2076_v4 = vrot.slane %v2074_v3, 5  ;;  %v2522_v39 = vrot.slane %v2520_v28, 4 }
 0x1a3   : > { %v2992_v49 = vpop.f32.mrf.mxu2  ;;  %v2302_v7 = vpop.f32.mrf.mxu0  ;;  %v2523_v34 = vrot.slane %v10113_v40, 5  ;;  %v7710_v20 = vrot.slane %v7700_v42, 9  ;;  %v3369_v25 = vrot.slane %v3368_v21, 4  ;;  %v2078_v11 = vshrl.u32 %v10117_v46, 16 }
 0x1a4   : > { %v3611_v31 = vpop.f32.mrf.mxu3  ;;  %v3067_v61 = vadd.f32 %v2992_v49, %v2764_v5  ;;  %v2691_v16 = vpop.f32.mrf.mxu1  ;;  %v2376_v30 = vadd.f32 %v2302_v7, %v9418_v35  ;;  %v2060_v5 = vshll.u32 %v10113_v40, 16  ;;  %v3381_v35 = vrot.slane %v3379_v51, 5 }
 0x1a5   : > { %v3533_v49 = vpack.c.b16 %v3513_v22, %v3512_v14  ;;  %v2072_v7 = vrot.slane %v2071_v60, 4  ;;  %v11996_v22 = vrot.slane %v10117_v46, 5  ;;  %v10142_v60 = vrot.slane %v3385_v17, 5 }
 0x1a6   : > { %v10119_v44 = vadd.f32 %v3611_v31, %v3067_v61  ;;  %v2765_v38 = vadd.f32 %v2691_v16, %v2376_v30  ;;  %v2062_v61 = vrot.slane %v2060_v5, 5  ;;  %v3382_v12 = vor.u32 %v3381_v35, %v3378_v37  ;;  %v7931_v35 = vld [vmem:[%s9164_s16 + $0x98] sm:$0xf] }
 0x1a7   : > { %v2084_v40 = vshll.u32 %v10136_v59, 16  ;;  %v2077_v3 = vsel %vm9216_vm5, %v2072_v7, %v2076_v4  ;;  %v2524_v21 = vsel %vm9207_vm4, %v2522_v39, %v2523_v34 }
 0x1a8   : > { %v3383_v28 = vrot.slane %v3382_v12, 4  ;;  %v2063_v37 = vsel %vm9216_vm5, %v2058_v23, %v2062_v61  ;;  %v10166_v12 = vld [vmem:[%s9164_s16 + $0x8c] sm:$0x1] }
 0x1a9   : > { %v2203_v34 = vunpack.c.l.b16 %v2063_v37 }
 0x1aa   : > { %v3388_v17 = vsel %vm9216_vm5, %v3383_v28, %v10142_v60 }
 0x1ab   : > { %v2994_v31 = vpop.f32.mrf.mxu2  ;;  %v2305_v16 = vpop.f32.mrf.mxu0 }
 0x1ac   : > { %v3613_v63 = vpop.f32.mrf.mxu3  ;;  %v3068_v51 = vadd.f32 %v2994_v31, %v2765_v38  ;;  %v2694_v30 = vpop.f32.mrf.mxu1  ;;  %v2377_v14 = vadd.f32 %v2305_v16, %v9439_v62  ;;  %v3373_v38 = vrot.slane %v3371_v54, 5  ;;  %v2088_v62 = vshrl.u32 %v10136_v59, 16 }
 0x1ad   : > { %v10163_v31 = vrot.slane %v2084_v40, 5  ;;  %v3395_v16 = vshll.u32 %v7931_v35, 16  ;;  %v8752_v40 = vld [vmem:[%s9164_s16 + $0x8c] sm:$0xf0] }
 0x1ae   : > { %v10140_v5 = vadd.f32 %v3613_v63, %v3068_v51  ;;  %v2766_v56 = vadd.f32 %v2694_v30, %v2377_v14  ;;  %2344 = vmatmul.bf16.gmra.mxu0 %v2222_v27  ;;  %v2528_v27 = vsel %vm9207_vm4, %v7710_v20, %v11996_v22  ;;  %v2090_v63 = vrot.slane %v2088_v62, 4 }
 0x1af   : > { %2733 = vmatmul.bf16.gmra.mxu1 %v2611_v2  ;;  %v2080_v2 = vrot.slane %v2078_v11, 4  ;;  %v3389_v51 = vshrl.u32 %v10125_v29, 16  ;;  %v3399_v30 = vshrl.u32 %v7931_v35, 16  ;;  %v2204_v14 = vunpack.c.l.b16 %v2077_v3  ;;  %v7851_v29 = vld [vmem:[%s9164_s16 + $0x88] sm:$0xf] }
 0x1b0   : > { %3036 = vmatmul.bf16.gmra.mxu2 %v8751_v58  ;;  %v8774_v58 = vld [vmem:[%s11988_s1 + $0x208] sm:$0xff]  ;;  %v2592_v20 = vunpack.c.l.b16 %v2524_v21  ;;  %v3515_v62 = vunpack.c.l.b16 %v3388_v17  ;;  %v2091_v35 = vor.u32 %v2090_v63, %v10163_v31  ;;  %v7932_v3 = vld [vmem:[%s9164_s16 + $0x9c] sm:$0x1]  ;;  %v2530_v17 = vrot.slane %v10136_v59, 5 }
 0x1b1   : > { %3655 = vmatmul.bf16.gmra.mxu3 %v3533_v49  ;;  %v3374_v49 = vsel %vm9216_vm5, %v3369_v25, %v3373_v38  ;;  %v2593_v38 = vunpack.c.l.b16 %v2528_v27  ;;  %3997 = vmatpush.bf16.msra.mxu0 %v8774_v58  ;;  %v3391_v22 = vrot.slane %v3389_v51, 4  ;;  %v3401_v37 = vrot.slane %v3399_v30, 4 }
 0x1b2   : > { %v3514_v11 = vunpack.c.l.b16 %v3374_v49  ;;  %v2223_v21 = vpack.c.b16 %v2204_v14, %v2203_v34  ;;  %v3405_v30 = vshll.u32 %v7932_v3, 16  ;;  %v12007_v59 = vrot.slane %v10117_v46, 5  ;;  %v7933_v46 = vld [vmem:[%s9164_s16 + $0xa0] sm:$0xf]  ;;  %v7934_v3 = vld [vmem:[%s9164_s16 + $0xa4] sm:$0xf] }
 0x1b3   : > { %v2997_v42 = vpop.f32.mrf.mxu2  ;;  %v2307_v61 = vpop.f32.mrf.mxu0  ;;  %v3392_v51 = vor.u32 %v3391_v22, %v10142_v60  ;;  %v2532_v60 = vrot.slane %v2530_v17, 4 }
 0x1b4   : > { %v3616_v54 = vpop.f32.mrf.mxu3  ;;  %v3069_v23 = vadd.f32 %v2997_v42, %v2766_v56  ;;  %v2696_v7 = vpop.f32.mrf.mxu1  ;;  %v2378_v39 = vadd.f32 %v2307_v61, %v9447_v26  ;;  %v2081_v56 = vor.u32 %v2080_v2, %v2076_v4  ;;  %v2094_v42 = vshll.u32 %v10166_v12, 16 }
 0x1b5   : > { %v10179_v26 = vrot.slane %v3395_v16, 5  ;;  %v3534_v2 = vpack.c.b16 %v3515_v62, %v3514_v11  ;;  %v2092_v61 = vrot.slane %v2091_v35, 4 }
 0x1b6   : > { %v10173_v25 = vadd.f32 %v3616_v54, %v3069_v23  ;;  %v2767_v28 = vadd.f32 %v2696_v7, %v2378_v39  ;;  %v7852_v54 = vor.u32 %v8752_v40, %v7851_v29  ;;  %v2612_v23 = vpack.c.b16 %v2593_v38, %v2592_v20 }
 0x1b7   : > { %v2082_v27 = vrot.slane %v2081_v56, 4  ;;  %v2096_v7 = vrot.slane %v2094_v42, 5  ;;  %v3402_v16 = vor.u32 %v3401_v37, %v10179_v26  ;;  %v2529_v38 = vrot.slane %v12007_v59, 4  ;;  %v7637_v56 = vld [vmem:[%s9164_s16 + $0x90] sm:$0xf] }
 0x1b8   : > { %v3407_v40 = vrot.slane %v3405_v30, 5  ;;  %v2099_v37 = vshrl.u32 %v7637_v56, 16 }
 0x1b9   : > { %v2087_v20 = vsel %vm9216_vm5, %v2082_v27, %v10163_v31  ;;  %v2097_v22 = vsel %vm9216_vm5, %v2092_v61, %v2096_v7  ;;  %v3403_v29 = vrot.slane %v3402_v16, 4  ;;  %v10198_v31 = vld [vmem:[%s9164_s16 + $0x94] sm:$0xf]  ;;  %v2531_v42 = vsel %vm9207_vm4, %v2529_v38, %v2530_v17 }
 0x1ba   : > { %v2205_v62 = vunpack.c.l.b16 %v2087_v20  ;;  %v2206_v35 = vunpack.c.l.b16 %v2097_v22  ;;  %v2108_v27 = vshll.u32 %v10198_v31, 16  ;;  %v3423_v16 = vshrl.u32 %v7934_v3, 16 }
 0x1bb   : > { %v2999_v49 = vpop.f32.mrf.mxu2  ;;  %v2310_v63 = vpop.f32.mrf.mxu0  ;;  %v3408_v17 = vsel %vm9216_vm5, %v3403_v29, %v3407_v40  ;;  %v2101_v59 = vrot.slane %v2099_v37, 4 }
 0x1bc   : > { %v3618_v4 = vpop.f32.mrf.mxu3  ;;  %v3070_v58 = vadd.f32 %v2999_v49, %v2767_v28  ;;  %v2699_v39 = vpop.f32.mrf.mxu1  ;;  %v2379_v34 = vadd.f32 %v2310_v63, %v9463_v52  ;;  %v2533_v52 = vrot.slane %v10166_v12, 5  ;;  %v3393_v28 = vrot.slane %v3392_v51, 4 }
 0x1bd   : > { %v2112_v49 = vshrl.u32 %v10198_v31, 16  ;;  %v3419_v51 = vshll.u32 %v7934_v3, 16  ;;  %v2110_v22 = vrot.slane %v2108_v27, 5  ;;  %v3425_v40 = vrot.slane %v3423_v16, 4  ;;  %v7935_v3 = vld [vmem:[%s9164_s16 + $0xa8] sm:$0xf] }
 0x1be   : > { %v10186_v14 = vadd.f32 %v3618_v4, %v3070_v58  ;;  %v2768_v11 = vadd.f32 %v2699_v39, %v2379_v34  ;;  %2349 = vmatmul.bf16.gmra.mxu0 %v2223_v21  ;;  %v2534_v12 = vsel %vm9207_vm4, %v2532_v60, %v2533_v52  ;;  %v3398_v7 = vsel %vm9216_vm5, %v3393_v28, %v10179_v26 }
 0x1bf   : > { %2738 = vmatmul.bf16.gmra.mxu1 %v2612_v23  ;;  %v3410_v58 = vshrl.u32 %v7933_v46, 16  ;;  %v3413_v39 = vshll.u32 %v7933_v46, 16  ;;  %v2594_v34 = vunpack.c.l.b16 %v2531_v42  ;;  %v2595_v20 = vunpack.c.l.b16 %v2534_v12 }
 0x1c0   : > { %3041 = vmatmul.bf16.gmra.mxu2 %v7852_v54  ;;  %v2102_v54 = vshll.u32 %v7637_v56, 16  ;;  %v2114_v26 = vrot.slane %v2112_v49, 4  ;;  %v3516_v60 = vunpack.c.l.b16 %v3398_v7  ;;  %v3517_v52 = vunpack.c.l.b16 %v3408_v17  ;;  %v10217_v56 = vld [vmem:[%s9164_s16 + $0x98] sm:$0xf]  ;;  %v7701_v17 = vld [vmem:[%s9164_s16 + $0x90] sm:$0xe] }
 0x1c1   : > { %3660 = vmatmul.bf16.gmra.mxu3 %v3534_v2  ;;  %v3412_v28 = vrot.slane %v3410_v58, 4  ;;  %v3421_v29 = vrot.slane %v3419_v51, 5  ;;  %v2224_v46 = vpack.c.b16 %v2206_v35, %v2205_v62  ;;  %v3429_v58 = vshll.u32 %v7935_v3, 16 }
 0x1c2   : > { %v2115_v12 = vor.u32 %v2114_v26, %v2110_v22 }
 0x1c3   : > { %v3002_v21 = vpop.f32.mrf.mxu2  ;;  %v2312_v2 = vpop.f32.mrf.mxu0  ;;  %v3426_v35 = vor.u32 %v3425_v40, %v3421_v29  ;;  %v3431_v26 = vrot.slane %v3429_v58, 5  ;;  %v10253_v58 = vld [vmem:[%s9164_s16 + $0xa4] sm:$0xf] }
 0x1c4   : > { %v3621_v23 = vpop.f32.mrf.mxu3  ;;  %v3071_v4 = vadd.f32 %v3002_v21, %v2768_v11  ;;  %v2701_v61 = vpop.f32.mrf.mxu1  ;;  %v2380_v63 = vadd.f32 %v2312_v2, %v9473_v15  ;;  %v2104_v11 = vrot.slane %v2102_v54, 5  ;;  %v3415_v15 = vrot.slane %v3413_v39, 5 }
 0x1c5   : > { %v2118_v54 = vshll.u32 %v10217_v56, 16  ;;  %v3535_v2 = vpack.c.b16 %v3517_v52, %v3516_v60  ;;  %v2116_v51 = vrot.slane %v2115_v12, 4  ;;  %v2122_v60 = vshrl.u32 %v10217_v56, 16  ;;  %v7937_v52 = vld [vmem:[%s9164_s16 + $0xb0] sm:$0xf] }
 0x1c6   : > { %v10214_v30 = vadd.f32 %v3621_v23, %v3071_v4  ;;  %v2769_v38 = vadd.f32 %v2701_v61, %v2380_v63  ;;  %v2613_v23 = vpack.c.b16 %v2595_v20, %v2594_v34  ;;  %v2105_v37 = vor.u32 %v2104_v11, %v2101_v59  ;;  %v8753_v4 = vld [vmem:[%s9164_s16 + $0x94] sm:$0xff]  ;;  %v7641_v34 = vld [vmem:[%s9164_s16 + $0xa0] sm:$0xf] }
 0x1c7   : > { %v2537_v61 = vrot.slane %v10198_v31, 5  ;;  %v3416_v62 = vor.u32 %v3415_v15, %v3412_v28  ;;  %v2120_v16 = vrot.slane %v2118_v54, 5  ;;  %v7711_v20 = vrot.slane %v7701_v17, 9  ;;  %v8773_v59 = vld [vmem:[%s11988_s1 + $0x200] sm:$0xff] }
 0x1c8   : > { %v2106_v39 = vrot.slane %v2105_v37, 4  ;;  %v3427_v11 = vrot.slane %v3426_v35, 4  ;;  %v2133_v28 = vshrl.u32 %v7641_v34, 16  ;;  %v2136_v15 = vshll.u32 %v7641_v34, 16  ;;  %3998 = vmatpush.bf16.msra.mxu0 %v8773_v59 }
 0x1c9   : > { %v2539_v31 = vrot.slane %v2537_v61, 4  ;;  %v3444_v37 = vshrl.u32 %v7937_v52, 16  ;;  %v3447_v12 = vshll.u32 %v7937_v52, 16 }
 0x1ca   : > { %v2111_v40 = vsel %vm9216_vm5, %v2106_v39, %v2110_v22 }
 0x1cb   : > { %v3004_v21 = vpop.f32.mrf.mxu2  ;;  %v2315_v49 = vpop.f32.mrf.mxu0  ;;  %v3446_v34 = vrot.slane %v3444_v37, 4 }
 0x1cc   : > { %v3623_v42 = vpop.f32.mrf.mxu3  ;;  %v3072_v27 = vadd.f32 %v3004_v21, %v2769_v38  ;;  %v10224_v7 = vadd.f32 %v2315_v49, %v9512_v48  ;;  %v2540_v48 = vrot.slane %v10217_v56, 5  ;;  %v3417_v38 = vrot.slane %v3416_v62, 4 }
 0x1cd   : > { %v3433_v21 = vshrl.u32 %v7935_v3, 16  ;;  %v3432_v3 = vsel %vm9216_vm5, %v3427_v11, %v3431_v26  ;;  %v2207_v49 = vunpack.c.l.b16 %v2111_v40 }
 0x1ce   : > { %v10227_v63 = vadd.f32 %v3623_v42, %v3072_v27  ;;  %2354 = vmatmul.bf16.gmra.mxu0 %v2224_v46  ;;  %v2121_v46 = vsel %vm9216_vm5, %v2116_v51, %v2120_v16  ;;  %v2541_v56 = vsel %vm9207_vm4, %v2539_v31, %v2540_v48  ;;  %v3422_v22 = vsel %vm9216_vm5, %v3417_v38, %v3421_v29  ;;  %v7936_v29 = vld [vmem:[%s9164_s16 + $0xac] sm:$0x1]  ;;  %v10257_v38 = vld [vmem:[%s9164_s16 + $0xb4] sm:$0xf] }
 0x1cf   : > { %2743 = vmatmul.bf16.gmra.mxu1 %v2613_v23  ;;  %v2538_v23 = vsel %vm9207_vm4, %v7711_v20, %v2537_v61  ;;  %v2124_v27 = vrot.slane %v2122_v60, 4  ;;  %v2138_v61 = vrot.slane %v2136_v15, 5  ;;  %v2208_v17 = vunpack.c.l.b16 %v2121_v46 }
 0x1d0   : > { %3046 = vmatmul.bf16.gmra.mxu2 %v8753_v4  ;;  %v7640_v4 = vld [vmem:[%s9164_s16 + $0x9c] sm:$0x1]  ;;  %v2596_v62 = vunpack.c.l.b16 %v2538_v23  ;;  %v2597_v35 = vunpack.c.l.b16 %v2541_v56  ;;  %v3435_v39 = vrot.slane %v3433_v21, 4  ;;  %v3519_v51 = vunpack.c.l.b16 %v3432_v3  ;;  %v8754_v21 = vld [vmem:[%s9164_s16 + $0xa0] sm:$0xff] }
 0x1d1   : > { %3665 = vmatmul.bf16.gmra.mxu3 %v3535_v2  ;;  %v2135_v2 = vrot.slane %v2133_v28, 4  ;;  %v3449_v20 = vrot.slane %v3447_v12, 5  ;;  %v2125_v31 = vor.u32 %v2124_v27, %v2120_v16  ;;  %v2128_v59 = vshll.u32 %v7640_v4, 16  ;;  %v7702_v23 = vld [vmem:[%s9164_s16 + $0xa0] sm:$0xe] }
 0x1d2   : > { %v2142_v60 = vshll.u32 %v10253_v58, 16  ;;  %v2225_v52 = vpack.c.b16 %v2208_v17, %v2207_v49  ;;  %v2614_v28 = vpack.c.b16 %v2597_v35, %v2596_v62  ;;  %v3436_v15 = vor.u32 %v3435_v39, %v3431_v26  ;;  %v10270_v39 = vld [vmem:[%s9164_s16 + $0xa8] sm:$0xf] }
 0x1d3   : > { %v2317_v42 = vpop.f32.mrf.mxu0  ;;  %v2139_v11 = vor.u32 %v2138_v61, %v2135_v2  ;;  %v3439_v40 = vshll.u32 %v7936_v29, 16  ;;  %v3450_v56 = vor.u32 %v3449_v20, %v3446_v34  ;;  %v2126_v16 = vrot.slane %v2125_v31, 4  ;;  %v7939_v29 = vld [vmem:[%s9164_s16 + $0xb8] sm:$0xf] }
 0x1d4   : > { %v10245_v54 = vadd.f32 %v2317_v42, %v9540_v18  ;;  %v3518_v18 = vunpack.c.l.b16 %v3422_v22  ;;  %v3453_v22 = vshll.u32 %v10257_v38, 16  ;;  %v2130_v12 = vrot.slane %v2128_v59, 5 }
 0x1d5   : > { %v2140_v3 = vrot.slane %v2139_v11, 4  ;;  %v10266_v27 = vrot.slane %v2142_v60, 5  ;;  %v2542_v49 = vrot.slane %v2540_v48, 4  ;;  %v2543_v2 = vrot.slane %v7640_v4, 5  ;;  %v8812_v48 = vld [vmem:[%s11990_s3 + $0xb8] sm:$0xff] }
 0x1d6   : > { %v3536_v42 = vpack.c.b16 %v3519_v51, %v3518_v18  ;;  %v7712_v26 = vrot.slane %v7702_v23, 9  ;;  %v2547_v61 = vrot.slane %v10253_v58, 5  ;;  %v3437_v17 = vrot.slane %v3436_v15, 4  ;;  %v8796_v18 = vld [vmem:[%s11990_s3 + $0x38] sm:$0xff]  ;;  %5128 = vmatpush.bf16.msra.mxu3 %v8812_v48 }
 0x1d7   : > { %v3441_v62 = vrot.slane %v3439_v40, 5  ;;  %v3455_v35 = vrot.slane %v3453_v22, 5  ;;  %v2131_v4 = vsel %vm9216_vm5, %v2126_v16, %v2130_v12  ;;  %v2145_v51 = vsel %vm9216_vm5, %v2140_v3, %v10266_v27  ;;  %4902 = vmatpush.bf16.msra.mxu2 %v8796_v18  ;;  %v8804_v15 = vld [vmem:[%s11990_s3 + $0x78] sm:$0xff] }
 0x1d8   : > { %v2544_v34 = vsel %vm9207_vm4, %v2542_v49, %v2543_v2  ;;  %v2146_v20 = vshrl.u32 %v10253_v58, 16  ;;  %v2152_v31 = vshll.u32 %v10270_v39, 16  ;;  %v2156_v59 = vshrl.u32 %v10270_v39, 16  ;;  %4757 = vmatpush.bf16.msra.mxu1 %v8804_v15  ;;  %v7863_v2 = vld [vmem:[%s9164_s16 + $0xa8] sm:$0xf] }
 0x1d9   : > { %v2548_v60 = vsel %vm9207_vm4, %v7712_v26, %v2547_v61  ;;  %v2209_v23 = vunpack.c.l.b16 %v2131_v4  ;;  %v2598_v22 = vunpack.c.l.b16 %v2544_v34  ;;  %v8755_v26 = vld [vmem:[%s9164_s16 + $0xac] sm:$0xf0] }
 0x1da   : > { %v2599_v16 = vunpack.c.l.b16 %v2548_v60  ;;  %v2148_v12 = vrot.slane %v2146_v20, 4  ;;  %v2154_v3 = vrot.slane %v2152_v31, 5  ;;  %v2158_v49 = vrot.slane %v2156_v59, 4 }
 0x1db   : > { %v2320_v46 = vpop.f32.mrf.mxu0  ;;  %v7864_v15 = vor.u32 %v8755_v26, %v7863_v2  ;;  %v2550_v31 = vrot.slane %v10270_v39, 5 }
 0x1dc   : > { %v10264_v37 = vadd.f32 %v2320_v46, %v9583_v53  ;;  %v3451_v53 = vrot.slane %v3450_v56, 4  ;;  %v3457_v46 = vshrl.u32 %v10257_v38, 16  ;;  %v2210_v56 = vunpack.c.l.b16 %v2145_v51  ;;  %v7940_v38 = vld [vmem:[%s9164_s16 + $0xbc] sm:$0x1] }
 0x1dd   : > { %v2149_v4 = vor.u32 %v2148_v12, %v10266_v27  ;;  %v2159_v51 = vor.u32 %v2158_v49, %v2154_v3 }
 0x1de   : > { %2359 = vmatmul.bf16.gmra.mxu0 %v2225_v52  ;;  %v3442_v52 = vsel %vm9216_vm5, %v3437_v17, %v3441_v62 }
 0x1df   : > { %2748 = vmatmul.bf16.gmra.mxu1 %v2614_v28  ;;  %v3456_v28 = vsel %vm9216_vm5, %v3451_v53, %v3455_v35  ;;  %v3520_v17 = vunpack.c.l.b16 %v3442_v52  ;;  %v3459_v53 = vrot.slane %v3457_v46, 4  ;;  %v3473_v46 = vshll.u32 %v7940_v38, 16 }
 0x1e0   : > { %3051 = vmatmul.bf16.gmra.mxu2 %v8754_v21  ;;  %v3463_v21 = vshll.u32 %v7939_v29, 16  ;;  %v3521_v62 = vunpack.c.l.b16 %v3456_v28 }
 0x1e1   : > { %3670 = vmatmul.bf16.gmra.mxu3 %v3536_v42  ;;  %v3467_v42 = vshrl.u32 %v7939_v29, 16  ;;  %v2615_v29 = vpack.c.b16 %v2599_v16, %v2598_v22  ;;  %v3460_v52 = vor.u32 %v3459_v53, %v3455_v35  ;;  %v3475_v12 = vrot.slane %v3473_v46, 5  ;;  %v8984_v46 = vld [vmem:[%s9164_s16 + $0x28] sm:$0xf] }
 0x1e2   : > { %v3465_v18 = vrot.slane %v3463_v21, 5  ;;  %v3537_v60 = vpack.c.b16 %v3521_v62, %v3520_v17  ;;  %v2150_v21 = vrot.slane %v2149_v4, 4 }
 0x1e3   : > { %v2322_v11 = vpop.f32.mrf.mxu0  ;;  %v3469_v48 = vrot.slane %v3467_v42, 4  ;;  %v2160_v42 = vrot.slane %v2159_v51, 4  ;;  %v3461_v16 = vrot.slane %v3460_v52, 4  ;;  %v8756_v51 = vld [vmem:[%s9164_s16 + $0xb4] sm:$0xff] }
 0x1e4   : > { %v10301_v40 = vadd.f32 %v2322_v11, %v9617_v32  ;;  %v7644_v32 = vld [vmem:[%s9164_s16 + $0xac] sm:$0x1]  ;;  %v2226_v11 = vpack.c.b16 %v2210_v56, %v2209_v23  ;;  %v2549_v23 = vrot.slane %v2547_v61, 4  ;;  %v2552_v56 = vrot.slane %v2550_v31, 4  ;;  %v8803_v52 = vld [vmem:[%s11990_s3 + $0x70] sm:$0xff] }
 0x1e5   : > { %v2162_v20 = vshll.u32 %v7644_v32, 16  ;;  %v3470_v28 = vor.u32 %v3469_v48, %v3465_v18  ;;  %v2553_v22 = vrot.slane %v7644_v32, 5  ;;  %v2155_v35 = vsel %vm9216_vm5, %v2150_v21, %v2154_v3  ;;  %4758 = vmatpush.bf16.msra.mxu1 %v8803_v52 }
 0x1e6   : > { %v2551_v2 = vsel %vm9207_vm4, %v2549_v23, %v2550_v31  ;;  %v3466_v26 = vsel %vm9216_vm5, %v3461_v16, %v3465_v18  ;;  %v2211_v17 = vunpack.c.l.b16 %v2155_v35  ;;  %v8811_v31 = vld [vmem:[%s11990_s3 + $0xb0] sm:$0xff]  ;;  %v3771_v21 = vrot.slane %v8984_v46, 5 }
 0x1e7   : > { %v2164_v27 = vrot.slane %v2162_v20, 5  ;;  %v3471_v39 = vrot.slane %v3470_v28, 4  ;;  %v2554_v58 = vsel %vm9207_vm4, %v2552_v56, %v2553_v22  ;;  %v2600_v32 = vunpack.c.l.b16 %v2551_v2  ;;  %v8795_v20 = vld [vmem:[%s11990_s3 + $0x30] sm:$0xff]  ;;  %5129 = vmatpush.bf16.msra.mxu3 %v8811_v31  ;;  %v8985_v2 = vld [vmem:[%s9164_s16 + $0x2c] sm:$0x1] }
 0x1e8   : > { %v2601_v53 = vunpack.c.l.b16 %v2554_v58  ;;  %v3522_v48 = vunpack.c.l.b16 %v3466_v26  ;;  %4903 = vmatpush.bf16.msra.mxu2 %v8795_v20  ;;  %v7990_v35 = vld [vmem:[%s9164_s16 + $0x30] sm:$0xe]  ;;  %v3774_v58 = vrot.slane %v8985_v2, 5  ;;  %v8988_v20 = vld [vmem:[%s9164_s16 + $0x3c] sm:$0x1] }
 0x1e9   : > { %v2165_v49 = vsel %vm9216_vm5, %v2160_v42, %v2164_v27  ;;  %v3476_v3 = vsel %vm9216_vm5, %v3471_v39, %v3475_v12  ;;  %v8000_v26 = vrot.slane %v7990_v35, 9  ;;  %v3784_v31 = vrot.slane %v8988_v20, 5  ;;  %v10419_v20 = vpop.f32.mrf.mxu2 }
 0x1ea   : > { %v2212_v62 = vunpack.c.l.b16 %v2165_v49  ;;  %v3523_v38 = vunpack.c.l.b16 %v3476_v3  ;;  %v3773_v49 = vrot.slane %v3771_v21, 4  ;;  %v8986_v3 = vld [vmem:[%s9164_s16 + $0x34] sm:$0xf] }
 0x1eb   : > { %v2325_v34 = vpop.f32.mrf.mxu0 }
 0x1ec   : > { %v10311_v59 = vadd.f32 %v2325_v34, %v9643_v6  ;;  %v8983_v34 = vld [vmem:[%s9164_s16 + $0x24] sm:$0xf] }
 0x1ee   : > { %2364 = vmatmul.bf16.gmra.mxu0 %v2226_v11  ;;  %v2227_v11 = vpack.c.b16 %v2212_v62, %v2211_v17  ;;  %v3778_v17 = vrot.slane %v8986_v3, 5 }
 0x1ef   : > { %2753 = vmatmul.bf16.gmra.mxu1 %v2615_v29  ;;  %v2616_v29 = vpack.c.b16 %v2601_v53, %v2600_v32 }
 0x1f0   : > { %3056 = vmatmul.bf16.gmra.mxu2 %v7864_v15  ;;  %v3768_v15 = vrot.slane %v8983_v34, 5  ;;  %v3779_v32 = vsel %vm9207_vm4, %v8000_v26, %v3778_v17  ;;  %v8810_v34 = vld [vmem:[%s11990_s3 + $0xa8] sm:$0xff] }
 0x1f1   : > { %3675 = vmatmul.bf16.gmra.mxu3 %v3537_v60  ;;  %v7989_v60 = vld [vmem:[%s9164_s16 + $0x20] sm:$0xe] }
 0x1f2   : > { %v7999_v28 = vrot.slane %v7989_v60, 9  ;;  %5130 = vmatpush.bf16.msra.mxu3 %v8810_v34  ;;  %v8992_v34 = vld [vmem:[%s9164_s16 + $0x54] sm:$0xf] }
 0x1f3   : > { %v2327_v6 = vpop.f32.mrf.mxu0 }
 0x1f4   : > { %v10324_v61 = vadd.f32 %v2327_v6, %v9664_v55  ;;  %v3538_v55 = vpack.c.b16 %v3523_v38, %v3522_v48  ;;  %v3769_v27 = vsel %vm9207_vm4, %v7999_v28, %v3768_v15  ;;  %v3886_v48 = vunpack.c.l.b16 %v3779_v32 }
 0x1f5   : > { %v3883_v22 = vunpack.c.l.b16 %v3769_v27 }
 0x1fb   : > { %v2330_v4 = vpop.f32.mrf.mxu0 }
 0x1fc   : > { %v10333_v18 = vadd.f32 %v2330_v4, %v9691_v13  ;;  %v3770_v13 = vrot.slane %v3768_v15, 4  ;;  %v3780_v15 = vrot.slane %v3778_v17, 4 }
 0x1fe   : > { %2369 = vmatmul.bf16.gmra.mxu0 %v2227_v11  ;;  %v3772_v23 = vsel %vm9207_vm4, %v3770_v13, %v3771_v21 }
 0x1ff   : > { %2758 = vmatmul.bf16.gmra.mxu1 %v2616_v29  ;;  %v3884_v16 = vunpack.c.l.b16 %v3772_v23  ;;  %v8987_v29 = vld [vmem:[%s9164_s16 + $0x38] sm:$0xf]  ;;  %v8989_v23 = vld [vmem:[%s9164_s16 + $0x44] sm:$0xf] }
 0x200   : > { %3061 = vmatmul.bf16.gmra.mxu2 %v8756_v51  ;;  %v3781_v4 = vrot.slane %v8987_v29, 5  ;;  %v8794_v51 = vld [vmem:[%s11990_s3 + $0x28] sm:$0xff] }
 0x201   : > { %3680 = vmatmul.bf16.gmra.mxu3 %v3538_v55  ;;  %v3913_v39 = vpack.c.b16 %v3884_v16, %v3883_v22  ;;  %4904 = vmatpush.bf16.msra.mxu2 %v8794_v51  ;;  %v3788_v22 = vrot.slane %v8989_v23, 5  ;;  %v8991_v29 = vld [vmem:[%s9164_s16 + $0x4c] sm:$0x1] }
 0x202   : > { %v3783_v60 = vrot.slane %v3781_v4, 4  ;;  %v3782_v52 = vsel %vm9207_vm4, %v3780_v15, %v3781_v4  ;;  %v3794_v4 = vrot.slane %v8991_v29, 5 }
 0x203   : > { %v2332_v42 = vpop.f32.mrf.mxu0  ;;  %v3887_v46 = vunpack.c.l.b16 %v3782_v52  ;;  %v3790_v35 = vrot.slane %v3788_v22, 4 }
 0x204   : > { %v10351_v56 = vadd.f32 %v2332_v42, %v9713_v10  ;;  %v3775_v10 = vsel %vm9207_vm4, %v3773_v49, %v3774_v58  ;;  %v3785_v28 = vsel %vm9207_vm4, %v3783_v60, %v3784_v31  ;;  %v8990_v49 = vld [vmem:[%s9164_s16 + $0x48] sm:$0xf] }
 0x205   : > { %v3885_v53 = vunpack.c.l.b16 %v3775_v10  ;;  %v3888_v21 = vunpack.c.l.b16 %v3785_v28  ;;  %v3791_v2 = vrot.slane %v8990_v49, 5  ;;  %v8994_v49 = vld [vmem:[%s9164_s16 + $0x5c] sm:$0x1] }
 0x206   : > { %12008 = vst [vmem:[#allocation7_spill] sm:$0xff] %v10351_v56 }
 0x207   : > { %v3914_v38 = vpack.c.b16 %v3886_v48, %v3885_v53  ;;  %v3915_v42 = vpack.c.b16 %v3888_v21, %v3887_v46  ;;  %v3792_v26 = vsel %vm9207_vm4, %v3790_v35, %v3791_v2  ;;  %v8809_v53 = vld [vmem:[%s11990_s3 + $0xa0] sm:$0xff]  ;;  %v10426_v46 = vpop.f32.mrf.mxu3 }
 0x208   : > { %v3890_v17 = vunpack.c.l.b16 %v3792_v26  ;;  %5131 = vmatpush.bf16.msra.mxu3 %v8809_v53 }
 0x20b   : > { %v2335_v12 = vpop.f32.mrf.mxu0 }
 0x20c   : > { %v10354_v6 = vadd.f32 %v2335_v12, %v9743_v57 }
 0x20e   : > { %12009 = vst [vmem:[#allocation8_spill] sm:$0xff] %v10354_v6  ;;  %3999 = vmatmul.bf16.vlgmr.msra.gmra.mxu0 %v3913_v39  ;;  %v7991_v39 = vld [vmem:[%s9164_s16 + $0x40] sm:$0xe] }
 0x20f   : > { %v8001_v12 = vrot.slane %v7991_v39, 9  ;;  %v10432_v39 = vpop.f32.mrf.mxu2 }
 0x213   : > { %v2337_v62 = vpop.f32.mrf.mxu0 }
 0x214   : > { %v10364_v57 = vadd.f32 %v2337_v62, %v9755_v36  ;;  %v8802_v36 = vld [vmem:[%s11990_s3 + $0x68] sm:$0xff]  ;;  %v8793_v62 = vld [vmem:[%s11990_s3 + $0x20] sm:$0xff] }
 0x215   : > { %4759 = vmatpush.bf16.msra.mxu1 %v8802_v36  ;;  %4905 = vmatpush.bf16.msra.mxu2 %v8793_v62  ;;  %v3798_v36 = vrot.slane %v8992_v34, 5 }
 0x216   : > { %12010 = vst [vmem:[#allocation9_spill] sm:$0xff] %v10364_v57 }
 0x217   : > { %v10452_v53 = vpop.f32.mrf.mxu2 }
 0x21b   : > { %v2340_v11 = vpop.f32.mrf.mxu0 }
 0x21c   : > { %v10371_v55 = vadd.f32 %v2340_v11, %v9779_v24  ;;  %v3793_v11 = vrot.slane %v3791_v2, 4  ;;  %v3804_v2 = vrot.slane %v8994_v49, 5 }
 0x21e   : > { %12011 = vst [vmem:[#allocation10_spill] sm:$0xff] %v10371_v55  ;;  %4004 = vmatmul.bf16.gmra.mxu0 %v3914_v38  ;;  %v7992_v38 = vld [vmem:[%s9164_s16 + $0x50] sm:$0xe] }
 0x21f   : > { %v8002_v51 = vrot.slane %v7992_v38, 9 }
 0x221   : > { %v3799_v60 = vsel %vm9207_vm4, %v8002_v51, %v3798_v36  ;;  %v12019_v51 = vld [vmem:[#allocation3_spill] sm:$0xff] }
 0x222   : > { %v3892_v28 = vunpack.c.l.b16 %v3799_v60 }
 0x223   : > { %v2342_v24 = vpop.f32.mrf.mxu0 }
 0x224   : > { %v10385_v13 = vadd.f32 %v2342_v24, %v9803_v1  ;;  %v3789_v1 = vsel %vm9207_vm4, %v8001_v12, %v3788_v22  ;;  %v10424_v24 = vpop.f32.mrf.mxu1 }
 0x226   : > { %12012 = vst [vmem:[#allocation11_spill] sm:$0xff] %v10385_v13 }
 0x22b   : > { %v2345_v27 = vpop.f32.mrf.mxu0 }
 0x22c   : > { %v10389_v16 = vadd.f32 %v2345_v27, %v9830_v50  ;;  %v3889_v50 = vunpack.c.l.b16 %v3789_v1  ;;  %v8993_v27 = vld [vmem:[%s9164_s16 + $0x58] sm:$0xf]  ;;  %v10434_v12 = vpop.f32.mrf.mxu1 }
 0x22d   : > { %v3801_v23 = vrot.slane %v8993_v27, 5 }
 0x22e   : > { %12013 = vst [vmem:[#allocation12_spill] sm:$0xff] %v10389_v16  ;;  %4009 = vmatmul.bf16.gmra.mxu0 %v3915_v42  ;;  %v3916_v10 = vpack.c.b16 %v3890_v17, %v3889_v50 }
 0x22f   : > { %v3803_v35 = vrot.slane %v3801_v23, 4 }
 0x233   : > { %v2347_v58 = vpop.f32.mrf.mxu0 }
 0x234   : > { %v10398_v3 = vadd.f32 %v2347_v58, %v9849_v47  ;;  %v8801_v47 = vld [vmem:[%s11990_s3 + $0x60] sm:$0xff]  ;;  %v10437_v58 = vpop.f32.mrf.mxu3  ;;  %v10454_v38 = vpop.f32.mrf.mxu1 }
 0x235   : > { %4760 = vmatpush.bf16.msra.mxu1 %v8801_v47 }
 0x236   : > { %12014 = vst [vmem:[#allocation13_spill] sm:$0xff] %v10398_v3 }
 0x23b   : > { %v2350_v32 = vpop.f32.mrf.mxu0 }
 0x23c   : > { %v10407_v48 = vadd.f32 %v2350_v32, %v9879_v8  ;;  %v3795_v8 = vsel %vm9207_vm4, %v3793_v11, %v3794_v4  ;;  %v8808_v32 = vld [vmem:[%s11990_s3 + $0x98] sm:$0xff]  ;;  %v8995_v11 = vld [vmem:[%s9164_s16 + $0x64] sm:$0xf] }
 0x23d   : > { %v3891_v52 = vunpack.c.l.b16 %v3795_v8  ;;  %5132 = vmatpush.bf16.msra.mxu3 %v8808_v32  ;;  %v3808_v29 = vrot.slane %v8995_v11, 5  ;;  %v8800_v4 = vld [vmem:[%s11990_s3 + $0x58] sm:$0xff] }
 0x23e   : > { %12015 = vst [vmem:[#allocation14_spill] sm:$0xff] %v10407_v48  ;;  %4014 = vmatmul.bf16.gmra.mxu0 %v3916_v10  ;;  %v8792_v10 = vld [vmem:[%s11990_s3 + $0x18] sm:$0xff]  ;;  %4761 = vmatpush.bf16.msra.mxu1 %v8800_v4 }
 0x23f   : > { %v3917_v21 = vpack.c.b16 %v3892_v28, %v3891_v52  ;;  %4906 = vmatpush.bf16.msra.mxu2 %v8792_v10  ;;  %v3810_v60 = vrot.slane %v3808_v29, 4  ;;  %v8996_v52 = vld [vmem:[%s9164_s16 + $0x68] sm:$0xf] }
 0x240   : > { %v3811_v28 = vrot.slane %v8996_v52, 5  ;;  %v12023_v10 = vld [vmem:[#allocation5_spill] sm:$0xff] }
 0x242   : > { %v3813_v11 = vrot.slane %v3811_v28, 4 }
 0x243   : > { %v2352_v15 = vpop.f32.mrf.mxu0 }
 0x244   : > { %v10422_v31 = vadd.f32 %v2352_v15, %v9893_v33  ;;  %v3800_v33 = vrot.slane %v3798_v36, 4  ;;  %v7993_v36 = vld [vmem:[%s9164_s16 + $0x60] sm:$0xe]  ;;  %v10464_v15 = vpop.f32.mrf.mxu3 }
 0x245   : > { %v8003_v8 = vrot.slane %v7993_v36, 9  ;;  %v8998_v36 = vld [vmem:[%s9164_s16 + $0x74] sm:$0xf] }
 0x246   : > { %12016 = vst [vmem:[#allocation15_spill] sm:$0xff] %v10422_v31  ;;  %v3802_v26 = vsel %vm9207_vm4, %v3800_v33, %v3801_v23  ;;  %v3812_v33 = vsel %vm9207_vm4, %v3810_v60, %v3811_v28 }
 0x247   : > { %v3893_v17 = vunpack.c.l.b16 %v3802_v26  ;;  %v3809_v23 = vsel %vm9207_vm4, %v8003_v8, %v3808_v29  ;;  %v8997_v29 = vld [vmem:[%s9164_s16 + $0x6c] sm:$0x1]  ;;  %v3818_v8 = vrot.slane %v8998_v36, 5  ;;  %v8799_v36 = vld [vmem:[%s11990_s3 + $0x50] sm:$0xff] }
 0x248   : > { %v3814_v4 = vrot.slane %v8997_v29, 5  ;;  %4762 = vmatpush.bf16.msra.mxu1 %v8799_v36 }
 0x24b   : > { %v2355_v42 = vpop.f32.mrf.mxu0 }
 0x24c   : > { %v10430_v22 = vadd.f32 %v2355_v42, %v9919_v19  ;;  %v3805_v19 = vsel %vm9207_vm4, %v3803_v35, %v3804_v2  ;;  %v10469_v42 = vpop.f32.mrf.mxu1  ;;  %v12021_v35 = vld [vmem:[#allocation4_spill] sm:$0xff]  ;;  %v3895_v2 = vunpack.c.l.b16 %v3809_v23  ;;  %v10478_v26 = vpop.f32.mrf.mxu3 }
 0x24d   : > { %v3894_v62 = vunpack.c.l.b16 %v3805_v19 }
 0x24e   : > { %12017 = vst [vmem:[#allocation16_spill] sm:$0xff] %v10430_v22  ;;  %4019 = vmatmul.bf16.gmra.mxu0 %v3917_v21  ;;  %v10467_v21 = vpop.f32.mrf.mxu2 }
 0x24f   : > { %v3918_v47 = vpack.c.b16 %v3894_v62, %v3893_v17 }
 0x253   : > { %v2357_v1 = vpop.f32.mrf.mxu0 }
 0x254   : > { %v10444_v50 = vadd.f32 %v2357_v1, %v9938_v41  ;;  %v3896_v1 = vunpack.c.l.b16 %v3812_v33  ;;  %v10490_v60 = vpop.f32.mrf.mxu3 }
 0x256   : > { %12018 = vst [vmem:[#allocation17_spill] sm:$0xff] %v10444_v50  ;;  %v3919_v19 = vpack.c.b16 %v3896_v1, %v3895_v2  ;;  %v10480_v62 = vpop.f32.mrf.mxu2 }
 0x25b   : > { %v2360_v41 = vpop.f32.mrf.mxu0 }
 0x25c   : > { %v10461_v34 = vadd.f32 %v2360_v41, %v12019_v51  ;;  %v10486_v41 = vpop.f32.mrf.mxu1 }
 0x25e   : > { %12020 = vst [vmem:[#allocation3_spill] sm:$0xff] %v10461_v34  ;;  %4024 = vmatmul.bf16.gmra.mxu0 %v3918_v47  ;;  %v7994_v47 = vld [vmem:[%s9164_s16 + $0x70] sm:$0xe] }
 0x25f   : > { %v8004_v51 = vrot.slane %v7994_v47, 9 }
 0x261   : > { %v3819_v23 = vsel %vm9207_vm4, %v8004_v51, %v3818_v8  ;;  %v8807_v51 = vld [vmem:[%s11990_s3 + $0x90] sm:$0xff] }
 0x262   : > { %v3898_v2 = vunpack.c.l.b16 %v3819_v23  ;;  %5133 = vmatpush.bf16.msra.mxu3 %v8807_v51 }
 0x263   : > { %v2362_v27 = vpop.f32.mrf.mxu0 }
 0x264   : > { %v10476_v49 = vadd.f32 %v2362_v27, %v12021_v35  ;;  %v3815_v27 = vsel %vm9207_vm4, %v3813_v11, %v3814_v4  ;;  %v10499_v35 = vpop.f32.mrf.mxu2  ;;  %v10501_v1 = vpop.f32.mrf.mxu1  ;;  %v8999_v11 = vld [vmem:[%s9164_s16 + $0x78] sm:$0xf] }
 0x265   : > { %v3897_v28 = vunpack.c.l.b16 %v3815_v27  ;;  %v3821_v29 = vrot.slane %v8999_v11, 5  ;;  %v3820_v27 = vrot.slane %v3818_v8, 4 }
 0x266   : > { %12022 = vst [vmem:[#allocation4_spill] sm:$0xff] %v10476_v49  ;;  %v9002_v49 = vld [vmem:[%s9164_s16 + $0x88] sm:$0xf] }
 0x267   : > { %v3823_v23 = vrot.slane %v3821_v29, 4  ;;  %v3822_v8 = vsel %vm9207_vm4, %v3820_v27, %v3821_v29  ;;  %v3831_v34 = vrot.slane %v9002_v49, 5 }
 0x269   : > { %v3833_v16 = vrot.slane %v3831_v34, 4 }
 0x26b   : > { %v2365_v17 = vpop.f32.mrf.mxu0 }
 0x26c   : > { %v10483_v32 = vadd.f32 %v2365_v17, %v12023_v10  ;;  %v8791_v17 = vld [vmem:[%s11990_s3 + $0x10] sm:$0xff]  ;;  %v10506_v10 = vpop.f32.mrf.mxu3 }
 0x26d   : > { %4907 = vmatpush.bf16.msra.mxu2 %v8791_v17  ;;  %v10525_v17 = vpop.f32.mrf.mxu2 }
 0x26e   : > { %12024 = vst [vmem:[#allocation5_spill] sm:$0xff] %v10483_v32  ;;  %4029 = vmatmul.bf16.gmra.mxu0 %v3919_v19  ;;  %v3920_v19 = vpack.c.b16 %v3898_v2, %v3897_v28  ;;  %v9000_v28 = vld [vmem:[%s9164_s16 + $0x7c] sm:$0x1] }
 0x26f   : > { %v3824_v2 = vrot.slane %v9000_v28, 5 }
 0x273   : > { %v2367_v52 = vpop.f32.mrf.mxu0 }
 0x274   : > { %v10497_v33 = vadd.f32 %v2367_v52, %v10038_v9  ;;  %v12026_v9 = vld [vmem:[#allocation6_spill] sm:$0xff]  ;;  %v8790_v52 = vld [vmem:[%s11990_s3 + $0x8] sm:$0xff]  ;;  %v10540_v36 = vpop.f32.mrf.mxu3 }
 0x275   : > { %4908 = vmatpush.bf16.msra.mxu2 %v8790_v52  ;;  %12029 = vst [vmem:[#allocation20_spill] sm:$0xff] %v10540_v36  ;;  %v3899_v52 = vunpack.c.l.b16 %v3822_v8  ;;  %v7995_v8 = vld [vmem:[%s9164_s16 + $0x80] sm:$0xe] }
 0x276   : > { %12025 = vst [vmem:[#allocation18_spill] sm:$0xff] %v10497_v33 }
 0x27b   : > { %v2370_v47 = vpop.f32.mrf.mxu0 }
 0x27c   : > { %v10510_v4 = vadd.f32 %v2370_v47, %v12026_v9  ;;  %v10527_v47 = vpop.f32.mrf.mxu1  ;;  %v3825_v9 = vsel %vm9207_vm4, %v3823_v23, %v3824_v2  ;;  %v9001_v2 = vld [vmem:[%s9164_s16 + $0x84] sm:$0xf] }
 0x27d   : > { %v3900_v28 = vunpack.c.l.b16 %v3825_v9  ;;  %v8806_v9 = vld [vmem:[%s11990_s3 + $0x88] sm:$0xff] }
 0x27e   : > { %12027 = vst [vmem:[#allocation6_spill] sm:$0xff] %v10510_v4  ;;  %4034 = vmatmul.bf16.gmra.mxu0 %v3920_v19  ;;  %v8789_v19 = vld [vmem:[%s11990_s3] sm:$0xff]  ;;  %v4169_v4 = vlaneseq  ;;  %5134 = vmatpush.bf16.msra.mxu3 %v8806_v9 }
 0x27f   : > { %4909 = vmatpush.bf16.msra.mxu2 %v8789_v19  ;;  %v3921_v29 = vpack.c.b16 %v3900_v28, %v3899_v52  ;;  %v3828_v19 = vrot.slane %v9001_v2, 5  ;;  %v10569_v52 = vld [vmem:[%s11989_s2] ss:$0 sm:$0xff]  ;;  %v10574_v28 = vpop.f32.mrf.mxu3  ;;  %v8005_v2 = vrot.slane %v7995_v8, 9 }
 0x280   : > { %12034 = vst [vmem:[#allocation23_spill] sm:$0xff] %v10574_v28  ;;  %v8797_v8 = vld [vmem:[%s11990_s3 + $0x40] sm:$0xff]  ;;  %v9005_v28 = vld [vmem:[%s9164_s16 + $0x98] sm:$0xf] }
 0x281   : > { %v3830_v32 = vrot.slane %v3828_v19, 4  ;;  %v3829_v9 = vsel %vm9207_vm4, %v8005_v2, %v3828_v19 }
 0x282   : > { %v3901_v2 = vunpack.c.l.b16 %v3829_v9  ;;  %v7996_v9 = vld [vmem:[%s9164_s16 + $0x90] sm:$0xe] }
 0x283   : > { %v2372_v11 = vpop.f32.mrf.mxu0 }
 0x284   : > { %v10538_v51 = vadd.f32 %v2372_v11, %v10087_v0  ;;  %v10552_v0 = vpop.f32.mrf.mxu2  ;;  %v10554_v27 = vpop.f32.mrf.mxu1  ;;  %v10557_v11 = vshrl.u32 %v4169_v4, 7  ;;  %v8798_v4 = vld [vmem:[%s11990_s3 + $0x48] sm:$0xff] }
 0x285   : > { %12032 = vst [vmem:[#allocation21_spill] sm:$0xff] %v10552_v0  ;;  %4763 = vmatpush.bf16.msra.mxu1 %v8798_v4  ;;  %v3832_v4 = vsel %vm9207_vm4, %v3830_v32, %v3831_v34  ;;  %v4215_v34 = vstv %s4214_s18  ;;  %v3841_v0 = vrot.slane %v9005_v28, 5  ;;  %s4353_s18 = sadd.s32 6, %s10522_s14 }
 0x286   : > { %12028 = vst [vmem:[#allocation19_spill] sm:$0xff] %v10538_v51  ;;  %v4185_v51 = vstv %s4184_s20  ;;  %vm4173_vm6 = vcmp.ge.s32.totalorder %v10557_v11, 1  ;;  %v10598_v22 = vadd.s32 16, %v10557_v11  ;;  %v3902_v48 = vunpack.c.l.b16 %v3832_v4  ;;  %p11226_p6 = scmp.ge.s32.totalorder %s4353_s18, 0  ;;  %p11243_p7 = scmp.lt.s32.totalorder %s4353_s18, 16 }
 0x287   : > { %12033 = vst [vmem:[#allocation22_spill] sm:$0xff] %v10554_v27  ;;  %vm4186_vm7 = vcmp.eq.s32.totalorder %v4185_v51, 1  ;;  %v10606_v32 = vpop.f32.mrf.mxu3  ;;  %vm10643_vm1 = vcmp.eq.s32.totalorder %v4215_v34, 1  ;;  %s4412_s18 = scalar_select %p11440_p11, 1, 0 }
 0x288   : > { %vm4187_vm8 = vmand %vm4173_vm6, %vm4186_vm7  ;;  %12037 = vst [vmem:[#allocation26_spill] sm:$0xff] %v10606_v32  ;;  %vm4178_vm12 = vcmp.le.s32.totalorder %v10598_v22, 16  ;;  %s4355_s20 = scalar_select %p11226_p6, 1, 0 }
 0x289   : > { %4764 = vmatpush.bf16.msra.mxu1 %v8797_v8  ;;  %vm4189_vm13 = vmand %vm4178_vm12, %vm4186_vm7 }
 0x28b   : > { %v4000_v23 = vpop.f32.mrf.mxu0 }
 0x28c   : > { %v4075_v33 = vadd.f32 %v4000_v23, %v10119_v44  ;;  %v4192_v44 = vstv %s4191_s29  ;;  %v10592_v50 = vpop.f32.mrf.mxu2  ;;  %s4231_s29 = scalar_select %p10688_p10, 1, 0 }
 0x28d   : > { %vm4193_vm9 = vcmp.eq.s32.totalorder %v4192_v44, 1  ;;  %12035 = vst [vmem:[#allocation24_spill] sm:$0xff] %v10592_v50  ;;  %p11418_p10 = scmp.ge.s32.totalorder %s4403_s12, 0 }
 0x28e   : > { %4039 = vmatmul.bf16.gmra.mxu0 %v3921_v29  ;;  %v8805_v29 = vld [vmem:[%s11990_s3 + $0x80] sm:$0xff]  ;;  %v4109_v23 = vadd.f32 %v10569_v52, %v4075_v33  ;;  %vm4194_vm10 = vmand %vm4187_vm8, %vm4193_vm9 }
 0x28f   : > { %5135 = vmatpush.bf16.msra.mxu3 %v8805_v29  ;;  %v10595_v29 = vpop.f32.mrf.mxu1  ;;  %vm4195_vm11 = vmand %vm4186_vm7, %vm4193_vm9 }
 0x290   : > { %12036 = vst [vmem:[#allocation25_spill] sm:$0xff] %v10595_v29  ;;  %v4139_v31 = vmax.f32 %v4109_v23, 0.0  ;;  %vm4196_vm14 = vmand %vm4189_vm13, %vm4193_vm9 }
 0x292   : > { %v4197_v23 = vsel %vm4194_vm10, %v4139_v31, 0.0 }
 0x293   : > { %v4002_v49 = vpop.f32.mrf.mxu0 }
 0x294   : > { %v4076_v33 = vadd.f32 %v4002_v49, %v10140_v5  ;;  %v3922_v49 = vpack.c.b16 %v3902_v48, %v3901_v2  ;;  %v10616_v13 = vpop.f32.mrf.mxu2  ;;  %v9003_v48 = vld [vmem:[%s9164_s16 + $0x8c] sm:$0x1] }
 0x295   : > { %12038 = vst [vmem:[#allocation27_spill] sm:$0xff] %v10616_v13  ;;  %v3834_v2 = vrot.slane %v9003_v48, 5 }
 0x296   : > { %v4110_v19 = vadd.f32 %v10569_v52, %v4076_v33 }
 0x298   : > { %v4140_v5 = vmax.f32 %v4110_v19, 0.0  ;;  %v4208_v19 = vstv %s4207_s17  ;;  %s4328_s17 = sadd.s32 5, %s10522_s14 }
 0x299   : > { %vm10624_vm15 = vcmp.eq.s32.totalorder %v4208_v19, 1  ;;  %p11139_p4 = scmp.ge.s32.totalorder %s4328_s17, 0  ;;  %p11166_p5 = scmp.lt.s32.totalorder %s4328_s17, 16 }
 0x29a   : > { %v4198_v8 = vsel %vm4195_vm11, %v4140_v5, 0.0  ;;  %v8006_v5 = vrot.slane %v7996_v9, 9  ;;  %v10632_v9 = vpop.f32.mrf.mxu3  ;;  %vm10639_vm0 = vmand %vm4173_vm6, %vm10624_vm15  ;;  %s4405_s17 = scalar_select %p11418_p10, 1, 0 }
 0x29b   : > { %v8888_v3 = vpack.c.bf16 %v4198_v8, %v4197_v23  ;;  %v4005_v33 = vpop.f32.mrf.mxu0  ;;  %v9004_v23 = vld [vmem:[%s9164_s16 + $0x94] sm:$0xf]  ;;  %12042 = vst [vmem:[#allocation29_spill] sm:$0xff] %v10632_v9  ;;  %vm4217_vm2 = vmand %vm10639_vm0, %vm10643_vm1  ;;  %s4330_s8 = scalar_select %p11139_p4, 1, 0 }
 0x29c   : > { %v4077_v4 = vadd.f32 %v4005_v33, %v10173_v25  ;;  %v3838_v8 = vrot.slane %v9004_v23, 5  ;;  %v10621_v25 = vpop.f32.mrf.mxu1  ;;  %vm10684_vm3 = vmand %vm4178_vm12, %vm10624_vm15  ;;  %s4337_s9 = scalar_select %p11166_p5, 1, 0 }
 0x29d   : > { %8889 = vst [vmem:[#allocation2] sm:$0xff] %v8888_v3   ;;  %vm4218_vm7 = vmand %vm10624_vm15, %vm10643_vm1  ;;  %v7997_v3 = vld [vmem:[%s9164_s16 + $0xa0] sm:$0xe] }
 0x29e   : > { %v4111_v31 = vadd.f32 %v10569_v52, %v4077_v4  ;;  %4044 = vmatmul.bf16.gmra.mxu0 %v3922_v49  ;;  %12039 = vst [vmem:[#allocation28_spill] sm:$0xff] %v10621_v25  ;;  %v3835_v4 = vsel %vm9207_vm4, %v3833_v16, %v3834_v2  ;;  %v3839_v49 = vsel %vm9207_vm4, %v8006_v5, %v3838_v8  ;;  %v10652_v25 = vpop.f32.mrf.mxu2  ;;  %v3840_v28 = vrot.slane %v3838_v8, 4  ;;  %vm4219_vm8 = vmand %vm10684_vm3, %vm10643_vm1 }
 0x29f   : > { %v3903_v5 = vunpack.c.l.b16 %v3835_v4  ;;  %12047 = vst [vmem:[#allocation30_spill] sm:$0xff] %v10652_v25 }
 0x2a0   : > { %v4141_v51 = vmax.f32 %v4111_v31, 0.0 }
 0x2a2   : > { %v4199_v33 = vsel %vm4196_vm14, %v4141_v51, 0.0  ;;  %v3904_v51 = vunpack.c.l.b16 %v3839_v49 }
 0x2a3   : > { %v4202_v48 = vpack.c.bf16 %v4199_v33, %v4199_v33  ;;  %v4007_v23 = vpop.f32.mrf.mxu0 }
 0x2a4   : > { %v4078_v44 = vadd.f32 %v4007_v23, %v10186_v14  ;;  %v8781_v16 = vld [vmem:[#allocation2] sm:$0xff]  ;;  %v10654_v57 = vpop.f32.mrf.mxu1  ;;  %v3923_v29 = vpack.c.b16 %v3904_v51, %v3903_v5  ;;  %v3843_v51 = vrot.slane %v3841_v0, 4 }
 0x2a5   : > { %v4429_v2 = vld [vmem:[#allocation2 + $0x4] sm:$0xf]  ;;  %4205 = vst [vmem:[#allocation2 + $0x8] sm:$0xf] %v4202_v48  ;;  %v4428_v33 = vld [vmem:[#allocation2] sm:$0xf]  ;;  %4910 = vmatmul.bf16.vlgmr.msra.gmra.mxu2 %v8781_v16 }
 0x2a6   : > { %v4112_v14 = vadd.f32 %v10569_v52, %v4078_v44  ;;  %v4951_v23 = vld [vmem:[#allocation2] sm:$0xe]  ;;  %v4469_v55 = vshrl.u32 %v4428_v33, 16  ;;  %v4472_v9 = vshll.u32 %v4428_v33, 16  ;;  %v4478_v13 = vshll.u32 %v4429_v2, 16 }
 0x2a7   : > { %v4482_v34 = vshrl.u32 %v4429_v2, 16  ;;  %v8170_v44 = vrot.slane %v4951_v23, 9  ;;  %v4977_v16 = vrot.slane %v4429_v2, 5  ;;  %v9006_v23 = vld [vmem:[%s9164_s16 + $0x9c] sm:$0x1] }
 0x2a8   : > { %v4142_v48 = vmax.f32 %v4112_v14, 0.0  ;;  %v4471_v4 = vrot.slane %v4469_v55, 4  ;;  %v4474_v49 = vrot.slane %v4472_v9, 5  ;;  %v4480_v32 = vrot.slane %v4478_v13, 5  ;;  %v10657_v14 = vpop.f32.mrf.mxu3 }
 0x2a9   : > { %v4484_v50 = vrot.slane %v4482_v34, 4  ;;  %v4978_v55 = vsel %vm9207_vm4, %v8170_v44, %v4977_v16  ;;  %v4979_v9 = vrot.slane %v4977_v16, 4  ;;  %v3844_v34 = vrot.slane %v9006_v23, 5 }
 0x2aa   : > { %v4220_v33 = vsel %vm4217_vm2, %v4142_v48, 0.0  ;;  %v4475_v6 = vor.u32 %v4474_v49, %v4471_v4  ;;  %v5048_v49 = vunpack.c.l.b16 %v4978_v55  ;;  %v10736_v55 = vstv %s4238_s30 }
 0x2ab   : > { %v4223_v19 = vpack.c.bf16 %v4220_v33, %v4220_v33  ;;  %v4010_v27 = vpop.f32.mrf.mxu0  ;;  %v4485_v56 = vor.u32 %v4484_v50, %v4480_v32  ;;  %vm4240_vm11 = vcmp.eq.s32.totalorder %v10736_v55, 1 }
 0x2ac   : > { %v4460_v36 = vld [vmem:[#allocation2 + $0x8] sm:$0x1]  ;;  %v4476_v25 = vrot.slane %v4475_v6, 4  ;;  %v4079_v5 = vadd.f32 %v4010_v27, %v10214_v30  ;;  %v10670_v30 = vpop.f32.mrf.mxu2  ;;  %v10673_v33 = vpop.f32.mrf.mxu1 }
 0x2ad   : > { %4227 = vst [vmem:[#allocation2 + $0xc] sm:$0xf] %v4223_v19  ;;  %v4980_v13 = vrot.slane %v4460_v36, 5  ;;  %v4488_v2 = vshll.u32 %v4460_v36, 16  ;;  %v4486_v48 = vrot.slane %v4485_v56, 4  ;;  %v3842_v56 = vsel %vm9207_vm4, %v3840_v28, %v3841_v0 }
 0x2ae   : > { %4049 = vmatmul.bf16.gmra.mxu0 %v3923_v29  ;;  %v4481_v50 = vsel %vm9216_vm5, %v4476_v25, %v4480_v32  ;;  %v4113_v27 = vadd.f32 %v10569_v52, %v4079_v5  ;;  %v3845_v32 = vsel %vm9207_vm4, %v3843_v51, %v3844_v34  ;;  %v9007_v51 = vld [vmem:[%s9164_s16 + $0xa4] sm:$0xf] }
 0x2af   : > { %v4981_v6 = vsel %vm9207_vm4, %v4979_v9, %v4980_v13  ;;  %v4490_v4 = vrot.slane %v4488_v2, 5  ;;  %v4677_v8 = vunpack.c.l.b16 %v4481_v50  ;;  %v3905_v2 = vunpack.c.l.b16 %v3842_v56 }
 0x2b0   : > { %v5049_v44 = vunpack.c.l.b16 %v4981_v6  ;;  %v4143_v0 = vmax.f32 %v4113_v27, 0.0  ;;  %v3906_v5 = vunpack.c.l.b16 %v3845_v32  ;;  %v10699_v28 = vpop.f32.mrf.mxu3  ;;  %v3848_v23 = vrot.slane %v9007_v51, 5  ;;  %v8860_v32 = vld [vmem:[%s11990_s3 + $0x1b8] sm:$0xff] }
 0x2b1   : > { %v4491_v36 = vsel %vm9216_vm5, %v4486_v48, %v4490_v4  ;;  %v8007_v27 = vrot.slane %v7997_v3, 9  ;;  %6144 = vmatpush.bf16.msrb.mxu0 %v8860_v32 }
 0x2b2   : > { %v5064_v29 = vpack.c.b16 %v5049_v44, %v5048_v49  ;;  %v4678_v16 = vunpack.c.l.b16 %v4491_v36  ;;  %v4221_v34 = vsel %vm4218_vm7, %v4143_v0, 0.0  ;;  %v3924_v31 = vpack.c.b16 %v3906_v5, %v3905_v2 }
 0x2b3   : > { %v4012_v19 = vpop.f32.mrf.mxu0  ;;  %v2771_v44 = vadd.f32 %v10434_v12, %v10245_v54  ;;  %v10719_v36 = vstv %s4231_s29  ;;  %s4362_s29 = scalar_select %p11243_p7, 1, 0 }
 0x2b4   : > { %v4080_v25 = vadd.f32 %v4012_v19, %v10227_v63  ;;  %5136 = vmatmul.bf16.vlgmr.msra.gmra.mxu3 %v5064_v29  ;;  %v4693_v9 = vpack.c.b16 %v4678_v16, %v4677_v8  ;;  %v2770_v63 = vadd.f32 %v10424_v24, %v10224_v7  ;;  %v4430_v50 = vld [vmem:[#allocation2 + $0xc] sm:$0xf]  ;;  %v10723_v29 = vpop.f32.mrf.mxu1  ;;  %v3850_v8 = vrot.slane %v3848_v23, 4  ;;  %v10726_v16 = vld [vmem:[%s9164_s16 + $0xa8] sm:$0xf] }
 0x2b5   : > { %v3851_v19 = vrot.slane %v10726_v16, 5  ;;  %v4496_v56 = vshll.u32 %v4430_v50, 16  ;;  %v3074_v54 = vadd.f32 %v10432_v39, %v2771_v44  ;;  %vm4233_vm9 = vcmp.eq.s32.totalorder %v10719_v36, 1  ;;  %v4952_v0 = vld [vmem:[#allocation2 + $0xc] sm:$0xe]  ;;  %v8856_v16 = vld [vmem:[%s11990_s3 + $0x198] sm:$0xff] }
 0x2b6   : > { %v4114_v13 = vadd.f32 %v10569_v52, %v4080_v25  ;;  %4765 = vmatmul.bf16.vlgmr.msra.gmra.mxu1 %v4693_v9  ;;  %v3073_v7 = vadd.f32 %v10419_v20, %v2770_v63  ;;  %v10717_v20 = vpop.f32.mrf.mxu2  ;;  %v2772_v25 = vadd.f32 %v10454_v38, %v10264_v37  ;;  %v3849_v39 = vsel %vm9207_vm4, %v8007_v27, %v3848_v23  ;;  %vm10754_vm10 = vmand %vm4173_vm6, %vm4233_vm9  ;;  %v9009_v36 = vld [vmem:[%s9164_s16 + $0xac] sm:$0x1] }
 0x2b7   : > { %v3852_v63 = vsel %vm9207_vm4, %v3850_v8, %v3851_v19  ;;  %v4498_v2 = vrot.slane %v4496_v56, 5  ;;  %v3693_v37 = vadd.f32 %v10437_v58, %v3074_v54  ;;  %v8859_v58 = vld [vmem:[%s11990_s3 + $0x1b0] sm:$0xff]  ;;  %v3907_v51 = vunpack.c.l.b16 %v3849_v39  ;;  %vm10774_vm13 = vmand %vm10754_vm10, %vm4240_vm11 }
 0x2b8   : > { %v4144_v24 = vmax.f32 %v4114_v13, 0.0  ;;  %v3692_v49 = vadd.f32 %v10426_v46, %v3073_v7  ;;  %v4493_v46 = vshrl.u32 %v4430_v50, 16  ;;  %v10739_v9 = vpop.f32.mrf.mxu3  ;;  %v3075_v5 = vadd.f32 %v10452_v53, %v2772_v25  ;;  %6145 = vmatpush.bf16.msrb.mxu0 %v8859_v58  ;;  %vm10785_vm14 = vmand %vm4233_vm9, %vm4240_vm11 }
 0x2b9   : > { %v3908_v23 = vunpack.c.l.b16 %v3852_v63  ;;  %vm10824_vm15 = vmand %vm4178_vm12, %vm4233_vm9 }
 0x2ba   : > { %v4222_v6 = vsel %vm4219_vm8, %v4144_v24, 0.0  ;;  %v4495_v13 = vrot.slane %v4493_v46, 4  ;;  %vm4243_vm0 = vmand %vm10824_vm15, %vm4240_vm11 }
 0x2bb   : > { %v8893_v48 = vpack.c.bf16 %v4222_v6, %v4221_v34  ;;  %v4015_v4 = vpop.f32.mrf.mxu0  ;;  %v3925_v7 = vpack.c.b16 %v3908_v23, %v3907_v51 }
 0x2bc   : > { %v4081_v12 = vadd.f32 %v4015_v4, %v3692_v49 }
 0x2bd   : > { %8935 = vst [vmem:[#allocation2 + $0x10] sm:$0xff] %v8893_v48   ;;  %v4499_v48 = vor.u32 %v4498_v2, %v4495_v13  ;;  %v8858_v13 = vld [vmem:[%s11990_s3 + $0x1a8] sm:$0xff]  ;;  %v3694_v2 = vadd.f32 %v10464_v15, %v3075_v5 }
 0x2be   : > { %4054 = vmatmul.bf16.gmra.mxu0 %v3924_v31  ;;  %v4115_v38 = vadd.f32 %v10569_v52, %v4081_v12  ;;  %v8171_v31 = vrot.slane %v4952_v0, 9  ;;  %v10768_v44 = vpop.f32.mrf.mxu2  ;;  %v10779_v12 = vpop.f32.mrf.mxu1 }
 0x2bf   : > { %v4500_v58 = vrot.slane %v4499_v48, 4  ;;  %6146 = vmatpush.bf16.msrb.mxu0 %v8858_v13  ;;  %v8857_v48 = vld [vmem:[%s11990_s3 + $0x1a0] sm:$0xff] }
 0x2c0   : > { %v4145_v27 = vmax.f32 %v4115_v38, 0.0  ;;  %v10812_v51 = vpop.f32.mrf.mxu3 }
 0x2c2   : > { %v4244_v15 = vsel %vm10774_vm13, %v4145_v27, 0.0 }
 0x2c3   : > { %v4017_v24 = vpop.f32.mrf.mxu0  ;;  %6147 = vmatpush.bf16.msrb.mxu0 %v8857_v48 }
 0x2c4   : > { %v4082_v53 = vadd.f32 %v4017_v24, %v3693_v37  ;;  %v8782_v3 = vld [vmem:[#allocation2 + $0xc] sm:$0xff]  ;;  %v4461_v6 = vld [vmem:[#allocation2 + $0x14] sm:$0x1]  ;;  %v2773_v37 = vadd.f32 %v10469_v42, %v10301_v40 }
 0x2c5   : > { %v4431_v34 = vld [vmem:[#allocation2 + $0x10] sm:$0xf]  ;;  %4915 = vmatmul.bf16.gmra.mxu2 %v8782_v3  ;;  %v4987_v56 = vrot.slane %v4461_v6, 5  ;;  %v4512_v54 = vshll.u32 %v4461_v6, 16 }
 0x2c6   : > { %v4984_v50 = vrot.slane %v4431_v34, 5  ;;  %v4502_v4 = vshll.u32 %v4431_v34, 16  ;;  %v4506_v49 = vshrl.u32 %v4431_v34, 16  ;;  %v4116_v46 = vadd.f32 %v10569_v52, %v4082_v53  ;;  %v7998_v3 = vld [vmem:[%s9164_s16 + $0xb0] sm:$0xe] }
 0x2c7   : > { %v8008_v32 = vrot.slane %v7998_v3, 9  ;;  %6148 = vmatpush.bf16.msrb.mxu0 %v8856_v16  ;;  %v8855_v3 = vld [vmem:[%s11990_s3 + $0x190] sm:$0xff] }
 0x2c8   : > { %v4985_v25 = vsel %vm9207_vm4, %v8171_v31, %v4984_v50  ;;  %v4986_v39 = vrot.slane %v4984_v50, 4  ;;  %v4504_v63 = vrot.slane %v4502_v4, 5  ;;  %v4508_v0 = vrot.slane %v4506_v49, 4  ;;  %v10886_v48 = vpop.f32.mrf.mxu3 }
 0x2c9   : > { %v4146_v38 = vmax.f32 %v4116_v46, 0.0  ;;  %v5050_v42 = vunpack.c.l.b16 %v4985_v25  ;;  %v4514_v50 = vrot.slane %v4512_v54, 5  ;;  %v3076_v4 = vadd.f32 %v10467_v21, %v2773_v37 }
 0x2ca   : > { %v4988_v24 = vsel %vm9207_vm4, %v4986_v39, %v4987_v56  ;;  %v4509_v53 = vor.u32 %v4508_v0, %v4504_v63  ;;  %v4505_v6 = vsel %vm9216_vm5, %v4500_v58, %v4504_v63  ;;  %v10828_v46 = vstv %s4255_s15  ;;  %v10839_v0 = vld [vmem:[%s9164_s16 + $0xb4] sm:$0xf] }
 0x2cb   : > { %v4245_v40 = vsel %vm10785_vm14, %v4146_v38, 0.0  ;;  %v5051_v5 = vunpack.c.l.b16 %v4988_v24  ;;  %v4020_v34 = vpop.f32.mrf.mxu0  ;;  %v3853_v21 = vrot.slane %v3851_v19, 4  ;;  %v3854_v54 = vrot.slane %v9009_v36, 5  ;;  %v10849_v19 = vpop.f32.mrf.mxu2  ;;  %6149 = vmatpush.bf16.msrb.mxu0 %v8855_v3 }
 0x2cc   : > { %v8898_v23 = vpack.c.bf16 %v4245_v40, %v4244_v15  ;;  %v4510_v31 = vrot.slane %v4509_v53, 4  ;;  %v4083_v49 = vadd.f32 %v4020_v34, %v3694_v2  ;;  %v4679_v39 = vunpack.c.l.b16 %v4505_v6  ;;  %v10851_v38 = vpop.f32.mrf.mxu1  ;;  %v8836_v15 = vld [vmem:[%s11990_s3 + $0x138] sm:$0xff] }
 0x2cd   : > { %v5065_v8 = vpack.c.b16 %v5051_v5, %v5050_v42  ;;  %v3858_v13 = vrot.slane %v10839_v0, 5  ;;  %vm4257_vm1 = vcmp.eq.s32.totalorder %v10828_v46, 1  ;;  %v3695_v55 = vadd.f32 %v10478_v26, %v3076_v4  ;;  %v8844_v40 = vld [vmem:[%s11990_s3 + $0x178] sm:$0xff]  ;;  %5700 = vmatpush.bf16.msrb.mxu2 %v8836_v15 }
 0x2ce   : > { %8899 = vst [vmem:[#allocation2 + $0x18] sm:$0xff] %v8898_v23   ;;  %v4515_v56 = vsel %vm9216_vm5, %v4510_v31, %v4514_v50  ;;  %v4117_v25 = vadd.f32 %v10569_v52, %v4083_v49  ;;  %4059 = vmatmul.bf16.gmra.mxu0 %v3925_v7  ;;  %v10854_v7 = vstv %s4262_s19  ;;  %v3855_v58 = vsel %vm9207_vm4, %v3853_v21, %v3854_v54  ;;  %v8828_v5 = vld [vmem:[%s11990_s3 + $0xf8] sm:$0xff]  ;;  %vm10879_vm2 = vmand %vm4173_vm6, %vm4257_vm1  ;;  %s4303_s19 = sadd.s32 4, %s10522_s14 }
 0x2cf   : > { %5141 = vmatmul.bf16.gmra.mxu3 %v5065_v8  ;;  %v4680_v63 = vunpack.c.l.b16 %v4515_v56  ;;  %v3859_v53 = vsel %vm9207_vm4, %v8008_v32, %v3858_v13  ;;  %vm4264_vm3 = vcmp.eq.s32.totalorder %v10854_v7, 1  ;;  %v2774_v50 = vadd.f32 %v10486_v41, %v10311_v59  ;;  %5322 = vmatpush.bf16.msrb.mxu1 %v8828_v5  ;;  %v8854_v41 = vld [vmem:[%s11990_s3 + $0x188] sm:$0xff]  ;;  %vm10935_vm8 = vmand %vm4178_vm12, %vm4257_vm1  ;;  %p11026_p2 = scmp.ge.s32.totalorder %s4303_s19, 0  ;;  %p11047_p3 = scmp.lt.s32.totalorder %s4303_s19, 16 }
 0x2d0   : > { %v4147_v2 = vmax.f32 %v4117_v25, 0.0  ;;  %5950 = vmatpush.bf16.msrb.mxu3 %v8844_v40  ;;  %v3909_v4 = vunpack.c.l.b16 %v3855_v58  ;;  %v3910_v49 = vunpack.c.l.b16 %v3859_v53  ;;  %vm4265_vm7 = vmand %vm10879_vm2, %vm4264_vm3  ;;  %v2775_v25 = vadd.f32 %v10501_v1, %v10324_v61  ;;  %6150 = vmatpush.bf16.msrb.mxu0 %v8854_v41  ;;  %v9011_v40 = vld [vmem:[%s9164_s16 + $0xb8] sm:$0xf]  ;;  %v8853_v1 = vld [vmem:[%s11990_s3 + $0x180] sm:$0xff] }
 0x2d1   : > { %v4694_v37 = vpack.c.b16 %v4680_v63, %v4679_v39  ;;  %v3077_v32 = vadd.f32 %v10480_v62, %v2774_v50  ;;  %vm4266_vm9 = vmand %vm4257_vm1, %vm4264_vm3  ;;  %s4305_s30 = scalar_select %p11026_p2, 1, 0 }
 0x2d2   : > { %v4246_v24 = vsel %vm4243_vm0, %v4147_v2, 0.0  ;;  %v3926_v53 = vpack.c.b16 %v3910_v49, %v3909_v4  ;;  %v3078_v34 = vadd.f32 %v10499_v35, %v2775_v25  ;;  %v10914_v35 = vpop.f32.mrf.mxu3  ;;  %vm4267_vm10 = vmand %vm10935_vm8, %vm4264_vm3  ;;  %s4312_s7 = scalar_select %p11047_p3, 1, 0 }
 0x2d3   : > { %4770 = vmatmul.bf16.gmra.mxu1 %v4694_v37  ;;  %v4249_v42 = vpack.c.bf16 %v4246_v24, %v4246_v24  ;;  %v4022_v26 = vpop.f32.mrf.mxu0  ;;  %v10899_v24 = vpop.f32.mrf.mxu2 }
 0x2d4   : > { %v4084_v23 = vadd.f32 %v4022_v26, %v3695_v55  ;;  %v10902_v26 = vpop.f32.mrf.mxu1  ;;  %6151 = vmatpush.bf16.msrb.mxu0 %v8853_v1  ;;  %v8827_v1 = vld [vmem:[%s11990_s3 + $0xf0] sm:$0xff] }
 0x2d5   : > { %v8783_v6 = vld [vmem:[#allocation2 + $0x18] sm:$0xff]  ;;  %4253 = vst [vmem:[#allocation2 + $0x20] sm:$0xf] %v4249_v42  ;;  %v3861_v42 = vrot.slane %v9011_v40, 5  ;;  %5323 = vmatpush.bf16.msrb.mxu1 %v8827_v1 }
 0x2d6   : > { %v4433_v31 = vld [vmem:[#allocation2 + $0x1c] sm:$0xf]  ;;  %v4432_v27 = vld [vmem:[#allocation2 + $0x18] sm:$0xf]  ;;  %v4118_v8 = vadd.f32 %v10569_v52, %v4084_v23  ;;  %4920 = vmatmul.bf16.gmra.mxu2 %v8783_v6  ;;  %v3696_v23 = vadd.f32 %v10490_v60, %v3077_v32 }
 0x2d7   : > { %v4953_v56 = vld [vmem:[#allocation2 + $0x18] sm:$0xe]  ;;  %v4517_v21 = vshrl.u32 %v4432_v27, 16  ;;  %v4520_v36 = vshll.u32 %v4432_v27, 16  ;;  %v4526_v54 = vshll.u32 %v4433_v31, 16  ;;  %v4530_v59 = vshrl.u32 %v4433_v31, 16 }
 0x2d8   : > { %v4148_v39 = vmax.f32 %v4118_v8, 0.0  ;;  %v8172_v2 = vrot.slane %v4953_v56, 9  ;;  %v4991_v37 = vrot.slane %v4433_v31, 5  ;;  %v3860_v56 = vrot.slane %v3858_v13, 4  ;;  %v9012_v60 = vld [vmem:[%s9164_s16 + $0xbc] sm:$0x1] }
 0x2d9   : > { %v4519_v63 = vrot.slane %v4517_v21, 4  ;;  %v4522_v16 = vrot.slane %v4520_v36, 5  ;;  %v4528_v62 = vrot.slane %v4526_v54, 5  ;;  %v4532_v55 = vrot.slane %v4530_v59, 4 }
 0x2da   : > { %v4268_v58 = vsel %vm4265_vm7, %v4148_v39, 0.0  ;;  %v4992_v50 = vsel %vm9207_vm4, %v8172_v2, %v4991_v37  ;;  %v4993_v4 = vrot.slane %v4991_v37, 4  ;;  %v3863_v21 = vrot.slane %v3861_v42, 4  ;;  %v10970_v46 = vpop.f32.mrf.mxu3 }
 0x2db   : > { %v4523_v15 = vor.u32 %v4522_v16, %v4519_v63  ;;  %v4271_v5 = vpack.c.bf16 %v4268_v58, %v4268_v58  ;;  %v4025_v3 = vpop.f32.mrf.mxu0  ;;  %v4533_v61 = vor.u32 %v4532_v55, %v4528_v62  ;;  %v3864_v36 = vrot.slane %v9012_v60, 5  ;;  %v12070_v60 = vld [vmem:[#allocation22_spill] sm:$0xff] }
 0x2dc   : > { %v4462_v6 = vld [vmem:[#allocation2 + $0x20] sm:$0x1]  ;;  %v4085_v8 = vadd.f32 %v4025_v3, %v3696_v23  ;;  %v5052_v25 = vunpack.c.l.b16 %v4992_v50  ;;  %v3697_v63 = vadd.f32 %v10506_v10, %v3078_v34  ;;  %v3862_v58 = vsel %vm9207_vm4, %v3860_v56, %v3861_v42  ;;  %v10941_v42 = vpop.f32.mrf.mxu1  ;;  %v8835_v3 = vld [vmem:[%s11990_s3 + $0x130] sm:$0xff] }
 0x2dd   : > { %v4524_v31 = vrot.slane %v4523_v15, 4  ;;  %4275 = vst [vmem:[#allocation2 + $0x24] sm:$0xf] %v4271_v5  ;;  %v4994_v49 = vrot.slane %v4462_v6, 5  ;;  %v4536_v27 = vshll.u32 %v4462_v6, 16  ;;  %v4534_v59 = vrot.slane %v4533_v61, 4  ;;  %5701 = vmatpush.bf16.msrb.mxu2 %v8835_v3 }
 0x2de   : > { %4064 = vmatmul.bf16.gmra.mxu0 %v3926_v53  ;;  %v4119_v13 = vadd.f32 %v10569_v52, %v4085_v8  ;;  %v10929_v53 = vpop.f32.mrf.mxu2  ;;  %v2776_v5 = vadd.f32 %v10527_v47, %v10333_v18  ;;  %v8843_v61 = vld [vmem:[%s11990_s3 + $0x170] sm:$0xff]  ;;  %v3911_v23 = vunpack.c.l.b16 %v3862_v58  ;;  %v12068_v56 = vld [vmem:[#allocation20_spill] sm:$0xff]  ;;  %v8842_v3 = vld [vmem:[%s11990_s3 + $0x168] sm:$0xff] }
 0x2df   : > { %v4995_v54 = vsel %vm9207_vm4, %v4993_v4, %v4994_v49  ;;  %v4529_v32 = vsel %vm9216_vm5, %v4524_v31, %v4528_v62  ;;  %v4538_v41 = vrot.slane %v4536_v27, 5  ;;  %v3865_v62 = vsel %vm9207_vm4, %v3863_v21, %v3864_v36  ;;  %5951 = vmatpush.bf16.msrb.mxu3 %v8843_v61  ;;  %v8826_v61 = vld [vmem:[%s11990_s3 + $0xe8] sm:$0xff] }
 0x2e0   : > { %v5053_v39 = vunpack.c.l.b16 %v4995_v54  ;;  %v4681_v2 = vunpack.c.l.b16 %v4529_v32  ;;  %v4149_v18 = vmax.f32 %v4119_v13, 0.0  ;;  %v3912_v34 = vunpack.c.l.b16 %v3865_v62  ;;  %v12073_v62 = vld [vmem:[#allocation8_spill] sm:$0xff]  ;;  %5324 = vmatpush.bf16.msrb.mxu1 %v8826_v61 }
 0x2e1   : > { %v4539_v0 = vsel %vm9216_vm5, %v4534_v59, %v4538_v41  ;;  %v3079_v6 = vadd.f32 %v10525_v17, %v2776_v5  ;;  %v12069_v17 = vld [vmem:[#allocation7_spill] sm:$0xff]  ;;  %v10979_v54 = vstv %s4280_s10  ;;  %v12071_v41 = vld [vmem:[#allocation21_spill] sm:$0xff]  ;;  %v10987_v13 = vstv %s4287_s11  ;;  %s4378_s11 = sadd.s32 7, %s10522_s14  ;;  %s12141_s14 = smov (!%p269_p12, %s10522_s14), 15 }
 0x2e2   : > { %v5066_v16 = vpack.c.b16 %v5053_v39, %v5052_v25  ;;  %v4682_v37 = vunpack.c.l.b16 %v4539_v0  ;;  %v4269_v50 = vsel %vm4266_vm9, %v4149_v18, 0.0  ;;  %v3927_v4 = vpack.c.b16 %v3912_v34, %v3911_v23  ;;  %v8834_v5 = vld [vmem:[%s11990_s3 + $0x128] sm:$0xff]  ;;  %v11002_v1 = vpop.f32.mrf.mxu3  ;;  %v12077_v23 = vld [vmem:[#allocation24_spill] sm:$0xff]  ;;  %p11327_p8 = scmp.ge.s32.totalorder %s4378_s11, 0  ;;  %p11351_p9 = scmp.lt.s32.totalorder %s4378_s11, 16 }
 0x2e3   : > { %v4027_v55 = vpop.f32.mrf.mxu0  ;;  %v3698_v21 = vadd.f32 %v12068_v56, %v3079_v6  ;;  %v2777_v36 = vadd.f32 %v12070_v60, %v12069_v17  ;;  %vm4282_vm11 = vcmp.eq.s32.totalorder %v10979_v54, 1  ;;  %vm4289_vm14 = vcmp.eq.s32.totalorder %v10987_v13, 1  ;;  %5702 = vmatpush.bf16.msrb.mxu2 %v8834_v5  ;;  %5952 = vmatpush.bf16.msrb.mxu3 %v8842_v3  ;;  %v8841_v13 = vld [vmem:[%s11990_s3 + $0x160] sm:$0xff]  ;;  %s7262_s11 = sshll.u32 %s12139_s22, 5 }
 0x2e4   : > { %v4086_v15 = vadd.f32 %v4027_v55, %v3697_v63  ;;  %5146 = vmatmul.bf16.gmra.mxu3 %v5066_v16  ;;  %v4695_v40 = vpack.c.b16 %v4682_v37, %v4681_v2  ;;  %v4434_v49 = vld [vmem:[#allocation2 + $0x24] sm:$0xf]  ;;  %v10984_v0 = vpop.f32.mrf.mxu1  ;;  %v12072_v55 = vld [vmem:[#allocation23_spill] sm:$0xff]  ;;  %vm11008_vm13 = vmand %vm4173_vm6, %vm4282_vm11 }
 0x2e5   : > { %v4541_v32 = vshrl.u32 %v4434_v49, 16  ;;  %v4544_v59 = vshll.u32 %v4434_v49, 16  ;;  %v3080_v25 = vadd.f32 %v12071_v41, %v2777_v36  ;;  %v4954_v16 = vld [vmem:[#allocation2 + $0x24] sm:$0xe]  ;;  %vm11019_vm15 = vmand %vm11008_vm13, %vm4289_vm14 }
 0x2e6   : > { %v4120_v47 = vadd.f32 %v10569_v52, %v4086_v15  ;;  %4775 = vmatmul.bf16.gmra.mxu1 %v4695_v40  ;;  %v10982_v39 = vpop.f32.mrf.mxu2  ;;  %v12074_v15 = vld [vmem:[#allocation25_spill] sm:$0xff]  ;;  %vm4291_vm0 = vmand %vm4282_vm11, %vm4289_vm14 }
 0x2e7   : > { %v4543_v2 = vrot.slane %v4541_v32, 4  ;;  %v4546_v37 = vrot.slane %v4544_v59, 5  ;;  %v3699_v58 = vadd.f32 %v12072_v55, %v3080_v25  ;;  %v2778_v10 = vadd.f32 %v12074_v15, %v12073_v62  ;;  %v12083_v62 = vld [vmem:[#allocation28_spill] sm:$0xff]  ;;  %vm4285_vm1 = vmand %vm4178_vm12, %vm4282_vm11  ;;  %5953 = vmatpush.bf16.msrb.mxu3 %v8841_v13 }
 0x2e8   : > { %v4150_v31 = vmax.f32 %v4120_v47, 0.0  ;;  %vm4292_vm2 = vmand %vm4285_vm1, %vm4289_vm14 }
 0x2e9   : > { %v3081_v34 = vadd.f32 %v12077_v23, %v2778_v10 }
 0x2ea   : > { %v4270_v7 = vsel %vm4267_vm10, %v4150_v31, 0.0 }
 0x2eb   : > { %v8903_v27 = vpack.c.bf16 %v4270_v7, %v4269_v50  ;;  %v4030_v8 = vpop.f32.mrf.mxu0 }
 0x2ec   : > { %v4087_v63 = vadd.f32 %v4030_v8, %v3698_v21  ;;  %v11041_v10 = vpop.f32.mrf.mxu1 }
 0x2ed   : > { %8936 = vst [vmem:[#allocation2 + $0x28] sm:$0xff] %v8903_v27   ;;  %v4547_v27 = vor.u32 %v4546_v37, %v4543_v2 }
 0x2ee   : > { %4069 = vmatmul.bf16.gmra.mxu0 %v3927_v4  ;;  %v4121_v40 = vadd.f32 %v10569_v52, %v4087_v63  ;;  %v8173_v4 = vrot.slane %v4954_v16, 9  ;;  %v12081_v16 = vld [vmem:[#allocation26_spill] sm:$0xff]  ;;  %v11037_v37 = vpop.f32.mrf.mxu2 }
 0x2ef   : > { %v3700_v2 = vadd.f32 %v12081_v16, %v3081_v34  ;;  %v4548_v5 = vrot.slane %v4547_v27, 4  ;;  %v8845_v27 = vld [vmem:[#allocation2 + $0x18] sm:$0xff] }
 0x2f0   : > { %v4151_v21 = vmax.f32 %v4121_v40, 0.0 }
 0x2f2   : > { %v4293_v61 = vsel %vm11019_vm15, %v4151_v21, 0.0  ;;  %v11062_v21 = vpop.f32.mrf.mxu3 }
 0x2f3   : > { %v4032_v47 = vpop.f32.mrf.mxu0 }
 0x2f4   : > { %v4088_v6 = vadd.f32 %v4032_v47, %v3699_v58  ;;  %v8784_v31 = vld [vmem:[#allocation2 + $0x24] sm:$0xff]  ;;  %v4463_v7 = vld [vmem:[#allocation2 + $0x2c] sm:$0x1] }
 0x2f5   : > { %v4435_v50 = vld [vmem:[#allocation2 + $0x28] sm:$0xf]  ;;  %4925 = vmatmul.bf16.gmra.mxu2 %v8784_v31  ;;  %v5001_v36 = vrot.slane %v4463_v7, 5  ;;  %v4560_v32 = vshll.u32 %v4463_v7, 16 }
 0x2f6   : > { %v4998_v49 = vrot.slane %v4435_v50, 5  ;;  %v4550_v8 = vshll.u32 %v4435_v50, 16  ;;  %v4554_v56 = vshrl.u32 %v4435_v50, 16  ;;  %v4122_v60 = vadd.f32 %v10569_v52, %v4088_v6  ;;  %v12082_v58 = vld [vmem:[#allocation9_spill] sm:$0xff] }
 0x2f7   : > { %v2779_v15 = vadd.f32 %v12083_v62, %v12082_v58  ;;  %v4562_v7 = vrot.slane %v4560_v32, 5  ;;  %v11069_v32 = vstv %s4305_s30  ;;  %v8833_v58 = vld [vmem:[%s11990_s3 + $0x120] sm:$0xff]  ;;  %v11085_v62 = vpop.f32.mrf.mxu1  ;;  %s4387_s30 = scalar_select %p11351_p9, 1, 0 }
 0x2f8   : > { %v4999_v59 = vsel %vm9207_vm4, %v8173_v4, %v4998_v49  ;;  %v5000_v41 = vrot.slane %v4998_v49, 4  ;;  %v4552_v25 = vrot.slane %v4550_v8, 5  ;;  %v4556_v63 = vrot.slane %v4554_v56, 4  ;;  %v12085_v8 = vld [vmem:[#allocation27_spill] sm:$0xff]  ;;  %5703 = vmatpush.bf16.msrb.mxu2 %v8833_v58 }
 0x2f9   : > { %v4152_v55 = vmax.f32 %v4122_v60, 0.0  ;;  %v5054_v47 = vunpack.c.l.b16 %v4999_v59  ;;  %v3082_v56 = vadd.f32 %v12085_v8, %v2779_v15  ;;  %vm4307_vm3 = vcmp.eq.s32.totalorder %v11069_v32, 1 }
 0x2fa   : > { %v5002_v40 = vsel %vm9207_vm4, %v5000_v41, %v5001_v36  ;;  %v4557_v3 = vor.u32 %v4556_v63, %v4552_v25  ;;  %v4553_v31 = vsel %vm9216_vm5, %v4548_v5, %v4552_v25  ;;  %v11074_v25 = vstv %s4312_s7  ;;  %v12086_v63 = vld [vmem:[#allocation29_spill] sm:$0xff]  ;;  %v8825_v5 = vld [vmem:[%s11990_s3 + $0xe0] sm:$0xff]  ;;  %vm11094_vm7 = vmand %vm4173_vm6, %vm4307_vm3 }
 0x2fb   : > { %v4294_v18 = vsel %vm4291_vm0, %v4152_v55, 0.0  ;;  %v5055_v23 = vunpack.c.l.b16 %v5002_v40  ;;  %v4035_v6 = vpop.f32.mrf.mxu0  ;;  %v4683_v54 = vunpack.c.l.b16 %v4553_v31  ;;  %v3701_v16 = vadd.f32 %v12086_v63, %v3082_v56  ;;  %5325 = vmatpush.bf16.msrb.mxu1 %v8825_v5  ;;  %v12090_v56 = vld [vmem:[#allocation30_spill] sm:$0xff]  ;;  %v12091_v63 = vld [vmem:[#allocation11_spill] sm:$0xff]  ;;  %vm4310_vm10 = vmand %vm4178_vm12, %vm4307_vm3 }
 0x2fc   : > { %v8908_v34 = vpack.c.bf16 %v4294_v18, %v4293_v61  ;;  %v4558_v50 = vrot.slane %v4557_v3, 4  ;;  %v4089_v4 = vadd.f32 %v4035_v6, %v3700_v2  ;;  %v11077_v2 = vpop.f32.mrf.mxu2  ;;  %vm4314_vm8 = vcmp.eq.s32.totalorder %v11074_v25, 1 }
 0x2fd   : > { %v5067_v49 = vpack.c.b16 %v5055_v23, %v5054_v47  ;;  %v12089_v23 = vld [vmem:[#allocation10_spill] sm:$0xff]  ;;  %vm4315_vm9 = vmand %vm11094_vm7, %vm4314_vm8 }
 0x2fe   : > { %8909 = vst [vmem:[#allocation2 + $0x30] sm:$0xff] %v8908_v34   ;;  %v4563_v17 = vsel %vm9216_vm5, %v4558_v50, %v4562_v7  ;;  %v4123_v60 = vadd.f32 %v10569_v52, %v4089_v4  ;;  %6152 = vmatmul.bf16.vlgmr.msrb.gmra.mxu0 %v8845_v27  ;;  %v2780_v34 = vadd.f32 %v10654_v57, %v12089_v23  ;;  %v11102_v27 = vpop.f32.mrf.mxu3  ;;  %vm4316_vm11 = vmand %vm4307_vm3, %vm4314_vm8 }
 0x2ff   : > { %5151 = vmatmul.bf16.gmra.mxu3 %v5067_v49  ;;  %v4684_v36 = vunpack.c.l.b16 %v4563_v17  ;;  %vm4317_vm13 = vmand %vm4310_vm10, %vm4314_vm8 }
 0x300   : > { %v4153_v59 = vmax.f32 %v4123_v60, 0.0  ;;  %v3083_v57 = vadd.f32 %v12090_v56, %v2780_v34 }
 0x301   : > { %v4696_v41 = vpack.c.b16 %v4684_v36, %v4683_v54 }
 0x302   : > { %v4295_v55 = vsel %vm4292_vm2, %v4153_v59, 0.0  ;;  %v3702_v5 = vadd.f32 %v10657_v14, %v3083_v57 }
 0x303   : > { %4780 = vmatmul.bf16.gmra.mxu1 %v4696_v41  ;;  %v4298_v15 = vpack.c.bf16 %v4295_v55, %v4295_v55  ;;  %v4037_v40 = vpop.f32.mrf.mxu0 }
 0x304   : > { %v4090_v3 = vadd.f32 %v4037_v40, %v3701_v16  ;;  %v2781_v16 = vadd.f32 %v10673_v33, %v12091_v63  ;;  %v11113_v61 = vpop.f32.mrf.mxu2 }
 0x305   : > { %v8785_v18 = vld [vmem:[#allocation2 + $0x30] sm:$0xff]  ;;  %4302 = vst [vmem:[#allocation2 + $0x38] sm:$0xf] %v4298_v15 }
 0x306   : > { %v4437_v47 = vld [vmem:[#allocation2 + $0x34] sm:$0xf]  ;;  %v4436_v6 = vld [vmem:[#allocation2 + $0x30] sm:$0xf]  ;;  %v4124_v31 = vadd.f32 %v10569_v52, %v4090_v3  ;;  %4930 = vmatmul.bf16.gmra.mxu2 %v8785_v18  ;;  %v3084_v3 = vadd.f32 %v10670_v30, %v2781_v16  ;;  %v8846_v18 = vld [vmem:[#allocation2 + $0x24] sm:$0xff] }
 0x307   : > { %v4955_v50 = vld [vmem:[#allocation2 + $0x30] sm:$0xe]  ;;  %v4565_v7 = vshrl.u32 %v4436_v6, 16  ;;  %v4568_v4 = vshll.u32 %v4436_v6, 16  ;;  %v4574_v49 = vshll.u32 %v4437_v47, 16  ;;  %v4578_v8 = vshrl.u32 %v4437_v47, 16 }
 0x308   : > { %v4154_v17 = vmax.f32 %v4124_v31, 0.0  ;;  %v8174_v36 = vrot.slane %v4955_v50, 9  ;;  %v5005_v52 = vrot.slane %v4437_v47, 5  ;;  %v11115_v47 = vpop.f32.mrf.mxu1  ;;  %v3703_v57 = vadd.f32 %v10699_v28, %v3084_v3 }
 0x309   : > { %v4567_v60 = vrot.slane %v4565_v7, 4  ;;  %v4570_v54 = vrot.slane %v4568_v4, 5  ;;  %v4576_v59 = vrot.slane %v4574_v49, 5  ;;  %v4580_v41 = vrot.slane %v4578_v8, 4 }
 0x30a   : > { %v4318_v55 = vsel %vm4315_vm9, %v4154_v17, 0.0  ;;  %v5006_v33 = vsel %vm9207_vm4, %v8174_v36, %v5005_v52  ;;  %v5007_v6 = vrot.slane %v5005_v52, 4  ;;  %v11124_v17 = vpop.f32.mrf.mxu3 }
 0x30b   : > { %v4571_v58 = vor.u32 %v4570_v54, %v4567_v60  ;;  %v4321_v13 = vpack.c.bf16 %v4318_v55, %v4318_v55  ;;  %v4040_v15 = vpop.f32.mrf.mxu0  ;;  %v4581_v40 = vor.u32 %v4580_v41, %v4576_v59  ;;  %v5056_v8 = vunpack.c.l.b16 %v5006_v33  ;;  %v11131_v54 = vld [vmem:[%s11989_s2] ss:$0 sm:$0xff]  ;;  %v8832_v55 = vld [vmem:[%s11990_s3 + $0x118] sm:$0xff] }
 0x30c   : > { %v4464_v23 = vld [vmem:[#allocation2 + $0x38] sm:$0x1]  ;;  %v4091_v7 = vadd.f32 %v4040_v15, %v3702_v5  ;;  %v12093_v15 = vld [vmem:[#allocation12_spill] sm:$0xff]  ;;  %v11154_v5 = vpop.f32.mrf.mxu2  ;;  %5704 = vmatpush.bf16.msrb.mxu2 %v8832_v55  ;;  %v8839_v55 = vld [vmem:[%s11990_s3 + $0x150] sm:$0xff] }
 0x30d   : > { %v4572_v34 = vrot.slane %v4571_v58, 4  ;;  %4325 = vst [vmem:[#allocation2 + $0x3c] sm:$0xf] %v4321_v13  ;;  %v5008_v31 = vrot.slane %v4464_v23, 5  ;;  %v4584_v50 = vshll.u32 %v4464_v23, 16  ;;  %v4582_v4 = vrot.slane %v4581_v40, 4 }
 0x30e   : > { %6157 = vmatmul.bf16.gmra.mxu0 %v8846_v18  ;;  %v4125_v36 = vadd.f32 %v11131_v54, %v4091_v7  ;;  %v8840_v58 = vld [vmem:[%s11990_s3 + $0x158] sm:$0xff]  ;;  %v2782_v40 = vadd.f32 %v10723_v29, %v12093_v15 }
 0x30f   : > { %v5009_v14 = vsel %vm9207_vm4, %v5007_v6, %v5008_v31  ;;  %v4577_v30 = vsel %vm9216_vm5, %v4572_v34, %v4576_v59  ;;  %v4586_v49 = vrot.slane %v4584_v50, 5  ;;  %v8824_v13 = vld [vmem:[%s11990_s3 + $0xd8] sm:$0xff]  ;;  %5954 = vmatpush.bf16.msrb.mxu3 %v8840_v58  ;;  %v8823_v58 = vld [vmem:[%s11990_s3 + $0xd0] sm:$0xff] }
 0x310   : > { %v5057_v56 = vunpack.c.l.b16 %v5009_v14  ;;  %v4685_v59 = vunpack.c.l.b16 %v4577_v30  ;;  %v4155_v3 = vmax.f32 %v4125_v36, 0.0  ;;  %v11161_v23 = vpop.f32.mrf.mxu1  ;;  %v3085_v29 = vadd.f32 %v10717_v20, %v2782_v40  ;;  %5326 = vmatpush.bf16.msrb.mxu1 %v8824_v13  ;;  %v12095_v14 = vld [vmem:[#allocation13_spill] sm:$0xff]  ;;  %v8847_v30 = vld [vmem:[#allocation2 + $0x30] sm:$0xff] }
 0x311   : > { %v4587_v60 = vsel %vm9216_vm5, %v4582_v4, %v4586_v49  ;;  %v2783_v20 = vadd.f32 %v10779_v12, %v12095_v14  ;;  %v11179_v4 = vstv %s4330_s8 }
 0x312   : > { %v5068_v52 = vpack.c.b16 %v5057_v56, %v5056_v8  ;;  %v4686_v41 = vunpack.c.l.b16 %v4587_v60  ;;  %v4319_v32 = vsel %vm4316_vm11, %v4155_v3, 0.0  ;;  %v11172_v31 = vpop.f32.mrf.mxu3  ;;  %v3704_v7 = vadd.f32 %v10739_v9, %v3085_v29 }
 0x313   : > { %v4042_v63 = vpop.f32.mrf.mxu0  ;;  %v3086_v56 = vadd.f32 %v10768_v44, %v2783_v20  ;;  %vm4332_vm14 = vcmp.eq.s32.totalorder %v11179_v4, 1  ;;  %v11185_v9 = vstv %s4337_s9  ;;  %5955 = vmatpush.bf16.msrb.mxu3 %v8839_v55  ;;  %v11267_v4 = vstv %s4355_s20 }
 0x314   : > { %v4092_v16 = vadd.f32 %v4042_v63, %v3703_v57  ;;  %5156 = vmatmul.bf16.gmra.mxu3 %v5068_v52  ;;  %v4697_v28 = vpack.c.b16 %v4686_v41, %v4685_v59  ;;  %v4438_v6 = vld [vmem:[#allocation2 + $0x3c] sm:$0xf]  ;;  %v11182_v60 = vpop.f32.mrf.mxu2  ;;  %v12096_v63 = vld [vmem:[#allocation14_spill] sm:$0xff]  ;;  %vm11206_vm15 = vmand %vm4173_vm6, %vm4332_vm14  ;;  %vm4339_vm0 = vcmp.eq.s32.totalorder %v11185_v9, 1  ;;  %5327 = vmatpush.bf16.msrb.mxu1 %v8823_v58  ;;  %vm4357_vm8 = vcmp.eq.s32.totalorder %v11267_v4, 1 }
 0x315   : > { %v4589_v49 = vshrl.u32 %v4438_v6, 16  ;;  %v4592_v8 = vshll.u32 %v4438_v6, 16  ;;  %v4956_v36 = vld [vmem:[#allocation2 + $0x3c] sm:$0xe]  ;;  %v3705_v41 = vadd.f32 %v10812_v51, %v3086_v56  ;;  %vm11219_vm1 = vmand %vm11206_vm15, %vm4339_vm0  ;;  %v8838_v9 = vld [vmem:[%s11990_s3 + $0x148] sm:$0xff] }
 0x316   : > { %v4126_v18 = vadd.f32 %v11131_v54, %v4092_v16  ;;  %4785 = vmatmul.bf16.gmra.mxu1 %v4697_v28  ;;  %v2784_v16 = vadd.f32 %v10851_v38, %v12096_v63  ;;  %v8831_v28 = vld [vmem:[%s11990_s3 + $0x110] sm:$0xff]  ;;  %v8175_v29 = vrot.slane %v4956_v36, 9  ;;  %vm4341_vm2 = vmand %vm4332_vm14, %vm4339_vm0 }
 0x317   : > { %v4591_v52 = vrot.slane %v4589_v49, 4  ;;  %v4594_v59 = vrot.slane %v4592_v8, 5  ;;  %5705 = vmatpush.bf16.msrb.mxu2 %v8831_v28  ;;  %vm4335_vm3 = vmand %vm4178_vm12, %vm4332_vm14  ;;  %5956 = vmatpush.bf16.msrb.mxu3 %v8838_v9  ;;  %v11355_v4 = vld [vmem:[#allocation2 + $0x10] sm:$0xf] }
 0x318   : > { %v4156_v34 = vmax.f32 %v4126_v18, 0.0  ;;  %v11187_v12 = vpop.f32.mrf.mxu1  ;;  %v3087_v13 = vadd.f32 %v10849_v19, %v2784_v16  ;;  %vm4342_vm7 = vmand %vm4335_vm3, %vm4339_vm0 }
 0x319   : > { %vm11290_vm9 = vmand %vm4173_vm6, %vm4357_vm8 }
 0x31a   : > { %v4320_v33 = vsel %vm4317_vm13, %v4156_v34, 0.0  ;;  %v11213_v34 = vpop.f32.mrf.mxu3  ;;  %vm4360_vm13 = vmand %vm4178_vm12, %vm4357_vm8 }
 0x31b   : > { %v8913_v25 = vpack.c.bf16 %v4320_v33, %v4319_v32  ;;  %v4045_v50 = vpop.f32.mrf.mxu0  ;;  %v4595_v33 = vor.u32 %v4594_v59, %v4591_v52  ;;  %v12102_v52 = vld [vmem:[#allocation15_spill] sm:$0xff] }
 0x31c   : > { %v4093_v57 = vadd.f32 %v4045_v50, %v3704_v7  ;;  %v2785_v59 = vadd.f32 %v10902_v26, %v12102_v52  ;;  %v8822_v52 = vld [vmem:[%s11990_s3 + $0xc8] sm:$0xff] }
 0x31d   : > { %8937 = vst [vmem:[#allocation2 + $0x40] sm:$0xff] %v8913_v25   ;;  %v4596_v63 = vrot.slane %v4595_v33, 4  ;;  %5328 = vmatpush.bf16.msrb.mxu1 %v8822_v52 }
 0x31e   : > { %6162 = vmatmul.bf16.gmra.mxu0 %v8847_v30  ;;  %v4127_v44 = vadd.f32 %v11131_v54, %v4093_v57  ;;  %v3706_v57 = vadd.f32 %v10886_v48, %v3087_v13 }
 0x320   : > { %v4157_v50 = vmax.f32 %v4127_v44, 0.0  ;;  %v11247_v44 = vpop.f32.mrf.mxu2  ;;  %v11253_v26 = vpop.f32.mrf.mxu1 }
 0x322   : > { %v4343_v28 = vsel %vm11219_vm1, %v4157_v50, 0.0  ;;  %v11269_v19 = vpop.f32.mrf.mxu3 }
 0x323   : > { %v4047_v38 = vpop.f32.mrf.mxu0 }
 0x324   : > { %v4094_v15 = vadd.f32 %v4047_v38, %v3705_v41  ;;  %v8786_v40 = vld [vmem:[#allocation2 + $0x3c] sm:$0xff]  ;;  %v4465_v18 = vld [vmem:[#allocation2 + $0x44] sm:$0x1] }
 0x325   : > { %v4439_v3 = vld [vmem:[#allocation2 + $0x40] sm:$0xf]  ;;  %4935 = vmatmul.bf16.gmra.mxu2 %v8786_v40  ;;  %v5015_v14 = vrot.slane %v4465_v18, 5  ;;  %v4608_v20 = vshll.u32 %v4465_v18, 16 }
 0x326   : > { %v5012_v32 = vrot.slane %v4439_v3, 5  ;;  %v4598_v6 = vshll.u32 %v4439_v3, 16  ;;  %v4602_v25 = vshrl.u32 %v4439_v3, 16  ;;  %v4128_v7 = vadd.f32 %v11131_v54, %v4094_v15 }
 0x327   : > { %v4610_v40 = vrot.slane %v4608_v20, 5 }
 0x328   : > { %v5013_v30 = vsel %vm9207_vm4, %v8175_v29, %v5012_v32  ;;  %v5014_v49 = vrot.slane %v5012_v32, 4  ;;  %v4600_v8 = vrot.slane %v4598_v6, 5  ;;  %v4604_v56 = vrot.slane %v4602_v25, 4  ;;  %v8848_v29 = vld [vmem:[#allocation2 + $0x3c] sm:$0xff] }
 0x329   : > { %v4158_v36 = vmax.f32 %v4128_v7, 0.0  ;;  %v5058_v55 = vunpack.c.l.b16 %v5013_v30  ;;  %v3088_v32 = vadd.f32 %v10899_v24, %v2785_v59  ;;  %v4911_v30 = vpop.f32.mrf.mxu2 }
 0x32a   : > { %v5016_v41 = vsel %vm9207_vm4, %v5014_v49, %v5015_v14  ;;  %v4605_v16 = vor.u32 %v4604_v56, %v4600_v8  ;;  %v4601_v13 = vsel %vm9216_vm5, %v4596_v63, %v4600_v8  ;;  %v11274_v14 = vstv %s4362_s29  ;;  %v8830_v8 = vld [vmem:[%s11990_s3 + $0x108] sm:$0xff]  ;;  %s4380_s29 = scalar_select %p11327_p8, 1, 0 }
 0x32b   : > { %v4344_v48 = vsel %vm4341_vm2, %v4158_v36, 0.0  ;;  %v5059_v58 = vunpack.c.l.b16 %v5016_v41  ;;  %v4050_v38 = vpop.f32.mrf.mxu0  ;;  %v4687_v25 = vunpack.c.l.b16 %v4601_v13  ;;  %v3707_v20 = vadd.f32 %v10914_v35, %v3088_v32  ;;  %5706 = vmatpush.bf16.msrb.mxu2 %v8830_v8 }
 0x32c   : > { %v8918_v51 = vpack.c.bf16 %v4344_v48, %v4343_v28  ;;  %v4606_v15 = vrot.slane %v4605_v16, 4  ;;  %v4095_v3 = vadd.f32 %v4050_v38, %v3706_v57  ;;  %vm4364_vm10 = vcmp.eq.s32.totalorder %v11274_v14, 1  ;;  %v12106_v28 = vld [vmem:[#allocation16_spill] sm:$0xff] }
 0x32d   : > { %v5069_v18 = vpack.c.b16 %v5059_v58, %v5058_v55  ;;  %v2786_v48 = vadd.f32 %v10941_v42, %v12106_v28  ;;  %vm4365_vm11 = vmand %vm11290_vm9, %vm4364_vm10 }
 0x32e   : > { %8919 = vst [vmem:[#allocation2 + $0x48] sm:$0xff] %v8918_v51   ;;  %v4611_v33 = vsel %vm9216_vm5, %v4606_v15, %v4610_v40  ;;  %v4129_v6 = vadd.f32 %v11131_v54, %v4095_v3  ;;  %6167 = vmatmul.bf16.gmra.mxu0 %v8848_v29  ;;  %vm4366_vm14 = vmand %vm4357_vm8, %vm4364_vm10 }
 0x32f   : > { %5161 = vmatmul.bf16.gmra.mxu3 %v5069_v18  ;;  %v4688_v50 = vunpack.c.l.b16 %v4611_v33  ;;  %v3089_v15 = vadd.f32 %v10929_v53, %v2786_v48  ;;  %vm4367_vm15 = vmand %vm4360_vm13, %vm4364_vm10 }
 0x330   : > { %v4159_v24 = vmax.f32 %v4129_v6, 0.0 }
 0x331   : > { %v4698_v7 = vpack.c.b16 %v4688_v50, %v4687_v25 }
 0x332   : > { %v4345_v49 = vsel %vm4342_vm7, %v4159_v24, 0.0 }
 0x333   : > { %4790 = vmatmul.bf16.gmra.mxu1 %v4698_v7  ;;  %v4348_v56 = vpack.c.bf16 %v4345_v49, %v4345_v49  ;;  %v4052_v57 = vpop.f32.mrf.mxu0  ;;  %v4766_v36 = vpop.f32.mrf.mxu1  ;;  %v12107_v7 = vld [vmem:[#allocation17_spill] sm:$0xff] }
 0x334   : > { %v4096_v59 = vadd.f32 %v4052_v57, %v3707_v20  ;;  %v4912_v41 = vadd.f32 %v4911_v30, %v4766_v36  ;;  %v2787_v53 = vadd.f32 %v10984_v0, %v12107_v7 }
 0x335   : > { %v8787_v63 = vld [vmem:[#allocation2 + $0x48] sm:$0xff]  ;;  %4352 = vst [vmem:[#allocation2 + $0x50] sm:$0xf] %v4348_v56  ;;  %v3708_v56 = vadd.f32 %v10970_v46, %v3089_v15 }
 0x336   : > { %v4441_v16 = vld [vmem:[#allocation2 + $0x4c] sm:$0xf]  ;;  %v4130_v58 = vadd.f32 %v11131_v54, %v4096_v59  ;;  %4940 = vmatmul.bf16.gmra.mxu2 %v8787_v63  ;;  %v4957_v51 = vld [vmem:[#allocation2 + $0x48] sm:$0xe]  ;;  %v3090_v57 = vadd.f32 %v10982_v39, %v2787_v53 }
 0x337   : > { %v4622_v55 = vshll.u32 %v4441_v16, 16  ;;  %v4440_v38 = vld [vmem:[#allocation2 + $0x48] sm:$0xf]  ;;  %v4626_v13 = vshrl.u32 %v4441_v16, 16  ;;  %v5137_v40 = vpop.f32.mrf.mxu3  ;;  %v5019_v33 = vrot.slane %v4441_v16, 5  ;;  %v8176_v25 = vrot.slane %v4957_v51, 9 }
 0x338   : > { %v4613_v3 = vshrl.u32 %v4440_v38, 16  ;;  %v4616_v18 = vshll.u32 %v4440_v38, 16  ;;  %v4160_v29 = vmax.f32 %v4130_v58, 0.0  ;;  %v11303_v32 = vadd.f32 %v5137_v40, %v4912_v41  ;;  %v8849_v36 = vld [vmem:[#allocation2 + $0x48] sm:$0xff] }
 0x339   : > { %v4624_v42 = vrot.slane %v4622_v55, 5  ;;  %v4628_v6 = vrot.slane %v4626_v13, 4  ;;  %v5021_v59 = vrot.slane %v5019_v33, 4  ;;  %v5020_v35 = vsel %vm9207_vm4, %v8176_v25, %v5019_v33  ;;  %v8837_v33 = vld [vmem:[%s11990_s3 + $0x140] sm:$0xff]  ;;  %v12109_v25 = vld [vmem:[#allocation3_spill] sm:$0xff] }
 0x33a   : > { %v4615_v50 = vrot.slane %v4613_v3, 4  ;;  %v4618_v24 = vrot.slane %v4616_v18, 5  ;;  %v4368_v20 = vsel %vm4365_vm11, %v4160_v29, 0.0  ;;  %v5060_v55 = vunpack.c.l.b16 %v5020_v35  ;;  %5957 = vmatpush.bf16.msrb.mxu3 %v8837_v33  ;;  %v5387_v35 = vld [vmem:[#allocation2 + $0xc] sm:$0xf]  ;;  %v8876_v33 = vld [vmem:[%s11990_s3 + $0x238] sm:$0xff] }
 0x33b   : > { %v4371_v30 = vpack.c.bf16 %v4368_v20, %v4368_v20  ;;  %v4055_v49 = vpop.f32.mrf.mxu0  ;;  %v4629_v9 = vor.u32 %v4628_v6, %v4624_v42  ;;  %v3709_v51 = vadd.f32 %v11002_v1, %v3090_v57  ;;  %v8821_v6 = vld [vmem:[%s11990_s3 + $0xc0] sm:$0xff]  ;;  %v11346_v20 = vpop.f32.mrf.mxu1 }
 0x33c   : > { %v4619_v8 = vor.u32 %v4618_v24, %v4615_v50  ;;  %v4466_v52 = vld [vmem:[#allocation2 + $0x50] sm:$0x1]  ;;  %v4097_v16 = vadd.f32 %v4055_v49, %v3708_v56  ;;  %v2788_v50 = vadd.f32 %v11041_v10, %v12109_v25  ;;  %v11339_v24 = vpop.f32.mrf.mxu2  ;;  %5329 = vmatpush.bf16.msrb.mxu1 %v8821_v6  ;;  %v8884_v6 = vld [vmem:[%s11992_s5 + $0x38] sm:$0xff] }
 0x33d   : > { %4375 = vst [vmem:[#allocation2 + $0x54] sm:$0xf] %v4371_v30  ;;  %v5022_v41 = vrot.slane %v4466_v52, 5  ;;  %v4632_v0 = vshll.u32 %v4466_v52, 16  ;;  %v4630_v39 = vrot.slane %v4629_v9, 4  ;;  %v12111_v52 = vld [vmem:[#allocation4_spill] sm:$0xff] }
 0x33e   : > { %v4620_v63 = vrot.slane %v4619_v8, 4  ;;  %6172 = vmatmul.bf16.gmra.mxu0 %v8849_v36  ;;  %v4131_v13 = vadd.f32 %v11131_v54, %v4097_v16  ;;  %v3091_v10 = vadd.f32 %v11037_v37, %v2788_v50  ;;  %v5421_v36 = vshll.u32 %v11355_v4, 16  ;;  %v8868_v25 = vld [vmem:[%s11990_s3 + $0x1f8] sm:$0xff]  ;;  %7037 = vmatpush.bf16.msra.mxu3 %v8884_v6 }
 0x33f   : > { %v5023_v28 = vsel %vm9207_vm4, %v5021_v59, %v5022_v41  ;;  %v4634_v48 = vrot.slane %v4632_v0, 5  ;;  %v11357_v49 = vpop.f32.mrf.mxu3  ;;  %v2789_v59 = vadd.f32 %v11085_v62, %v12111_v52  ;;  %v5425_v41 = vshrl.u32 %v11355_v4, 16 }
 0x340   : > { %v4625_v46 = vsel %vm9216_vm5, %v4620_v63, %v4624_v42  ;;  %v5061_v58 = vunpack.c.l.b16 %v5023_v28  ;;  %v8829_v42 = vld [vmem:[%s11990_s3 + $0x100] sm:$0xff]  ;;  %v4161_v7 = vmax.f32 %v4131_v13, 0.0  ;;  %v3710_v37 = vadd.f32 %v11062_v21, %v3091_v10  ;;  %v12112_v63 = vld [vmem:[#allocation5_spill] sm:$0xff]  ;;  %6522 = vmatpush.bf16.msra.mxu1 %v8868_v25 }
 0x341   : > { %v4635_v38 = vsel %vm9216_vm5, %v4630_v39, %v4634_v48  ;;  %v4689_v40 = vunpack.c.l.b16 %v4625_v46  ;;  %5707 = vmatpush.bf16.msrb.mxu2 %v8829_v42  ;;  %v2790_v0 = vadd.f32 %v11115_v47, %v12112_v63  ;;  %v11370_v16 = vstv %s4380_s29  ;;  %v11379_v42 = vld [vmem:[#allocation2 + $0x14] sm:$0x1] }
 0x342   : > { %v5070_v15 = vpack.c.b16 %v5061_v58, %v5060_v55  ;;  %v4690_v3 = vunpack.c.l.b16 %v4635_v38  ;;  %v4369_v8 = vsel %vm4366_vm14, %v4161_v7, 0.0  ;;  %v3092_v39 = vadd.f32 %v11077_v2, %v2789_v59 }
 0x343   : > { %v4057_v18 = vpop.f32.mrf.mxu0  ;;  %v3093_v55 = vadd.f32 %v11113_v61, %v2790_v0  ;;  %v5412_v58 = vshrl.u32 %v5387_v35, 16  ;;  %v11374_v38 = vrot.slane %v5421_v36, 5  ;;  %vm4382_vm0 = vcmp.eq.s32.totalorder %v11370_v16, 1 }
 0x344   : > { %v4098_v29 = vadd.f32 %v4057_v18, %v3709_v51  ;;  %5166 = vmatmul.bf16.gmra.mxu3 %v5070_v15  ;;  %v4699_v1 = vpack.c.b16 %v4690_v3, %v4689_v40  ;;  %v4442_v14 = vld [vmem:[#allocation2 + $0x54] sm:$0xf]  ;;  %v5415_v51 = vshll.u32 %v5387_v35, 16  ;;  %v11377_v13 = vstv %s4387_s30  ;;  %vm11399_vm1 = vmand %vm4173_vm6, %vm4382_vm0 }
 0x345   : > { %v4637_v28 = vshrl.u32 %v4442_v14, 16  ;;  %v4640_v46 = vshll.u32 %v4442_v14, 16  ;;  %v5427_v15 = vrot.slane %v5425_v41, 4  ;;  %v4958_v3 = vld [vmem:[#allocation2 + $0x54] sm:$0xe]  ;;  %v3711_v61 = vadd.f32 %v11102_v27, %v3092_v39  ;;  %6772 = vmatpush.bf16.msra.mxu2 %v8876_v33  ;;  %vm11459_vm8 = vmand %vm4178_vm12, %vm4382_vm0 }
 0x346   : > { %v4132_v53 = vadd.f32 %v11131_v54, %v4098_v29  ;;  %4795 = vmatmul.bf16.gmra.mxu1 %v4699_v1  ;;  %v3712_v50 = vadd.f32 %v11124_v17, %v3093_v55  ;;  %vm4389_vm2 = vcmp.eq.s32.totalorder %v11377_v13, 1  ;;  %v5417_v10 = vrot.slane %v5415_v51, 5  ;;  %v5390_v27 = vld [vmem:[#allocation2 + $0x18] sm:$0xf]  ;;  %v8883_v13 = vld [vmem:[%s11992_s5 + $0x30] sm:$0xff] }
 0x347   : > { %v4639_v18 = vrot.slane %v4637_v28, 4  ;;  %v4642_v2 = vrot.slane %v4640_v46, 5  ;;  %v5428_v17 = vor.u32 %v5427_v15, %v11374_v38  ;;  %vm11411_vm3 = vmand %vm11399_vm1, %vm4389_vm2  ;;  %v5799_v16 = vrot.slane %v11355_v4, 5  ;;  %7038 = vmatpush.bf16.msra.mxu3 %v8883_v13 }
 0x348   : > { %v4162_v30 = vmax.f32 %v4132_v53, 0.0  ;;  %v4916_v48 = vpop.f32.mrf.mxu2  ;;  %v5414_v53 = vrot.slane %v5412_v58, 4  ;;  %vm11426_vm7 = vmand %vm4382_vm0, %vm4389_vm2  ;;  %v12120_v58 = vld [vmem:[#allocation18_spill] sm:$0xff]  ;;  %v11473_v63 = vstv %s4405_s17  ;;  %v5439_v39 = vshll.u32 %v5390_v27, 16 }
 0x349   : > { %v4643_v52 = vor.u32 %v4642_v2, %v4639_v18  ;;  %v2791_v51 = vadd.f32 %v11161_v23, %v12120_v58  ;;  %vm11484_vm9 = vmand %vm11459_vm8, %vm4389_vm2  ;;  %vm4407_vm10 = vcmp.eq.s32.totalorder %v11473_v63, 1 }
 0x34a   : > { %v4370_v9 = vsel %vm4367_vm15, %v4162_v30, 0.0  ;;  %vm4408_vm11 = vmand %vm4173_vm6, %vm4407_vm10 }
 0x34b   : > { %v8923_v56 = vpack.c.bf16 %v4370_v9, %v4369_v8  ;;  %v4060_v57 = vpop.f32.mrf.mxu0  ;;  %v4644_v2 = vrot.slane %v4643_v52, 4  ;;  %vm4410_vm14 = vmand %vm4178_vm12, %vm4407_vm10 }
 0x34c   : > { %v4099_v21 = vadd.f32 %v4060_v57, %v3710_v37  ;;  %v5431_v57 = vshll.u32 %v11379_v42, 16 }
 0x34d   : > { %8938 = vst [vmem:[#allocation2 + $0x58] sm:$0xff] %v8923_v56   ;;  %v8177_v56 = vrot.slane %v4958_v3, 9 }
 0x34e   : > { %v4133_v29 = vadd.f32 %v11131_v54, %v4099_v21  ;;  %v5433_v3 = vrot.slane %v5431_v57, 5 }
 0x350   : > { %v4771_v62 = vpop.f32.mrf.mxu1  ;;  %v4163_v41 = vmax.f32 %v4133_v29, 0.0  ;;  %v5429_v29 = vrot.slane %v5428_v17, 4 }
 0x351   : > { %v4917_v47 = vadd.f32 %v4916_v48, %v4771_v62 }
 0x352   : > { %v5142_v40 = vpop.f32.mrf.mxu3  ;;  %v4393_v33 = vsel %vm11411_vm3, %v4163_v41, 0.0 }
 0x353   : > { %v11383_v1 = vadd.f32 %v5142_v40, %v4917_v47  ;;  %v4062_v7 = vpop.f32.mrf.mxu0  ;;  %v11434_v47 = vpop.f32.mrf.mxu2  ;;  %v5418_v40 = vor.u32 %v5417_v10, %v5414_v53 }
 0x354   : > { %v4100_v30 = vadd.f32 %v4062_v7, %v3711_v61  ;;  %v8788_v8 = vld [vmem:[#allocation2 + $0x54] sm:$0xff]  ;;  %v4467_v36 = vld [vmem:[#allocation2 + $0x5c] sm:$0x1] }
 0x355   : > { %v8850_v9 = vld [vmem:[#allocation2 + $0x54] sm:$0xff]  ;;  %4945 = vmatmul.bf16.gmra.mxu2 %v8788_v8  ;;  %v5029_v28 = vrot.slane %v4467_v36, 5  ;;  %v4656_v46 = vshll.u32 %v4467_v36, 16  ;;  %v5419_v36 = vrot.slane %v5418_v40, 4  ;;  %v5801_v40 = vrot.slane %v5799_v16, 4 }
 0x356   : > { %v4443_v14 = vld [vmem:[#allocation2 + $0x58] sm:$0xf]  ;;  %v4134_v0 = vadd.f32 %v11131_v54, %v4100_v30  ;;  %6177 = vmatmul.bf16.gmra.mxu0 %v8850_v9 }
 0x357   : > { %v5026_v37 = vrot.slane %v4443_v14, 5  ;;  %v4646_v59 = vshll.u32 %v4443_v14, 16  ;;  %v4650_v35 = vshrl.u32 %v4443_v14, 16  ;;  %v4658_v9 = vrot.slane %v4656_v46, 5 }
 0x358   : > { %v4164_v15 = vmax.f32 %v4134_v0, 0.0  ;;  %v11450_v53 = vpop.f32.mrf.mxu1  ;;  %v3094_v14 = vadd.f32 %v11154_v5, %v2791_v51  ;;  %v5434_v5 = vsel %vm9216_vm5, %v5429_v29, %v5433_v3  ;;  %v8875_v0 = vld [vmem:[%s11990_s3 + $0x230] sm:$0xff]  ;;  %v5424_v46 = vsel %vm9216_vm5, %v5419_v36, %v11374_v38  ;;  %v5765_v38 = vld [vmem:[#allocation2 + $0xc] sm:$0xe]  ;;  %v11503_v29 = vld [vmem:[#allocation2 + $0x20] sm:$0x1] }
 0x359   : > { %v5027_v48 = vsel %vm9207_vm4, %v8177_v56, %v5026_v37  ;;  %v5028_v21 = vrot.slane %v5026_v37, 4  ;;  %v4648_v55 = vrot.slane %v4646_v59, 5  ;;  %v4652_v62 = vrot.slane %v4650_v35, 4  ;;  %v11463_v37 = vld [vmem:[#allocation2 + $0x1c] sm:$0xf]  ;;  %6773 = vmatpush.bf16.msra.mxu2 %v8875_v0 }
 0x35a   : > { %v4394_v23 = vsel %vm11426_vm7, %v4164_v15, 0.0  ;;  %v5062_v6 = vunpack.c.l.b16 %v5027_v48  ;;  %v5445_v48 = vshll.u32 %v11463_v37, 16  ;;  %v5621_v58 = vunpack.c.l.b16 %v5434_v5 }
 0x35b   : > { %v5030_v18 = vsel %vm9207_vm4, %v5028_v21, %v5029_v28  ;;  %v4653_v61 = vor.u32 %v4652_v62, %v4648_v55  ;;  %v8928_v7 = vpack.c.bf16 %v4394_v23, %v4393_v33  ;;  %v4065_v10 = vpop.f32.mrf.mxu0  ;;  %v4649_v30 = vsel %vm9216_vm5, %v4644_v2, %v4648_v55  ;;  %v11478_v28 = vpop.f32.mrf.mxu3 }
 0x35c   : > { %v5063_v25 = vunpack.c.l.b16 %v5030_v18  ;;  %v4101_v56 = vadd.f32 %v4065_v10, %v3712_v50  ;;  %v5436_v50 = vshrl.u32 %v5390_v27, 16  ;;  %v4691_v35 = vunpack.c.l.b16 %v4649_v30  ;;  %v4921_v3 = vpop.f32.mrf.mxu2 }
 0x35d   : > { %v4654_v8 = vrot.slane %v4653_v61, 4  ;;  %8929 = vst [vmem:[#allocation2 + $0x60] sm:$0xff] %v8928_v7   ;;  %v5449_v21 = vshrl.u32 %v11463_v37, 16  ;;  %v3713_v51 = vadd.f32 %v11172_v31, %v3094_v14  ;;  %v11498_v15 = vstv %s4412_s18  ;;  %v8867_v31 = vld [vmem:[%s11990_s3 + $0x1f0] sm:$0xff] }
 0x35e   : > { %v5071_v57 = vpack.c.b16 %v5063_v25, %v5062_v6  ;;  %v4135_v59 = vadd.f32 %v11131_v54, %v4101_v56  ;;  %v5620_v2 = vunpack.c.l.b16 %v5424_v46  ;;  %v5802_v61 = vrot.slane %v11379_v42, 5  ;;  %6523 = vmatpush.bf16.msra.mxu1 %v8867_v31 }
 0x35f   : > { %v4659_v52 = vsel %vm9216_vm5, %v4654_v8, %v4658_v9  ;;  %v5438_v33 = vrot.slane %v5436_v50, 4  ;;  %v5441_v27 = vrot.slane %v5439_v39, 5  ;;  %v5447_v7 = vrot.slane %v5445_v48, 5  ;;  %v11526_v48 = vld [vmem:[#allocation2 + $0x28] sm:$0xf] }
 0x360   : > { %5171 = vmatmul.bf16.gmra.mxu3 %v5071_v57  ;;  %v4692_v41 = vunpack.c.l.b16 %v4659_v52  ;;  %v4165_v55 = vmax.f32 %v4135_v59, 0.0  ;;  %v5451_v10 = vrot.slane %v5449_v21, 4  ;;  %vm4414_vm13 = vcmp.eq.s32.totalorder %v11498_v15, 1  ;;  %v12126_v57 = vld [vmem:[#allocation6_spill] sm:$0xff] }
 0x361   : > { %v5636_v8 = vpack.c.b16 %v5621_v58, %v5620_v2  ;;  %v8354_v14 = vrot.slane %v5765_v38, 9  ;;  %v5803_v56 = vsel %vm9207_vm4, %v5801_v40, %v5802_v61  ;;  %v5455_v17 = vshll.u32 %v11503_v29, 16  ;;  %vm4415_vm6 = vmand %vm4408_vm11, %vm4414_vm13  ;;  %v5393_v40 = vld [vmem:[#allocation2 + $0x24] sm:$0xf]  ;;  %v5396_v15 = vld [vmem:[#allocation2 + $0x30] sm:$0xf] }
 0x362   : > { %v4700_v62 = vpack.c.b16 %v4692_v41, %v4691_v35  ;;  %v4395_v18 = vsel %vm11484_vm9, %v4165_v55, 0.0  ;;  %v2792_v36 = vadd.f32 %v11187_v12, %v12126_v57  ;;  %v5442_v50 = vor.u32 %v5441_v27, %v5438_v33  ;;  %vm4416_vm15 = vmand %vm4407_vm10, %vm4414_vm13 }
 0x363   : > { %v4398_v23 = vpack.c.bf16 %v4395_v18, %v4395_v18  ;;  %v4067_v6 = vpop.f32.mrf.mxu0  ;;  %v4776_v25 = vpop.f32.mrf.mxu1  ;;  %v5800_v5 = vsel %vm9207_vm4, %v8354_v14, %v5799_v16  ;;  %v5452_v59 = vor.u32 %v5451_v10, %v5447_v7  ;;  %v5871_v4 = vunpack.c.l.b16 %v5803_v56  ;;  %v12127_v16 = vld [vmem:[#allocation19_spill] sm:$0xff]  ;;  %vm4417_vm12 = vmand %vm4410_vm14, %vm4414_vm13 }
 0x364   : > { %4800 = vmatmul.bf16.gmra.mxu1 %v4700_v62  ;;  %v4102_v30 = vadd.f32 %v4067_v6, %v3713_v51  ;;  %v4922_v42 = vadd.f32 %v4921_v3, %v4776_v25  ;;  %v8851_v9 = vld [vmem:[#allocation2 + $0x60] sm:$0xff]  ;;  %v3095_v35 = vadd.f32 %v11182_v60, %v2792_v36  ;;  %v5457_v12 = vrot.slane %v5455_v17, 5  ;;  %v5766_v25 = vld [vmem:[#allocation2 + $0x18] sm:$0xe]  ;;  %v11557_v36 = vld [vmem:[#allocation2 + $0x2c] sm:$0x1] }
 0x365   : > { %4402 = vst [vmem:[#allocation2 + $0x68] sm:$0xf] %v4398_v23  ;;  %5708 = vmatmul.bf16.vlgmr.msrb.gmra.mxu2 %v5636_v8  ;;  %v5870_v39 = vunpack.c.l.b16 %v5800_v5  ;;  %v5443_v62 = vrot.slane %v5442_v50, 4  ;;  %v5453_v58 = vrot.slane %v5452_v59, 4  ;;  %v2793_v51 = vadd.f32 %v11253_v26, %v12127_v16  ;;  %v8882_v26 = vld [vmem:[%s11992_s5 + $0x28] sm:$0xff]  ;;  %v11567_v59 = vpop.f32.mrf.mxu2 }
 0x366   : > { %v4136_v52 = vadd.f32 %v11131_v54, %v4102_v30  ;;  %6182 = vmatmul.bf16.gmra.mxu0 %v8851_v9  ;;  %v3714_v13 = vadd.f32 %v11213_v34, %v3095_v35  ;;  %v5469_v3 = vshll.u32 %v11526_v48, 16  ;;  %v5473_v18 = vshrl.u32 %v11526_v48, 16  ;;  %v8874_v34 = vld [vmem:[%s11990_s3 + $0x228] sm:$0xff]  ;;  %7039 = vmatpush.bf16.msra.mxu3 %v8882_v26 }
 0x367   : > { %v5147_v11 = vpop.f32.mrf.mxu3  ;;  %v5886_v38 = vpack.c.b16 %v5871_v4, %v5870_v39  ;;  %v5458_v60 = vsel %vm9216_vm5, %v5453_v58, %v5457_v12  ;;  %v3096_v2 = vadd.f32 %v11247_v44, %v2793_v51  ;;  %v5448_v33 = vsel %vm9216_vm5, %v5443_v62, %v5447_v7  ;;  %v8813_v23 = vld [vmem:[#allocation2 + $0xc] sm:$0xff]  ;;  %6774 = vmatpush.bf16.msra.mxu2 %v8874_v34 }
 0x368   : > { %v4166_v41 = vmax.f32 %v4136_v52, 0.0  ;;  %v11524_v0 = vadd.f32 %v5147_v11, %v4922_v42  ;;  %v5806_v31 = vrot.slane %v11463_v37, 5  ;;  %v5623_v6 = vunpack.c.l.b16 %v5458_v60  ;;  %v8866_v37 = vld [vmem:[%s11990_s3 + $0x1e8] sm:$0xff] }
 0x369   : > { %v5460_v27 = vshrl.u32 %v5393_v40, 16  ;;  %v5463_v44 = vshll.u32 %v5393_v40, 16  ;;  %v5809_v10 = vrot.slane %v11503_v29, 5  ;;  %v11546_v30 = vrot.slane %v5469_v3, 5  ;;  %6524 = vmatpush.bf16.msra.mxu1 %v8866_v37 }
 0x36a   : > { %v4418_v46 = vsel %vm4415_vm6, %v4166_v41, 0.0  ;;  %v5475_v42 = vrot.slane %v5473_v18, 4  ;;  %v3715_v8 = vadd.f32 %v11269_v19, %v3096_v2  ;;  %v5622_v7 = vunpack.c.l.b16 %v5448_v33  ;;  %v8873_v18 = vld [vmem:[%s11990_s3 + $0x220] sm:$0xff] }
 0x36b   : > { %v4421_v21 = vpack.c.bf16 %v4418_v46, %v4418_v46  ;;  %v4070_v55 = vpop.f32.mrf.mxu0  ;;  %v8355_v56 = vrot.slane %v5766_v25, 9  ;;  %v5808_v17 = vrot.slane %v5806_v31, 4  ;;  %v5462_v19 = vrot.slane %v5460_v27, 4  ;;  %v11569_v35 = vpop.f32.mrf.mxu1  ;;  %6775 = vmatpush.bf16.msra.mxu2 %v8873_v18  ;;  %v8881_v25 = vld [vmem:[%s11992_s5 + $0x20] sm:$0xff] }
 0x36c   : > { %v4103_v61 = vadd.f32 %v4070_v55, %v3714_v13  ;;  %v5637_v29 = vpack.c.b16 %v5623_v6, %v5622_v7  ;;  %v5465_v52 = vrot.slane %v5463_v44, 5  ;;  %v5476_v5 = vor.u32 %v5475_v42, %v11546_v30  ;;  %v8814_v6 = vld [vmem:[#allocation2 + $0x18] sm:$0xff]  ;;  %v5767_v42 = vld [vmem:[#allocation2 + $0x24] sm:$0xe]  ;;  %7040 = vmatpush.bf16.msra.mxu3 %v8881_v25 }
 0x36d   : > { %4425 = vst [vmem:[#allocation2 + $0x6c] sm:$0xf] %v4421_v21  ;;  %v5810_v11 = vsel %vm9207_vm4, %v5808_v17, %v5809_v10  ;;  %v5807_v41 = vsel %vm9207_vm4, %v8355_v56, %v5806_v31  ;;  %v5479_v4 = vshll.u32 %v11557_v36, 16  ;;  %v5813_v40 = vrot.slane %v11526_v48, 5  ;;  %v8865_v7 = vld [vmem:[%s11990_s3 + $0x1e0] sm:$0xff] }
 0x36e   : > { %v4137_v9 = vadd.f32 %v11131_v54, %v4103_v61  ;;  %v5873_v46 = vunpack.c.l.b16 %v5810_v11  ;;  %v5466_v39 = vor.u32 %v5465_v52, %v5462_v19  ;;  %v5477_v21 = vrot.slane %v5476_v5, 4  ;;  %6525 = vmatpush.bf16.msra.mxu1 %v8865_v7 }
 0x36f   : > { %v11576_v63 = vpop.f32.mrf.mxu3  ;;  %v5872_v62 = vunpack.c.l.b16 %v5807_v41  ;;  %v5481_v13 = vrot.slane %v5479_v4, 5  ;;  %v5484_v34 = vshrl.u32 %v5396_v15, 16  ;;  %v5487_v26 = vshll.u32 %v5396_v15, 16 }
 0x370   : > { %5958 = vmatmul.bf16.vlgmr.msrb.gmra.mxu3 %v5886_v38  ;;  %v4167_v50 = vmax.f32 %v4137_v9, 0.0  ;;  %v5467_v51 = vrot.slane %v5466_v39, 4  ;;  %v11578_v38 = vld [vmem:[#allocation2 + $0x34] sm:$0xf]  ;;  %v5815_v44 = vrot.slane %v5813_v40, 4  ;;  %v8356_v19 = vrot.slane %v5767_v42, 9 }
 0x371   : > { %v5887_v16 = vpack.c.b16 %v5873_v46, %v5872_v62  ;;  %v5482_v60 = vsel %vm9216_vm5, %v5477_v21, %v5481_v13  ;;  %v5493_v33 = vshll.u32 %v11578_v38, 16  ;;  %v5497_v31 = vshrl.u32 %v11578_v38, 16  ;;  %v5398_v9 = vld [vmem:[#allocation2 + $0x38] sm:$0x1]  ;;  %v11606_v46 = vld [vmem:[#allocation2 + $0x40] sm:$0xf] }
 0x372   : > { %v5472_v3 = vsel %vm9216_vm5, %v5467_v51, %v11546_v30  ;;  %v5625_v48 = vunpack.c.l.b16 %v5482_v60  ;;  %v5486_v37 = vrot.slane %v5484_v34, 4  ;;  %v5503_v11 = vshll.u32 %v5398_v9, 16  ;;  %v8872_v51 = vld [vmem:[%s11990_s3 + $0x218] sm:$0xff] }
 0x373   : > { %v4072_v14 = vpop.f32.mrf.mxu0  ;;  %v5624_v30 = vunpack.c.l.b16 %v5472_v3  ;;  %v5495_v56 = vrot.slane %v5493_v33, 5  ;;  %v5499_v17 = vrot.slane %v5497_v31, 4  ;;  %v5517_v13 = vshll.u32 %v11606_v46, 16  ;;  %v8815_v3 = vld [vmem:[#allocation2 + $0x24] sm:$0xff]  ;;  %6776 = vmatpush.bf16.msra.mxu2 %v8872_v51 }
 0x374   : > { %5330 = vmatmul.bf16.vlgmr.msrb.gmra.mxu1 %v8813_v23  ;;  %v4104_v57 = vadd.f32 %v4072_v14, %v3715_v8  ;;  %v5816_v8 = vrot.slane %v11557_v36, 5  ;;  %v5489_v14 = vrot.slane %v5487_v26, 5  ;;  %v5814_v36 = vsel %vm9207_vm4, %v8356_v19, %v5813_v40  ;;  %v8880_v26 = vld [vmem:[%s11992_s5 + $0x18] sm:$0xff] }
 0x375   : > { %5713 = vmatmul.bf16.gmra.mxu2 %v5637_v29  ;;  %v5505_v4 = vrot.slane %v5503_v11, 5  ;;  %v5820_v40 = vrot.slane %v11578_v38, 5  ;;  %v5823_v33 = vrot.slane %v5398_v9, 5  ;;  %v5519_v31 = vrot.slane %v5517_v13, 5  ;;  %7041 = vmatpush.bf16.msra.mxu3 %v8880_v26  ;;  %v8864_v38 = vld [vmem:[%s11990_s3 + $0x1d8] sm:$0xff]  ;;  %v8863_v26 = vld [vmem:[%s11990_s3 + $0x1d0] sm:$0xff] }
 0x376   : > { %v4138_v22 = vadd.f32 %v11131_v54, %v4104_v57  ;;  %v4419_v54 = vsel %vm4416_vm15, %v4167_v50, 0.0  ;;  %v5638_v57 = vpack.c.b16 %v5625_v48, %v5624_v30  ;;  %v5817_v52 = vsel %vm9207_vm4, %v5815_v44, %v5816_v8  ;;  %v5401_v8 = vld [vmem:[#allocation2 + $0x44] sm:$0x1]  ;;  %6526 = vmatpush.bf16.msra.mxu1 %v8864_v38 }
 0x377   : > { %v5490_v5 = vor.u32 %v5489_v14, %v5486_v37  ;;  %v5500_v50 = vor.u32 %v5499_v17, %v5495_v56  ;;  %v5822_v44 = vrot.slane %v5820_v40, 4 }
 0x378   : > { %v4168_v12 = vmax.f32 %v4138_v22, 0.0  ;;  %v4926_v2 = vpop.f32.mrf.mxu2  ;;  %v5875_v22 = vunpack.c.l.b16 %v5817_v52 }
 0x379   : > { %v5491_v21 = vrot.slane %v5490_v5, 4  ;;  %v5824_v9 = vsel %vm9207_vm4, %v5822_v44, %v5823_v33 }
 0x37a   : > { %v4420_v55 = vsel %vm4417_vm12, %v4168_v12, 0.0  ;;  %v5874_v12 = vunpack.c.l.b16 %v5814_v36  ;;  %v5877_v19 = vunpack.c.l.b16 %v5824_v9  ;;  %6527 = vmatpush.bf16.msra.mxu1 %v8863_v26 }
 0x37b   : > { %v8933_v58 = vpack.c.bf16 %v4420_v55, %v4419_v54  ;;  %v5501_v54 = vrot.slane %v5500_v50, 4  ;;  %v5496_v60 = vsel %vm9216_vm5, %v5491_v21, %v5495_v56 }
 0x37c   : > { %v5888_v55 = vpack.c.b16 %v5875_v22, %v5874_v12  ;;  %v11634_v12 = vld [vmem:[#allocation2 + $0x4c] sm:$0xf] }
 0x37d   : > { %8939 = vst [vmem:[#allocation2 + $0x70] sm:$0xff] %v8933_v58   ;;  %v5506_v62 = vsel %vm9216_vm5, %v5501_v54, %v5505_v4  ;;  %v5399_v58 = vld [vmem:[#allocation2 + $0x3c] sm:$0xf]  ;;  %v5402_v4 = vld [vmem:[#allocation2 + $0x48] sm:$0xf]  ;;  %v5827_v54 = vrot.slane %v11606_v46, 5 }
 0x37e   : > { %v5627_v18 = vunpack.c.l.b16 %v5506_v62  ;;  %v5511_v34 = vshll.u32 %v5399_v58, 16  ;;  %v8871_v62 = vld [vmem:[%s11990_s3 + $0x210] sm:$0xff]  ;;  %v5532_v13 = vshrl.u32 %v5402_v4, 16  ;;  %v5541_v51 = vshll.u32 %v11634_v12, 16 }
 0x37f   : > { %6777 = vmatpush.bf16.msra.mxu2 %v8871_v62 }
 0x380   : > { %5963 = vmatmul.bf16.gmra.mxu3 %v5887_v16  ;;  %v4781_v61 = vpop.f32.mrf.mxu1  ;;  %v11604_v41 = vpop.f32.mrf.mxu2  ;;  %v5521_v16 = vshrl.u32 %v11606_v46, 16  ;;  %v5513_v37 = vrot.slane %v5511_v34, 5  ;;  %v5404_v34 = vld [vmem:[#allocation2 + $0x50] sm:$0x1]  ;;  %v5534_v33 = vrot.slane %v5532_v13, 4 }
 0x381   : > { %v4927_v23 = vadd.f32 %v4926_v2, %v4781_v61  ;;  %v5768_v2 = vld [vmem:[#allocation2 + $0x30] sm:$0xe]  ;;  %v5508_v61 = vshrl.u32 %v5399_v58, 16 }
 0x382   : > { %v5152_v27 = vpop.f32.mrf.mxu3  ;;  %v8879_v58 = vld [vmem:[%s11992_s5 + $0x10] sm:$0xff] }
 0x383   : > { %v11594_v10 = vadd.f32 %v5152_v27, %v4927_v23  ;;  %v5523_v23 = vrot.slane %v5521_v16, 4  ;;  %v8357_v27 = vrot.slane %v5768_v2, 9  ;;  %v5510_v7 = vrot.slane %v5508_v61, 4  ;;  %7042 = vmatpush.bf16.msra.mxu3 %v8879_v58  ;;  %v5769_v2 = vld [vmem:[#allocation2 + $0x3c] sm:$0xe] }
 0x384   : > { %5335 = vmatmul.bf16.gmra.mxu1 %v8814_v6  ;;  %v8852_v29 = vld [vmem:[#allocation2 + $0x6c] sm:$0xff]  ;;  %v5626_v6 = vunpack.c.l.b16 %v5496_v60  ;;  %v5535_v16 = vshll.u32 %v5402_v4, 16  ;;  %v5545_v60 = vshrl.u32 %v11634_v12, 16  ;;  %v5830_v61 = vrot.slane %v5401_v8, 5  ;;  %v8817_v58 = vld [vmem:[#allocation2 + $0x3c] sm:$0xff] }
 0x385   : > { %5718 = vmatmul.bf16.gmra.mxu2 %v5638_v57  ;;  %6187 = vmatmul.bf16.gmra.mxu0 %v8852_v29  ;;  %v5524_v14 = vor.u32 %v5523_v23, %v5519_v31  ;;  %v5821_v17 = vsel %vm9207_vm4, %v8357_v27, %v5820_v40  ;;  %v5527_v57 = vshll.u32 %v5401_v8, 16  ;;  %v5514_v52 = vor.u32 %v5513_v37, %v5510_v7  ;;  %v8816_v40 = vld [vmem:[#allocation2 + $0x30] sm:$0xff] }
 0x386   : > { %v5639_v42 = vpack.c.b16 %v5627_v18, %v5626_v6  ;;  %v5876_v36 = vunpack.c.l.b16 %v5821_v17  ;;  %v5543_v23 = vrot.slane %v5541_v51, 5  ;;  %v5547_v6 = vrot.slane %v5545_v60, 4  ;;  %v11662_v17 = vld [vmem:[#allocation2 + $0x58] sm:$0xf] }
 0x387   : > { %v5525_v11 = vrot.slane %v5524_v14, 4  ;;  %v5529_v5 = vrot.slane %v5527_v57, 5  ;;  %v5515_v22 = vrot.slane %v5514_v52, 4  ;;  %v5551_v27 = vshll.u32 %v5404_v34, 16 }
 0x388   : > { %v11608_v39 = vpop.f32.mrf.mxu1  ;;  %v5889_v50 = vpack.c.b16 %v5877_v19, %v5876_v36  ;;  %v5548_v7 = vor.u32 %v5547_v6, %v5543_v23  ;;  %v5405_v36 = vld [vmem:[#allocation2 + $0x54] sm:$0xf]  ;;  %v5407_v6 = vld [vmem:[#allocation2 + $0x5c] sm:$0x1] }
 0x389   : > { %v4931_v48 = vpop.f32.mrf.mxu2  ;;  %v5530_v21 = vsel %vm9216_vm5, %v5525_v11, %v5529_v5  ;;  %v5553_v14 = vrot.slane %v5551_v27, 5  ;;  %v5565_v5 = vshll.u32 %v11662_v17, 16  ;;  %v5556_v51 = vshrl.u32 %v5405_v36, 16 }
 0x38a   : > { %v11617_v15 = vpop.f32.mrf.mxu3  ;;  %v5629_v46 = vunpack.c.l.b16 %v5530_v21  ;;  %v5549_v19 = vrot.slane %v5548_v7, 4  ;;  %v5559_v60 = vshll.u32 %v5405_v36, 16  ;;  %v5408_v36 = vld [vmem:[#allocation2 + $0x60] sm:$0xf] }
 0x38c   : > { %v5554_v11 = vsel %vm9216_vm5, %v5549_v19, %v5553_v14 }
 0x38d   : > { %v5631_v13 = vunpack.c.l.b16 %v5554_v11 }
 0x390   : > { %5968 = vmatmul.bf16.gmra.mxu3 %v5888_v55  ;;  %v5520_v55 = vsel %vm9216_vm5, %v5515_v22, %v5519_v31  ;;  %v5537_v31 = vrot.slane %v5535_v16, 5  ;;  %v8870_v22 = vld [vmem:[%s11990_s3 + $0x208] sm:$0xff] }
 0x391   : > { %v5628_v18 = vunpack.c.l.b16 %v5520_v55  ;;  %v11654_v44 = vpop.f32.mrf.mxu2  ;;  %v5834_v55 = vrot.slane %v11634_v12, 5  ;;  %v5770_v16 = vld [vmem:[#allocation2 + $0x48] sm:$0xe]  ;;  %6778 = vmatpush.bf16.msra.mxu2 %v8870_v22  ;;  %v5841_v22 = vrot.slane %v11662_v17, 5 }
 0x392   : > { %v5538_v8 = vor.u32 %v5537_v31, %v5534_v33  ;;  %v8862_v12 = vld [vmem:[%s11990_s3 + $0x1c8] sm:$0xff]  ;;  %v8359_v33 = vrot.slane %v5770_v16, 9 }
 0x393   : > { %v4786_v25 = vpop.f32.mrf.mxu1  ;;  %v5640_v38 = vpack.c.b16 %v5629_v46, %v5628_v18  ;;  %v5567_v18 = vrot.slane %v5565_v5, 5  ;;  %v5836_v31 = vrot.slane %v5834_v55, 4  ;;  %6528 = vmatpush.bf16.msra.mxu1 %v8862_v12  ;;  %v11690_v5 = vld [vmem:[#allocation2 + $0x64] sm:$0xf]  ;;  %v8818_v16 = vld [vmem:[#allocation2 + $0x48] sm:$0xff] }
 0x394   : > { %5340 = vmatmul.bf16.gmra.mxu1 %v8815_v3  ;;  %v4932_v30 = vadd.f32 %v4931_v48, %v4786_v25  ;;  %v5829_v3 = vrot.slane %v5827_v54, 4  ;;  %v8358_v48 = vrot.slane %v5769_v2, 9  ;;  %v5539_v57 = vrot.slane %v5538_v8, 4 }
 0x395   : > { %5723 = vmatmul.bf16.gmra.mxu2 %v5639_v42  ;;  %v5835_v27 = vsel %vm9207_vm4, %v8359_v33, %v5834_v55  ;;  %v5580_v55 = vshrl.u32 %v5408_v36, 16 }
 0x396   : > { %v5831_v25 = vsel %vm9207_vm4, %v5829_v3, %v5830_v61  ;;  %v5828_v42 = vsel %vm9207_vm4, %v8358_v48, %v5827_v54  ;;  %v5544_v54 = vsel %vm9216_vm5, %v5539_v57, %v5543_v23  ;;  %v5837_v3 = vrot.slane %v5404_v34, 5 }
 0x397   : > { %v5157_v56 = vpop.f32.mrf.mxu3  ;;  %v5879_v37 = vunpack.c.l.b16 %v5831_v25  ;;  %v5630_v26 = vunpack.c.l.b16 %v5544_v54  ;;  %v5561_v48 = vrot.slane %v5559_v60, 5  ;;  %v5843_v60 = vrot.slane %v5841_v22, 4 }
 0x398   : > { %v11632_v29 = vadd.f32 %v5157_v56, %v4932_v30  ;;  %v5878_v56 = vunpack.c.l.b16 %v5828_v42  ;;  %v5838_v34 = vsel %vm9207_vm4, %v5836_v31, %v5837_v3  ;;  %v5575_v42 = vshll.u32 %v5407_v6, 16 }
 0x399   : > { %v5641_v23 = vpack.c.b16 %v5631_v13, %v5630_v26  ;;  %v5881_v8 = vunpack.c.l.b16 %v5838_v34  ;;  %v5593_v13 = vshrl.u32 %v11690_v5, 16  ;;  %v5844_v3 = vrot.slane %v5407_v6, 5 }
 0x39a   : > { %v5890_v52 = vpack.c.b16 %v5879_v37, %v5878_v56  ;;  %v5880_v56 = vunpack.c.l.b16 %v5835_v27  ;;  %v5577_v19 = vrot.slane %v5575_v42, 5  ;;  %v5582_v33 = vrot.slane %v5580_v55, 4 }
 0x39b   : > { %v11656_v30 = vpop.f32.mrf.mxu1  ;;  %v5845_v27 = vsel %vm9207_vm4, %v5843_v60, %v5844_v3 }
 0x39f   : > { %v11660_v9 = vpop.f32.mrf.mxu3 }
 0x3a0   : > { %5973 = vmatmul.bf16.gmra.mxu3 %v5889_v50  ;;  %v5569_v50 = vshrl.u32 %v11662_v17, 16  ;;  %v8877_v17 = vld [vmem:[%s11992_s5] sm:$0xff] }
 0x3a2   : > { %v5571_v2 = vrot.slane %v5569_v50, 4 }
 0x3a4   : > { %5345 = vmatmul.bf16.gmra.mxu1 %v8816_v40  ;;  %v8878_v40 = vld [vmem:[%s11992_s5 + $0x8] sm:$0xff]  ;;  %v5572_v25 = vor.u32 %v5571_v2, %v5567_v18  ;;  %v8861_v2 = vld [vmem:[%s11990_s3 + $0x1c0] sm:$0xff] }
 0x3a5   : > { %5728 = vmatmul.bf16.gmra.mxu2 %v5640_v38  ;;  %7043 = vmatpush.bf16.msra.mxu3 %v8878_v40  ;;  %v5558_v38 = vrot.slane %v5556_v51, 4 }
 0x3a6   : > { %v5573_v14 = vrot.slane %v5572_v25, 4  ;;  %6529 = vmatpush.bf16.msra.mxu1 %v8861_v2 }
 0x3a7   : > { %v5562_v7 = vor.u32 %v5561_v48, %v5558_v38  ;;  %v5595_v38 = vrot.slane %v5593_v13, 4 }
 0x3a8   : > { %v4936_v4 = vpop.f32.mrf.mxu2  ;;  %v5578_v50 = vsel %vm9216_vm5, %v5573_v14, %v5577_v19  ;;  %v5883_v19 = vunpack.c.l.b16 %v5845_v27 }
 0x3a9   : > { %v5563_v11 = vrot.slane %v5562_v7, 4  ;;  %v5633_v51 = vunpack.c.l.b16 %v5578_v50  ;;  %7044 = vmatpush.bf16.msra.mxu3 %v8877_v17  ;;  %v8819_v17 = vld [vmem:[#allocation2 + $0x54] sm:$0xff] }
 0x3b0   : > { %5978 = vmatmul.bf16.gmra.mxu3 %v5890_v52  ;;  %v4791_v21 = vpop.f32.mrf.mxu1  ;;  %v11686_v37 = vpop.f32.mrf.mxu2  ;;  %v5891_v52 = vpack.c.b16 %v5881_v8, %v5880_v56 }
 0x3b1   : > { %v4937_v62 = vadd.f32 %v4936_v4, %v4791_v21  ;;  %v5568_v4 = vsel %vm9216_vm5, %v5563_v11, %v5567_v18  ;;  %v8869_v21 = vld [vmem:[%s11990_s3 + $0x200] sm:$0xff]  ;;  %v5410_v18 = vld [vmem:[#allocation2 + $0x68] sm:$0x1] }
 0x3b2   : > { %v5162_v46 = vpop.f32.mrf.mxu3  ;;  %6779 = vmatpush.bf16.msra.mxu2 %v8869_v21  ;;  %v5632_v40 = vunpack.c.l.b16 %v5568_v4  ;;  %v5599_v6 = vshll.u32 %v5410_v18, 16 }
 0x3b3   : > { %v11677_v61 = vadd.f32 %v5162_v46, %v4937_v62  ;;  %v5583_v62 = vshll.u32 %v5408_v36, 16  ;;  %v5771_v46 = vld [vmem:[#allocation2 + $0x54] sm:$0xe] }
 0x3b4   : > { %5350 = vmatmul.bf16.gmra.mxu1 %v8817_v58  ;;  %v5589_v58 = vshll.u32 %v11690_v5, 16  ;;  %v5642_v34 = vpack.c.b16 %v5633_v51, %v5632_v40  ;;  %v8360_v25 = vrot.slane %v5771_v46, 9  ;;  %v5772_v40 = vld [vmem:[#allocation2 + $0x60] sm:$0xe]  ;;  %v5851_v46 = vrot.slane %v5410_v18, 5 }
 0x3b5   : > { %5733 = vmatmul.bf16.gmra.mxu2 %v5641_v23  ;;  %v5585_v31 = vrot.slane %v5583_v62, 5  ;;  %v8361_v2 = vrot.slane %v5772_v40, 9 }
 0x3b6   : > { %v5591_v23 = vrot.slane %v5589_v58, 5  ;;  %v5842_v8 = vsel %vm9207_vm4, %v8360_v25, %v5841_v22  ;;  %v8595_v25 = vld [vmem:[%s9164_s16 + $0x24] sm:$0xf] }
 0x3b7   : > { %v5586_v7 = vor.u32 %v5585_v31, %v5582_v33  ;;  %v5882_v11 = vunpack.c.l.b16 %v5842_v8  ;;  %v6210_v33 = vld [vmem:[#allocation2 + $0x1c] sm:$0xf] }
 0x3b8   : > { %v11688_v57 = vpop.f32.mrf.mxu1  ;;  %v5596_v14 = vor.u32 %v5595_v38, %v5591_v23  ;;  %v6587_v38 = vld [vmem:[#allocation2 + $0x18] sm:$0xe] }
 0x3b9   : > { %v4941_v26 = vpop.f32.mrf.mxu2  ;;  %v5587_v50 = vrot.slane %v5586_v7, 4  ;;  %v5892_v21 = vpack.c.b16 %v5883_v19, %v5882_v11  ;;  %v6243_v19 = vshll.u32 %v6210_v33, 16  ;;  %v6887_v11 = vrot.slane %v8595_v25, 5 }
 0x3ba   : > { %v11700_v54 = vpop.f32.mrf.mxu3  ;;  %v5597_v4 = vrot.slane %v5596_v14, 4 }
 0x3bb   : > { %v5592_v22 = vsel %vm9216_vm5, %v5587_v50, %v5591_v23  ;;  %v6211_v23 = vld [vmem:[#allocation2 + $0x20] sm:$0x1] }
 0x3bc   : > { %v5634_v3 = vunpack.c.l.b16 %v5592_v22  ;;  %v6245_v22 = vrot.slane %v6243_v19, 5 }
 0x3c0   : > { %5983 = vmatmul.bf16.gmra.mxu3 %v5891_v52  ;;  %v5601_v52 = vrot.slane %v5599_v6, 5  ;;  %v8538_v6 = vrot.slane %v6587_v38, 9 }
 0x3c1   : > { %v4943_v55 = vpop.f32.mrf.mxu2 }
 0x3c2   : > { %v5602_v62 = vsel %vm9216_vm5, %v5597_v4, %v5601_v52  ;;  %v8594_v4 = vld [vmem:[%s9164_s16 + $0x20] sm:$0xe] }
 0x3c3   : > { %v4796_v12 = vpop.f32.mrf.mxu1  ;;  %v5635_v60 = vunpack.c.l.b16 %v5602_v62 }
 0x3c4   : > { %5355 = vmatmul.bf16.gmra.mxu1 %v8818_v16  ;;  %v4942_v48 = vadd.f32 %v4941_v26, %v4796_v12  ;;  %v5848_v16 = vrot.slane %v11690_v5, 5 }
 0x3c5   : > { %5738 = vmatmul.bf16.gmra.mxu2 %v5642_v34  ;;  %v5643_v12 = vpack.c.b16 %v5635_v60, %v5634_v3  ;;  %v6209_v34 = vld [vmem:[#allocation2 + $0x18] sm:$0xf]  ;;  %v6889_v60 = vrot.slane %v6887_v11, 4 }
 0x3c6   : > { %v5850_v26 = vrot.slane %v5848_v16, 4  ;;  %v5849_v5 = vsel %vm9207_vm4, %v8361_v2, %v5848_v16  ;;  %v6234_v7 = vshrl.u32 %v6209_v34, 16  ;;  %v6237_v14 = vshll.u32 %v6209_v34, 16  ;;  %v8820_v2 = vld [vmem:[#allocation2 + $0x60] sm:$0xff]  ;;  %v6213_v34 = vld [vmem:[#allocation2 + $0x28] sm:$0xf] }
 0x3c7   : > { %v5167_v42 = vpop.f32.mrf.mxu3  ;;  %v5884_v8 = vunpack.c.l.b16 %v5849_v5 }
 0x3c8   : > { %v11714_v56 = vadd.f32 %v5167_v42, %v4942_v48  ;;  %v5852_v31 = vsel %vm9207_vm4, %v5850_v26, %v5851_v46  ;;  %v6621_v48 = vrot.slane %v6210_v33, 5  ;;  %v6624_v42 = vrot.slane %v6211_v23, 5 }
 0x3c9   : > { %v5885_v18 = vunpack.c.l.b16 %v5852_v31  ;;  %v6253_v31 = vshll.u32 %v6211_v23, 16 }
 0x3ca   : > { %v6623_v52 = vrot.slane %v6621_v48, 4  ;;  %v6622_v62 = vsel %vm9207_vm4, %v8538_v6, %v6621_v48 }
 0x3cb   : > { %v4798_v36 = vpop.f32.mrf.mxu1  ;;  %v5893_v50 = vpack.c.b16 %v5885_v18, %v5884_v8  ;;  %v6692_v5 = vunpack.c.l.b16 %v6622_v62  ;;  %v6628_v8 = vrot.slane %v6213_v34, 5 }
 0x3cc   : > { %v4944_v58 = vadd.f32 %v4943_v55, %v4798_v36  ;;  %v6247_v36 = vshrl.u32 %v6210_v33, 16  ;;  %v6625_v55 = vsel %vm9207_vm4, %v6623_v52, %v6624_v42  ;;  %v6255_v42 = vrot.slane %v6253_v31, 5  ;;  %v8597_v31 = vld [vmem:[%s9164_s16 + $0x30] sm:$0xe] }
 0x3cd   : > { %v6693_v26 = vunpack.c.l.b16 %v6625_v55 }
 0x3ce   : > { %v6249_v46 = vrot.slane %v6247_v36, 4  ;;  %v6212_v36 = vld [vmem:[#allocation2 + $0x24] sm:$0xf] }
 0x3cf   : > { %v5169_v13 = vpop.f32.mrf.mxu3 }
 0x3d0   : > { %5988 = vmatmul.bf16.gmra.mxu3 %v5892_v21  ;;  %v11721_v51 = vadd.f32 %v5169_v13, %v4944_v58  ;;  %v8596_v21 = vld [vmem:[%s9164_s16 + $0x28] sm:$0x1]  ;;  %v6236_v58 = vrot.slane %v6234_v7, 4  ;;  %v6239_v13 = vrot.slane %v6237_v14, 5  ;;  %v6250_v6 = vor.u32 %v6249_v46, %v6245_v22 }
 0x3d1   : > { %v6890_v40 = vrot.slane %v8596_v21, 5  ;;  %v8598_v21 = vld [vmem:[%s9164_s16 + $0x34] sm:$0xf]  ;;  %v6258_v46 = vshrl.u32 %v6212_v36, 16 }
 0x3d2   : > { %v6240_v25 = vor.u32 %v6239_v13, %v6236_v58  ;;  %v6251_v52 = vrot.slane %v6250_v6, 4  ;;  %v6630_v58 = vrot.slane %v6628_v8, 4  ;;  %v6267_v13 = vshll.u32 %v6213_v34, 16 }
 0x3d3   : > { %v6891_v18 = vsel %vm9207_vm4, %v6889_v60, %v6890_v40  ;;  %v6588_v40 = vld [vmem:[#allocation2 + $0x24] sm:$0xe] }
 0x3d4   : > { %5360 = vmatmul.bf16.gmra.mxu1 %v8819_v17  ;;  %v8618_v17 = vrot.slane %v8594_v4, 9  ;;  %v6958_v23 = vunpack.c.l.b16 %v6891_v18  ;;  %v6241_v19 = vrot.slane %v6240_v25, 4  ;;  %v6214_v4 = vld [vmem:[#allocation2 + $0x2c] sm:$0x1]  ;;  %v6256_v62 = vsel %vm9216_vm5, %v6251_v52, %v6255_v42 }
 0x3d5   : > { %5743 = vmatmul.bf16.gmra.mxu2 %v5643_v12  ;;  %v6269_v25 = vrot.slane %v6267_v13, 5 }
 0x3d6   : > { %v6888_v48 = vsel %vm9207_vm4, %v8618_v17, %v6887_v11 }
 0x3d7   : > { %v6957_v7 = vunpack.c.l.b16 %v6888_v48  ;;  %v8539_v48 = vrot.slane %v6588_v40, 9  ;;  %v6277_v40 = vshll.u32 %v6214_v4, 16 }
 0x3d8   : > { %v4946_v27 = vpop.f32.mrf.mxu2 }
 0x3d9   : > { %v6973_v60 = vpack.c.b16 %v6958_v23, %v6957_v7  ;;  %v6629_v23 = vsel %vm9207_vm4, %v8539_v48, %v6628_v8  ;;  %v6215_v48 = vld [vmem:[#allocation2 + $0x30] sm:$0xf] }
 0x3da   : > { %v6694_v13 = vunpack.c.l.b16 %v6629_v23 }
 0x3e0   : > { %5993 = vmatmul.bf16.gmra.mxu3 %v5893_v50  ;;  %v4948_v33 = vpop.f32.mrf.mxu2 }
 0x3e1   : > { %v4801_v16 = vpop.f32.mrf.mxu1 }
 0x3e2   : > { %v4947_v3 = vadd.f32 %v4946_v27, %v4801_v16  ;;  %v6708_v27 = vpack.c.b16 %v6693_v26, %v6692_v5  ;;  %v6271_v16 = vshrl.u32 %v6213_v34, 16  ;;  %v6631_v26 = vrot.slane %v6214_v4, 5  ;;  %v8599_v5 = vld [vmem:[%s9164_s16 + $0x38] sm:$0x1] }
 0x3e3   : > { %v5172_v12 = vpop.f32.mrf.mxu3  ;;  %v6279_v4 = vrot.slane %v6277_v40, 5 }
 0x3e4   : > { %v11734_v38 = vadd.f32 %v5172_v12, %v4947_v3  ;;  %5365 = vmatmul.bf16.gmra.mxu1 %v8820_v2  ;;  %v6261_v3 = vshll.u32 %v6212_v36, 16  ;;  %v6246_v2 = vsel %vm9216_vm5, %v6241_v19, %v6245_v22  ;;  %v6894_v12 = vrot.slane %v8598_v21, 5 }
 0x3e5   : > { %6780 = vmatmul.bf16.vlgmr.msra.gmra.mxu2 %v6708_v27  ;;  %v6632_v18 = vsel %vm9207_vm4, %v6630_v58, %v6631_v26  ;;  %v6273_v34 = vrot.slane %v6271_v16, 4  ;;  %v6442_v6 = vunpack.c.l.b16 %v6246_v2  ;;  %v6260_v27 = vrot.slane %v6258_v46, 4  ;;  %v6216_v2 = vld [vmem:[#allocation2 + $0x34] sm:$0xf] }
 0x3e6   : > { %v6263_v42 = vrot.slane %v6261_v3, 5  ;;  %v8619_v22 = vrot.slane %v8597_v31, 9  ;;  %v6897_v19 = vrot.slane %v8599_v5, 5  ;;  %v4914_v46 = vadd.f32 %v11339_v24, %v11346_v20  ;;  %v6217_v5 = vld [vmem:[#allocation2 + $0x38] sm:$0x1] }
 0x3e7   : > { %v8601_v20 = vld [vmem:[%s9164_s16 + $0x44] sm:$0xf] }
 0x3e8   : > { %v5709_v55 = vpop.f32.mrf.mxu2  ;;  %v6895_v16 = vsel %vm9207_vm4, %v8619_v22, %v6894_v12  ;;  %v6264_v8 = vor.u32 %v6263_v42, %v6260_v27  ;;  %v6638_v22 = vrot.slane %v6217_v5, 5 }
 0x3e9   : > { %v4803_v14 = vpop.f32.mrf.mxu1  ;;  %v6959_v31 = vunpack.c.l.b16 %v6895_v16 }
 0x3ea   : > { %v4949_v50 = vadd.f32 %v4948_v33, %v4803_v14  ;;  %v6443_v33 = vunpack.c.l.b16 %v6256_v62  ;;  %v6896_v14 = vrot.slane %v6894_v12, 4  ;;  %v6274_v62 = vor.u32 %v6273_v34, %v6269_v25 }
 0x3eb   : > { %v5174_v11 = vpop.f32.mrf.mxu3  ;;  %v6265_v34 = vrot.slane %v6264_v8, 4  ;;  %v8602_v8 = vld [vmem:[%s9164_s16 + $0x48] sm:$0x1] }
 0x3ec   : > { %v11743_v17 = vadd.f32 %v5174_v11, %v4949_v50  ;;  %v6458_v36 = vpack.c.b16 %v6443_v33, %v6442_v6  ;;  %v6695_v50 = vunpack.c.l.b16 %v6632_v18  ;;  %v6275_v26 = vrot.slane %v6274_v62, 4 }
 0x3ed   : > { %v5178_v33 = vadd.f32 %v11357_v49, %v4914_v46  ;;  %v6635_v6 = vrot.slane %v6216_v2, 5  ;;  %v6270_v23 = vsel %vm9216_vm5, %v6265_v34, %v6269_v25  ;;  %v6901_v62 = vrot.slane %v8601_v20, 5 }
 0x3ee   : > { %v6709_v3 = vpack.c.b16 %v6695_v50, %v6694_v13  ;;  %v6280_v49 = vsel %vm9216_vm5, %v6275_v26, %v6279_v4  ;;  %v6291_v50 = vshll.u32 %v6216_v2, 16  ;;  %v6444_v40 = vunpack.c.l.b16 %v6270_v23 }
 0x3ef   : > { %v6445_v16 = vunpack.c.l.b16 %v6280_v49  ;;  %v6301_v20 = vshll.u32 %v6217_v5, 16 }
 0x3f0   : > { %7045 = vmatmul.bf16.vlgmr.msra.gmra.mxu3 %v6973_v60  ;;  %v5711_v11 = vpop.f32.mrf.mxu2  ;;  %v6898_v60 = vsel %vm9207_vm4, %v6896_v14, %v6897_v19  ;;  %v6282_v14 = vshrl.u32 %v6215_v48, 16  ;;  %v6293_v26 = vrot.slane %v6291_v50, 5 }
 0x3f1   : > { %v5331_v7 = vpop.f32.mrf.mxu1  ;;  %v6960_v12 = vunpack.c.l.b16 %v6898_v60  ;;  %v8600_v60 = vld [vmem:[%s9164_s16 + $0x40] sm:$0xe]  ;;  %v6303_v5 = vrot.slane %v6301_v20, 5 }
 0x3f2   : > { %v5371_v52 = vadd.f32 %v5331_v7, %v11303_v32 }
 0x3f3   : > { %v5959_v21 = vpop.f32.mrf.mxu3 }
 0x3f4   : > { %v5749_v58 = vadd.f32 %v5709_v55, %v5371_v52  ;;  %6530 = vmatmul.bf16.vlgmr.msra.gmra.mxu1 %v6458_v36  ;;  %v6589_v55 = vld [vmem:[#allocation2 + $0x30] sm:$0xe]  ;;  %v6974_v52 = vpack.c.b16 %v6960_v12, %v6959_v31  ;;  %v6285_v36 = vshll.u32 %v6215_v48, 16  ;;  %v6903_v31 = vrot.slane %v6901_v62, 4 }
 0x3f5   : > { %6785 = vmatmul.bf16.gmra.mxu2 %v6709_v3  ;;  %v8540_v24 = vrot.slane %v6589_v55, 9 }
 0x3f6   : > { %v11760_v32 = vadd.f32 %v5959_v21, %v5749_v58  ;;  %v6637_v21 = vrot.slane %v6635_v6, 4  ;;  %v6295_v58 = vshrl.u32 %v6216_v2, 16  ;;  %v6287_v3 = vrot.slane %v6285_v36, 5 }
 0x3f7   : > { %v6636_v46 = vsel %vm9207_vm4, %v8540_v24, %v6635_v6  ;;  %v6904_v2 = vrot.slane %v8602_v8, 5  ;;  %v6219_v24 = vld [vmem:[#allocation2 + $0x40] sm:$0xf]  ;;  %v8604_v8 = vld [vmem:[%s9164_s16 + $0x54] sm:$0xf] }
 0x3f8   : > { %v5714_v7 = vpop.f32.mrf.mxu2  ;;  %v6639_v25 = vsel %vm9207_vm4, %v6637_v21, %v6638_v22  ;;  %v6297_v12 = vrot.slane %v6295_v58, 4  ;;  %v6696_v6 = vunpack.c.l.b16 %v6636_v46  ;;  %v6642_v36 = vrot.slane %v6219_v24, 5 }
 0x3f9   : > { %v5333_v18 = vpop.f32.mrf.mxu1  ;;  %v6697_v34 = vunpack.c.l.b16 %v6639_v25  ;;  %v6905_v22 = vsel %vm9207_vm4, %v6903_v31, %v6904_v2  ;;  %v6590_v31 = vld [vmem:[#allocation2 + $0x3c] sm:$0xe] }
 0x3fa   : > { %v5372_v27 = vadd.f32 %v5333_v18, %v5178_v33  ;;  %v8620_v33 = vrot.slane %v8600_v60, 9  ;;  %v6459_v18 = vpack.c.b16 %v6445_v16, %v6444_v40  ;;  %v6220_v60 = vld [vmem:[#allocation2 + $0x44] sm:$0x1] }
 0x3fb   : > { %v5961_v42 = vpop.f32.mrf.mxu3 }
 0x3fc   : > { %v5750_v19 = vadd.f32 %v5711_v11, %v5372_v27  ;;  %v6284_v11 = vrot.slane %v6282_v14, 4  ;;  %v6902_v49 = vsel %vm9207_vm4, %v8620_v33, %v6901_v62  ;;  %v6218_v62 = vld [vmem:[#allocation2 + $0x3c] sm:$0xf] }
 0x3fd   : > { %v6306_v2 = vshrl.u32 %v6218_v62, 16 }
 0x3fe   : > { %v11768_v13 = vadd.f32 %v5961_v42, %v5750_v19  ;;  %v4919_v42 = vadd.f32 %v11434_v47, %v11450_v53  ;;  %v6288_v14 = vor.u32 %v6287_v3, %v6284_v11  ;;  %v6961_v53 = vunpack.c.l.b16 %v6902_v49 }
 0x3ff   : > { %v6644_v11 = vrot.slane %v6642_v36, 4  ;;  %v6315_v3 = vshll.u32 %v6219_v24, 16 }
 0x400   : > { %7050 = vmatmul.bf16.gmra.mxu3 %v6974_v52  ;;  %v5716_v27 = vpop.f32.mrf.mxu2  ;;  %v6710_v52 = vpack.c.b16 %v6697_v34, %v6696_v6  ;;  %v5180_v47 = vadd.f32 %v11478_v28, %v4919_v42  ;;  %v6289_v21 = vrot.slane %v6288_v14, 4  ;;  %v6319_v28 = vshrl.u32 %v6219_v24, 16  ;;  %v8603_v42 = vld [vmem:[%s9164_s16 + $0x50] sm:$0xe] }
 0x401   : > { %v5336_v55 = vpop.f32.mrf.mxu1  ;;  %v6908_v34 = vrot.slane %v8604_v8, 5  ;;  %v8541_v6 = vrot.slane %v6590_v31, 9  ;;  %v6317_v24 = vrot.slane %v6315_v3, 5  ;;  %v6308_v14 = vrot.slane %v6306_v2, 4 }
 0x402   : > { %v5373_v48 = vadd.f32 %v5336_v55, %v11383_v1  ;;  %v6298_v1 = vor.u32 %v6297_v12, %v6293_v26  ;;  %v6309_v12 = vshll.u32 %v6218_v62, 16  ;;  %v6325_v3 = vshll.u32 %v6220_v60, 16 }
 0x403   : > { %v5964_v4 = vpop.f32.mrf.mxu3 }
 0x404   : > { %v5751_v23 = vadd.f32 %v5714_v7, %v5373_v48  ;;  %6535 = vmatmul.bf16.gmra.mxu1 %v6459_v18  ;;  %v6962_v7 = vunpack.c.l.b16 %v6905_v22  ;;  %v6299_v58 = vrot.slane %v6298_v1, 4  ;;  %v6294_v48 = vsel %vm9216_vm5, %v6289_v21, %v6293_v26 }
 0x405   : > { %6790 = vmatmul.bf16.gmra.mxu2 %v6710_v52  ;;  %v6645_v18 = vrot.slane %v6220_v60, 5  ;;  %v6446_v22 = vunpack.c.l.b16 %v6294_v48  ;;  %v6311_v1 = vrot.slane %v6309_v12, 5  ;;  %v6643_v26 = vsel %vm9207_vm4, %v8541_v6, %v6642_v36 }
 0x406   : > { %v11783_v19 = vadd.f32 %v5964_v4, %v5751_v23  ;;  %v6304_v46 = vsel %vm9216_vm5, %v6299_v58, %v6303_v5  ;;  %v6975_v33 = vpack.c.b16 %v6962_v7, %v6961_v53  ;;  %v8605_v23 = vld [vmem:[%s9164_s16 + $0x58] sm:$0x1]  ;;  %v8621_v5 = vrot.slane %v8603_v42, 9 }
 0x407   : > { %v6447_v20 = vunpack.c.l.b16 %v6304_v46  ;;  %v6646_v49 = vsel %vm9207_vm4, %v6644_v11, %v6645_v18  ;;  %v6911_v53 = vrot.slane %v8605_v23, 5  ;;  %v6312_v46 = vor.u32 %v6311_v1, %v6308_v14 }
 0x408   : > { %v5719_v25 = vpop.f32.mrf.mxu2  ;;  %v6699_v21 = vunpack.c.l.b16 %v6646_v49  ;;  %v6909_v11 = vsel %vm9207_vm4, %v8621_v5, %v6908_v34  ;;  %v6327_v60 = vrot.slane %v6325_v3, 5 }
 0x409   : > { %v5338_v50 = vpop.f32.mrf.mxu1  ;;  %v6963_v12 = vunpack.c.l.b16 %v6909_v11  ;;  %v6313_v18 = vrot.slane %v6312_v46, 4 }
 0x40a   : > { %v5374_v16 = vadd.f32 %v5338_v50, %v5180_v47  ;;  %v6910_v47 = vrot.slane %v6908_v34, 4  ;;  %v6460_v50 = vpack.c.b16 %v6447_v20, %v6446_v22  ;;  %v6223_v34 = vld [vmem:[#allocation2 + $0x50] sm:$0x1]  ;;  %v6221_v20 = vld [vmem:[#allocation2 + $0x48] sm:$0xf] }
 0x40b   : > { %v5966_v40 = vpop.f32.mrf.mxu3  ;;  %v6652_v14 = vrot.slane %v6223_v34, 5  ;;  %v6330_v1 = vshrl.u32 %v6221_v20, 16  ;;  %v6333_v5 = vshll.u32 %v6221_v20, 16  ;;  %v6349_v20 = vshll.u32 %v6223_v34, 16 }
 0x40c   : > { %v5752_v55 = vadd.f32 %v5716_v27, %v5374_v16  ;;  %v6321_v27 = vrot.slane %v6319_v28, 4  ;;  %v6912_v36 = vsel %vm9207_vm4, %v6910_v47, %v6911_v53  ;;  %v4924_v28 = vadd.f32 %v11567_v59, %v11569_v35  ;;  %v8607_v35 = vld [vmem:[%s9164_s16 + $0x64] sm:$0xf] }
 0x40d   : > { %v6964_v48 = vunpack.c.l.b16 %v6912_v36  ;;  %v6318_v59 = vsel %vm9216_vm5, %v6313_v18, %v6317_v24  ;;  %v6335_v11 = vrot.slane %v6333_v5, 5  ;;  %v6351_v34 = vrot.slane %v6349_v20, 5 }
 0x40e   : > { %v11791_v4 = vadd.f32 %v5966_v40, %v5752_v55  ;;  %v6322_v16 = vor.u32 %v6321_v27, %v6317_v24  ;;  %v6698_v40 = vunpack.c.l.b16 %v6643_v26  ;;  %v5182_v2 = vadd.f32 %v11576_v63, %v4924_v28 }
 0x40f   : > { %v6976_v26 = vpack.c.b16 %v6964_v48, %v6963_v12 }
 0x410   : > { %7055 = vmatmul.bf16.gmra.mxu3 %v6975_v33  ;;  %v5721_v62 = vpop.f32.mrf.mxu2  ;;  %v6711_v55 = vpack.c.b16 %v6699_v21, %v6698_v40  ;;  %v6222_v33 = vld [vmem:[#allocation2 + $0x4c] sm:$0xf]  ;;  %v6323_v31 = vrot.slane %v6322_v16, 4  ;;  %v8608_v16 = vld [vmem:[%s9164_s16 + $0x68] sm:$0x1] }
 0x411   : > { %v5341_v52 = vpop.f32.mrf.mxu1  ;;  %v6649_v23 = vrot.slane %v6222_v33, 5  ;;  %v6339_v47 = vshll.u32 %v6222_v33, 16 }
 0x412   : > { %v5375_v7 = vadd.f32 %v5341_v52, %v11524_v0  ;;  %v6328_v63 = vsel %vm9216_vm5, %v6323_v31, %v6327_v60 }
 0x413   : > { %v5969_v58 = vpop.f32.mrf.mxu3  ;;  %v6651_v53 = vrot.slane %v6649_v23, 4  ;;  %v6449_v24 = vunpack.c.l.b16 %v6328_v63  ;;  %v6341_v36 = vrot.slane %v6339_v47, 5 }
 0x414   : > { %v5753_v8 = vadd.f32 %v5719_v25, %v5375_v7  ;;  %6540 = vmatmul.bf16.gmra.mxu1 %v6460_v50  ;;  %v6591_v25 = vld [vmem:[#allocation2 + $0x48] sm:$0xe]  ;;  %v6915_v7 = vrot.slane %v8607_v35, 5  ;;  %v6343_v50 = vshrl.u32 %v6222_v33, 16  ;;  %v6918_v33 = vrot.slane %v8608_v16, 5 }
 0x415   : > { %6795 = vmatmul.bf16.gmra.mxu2 %v6711_v55  ;;  %v8542_v22 = vrot.slane %v6591_v25, 9  ;;  %v6653_v40 = vsel %vm9207_vm4, %v6651_v53, %v6652_v14  ;;  %v6226_v53 = vld [vmem:[#allocation2 + $0x5c] sm:$0x1] }
 0x416   : > { %v11806_v0 = vadd.f32 %v5969_v58, %v5753_v8  ;;  %v8606_v58 = vld [vmem:[%s9164_s16 + $0x60] sm:$0xe]  ;;  %v6448_v8 = vunpack.c.l.b16 %v6318_v59  ;;  %v6917_v55 = vrot.slane %v6915_v7, 4  ;;  %v6345_v31 = vrot.slane %v6343_v50, 4 }
 0x417   : > { %v6650_v46 = vsel %vm9207_vm4, %v8542_v22, %v6649_v23  ;;  %v8622_v28 = vrot.slane %v8606_v58, 9  ;;  %v6701_v12 = vunpack.c.l.b16 %v6653_v40  ;;  %v6592_v40 = vld [vmem:[#allocation2 + $0x54] sm:$0xe] }
 0x418   : > { %v5724_v27 = vpop.f32.mrf.mxu2  ;;  %v6700_v23 = vunpack.c.l.b16 %v6650_v46  ;;  %v6919_v35 = vsel %vm9207_vm4, %v6917_v55, %v6918_v33  ;;  %v6659_v55 = vrot.slane %v6226_v53, 5 }
 0x419   : > { %v5343_v42 = vpop.f32.mrf.mxu1  ;;  %v6916_v59 = vsel %vm9207_vm4, %v8622_v28, %v6915_v7  ;;  %v8610_v7 = vld [vmem:[%s9164_s16 + $0x74] sm:$0xf] }
 0x41a   : > { %v5376_v6 = vadd.f32 %v5343_v42, %v5182_v2  ;;  %v6461_v2 = vpack.c.b16 %v6449_v24, %v6448_v8  ;;  %v4929_v42 = vadd.f32 %v11604_v41, %v11608_v39  ;;  %v6712_v22 = vpack.c.b16 %v6701_v12, %v6700_v23  ;;  %v8609_v12 = vld [vmem:[%s9164_s16 + $0x70] sm:$0xe] }
 0x41b   : > { %v5971_v49 = vpop.f32.mrf.mxu3  ;;  %v6965_v39 = vunpack.c.l.b16 %v6916_v59  ;;  %v6922_v33 = vrot.slane %v8610_v7, 5  ;;  %v6373_v7 = vshll.u32 %v6226_v53, 16 }
 0x41c   : > { %v5754_v52 = vadd.f32 %v5721_v62, %v5376_v6  ;;  %v6332_v62 = vrot.slane %v6330_v1, 4  ;;  %v6225_v6 = vld [vmem:[#allocation2 + $0x58] sm:$0xf]  ;;  %v6224_v1 = vld [vmem:[#allocation2 + $0x54] sm:$0xf]  ;;  %v5184_v41 = vadd.f32 %v11617_v15, %v4929_v42 }
 0x41d   : > { %v6656_v14 = vrot.slane %v6225_v6, 5  ;;  %v6354_v50 = vshrl.u32 %v6224_v1, 16  ;;  %v6357_v24 = vshll.u32 %v6224_v1, 16  ;;  %v6363_v46 = vshll.u32 %v6225_v6, 16 }
 0x41e   : > { %v11814_v21 = vadd.f32 %v5971_v49, %v5754_v52  ;;  %v6336_v49 = vor.u32 %v6335_v11, %v6332_v62  ;;  %v6367_v62 = vshrl.u32 %v6225_v6, 16  ;;  %v6375_v53 = vrot.slane %v6373_v7, 5 }
 0x41f   : > { %v6658_v15 = vrot.slane %v6656_v14, 4  ;;  %v6356_v20 = vrot.slane %v6354_v50, 4  ;;  %v6365_v23 = vrot.slane %v6363_v46, 5  ;;  %v4934_v50 = vadd.f32 %v11654_v44, %v11656_v30  ;;  %v8613_v30 = vld [vmem:[%s9164_s16 + $0x84] sm:$0xf] }
 0x420   : > { %7060 = vmatmul.bf16.gmra.mxu3 %v6976_v26  ;;  %v5726_v18 = vpop.f32.mrf.mxu2  ;;  %v6337_v26 = vrot.slane %v6336_v49, 4  ;;  %v6369_v6 = vrot.slane %v6367_v62, 4  ;;  %v6924_v49 = vrot.slane %v6922_v33, 4  ;;  %v6229_v62 = vld [vmem:[#allocation2 + $0x68] sm:$0x1] }
 0x421   : > { %v5346_v3 = vpop.f32.mrf.mxu1  ;;  %v6660_v42 = vsel %vm9207_vm4, %v6658_v15, %v6659_v55 }
 0x422   : > { %v5377_v25 = vadd.f32 %v5346_v3, %v11594_v10  ;;  %v6346_v10 = vor.u32 %v6345_v31, %v6341_v36  ;;  %v6342_v28 = vsel %vm9216_vm5, %v6337_v26, %v6341_v36  ;;  %v6703_v1 = vunpack.c.l.b16 %v6660_v42 }
 0x423   : > { %v5974_v48 = vpop.f32.mrf.mxu3 }
 0x424   : > { %v5755_v60 = vadd.f32 %v5724_v27, %v5377_v25  ;;  %6545 = vmatmul.bf16.gmra.mxu1 %v6461_v2  ;;  %v6966_v27 = vunpack.c.l.b16 %v6919_v35  ;;  %v6347_v5 = vrot.slane %v6346_v10, 4  ;;  %v8543_v2 = vrot.slane %v6592_v40, 9 }
 0x425   : > { %6800 = vmatmul.bf16.gmra.mxu2 %v6712_v22  ;;  %v8623_v35 = vrot.slane %v8609_v12, 9 }
 0x426   : > { %v11829_v63 = vadd.f32 %v5974_v48, %v5755_v60  ;;  %v6352_v8 = vsel %vm9216_vm5, %v6347_v5, %v6351_v34  ;;  %v6977_v3 = vpack.c.b16 %v6966_v27, %v6965_v39  ;;  %v8611_v48 = vld [vmem:[%s9164_s16 + $0x78] sm:$0x1]  ;;  %v6359_v60 = vrot.slane %v6357_v24, 5 }
 0x427   : > { %v6451_v25 = vunpack.c.l.b16 %v6352_v8  ;;  %v6657_v36 = vsel %vm9207_vm4, %v8543_v2, %v6656_v14  ;;  %v6925_v10 = vrot.slane %v8611_v48, 5  ;;  %v6666_v48 = vrot.slane %v6229_v62, 5 }
 0x428   : > { %v5729_v16 = vpop.f32.mrf.mxu2  ;;  %v6360_v27 = vor.u32 %v6359_v60, %v6356_v20  ;;  %v6702_v5 = vunpack.c.l.b16 %v6657_v36  ;;  %v6929_v36 = vrot.slane %v8613_v30, 5 }
 0x429   : > { %v5348_v52 = vpop.f32.mrf.mxu1  ;;  %v6926_v14 = vsel %vm9207_vm4, %v6924_v49, %v6925_v10  ;;  %v8612_v10 = vld [vmem:[%s9164_s16 + $0x80] sm:$0xe] }
 0x42a   : > { %v5378_v47 = vadd.f32 %v5348_v52, %v5184_v41  ;;  %v6370_v52 = vor.u32 %v6369_v6, %v6365_v23  ;;  %v6713_v24 = vpack.c.b16 %v6703_v1, %v6702_v5  ;;  %v6361_v8 = vrot.slane %v6360_v27, 4 }
 0x42b   : > { %v5976_v58 = vpop.f32.mrf.mxu3  ;;  %v6968_v46 = vunpack.c.l.b16 %v6926_v14  ;;  %v8624_v5 = vrot.slane %v8612_v10, 9 }
 0x42c   : > { %v5756_v11 = vadd.f32 %v5726_v18, %v5378_v47  ;;  %v6450_v18 = vunpack.c.l.b16 %v6342_v28  ;;  %v6923_v47 = vsel %vm9207_vm4, %v8623_v35, %v6922_v33  ;;  %v6371_v40 = vrot.slane %v6370_v52, 4 }
 0x42d   : > { %v6967_v15 = vunpack.c.l.b16 %v6923_v47  ;;  %v6366_v44 = vsel %vm9216_vm5, %v6361_v8, %v6365_v23  ;;  %v6931_v47 = vrot.slane %v6929_v36, 4 }
 0x42e   : > { %v11837_v31 = vadd.f32 %v5976_v58, %v5756_v11  ;;  %v6462_v34 = vpack.c.b16 %v6451_v25, %v6450_v18  ;;  %v6228_v58 = vld [vmem:[#allocation2 + $0x64] sm:$0xf]  ;;  %v6593_v11 = vld [vmem:[#allocation2 + $0x60] sm:$0xe] }
 0x42f   : > { %v6663_v55 = vrot.slane %v6228_v58, 5  ;;  %v8544_v12 = vrot.slane %v6593_v11, 9  ;;  %v6978_v60 = vpack.c.b16 %v6968_v46, %v6967_v15  ;;  %v6387_v18 = vshll.u32 %v6228_v58, 16 }
 0x430   : > { %7065 = vmatmul.bf16.gmra.mxu3 %v6977_v3  ;;  %v5731_v39 = vpop.f32.mrf.mxu2  ;;  %v6227_v3 = vld [vmem:[#allocation2 + $0x60] sm:$0xf]  ;;  %v6391_v35 = vshrl.u32 %v6228_v58, 16  ;;  %v4939_v15 = vadd.f32 %v11686_v37, %v11688_v57 }
 0x431   : > { %v5351_v59 = vpop.f32.mrf.mxu1  ;;  %v6378_v20 = vshrl.u32 %v6227_v3, 16  ;;  %v6381_v6 = vshll.u32 %v6227_v3, 16  ;;  %v6389_v52 = vrot.slane %v6387_v18, 5  ;;  %v6231_v3 = vld [vmem:[#allocation2 + $0x70] sm:$0xf] }
 0x432   : > { %v5379_v22 = vadd.f32 %v5351_v59, %v11632_v29  ;;  %v6665_v59 = vrot.slane %v6663_v55, 4  ;;  %v6393_v7 = vrot.slane %v6391_v35, 4  ;;  %v6670_v30 = vrot.slane %v6231_v3, 5  ;;  %v6230_v35 = vld [vmem:[#allocation2 + $0x6c] sm:$0xf] }
 0x433   : > { %v5979_v41 = vpop.f32.mrf.mxu3  ;;  %v6383_v27 = vrot.slane %v6381_v6, 5  ;;  %v5188_v37 = vadd.f32 %v11700_v54, %v4939_v15  ;;  %v6411_v54 = vshll.u32 %v6231_v3, 16 }
 0x434   : > { %v5757_v26 = vadd.f32 %v5729_v16, %v5379_v22  ;;  %6550 = vmatmul.bf16.gmra.mxu1 %v6462_v34  ;;  %v5186_v16 = vadd.f32 %v11660_v9, %v4934_v50  ;;  %v6376_v9 = vsel %vm9216_vm5, %v6371_v40, %v6375_v53  ;;  %v8614_v22 = vld [vmem:[%s9164_s16 + $0x88] sm:$0x1]  ;;  %v6452_v34 = vunpack.c.l.b16 %v6366_v44 }
 0x435   : > { %6805 = vmatmul.bf16.gmra.mxu2 %v6713_v24  ;;  %v6453_v23 = vunpack.c.l.b16 %v6376_v9  ;;  %v6667_v1 = vsel %vm9207_vm4, %v6665_v59, %v6666_v48  ;;  %v6932_v14 = vrot.slane %v8614_v22, 5 }
 0x436   : > { %v11852_v29 = vadd.f32 %v5979_v41, %v5757_v26  ;;  %v6664_v41 = vsel %vm9207_vm4, %v8544_v12, %v6663_v55  ;;  %v6705_v58 = vunpack.c.l.b16 %v6667_v1 }
 0x437   : > { %v6463_v24 = vpack.c.b16 %v6453_v23, %v6452_v34  ;;  %v6704_v11 = vunpack.c.l.b16 %v6664_v41  ;;  %v6933_v53 = vsel %vm9207_vm4, %v6931_v47, %v6932_v14  ;;  %v6415_v23 = vshrl.u32 %v6231_v3, 16  ;;  %v8617_v47 = vld [vmem:[%s9164_s16 + $0x98] sm:$0x1] }
 0x438   : > { %v5734_v2 = vpop.f32.mrf.mxu2  ;;  %v6402_v14 = vshrl.u32 %v6230_v35, 16 }
 0x439   : > { %v5353_v28 = vpop.f32.mrf.mxu1  ;;  %v6714_v44 = vpack.c.b16 %v6705_v58, %v6704_v11  ;;  %v6417_v58 = vrot.slane %v6415_v23, 4 }
 0x43a   : > { %v5380_v33 = vadd.f32 %v5353_v28, %v5186_v16  ;;  %v6397_v16 = vshll.u32 %v6229_v62, 16  ;;  %v6930_v28 = vsel %vm9207_vm4, %v8624_v5, %v6929_v36  ;;  %v6672_v36 = vrot.slane %v6670_v30, 4  ;;  %v8615_v5 = vld [vmem:[%s9164_s16 + $0x90] sm:$0xe] }
 0x43b   : > { %v5981_v25 = vpop.f32.mrf.mxu3  ;;  %v6969_v57 = vunpack.c.l.b16 %v6930_v28 }
 0x43c   : > { %v5758_v42 = vadd.f32 %v5731_v39, %v5380_v33  ;;  %v6380_v39 = vrot.slane %v6378_v20, 4  ;;  %v6399_v62 = vrot.slane %v6397_v16, 5  ;;  %v6232_v20 = vld [vmem:[#allocation2 + $0x74] sm:$0x1]  ;;  %v8625_v16 = vrot.slane %v8615_v5, 9 }
 0x43d   : > { %v6673_v1 = vrot.slane %v6232_v20, 5 }
 0x43e   : > { %v11860_v49 = vadd.f32 %v5981_v25, %v5758_v42  ;;  %v6384_v55 = vor.u32 %v6383_v27, %v6380_v39  ;;  %v6970_v25 = vunpack.c.l.b16 %v6933_v53  ;;  %v6594_v42 = vld [vmem:[#allocation2 + $0x6c] sm:$0xe] }
 0x440   : > { %7070 = vmatmul.bf16.gmra.mxu3 %v6978_v60  ;;  %v5736_v40 = vpop.f32.mrf.mxu2  ;;  %v6385_v9 = vrot.slane %v6384_v55, 4  ;;  %v8616_v60 = vld [vmem:[%s9164_s16 + $0x94] sm:$0xf]  ;;  %v6979_v22 = vpack.c.b16 %v6970_v25, %v6969_v57  ;;  %s7261_s16 = sshll.u32 %s12141_s14, 1 }
 0x441   : > { %v5356_v26 = vpop.f32.mrf.mxu1  ;;  %v6936_v41 = vrot.slane %v8616_v60, 5  ;;  %s273_s12 = sadd.s32 %s7262_s11, %s7261_s16 }
 0x442   : > { %v5381_v50 = vadd.f32 %v5356_v26, %v11677_v61  ;;  %v6394_v61 = vor.u32 %v6393_v7, %v6389_v52  ;;  %v6390_v34 = vsel %vm9216_vm5, %v6385_v9, %v6389_v52  ;;  %v8545_v26 = vrot.slane %v6594_v42, 9  ;;  %s7263_s17 = sshll.u32 %s273_s12, 3 }
 0x443   : > { %v5984_v8 = vpop.f32.mrf.mxu3  ;;  %v6674_v7 = vsel %vm9207_vm4, %v6672_v36, %v6673_v1  ;;  %v6938_v15 = vrot.slane %v6936_v41, 4  ;;  %v6421_v9 = vshll.u32 %v6232_v20, 16  ;;  %s11925_s18 = scalar_lea.vmem %s11993_s6, %s7263_s17 }
 0x444   : > { %v5759_v46 = vadd.f32 %v5734_v2, %v5381_v50  ;;  %6555 = vmatmul.bf16.gmra.mxu1 %v6463_v24  ;;  %v6395_v12 = vrot.slane %v6394_v61, 4  ;;  %v6405_v50 = vshll.u32 %v6230_v35, 16  ;;  %v6413_v24 = vrot.slane %v6411_v54, 5 }
 0x445   : > { %6810 = vmatmul.bf16.gmra.mxu2 %v6714_v44  ;;  %v6671_v52 = vsel %vm9207_vm4, %v8545_v26, %v6670_v30  ;;  %v6707_v28 = vunpack.c.l.b16 %v6674_v7  ;;  %v6404_v61 = vrot.slane %v6402_v14, 4  ;;  %v6423_v36 = vrot.slane %v6421_v9, 5 }
 0x446   : > { %v11875_v33 = vadd.f32 %v5984_v8, %v5759_v46  ;;  %v6400_v59 = vsel %vm9216_vm5, %v6395_v12, %v6399_v62  ;;  %v6454_v8 = vunpack.c.l.b16 %v6390_v34  ;;  %v6939_v46 = vrot.slane %v8617_v47, 5 }
 0x447   : > { %v6455_v27 = vunpack.c.l.b16 %v6400_v59  ;;  %v6407_v44 = vrot.slane %v6405_v50, 5  ;;  %v6418_v62 = vor.u32 %v6417_v58, %v6413_v24  ;;  %v6706_v25 = vunpack.c.l.b16 %v6671_v52 }
 0x448   : > { %v5739_v18 = vpop.f32.mrf.mxu2  ;;  %v6940_v30 = vsel %vm9207_vm4, %v6938_v15, %v6939_v46 }
 0x449   : > { %v5358_v2 = vpop.f32.mrf.mxu1  ;;  %v6464_v3 = vpack.c.b16 %v6455_v27, %v6454_v8  ;;  %v6419_v42 = vrot.slane %v6418_v62, 4 }
 0x44a   : > { %v5382_v48 = vadd.f32 %v5358_v2, %v5188_v37  ;;  %v6153_v37 = vpop.f32.mrf.mxu0  ;;  %v6937_v2 = vsel %vm9207_vm4, %v8625_v16, %v6936_v41 }
 0x44b   : > { %v5986_v6 = vpop.f32.mrf.mxu3  ;;  %v6971_v60 = vunpack.c.l.b16 %v6937_v2  ;;  %v6424_v43 = vsel %vm9216_vm5, %v6419_v42, %v6423_v36 }
 0x44c   : > { %v5760_v10 = vadd.f32 %v5736_v40, %v5382_v48  ;;  %v6408_v48 = vor.u32 %v6407_v44, %v6404_v61  ;;  %v6457_v41 = vunpack.c.l.b16 %v6424_v43 }
 0x44e   : > { %v11883_v39 = vadd.f32 %v5986_v6, %v5760_v10  ;;  %v6972_v6 = vunpack.c.l.b16 %v6940_v30  ;;  %v6409_v23 = vrot.slane %v6408_v48, 4 }
 0x450   : > { %7075 = vmatmul.bf16.gmra.mxu3 %v6979_v22  ;;  %v5741_v55 = vpop.f32.mrf.mxu2  ;;  %v6980_v20 = vpack.c.b16 %v6972_v6, %v6971_v60  ;;  %v6414_v22 = vsel %vm9216_vm5, %v6409_v23, %v6413_v24 }
 0x451   : > { %v5361_v40 = vpop.f32.mrf.mxu1  ;;  %v6456_v27 = vunpack.c.l.b16 %v6414_v22 }
 0x452   : > { %v5383_v11 = vadd.f32 %v5361_v40, %v11714_v56  ;;  %v6715_v56 = vpack.c.b16 %v6707_v28, %v6706_v25  ;;  %v6155_v34 = vpop.f32.mrf.mxu0 }
 0x453   : > { %v5989_v53 = vpop.f32.mrf.mxu3  ;;  %v6465_v5 = vpack.c.b16 %v6457_v41, %v6456_v27 }
 0x454   : > { %v5761_v57 = vadd.f32 %v5739_v18, %v5383_v11  ;;  %6560 = vmatmul.bf16.gmra.mxu1 %v6464_v3 }
 0x455   : > { %6815 = vmatmul.bf16.gmra.mxu2 %v6715_v56 }
 0x456   : > { %v11896_v12 = vadd.f32 %v5989_v53, %v5761_v57 }
 0x458   : > { %v5744_v54 = vpop.f32.mrf.mxu2 }
 0x459   : > { %v5363_v59 = vpop.f32.mrf.mxu1 }
 0x45a   : > { %v5384_v18 = vadd.f32 %v5363_v59, %v11721_v51  ;;  %v6158_v45 = vpop.f32.mrf.mxu0 }
 0x45b   : > { %v5991_v35 = vpop.f32.mrf.mxu3 }
 0x45c   : > { %v5762_v10 = vadd.f32 %v5741_v55, %v5384_v18 }
 0x45e   : > { %v11903_v1 = vadd.f32 %v5991_v35, %v5762_v10 }
 0x460   : > { %7080 = vmatmul.bf16.gmra.mxu3 %v6980_v20  ;;  %v5746_v14 = vpop.f32.mrf.mxu2 }
 0x461   : > { %v5366_v51 = vpop.f32.mrf.mxu1 }
 0x462   : > { %v5385_v26 = vadd.f32 %v5366_v51, %v11734_v38  ;;  %v6193_v38 = vadd.f32 %v6153_v37, %v11760_v32  ;;  %v6160_v46 = vpop.f32.mrf.mxu0  ;;  %v6194_v32 = vadd.f32 %v6155_v34, %v11768_v13  ;;  %v6195_v13 = vadd.f32 %v6158_v45, %v11783_v19 }
 0x463   : > { %v5994_v47 = vpop.f32.mrf.mxu3  ;;  %v6196_v23 = vadd.f32 %v6160_v46, %v11791_v4 }
 0x464   : > { %v5763_v7 = vadd.f32 %v5744_v54, %v5385_v26  ;;  %6565 = vmatmul.bf16.gmra.mxu1 %v6465_v5 }
 0x466   : > { %v11906_v50 = vadd.f32 %v5994_v47, %v5763_v7 }
 0x468   : > { %v6781_v40 = vpop.f32.mrf.mxu2 }
 0x469   : > { %v5368_v24 = vpop.f32.mrf.mxu1 }
 0x46a   : > { %v5386_v58 = vadd.f32 %v5368_v24, %v11743_v17  ;;  %v11918_v17 = vld [vmem:[%s11991_s4] ss:$0 sm:$0xff]  ;;  %v6163_v2 = vpop.f32.mrf.mxu0 }
 0x46b   : > { %v5996_v8 = vpop.f32.mrf.mxu3  ;;  %v6197_v26 = vadd.f32 %v6163_v2, %v11806_v0 }
 0x46c   : > { %v5764_v52 = vadd.f32 %v5746_v14, %v5386_v58 }
 0x46e   : > { %v11911_v16 = vadd.f32 %v5996_v8, %v5764_v52 }
 0x470   : > { %v6783_v28 = vpop.f32.mrf.mxu2 }
 0x471   : > { %v6531_v15 = vpop.f32.mrf.mxu1 }
 0x472   : > { %v6571_v11 = vadd.f32 %v6531_v15, %v6193_v38  ;;  %v6165_v18 = vpop.f32.mrf.mxu0 }
 0x473   : > { %v7046_v3 = vpop.f32.mrf.mxu3  ;;  %v6198_v8 = vadd.f32 %v6165_v18, %v11814_v21 }
 0x474   : > { %v6821_v53 = vadd.f32 %v6781_v40, %v6571_v11 }
 0x476   : > { %v7086_v55 = vadd.f32 %v7046_v3, %v6821_v53 }
 0x478   : > { %v7106_v61 = vadd.f32 %v11918_v17, %v7086_v55  ;;  %v6786_v25 = vpop.f32.mrf.mxu2 }
 0x479   : > { %v6533_v44 = vpop.f32.mrf.mxu1 }
 0x47a   : > { %v7122_v62 = vmax.f32 %v7106_v61, 0.0  ;;  %v6572_v37 = vadd.f32 %v6533_v44, %v6194_v32  ;;  %v6168_v27 = vpop.f32.mrf.mxu0 }
 0x47b   : > { %v7048_v57 = vpop.f32.mrf.mxu3  ;;  %v6199_v53 = vadd.f32 %v6168_v27, %v11829_v63 }
 0x47c   : > { %7138 = vst [vmem:[%s11925_s18] sm:$0xff] %v7122_v62  ;;  %v6822_v30 = vadd.f32 %v6783_v28, %v6572_v37 }
 0x47e   : > { %v7087_v9 = vadd.f32 %v7048_v57, %v6822_v30 }
 0x480   : > { %v7107_v56 = vadd.f32 %v11918_v17, %v7087_v9  ;;  %v6788_v59 = vpop.f32.mrf.mxu2 }
 0x481   : > { %v6536_v48 = vpop.f32.mrf.mxu1 }
 0x482   : > { %v7123_v42 = vmax.f32 %v7107_v56, 0.0  ;;  %v6573_v60 = vadd.f32 %v6536_v48, %v6195_v13  ;;  %v6170_v52 = vpop.f32.mrf.mxu0 }
 0x483   : > { %v7051_v6 = vpop.f32.mrf.mxu3  ;;  %v6200_v2 = vadd.f32 %v6170_v52, %v11837_v31 }
 0x484   : > { %7139 = vst [vmem:[%s11925_s18 + $0x8] sm:$0xff] %v7123_v42  ;;  %v6823_v36 = vadd.f32 %v6786_v25, %v6573_v60 }
 0x486   : > { %v7088_v35 = vadd.f32 %v7051_v6, %v6823_v36 }
 0x488   : > { %v7108_v54 = vadd.f32 %v11918_v17, %v7088_v35  ;;  %v6791_v19 = vpop.f32.mrf.mxu2 }
 0x489   : > { %v6538_v43 = vpop.f32.mrf.mxu1 }
 0x48a   : > { %v7124_v10 = vmax.f32 %v7108_v54, 0.0  ;;  %v6574_v20 = vadd.f32 %v6538_v43, %v6196_v23  ;;  %v6173_v37 = vpop.f32.mrf.mxu0 }
 0x48b   : > { %v7053_v22 = vpop.f32.mrf.mxu3 }
 0x48c   : > { %7140 = vst [vmem:[%s11925_s18 + $0x10] sm:$0xff] %v7124_v10  ;;  %v6824_v34 = vadd.f32 %v6788_v59, %v6574_v20  ;;  %v6201_v59 = vadd.f32 %v6173_v37, %v11852_v29 }
 0x48e   : > { %v7089_v41 = vadd.f32 %v7053_v22, %v6824_v34 }
 0x490   : > { %v7109_v51 = vadd.f32 %v11918_v17, %v7089_v41  ;;  %v6793_v4 = vpop.f32.mrf.mxu2 }
 0x491   : > { %v6541_v5 = vpop.f32.mrf.mxu1 }
 0x492   : > { %v7125_v47 = vmax.f32 %v7109_v51, 0.0  ;;  %v6575_v14 = vadd.f32 %v6541_v5, %v6197_v26  ;;  %v6175_v60 = vpop.f32.mrf.mxu0 }
 0x493   : > { %v7056_v7 = vpop.f32.mrf.mxu3  ;;  %v6202_v22 = vadd.f32 %v6175_v60, %v11860_v49 }
 0x494   : > { %7141 = vst [vmem:[%s11925_s18 + $0x18] sm:$0xff] %v7125_v47  ;;  %v6825_v45 = vadd.f32 %v6791_v19, %v6575_v14 }
 0x496   : > { %v7090_v24 = vadd.f32 %v7056_v7, %v6825_v45 }
 0x498   : > { %v7110_v58 = vadd.f32 %v11918_v17, %v7090_v24  ;;  %v6796_v0 = vpop.f32.mrf.mxu2 }
 0x499   : > { %v6543_v40 = vpop.f32.mrf.mxu1 }
 0x49a   : > { %v7126_v38 = vmax.f32 %v7110_v58, 0.0  ;;  %v6576_v15 = vadd.f32 %v6543_v40, %v6198_v8  ;;  %v6178_v10 = vpop.f32.mrf.mxu0 }
 0x49b   : > { %v7058_v46 = vpop.f32.mrf.mxu3  ;;  %v6203_v47 = vadd.f32 %v6178_v10, %v11875_v33 }
 0x49c   : > { %7142 = vst [vmem:[%s11925_s18 + $0x20] sm:$0xff] %v7126_v38  ;;  %v6826_v11 = vadd.f32 %v6793_v4, %v6576_v15 }
 0x49e   : > { %v7091_v3 = vadd.f32 %v7058_v46, %v6826_v11 }
 0x4a0   : > { %v7111_v28 = vadd.f32 %v11918_v17, %v7091_v3  ;;  %v6798_v21 = vpop.f32.mrf.mxu2 }
 0x4a1   : > { %v6546_v55 = vpop.f32.mrf.mxu1 }
 0x4a2   : > { %v7127_v61 = vmax.f32 %v7111_v28, 0.0  ;;  %v6577_v32 = vadd.f32 %v6546_v55, %v6199_v53  ;;  %v6180_v14 = vpop.f32.mrf.mxu0 }
 0x4a3   : > { %v7061_v44 = vpop.f32.mrf.mxu3  ;;  %v6204_v52 = vadd.f32 %v6180_v14, %v11883_v39 }
 0x4a4   : > { %7143 = vst [vmem:[%s11925_s18 + $0x28] sm:$0xff] %v7127_v61  ;;  %v6827_v62 = vadd.f32 %v6796_v0, %v6577_v32 }
 0x4a6   : > { %v7092_v57 = vadd.f32 %v7061_v44, %v6827_v62 }
 0x4a8   : > { %v7112_v25 = vadd.f32 %v11918_v17, %v7092_v57  ;;  %v6801_v63 = vpop.f32.mrf.mxu2 }
 0x4a9   : > { %v6548_v30 = vpop.f32.mrf.mxu1 }
 0x4aa   : > { %v7128_v9 = vmax.f32 %v7112_v25, 0.0  ;;  %v6578_v56 = vadd.f32 %v6548_v30, %v6200_v2  ;;  %v6183_v0 = vpop.f32.mrf.mxu0 }
 0x4ab   : > { %v7063_v13 = vpop.f32.mrf.mxu3  ;;  %v6205_v55 = vadd.f32 %v6183_v0, %v11896_v12 }
 0x4ac   : > { %7144 = vst [vmem:[%s11925_s18 + $0x30] sm:$0xff] %v7128_v9  ;;  %v6828_v48 = vadd.f32 %v6798_v21, %v6578_v56 }
 0x4ae   : > { %v7093_v42 = vadd.f32 %v7063_v13, %v6828_v48 }
 0x4b0   : > { %v7113_v6 = vadd.f32 %v11918_v17, %v7093_v42  ;;  %v6803_v31 = vpop.f32.mrf.mxu2 }
 0x4b1   : > { %v6551_v36 = vpop.f32.mrf.mxu1 }
 0x4b2   : > { %v7129_v18 = vmax.f32 %v7113_v6, 0.0  ;;  %v6579_v35 = vadd.f32 %v6551_v36, %v6201_v59  ;;  %v6185_v62 = vpop.f32.mrf.mxu0 }
 0x4b3   : > { %v7066_v54 = vpop.f32.mrf.mxu3  ;;  %v6206_v2 = vadd.f32 %v6185_v62, %v11903_v1 }
 0x4b4   : > { %7145 = vst [vmem:[%s11925_s18 + $0x38] sm:$0xff] %v7129_v18  ;;  %v6829_v23 = vadd.f32 %v6801_v63, %v6579_v35 }
 0x4b6   : > { %v7094_v43 = vadd.f32 %v7066_v54, %v6829_v23 }
 0x4b8   : > { %v7114_v20 = vadd.f32 %v11918_v17, %v7094_v43  ;;  %v6806_v29 = vpop.f32.mrf.mxu2 }
 0x4b9   : > { %v6553_v19 = vpop.f32.mrf.mxu1 }
 0x4ba   : > { %v7130_v34 = vmax.f32 %v7114_v20, 0.0  ;;  %v6580_v41 = vadd.f32 %v6553_v19, %v6202_v22  ;;  %v6188_v63 = vpop.f32.mrf.mxu0 }
 0x4bb   : > { %v7068_v27 = vpop.f32.mrf.mxu3  ;;  %v6207_v60 = vadd.f32 %v6188_v63, %v11906_v50 }
 0x4bc   : > { %7146 = vst [vmem:[%s11925_s18 + $0x40] sm:$0xff] %v7130_v34  ;;  %v6830_v51 = vadd.f32 %v6803_v31, %v6580_v41 }
 0x4be   : > { %v7095_v26 = vadd.f32 %v7068_v27, %v6830_v51 }
 0x4c0   : > { %v7115_v5 = vadd.f32 %v11918_v17, %v7095_v26  ;;  %v6808_v49 = vpop.f32.mrf.mxu2 }
 0x4c1   : > { %v6556_v7 = vpop.f32.mrf.mxu1 }
 0x4c2   : > { %v7131_v4 = vmax.f32 %v7115_v5, 0.0  ;;  %v6581_v45 = vadd.f32 %v6556_v7, %v6203_v47  ;;  %v6190_v31 = vpop.f32.mrf.mxu0 }
 0x4c3   : > { %v7071_v24 = vpop.f32.mrf.mxu3  ;;  %v6208_v43 = vadd.f32 %v6190_v31, %v11911_v16 }
 0x4c4   : > { %7147 = vst [vmem:[%s11925_s18 + $0x48] sm:$0xff] %v7131_v4  ;;  %v6831_v58 = vadd.f32 %v6806_v29, %v6581_v45 }
 0x4c6   : > { %v7096_v8 = vadd.f32 %v7071_v24, %v6831_v58 }
 0x4c8   : > { %v7116_v40 = vadd.f32 %v11918_v17, %v7096_v8  ;;  %v6811_v3 = vpop.f32.mrf.mxu2 }
 0x4c9   : > { %v6558_v38 = vpop.f32.mrf.mxu1 }
 0x4ca   : > { %v7132_v15 = vmax.f32 %v7116_v40, 0.0  ;;  %v6582_v46 = vadd.f32 %v6558_v38, %v6204_v52 }
 0x4cb   : > { %v7073_v33 = vpop.f32.mrf.mxu3 }
 0x4cc   : > { %7148 = vst [vmem:[%s11925_s18 + $0x50] sm:$0xff] %v7132_v15  ;;  %v6832_v11 = vadd.f32 %v6808_v49, %v6582_v46 }
 0x4ce   : > { %v7097_v28 = vadd.f32 %v7073_v33, %v6832_v11 }
 0x4d0   : > { %v7117_v53 = vadd.f32 %v11918_v17, %v7097_v28  ;;  %v6813_v57 = vpop.f32.mrf.mxu2 }
 0x4d1   : > { %v6561_v61 = vpop.f32.mrf.mxu1 }
 0x4d2   : > { %v7133_v32 = vmax.f32 %v7117_v53, 0.0  ;;  %v6583_v44 = vadd.f32 %v6561_v61, %v6205_v55 }
 0x4d3   : > { %v7076_v21 = vpop.f32.mrf.mxu3 }
 0x4d4   : > { %7149 = vst [vmem:[%s11925_s18 + $0x58] sm:$0xff] %v7133_v32  ;;  %v6833_v39 = vadd.f32 %v6811_v3, %v6583_v44 }
 0x4d6   : > { %v7098_v37 = vadd.f32 %v7076_v21, %v6833_v39 }
 0x4d8   : > { %v7118_v25 = vadd.f32 %v11918_v17, %v7098_v37  ;;  %v6816_v6 = vpop.f32.mrf.mxu2 }
 0x4d9   : > { %v6563_v30 = vpop.f32.mrf.mxu1 }
 0x4da   : > { %v7134_v9 = vmax.f32 %v7118_v25, 0.0  ;;  %v6584_v56 = vadd.f32 %v6563_v30, %v6206_v2 }
 0x4db   : > { %v7078_v13 = vpop.f32.mrf.mxu3 }
 0x4dc   : > { %7150 = vst [vmem:[%s11925_s18 + $0x60] sm:$0xff] %v7134_v9  ;;  %v6834_v12 = vadd.f32 %v6813_v57, %v6584_v56 }
 0x4de   : > { %v7099_v48 = vadd.f32 %v7078_v13, %v6834_v12 }
 0x4e0   : > { %v7119_v42 = vadd.f32 %v11918_v17, %v7099_v48  ;;  %v6818_v19 = vpop.f32.mrf.mxu2 }
 0x4e1   : > { %v6566_v59 = vpop.f32.mrf.mxu1 }
 0x4e2   : > { %v7135_v36 = vmax.f32 %v7119_v42, 0.0  ;;  %v6585_v18 = vadd.f32 %v6566_v59, %v6207_v60 }
 0x4e3   : > { %v7081_v35 = vpop.f32.mrf.mxu3 }
 0x4e4   : > { %7151 = vst [vmem:[%s11925_s18 + $0x68] sm:$0xff] %v7135_v36  ;;  %v6835_v1 = vadd.f32 %v6816_v6, %v6585_v18 }
 0x4e6   : > { %v7100_v54 = vadd.f32 %v7081_v35, %v6835_v1 }
 0x4e8   : > { %v7120_v23 = vadd.f32 %v11918_v17, %v7100_v54 }
 0x4e9   : > { %v6568_v10 = vpop.f32.mrf.mxu1 }
 0x4ea   : > { %v7136_v20 = vmax.f32 %v7120_v23, 0.0  ;;  %v6586_v22 = vadd.f32 %v6568_v10, %v6208_v43 }
 0x4eb   : > { %v7083_v34 = vpop.f32.mrf.mxu3 }
 0x4ec   : > { %7152 = vst [vmem:[%s11925_s18 + $0x70] sm:$0xff] %v7136_v20  ;;  %v6836_v50 = vadd.f32 %v6818_v19, %v6586_v22 }
 0x4ee   : > { %v7101_v41 = vadd.f32 %v7083_v34, %v6836_v50 }
 0x4f0   : > { %v7121_v27 = vadd.f32 %v11918_v17, %v7101_v41 }
 0x4f2   : > { %v7137_v29 = vmax.f32 %v7121_v27, 0.0 }
 0x4f4   : > { %7153 = vst [vmem:[%s11925_s18 + $0x78] sm:$0xff] %v7137_v29 }
 0x4f5 PF: > { %s16_s25 = sadd.s32 1, %s9052_s25   ;;  %s12128_s21 = smov %s9044_s23 }
 0x4f6   : > { %p13_p13 = scmp.ge.s32.totalorder %s16_s25, 6   ;;  %s12129_s22 = smov %s9048_s24 }
 0x4f7   : > { %s12130_s23 = smov %s12133_s26  ;;  %s12131_s24 = smov %s12137_s27 }
 0x4f8   :  { %15 = sbr.rel (!%p13_p13) target bundleno = 3 (0x3), region = 102 }

</bundles_post_ra>
